<compile_context>
chip_gen: v7x
topology: tpu7x:2x2x1
jax: 0.10.0
libtpu: 0.0.40
codegen_flags: <defaults>
</compile_context>

<pallas_src>
import functools
import math

import jax
import jax.numpy as jnp
from jax.experimental import pallas as pl
from jax.experimental.pallas import tpu as pltpu

EPS = 1e-5


# ---------------------------------------------------------------------------
# helpers
# ---------------------------------------------------------------------------
def _round_up(x, m):
    return ((x + m - 1) // m) * m


def _largest_divisor_leq(n, cap):
    for d in range(min(n, cap), 0, -1):
        if n % d == 0:
            return d
    return 1


def _vmem_capacity():
    try:
        return int(pltpu.get_tpu_info().vmem_capacity_bytes)
    except Exception:
        return 64 << 20          # conservative (v7x-sized) fallback


def _mosaic_params(dims, est_bytes):
    cap = _vmem_capacity()
    limit = int(min(max(2 * est_bytes + (4 << 20), 32 << 20), int(0.8 * cap)))
    return pltpu.CompilerParams(dimension_semantics=dims,
                                vmem_limit_bytes=limit)


# ---------------------------------------------------------------------------
# (KH x 1) conv + bias as one GEMM (K = KH*Cin) per output row, with the
# producer's BN(+ReLU) fused into a one-shot bf16 staging pass and per-tile
# batch-statistic partials emitted for the consumer's BN.
# Layout: x (Hin, Cin, Lp) / out (Hout, Cout, Lp), Lp = padded N*W on lanes.
# ---------------------------------------------------------------------------
def _conv_kernel(x_ref, w_ref, b_ref, mi_ref, ri_ref, o_ref, ps_ref, xp_ref, *,
                 kh, stride, hin, cin, pad_top, th, lt, l_real, mask_stats,
                 normalize_in, relu_in):
    j = pl.program_id(0)          # lane-tile index        ("parallel")
    hb = pl.program_id(1)         # output-row-block index ("arbitrary")

    # ---- stage the whole (padded) input slab once per lane tile -----------
    @pl.when(hb == 0)
    def _stage():
        hp_rows = xp_ref.shape[0]                    # (pad_top+hin+pad_bot)*cin
        top = pad_top * cin
        bot_start = top + hin * cin
        if top > 0:
            xp_ref[0:top, :] = jnp.zeros((top, lt), jnp.bfloat16)
        if bot_start < hp_rows:
            xp_ref[bot_start:hp_rows, :] = jnp.zeros(
                (hp_rows - bot_start, lt), jnp.bfloat16)
        if normalize_in:
            mi = mi_ref[...]                         # (cin, 1)
            ri = ri_ref[...]
        for r in range(hin):                         # static unroll over rows
            xr = x_ref[r].astype(jnp.float32)        # (cin, lt)
            if normalize_in:
                xr = (xr - mi) * ri                  # fused BN of the producer
            if relu_in:
                xr = jnp.maximum(xr, 0.0)
            xp_ref[top + r * cin:top + (r + 1) * cin, :] = xr.astype(jnp.bfloat16)
        ps_ref[...] = jnp.zeros_like(ps_ref)         # per-tile stat partials

    # ---- one MXU GEMM (Cout, kh*cin) @ (kh*cin, lt) per output row --------
    w = w_ref[...]                                   # (Cout, kh*cin) bf16
    bias = b_ref[...]                                # (Cout, 1)      f32
    cout = w.shape[0]

    if mask_stats:
        lane = jax.lax.broadcasted_iota(jnp.int32, (1, lt), 1)
        lmask = ((j * lt + lane) < l_real).astype(jnp.float32)

    loc_s = jnp.zeros((cout, 1), jnp.float32)
    loc_q = jnp.zeros((cout, 1), jnp.float32)
    for t in range(th):                              # static unroll, th <= 8
        start = pl.multiple_of((hb * th + t) * stride * cin, cin)
        opnd = xp_ref[pl.ds(start, kh * cin), :]     # (kh*cin, lt) bf16
        res = jnp.dot(w, opnd, preferred_element_type=jnp.float32) + bias
        o_ref[t] = res.astype(o_ref.dtype)
        rm = res * lmask if mask_stats else res
        loc_s = loc_s + jnp.sum(rm, axis=1, keepdims=True)
        loc_q = loc_q + jnp.sum(rm * res, axis=1, keepdims=True)
    ps_ref[0] += jnp.concatenate([loc_s, loc_q], axis=1)   # (Cout, 2)


def conv_bn_stats(x, w_t, b, *, stride, pad_top, hout, l_real,
                  norm=None, relu_in=False, out_dtype=jnp.float32):
    """x: (Hin, Cin, Lp); w_t: (Cout, Cin, KH, 1) torch layout; b: (Cout,).

    Returns (out (hout, Cout, Lp) out_dtype,
             stats (Cout, 2) = [mean, rstd] of out over the real lane columns,
             i.e. train-mode BatchNorm batch statistics, biased variance).
    If `norm` (Cin, 2) is given, the input is normalised (and optionally
    ReLU'd) with it before the conv (fused BN of the producing layer).
    """
    hin, cin, lp = x.shape
    cout, cin_w, kh, kw = w_t.shape
    assert cin_w == cin and kw == 1 and lp % 128 == 0

    # pad the contraction channel axis to a bf16 sublane-tile multiple so the
    # dynamic scratch slices stay tile-aligned (zero channels are free).
    cin_p = _round_up(cin, 16)
    if cin_p != cin:
        x = jnp.pad(x, ((0, 0), (0, cin_p - cin), (0, 0)))
        w_t = jnp.pad(w_t, ((0, 0), (0, cin_p - cin), (0, 0), (0, 0)))

    # flat GEMM weight: [co, k*cin_p + ci] = w_t[co, ci, k, 0]
    w = jnp.transpose(w_t.reshape(cout, cin_p, kh), (0, 2, 1)).reshape(
        cout, kh * cin_p).astype(jnp.bfloat16)
    bias = b.reshape(cout, 1).astype(jnp.float32)

    if norm is None:
        mi = jnp.zeros((cin_p, 1), jnp.float32)
        ri = jnp.ones((cin_p, 1), jnp.float32)
        normalize_in = False
    else:
        mi = norm[:, 0:1]
        ri = norm[:, 1:2]
        if cin_p != cin:
            mi = jnp.pad(mi, ((0, cin_p - cin), (0, 0)))
            ri = jnp.pad(ri, ((0, cin_p - cin), (0, 0)))
        normalize_in = True

    pad_bot = max((hout - 1) * stride + kh - pad_top - hin, 0)
    hp = pad_top + hin + pad_bot

    th = _largest_divisor_leq(hout, 8)
    in_bytes = jnp.dtype(x.dtype).itemsize
    out_bytes = jnp.dtype(out_dtype).itemsize

    # lane-tile: largest 128-multiple divisor of Lp that fits the VMEM budget
    budget = int(0.4 * _vmem_capacity())
    nmax = lp // 128
    lt = 128
    for mult in range(1, min(nmax, 16) + 1):
        if nmax % mult:
            continue
        cand = 128 * mult
        need = (2 * hin * cin_p * cand * in_bytes       # input block (dbl buf)
                + hp * cin_p * cand * 2                 # staged bf16 scratch
                + 2 * th * cout * cand * out_bytes      # output block (dbl buf)
                + 2 * cout * kh * cin_p * 2 + (1 << 20))
        if need <= budget:
            lt = cand
    grid = (lp // lt, hout // th)
    est = (2 * hin * cin_p * lt * in_bytes + hp * cin_p * lt * 2
           + 2 * th * cout * lt * out_bytes + (1 << 20))

    kernel = functools.partial(
        _conv_kernel, kh=kh, stride=stride, hin=hin, cin=cin_p,
        pad_top=pad_top, th=th, lt=lt, l_real=l_real,
        mask_stats=(l_real != lp), normalize_in=normalize_in, relu_in=relu_in)

    out, partial = pl.pallas_call(
        kernel,
        out_shape=(jax.ShapeDtypeStruct((hout, cout, lp), out_dtype),
                   jax.ShapeDtypeStruct((grid[0], cout, 2), jnp.float32)),
        grid=grid,
        in_specs=[
            pl.BlockSpec((hin, cin_p, lt), lambda j, h: (0, 0, j)),
            pl.BlockSpec((cout, kh * cin_p), lambda j, h: (0, 0)),
            pl.BlockSpec((cout, 1), lambda j, h: (0, 0)),
            pl.BlockSpec((cin_p, 1), lambda j, h: (0, 0)),
            pl.BlockSpec((cin_p, 1), lambda j, h: (0, 0)),
        ],
        out_specs=(
            pl.BlockSpec((th, cout, lt), lambda j, h: (h, 0, j)),
            pl.BlockSpec((1, cout, 2), lambda j, h: (j, 0, 0)),
        ),
        scratch_shapes=[pltpu.VMEM((hp * cin_p, lt), jnp.bfloat16)],
        compiler_params=_mosaic_params(("parallel", "arbitrary"), est),
    )(x, w, bias, mi, ri)

    # finalize the batch statistics (tiny) in XLA.
    # TODO(synk): E[x^2]-E[x]^2 in f32 can lose precision on very large maps;
    # switch to a shifted / Welford reduction if that ever matters.
    s = jnp.sum(partial, axis=0)                      # (Cout, 2)
    count = float(hout * l_real)
    mean = s[:, 0:1] / count
    var = s[:, 1:2] / count - mean * mean
    rstd = jax.lax.rsqrt(jnp.maximum(var, 0.0) + EPS)
    return out, jnp.concatenate([mean, rstd], axis=1)


# ---------------------------------------------------------------------------
# Fused attention tail (per image, lane-dense (C, H*W) layout):
#   bn2 -> channel-attention gate -> y1 -> spatial (7,1) 'same' conv on the
#   channel mean/max maps -> sigmoid(sa)*y1 + shortcut(+BN) -> ReLU.
# ---------------------------------------------------------------------------
def _attn_kernel(o2_ref, m2_ref, r2_ref, w1_ref, b1_ref, w2_ref, b2_ref,
                 saw_ref, sab_ref, sc_ref, msc_ref, rsc_ref, out_ref, *,
                 w, kh_sa):
    hw = o2_ref.shape[2]
    # bn2 (train-mode batch statistics, affine=False)
    y = (o2_ref[0].astype(jnp.float32) - m2_ref[...]) * r2_ref[...]     # (C, HW)

    # --- channel attention: shared 1x1-conv MLP; ReLU applied after the full
    #     MLP and only on the avg branch, exactly as in the reference module.
    avg = jnp.mean(y, axis=1, keepdims=True)                            # (C, 1)
    mx = jnp.max(y, axis=1, keepdims=True)                              # (C, 1)
    v = jnp.concatenate([avg, mx], axis=1)                              # (C, 2)
    hmid = jnp.dot(w1_ref[...], v, preferred_element_type=jnp.float32) + b1_ref[...]
    o = jnp.dot(w2_ref[...], hmid, preferred_element_type=jnp.float32) + b2_ref[...]
    gate = jax.nn.sigmoid(jnp.maximum(o[:, 0:1], 0.0) + o[:, 1:2])      # (C, 1)
    y1 = gate * y                                                       # (C, HW)

    # --- spatial attention: (7,1) 'same' conv along H on the channel
    #     mean/max maps; done on the flat (1, H*W) vectors via static
    #     row-shifts (a shift of k*W along lanes == shift of k along H).
    cm = jnp.mean(y1, axis=0, keepdims=True)                            # (1, HW)
    cx = jnp.max(y1, axis=0, keepdims=True)                             # (1, HW)
    pad = (kh_sa - 1) // 2
    sa = jnp.zeros((1, hw), jnp.float32) + sab_ref[...]
    for k in range(kh_sa):
        s = (k - pad) * w
        if s == 0:
            cms, cxs = cm, cx
        elif s > 0:
            z = jnp.zeros((1, s), jnp.float32)
            cms = jnp.concatenate([cm[:, s:], z], axis=1)
            cxs = jnp.concatenate([cx[:, s:], z], axis=1)
        else:
            z = jnp.zeros((1, -s), jnp.float32)
            cms = jnp.concatenate([z, cm[:, :s]], axis=1)
            cxs = jnp.concatenate([z, cx[:, :s]], axis=1)
        sa = sa + saw_ref[0:1, k:k + 1] * cms + saw_ref[1:2, k:k + 1] * cxs
    sa = jax.nn.sigmoid(sa)                                             # (1, HW)

    # --- residual add (shortcut BN is identity 0/1 when no projection) -----
    sc = (sc_ref[0].astype(jnp.float32) - msc_ref[...]) * rsc_ref[...]
    out_ref[0] = jnp.maximum(sa * y1 + sc, 0.0)


def attention_residual(o2f, st2, caw1, cab1, caw2, cab2, saw, sab,
                       scf, msc, rsc, h, w):
    n, c, hw = o2f.shape
    ch = caw1.shape[0]
    est = (2 * c * hw * jnp.dtype(o2f.dtype).itemsize
           + 2 * c * hw * jnp.dtype(scf.dtype).itemsize
           + 2 * c * hw * 4 + (1 << 20))
    kernel = functools.partial(_attn_kernel, w=w, kh_sa=saw.shape[1])
    return pl.pallas_call(
        kernel,
        out_shape=jax.ShapeDtypeStruct((n, c, hw), jnp.float32),
        grid=(n,),
        in_specs=[
            pl.BlockSpec((1, c, hw), lambda i: (i, 0, 0)),
            pl.BlockSpec((c, 1), lambda i: (0, 0)),
            pl.BlockSpec((c, 1), lambda i: (0, 0)),
            pl.BlockSpec((ch, c), lambda i: (0, 0)),
            pl.BlockSpec((ch, 1), lambda i: (0, 0)),
            pl.BlockSpec((c, ch), lambda i: (0, 0)),
            pl.BlockSpec((c, 1), lambda i: (0, 0)),
            pl.BlockSpec((2, saw.shape[1]), lambda i: (0, 0)),
            pl.BlockSpec((1, 1), lambda i: (0, 0)),
            pl.BlockSpec((1, c, hw), lambda i: (i, 0, 0)),
            pl.BlockSpec((c, 1), lambda i: (0, 0)),
            pl.BlockSpec((c, 1), lambda i: (0, 0)),
        ],
        out_specs=pl.BlockSpec((1, c, hw), lambda i: (i, 0, 0)),
        compiler_params=_mosaic_params(("parallel",), est),
    )(o2f, st2[:, 0:1], st2[:, 1:2], caw1, cab1, caw2, cab2, saw, sab,
      scf, msc, rsc)


# ---------------------------------------------------------------------------
# BasicBlock forward (NCHW in / NCHW out)
# ---------------------------------------------------------------------------
def basic_block_forward(x, p, stride=1):
    N, Cin, H, W = x.shape
    Cout = p["conv1_w"].shape[0]

    # ---- conv1: Conv2dSame, kernel (7,1), stride (s,s) --------------------
    x1 = x[:, :, :, ::stride] if stride > 1 else x    # kernel width 1
    W1 = x1.shape[3]
    L = N * W1
    Lp = _round_up(L, 128)                            # lane-dense padding
    xT = jnp.transpose(x1, (2, 1, 0, 3)).reshape(H, Cin, L)
    if Lp != L:
        xT = jnp.pad(xT, ((0, 0), (0, 0), (0, Lp - L)))

    kh1 = p["conv1_w"].shape[2]
    pad_h = max((math.ceil(H / stride) - 1) * stride + kh1 - H, 0)
    H1 = (H + pad_h - kh1) // stride + 1
    o1, st1 = conv_bn_stats(xT, p["conv1_w"], p["conv1_b"], stride=stride,
                            pad_top=pad_h // 2, hout=H1, l_real=L,
                            out_dtype=jnp.bfloat16)

    # ---- conv2: kernel (3,1) 'same', stride 1; bn1+ReLU fused on its input
    kh2 = p["conv2_w"].shape[2]
    o2, st2 = conv_bn_stats(o1, p["conv2_w"], p["conv2_b"], stride=1,
                            pad_top=(kh2 - 1) // 2, hout=H1, l_real=L,
                            norm=st1, relu_in=True, out_dtype=jnp.bfloat16)

    # ---- shortcut ----------------------------------------------------------
    if stride != 1 or Cin != Cout:
        xs = x[:, :, ::stride, ::stride]
        Hs, Ws = xs.shape[2], xs.shape[3]
        Ls = N * Ws
        Lsp = _round_up(Ls, 128)
        xsT = jnp.transpose(xs, (2, 1, 0, 3)).reshape(Hs, Cin, Ls)
        if Lsp != Ls:
            xsT = jnp.pad(xsT, ((0, 0), (0, 0), (0, Lsp - Ls)))
        scraw, stsc = conv_bn_stats(xsT, p["sc_w"], p["sc_b"], stride=1,
                                    pad_top=0, hout=Hs, l_real=Ls,
                                    out_dtype=jnp.float32)
        sc_flat = jnp.transpose(
            scraw[:, :, :Ls].reshape(Hs, Cout, N, Ws),
            (2, 1, 0, 3)).reshape(N, Cout, Hs * Ws)
        msc = stsc[:, 0:1]
        rsc = stsc[:, 1:2]
    else:
        sc_flat = x.reshape(N, Cout, H * W).astype(jnp.float32)
        msc = jnp.zeros((Cout, 1), jnp.float32)
        rsc = jnp.ones((Cout, 1), jnp.float32)

    # ---- fused attention tail + residual (lane-dense N, C, H*W layout) ----
    # TODO(synk): this transpose back to a per-image layout is the one
    # remaining XLA-side data movement; the module's output must be NCHW.
    o2f = jnp.transpose(o2[:, :, :L].reshape(H1, Cout, N, W1),
                        (2, 1, 0, 3)).reshape(N, Cout, H1 * W1)
    Ch = p["ca_w1"].shape[0]
    out_flat = attention_residual(
        o2f, st2,
        p["ca_w1"].reshape(Ch, Cout), p["ca_b1"].reshape(Ch, 1),
        p["ca_w2"].reshape(Cout, Ch), p["ca_b2"].reshape(Cout, 1),
        p["sa_w"].reshape(2, p["sa_w"].shape[2]), p["sa_b"].reshape(1, 1),
        sc_flat, msc, rsc, H1, W1)
    return out_flat.reshape(N, Cout, H1, W1)


# ---------------------------------------------------------------------------
if __name__ == "__main__":
    N, Cin, H, W = 2, 16, 16, 16
    Cout, stride = 32, 1
    Ch = max(Cout // 16, 1)       # ChannelAttention hidden width (ratio=16)

    keys = jax.random.split(jax.random.PRNGKey(0), 13)

    def init(k, shape, scale=0.1):
        return scale * jax.random.normal(k, shape, jnp.float32)

    params = {
        "conv1_w": init(keys[0], (Cout, Cin, 7, 1)),
        "conv1_b": init(keys[1], (Cout,)),
        "conv2_w": init(keys[2], (Cout, Cout, 3, 1)),
        "conv2_b": init(keys[3], (Cout,)),
        "ca_w1":   init(keys[4], (Ch, Cout, 1, 1)),
        "ca_b1":   init(keys[5], (Ch,)),
        "ca_w2":   init(keys[6], (Cout, Ch, 1, 1)),
        "ca_b2":   init(keys[7], (Cout,)),
        "sa_w":    init(keys[8], (1, 2, 7, 1)),
        "sa_b":    init(keys[9], (1,)),
        "sc_w":    init(keys[10], (Cout, Cin, 1, 1)),
        "sc_b":    init(keys[11], (Cout,)),
    }
    x = jax.random.normal(keys[12], (N, Cin, H, W), jnp.float32)

    fwd = jax.jit(functools.partial(basic_block_forward, stride=stride))
    out = jax.block_until_ready(fwd(x, params))
    assert out.shape == (N, Cout, H, W), out.shape
    assert bool(jnp.all(jnp.isfinite(out)))
    print("KERNEL_OK")
</pallas_src>

<mosaic_0001>
module attributes {stable_mosaic.version = 11 : i64} {
  func.func @_conv_kernel(%arg0: i32, %arg1: i32, %arg2: memref<16x16x128xf32, #tpu.memory_space<vmem>>, %arg3: memref<32x112xbf16, #tpu.memory_space<vmem>>, %arg4: memref<32x1xf32, #tpu.memory_space<vmem>>, %arg5: memref<16x1xf32, #tpu.memory_space<vmem>>, %arg6: memref<16x1xf32, #tpu.memory_space<vmem>>, %arg7: memref<8x32x128xbf16, #tpu.memory_space<vmem>>, %arg8: memref<1x32x2xf32, #tpu.memory_space<vmem>>, %arg9: memref<352x128xbf16, #tpu.memory_space<vmem>>) attributes {dimension_semantics = [#tpu.dimension_semantics<parallel>, #tpu.dimension_semantics<arbitrary>], iteration_bounds = array<i64: 1, 2>, scalar_prefetch = 0 : i64, scratch_operands = 1 : i64, tpu.core_type = #tpu.core_type<tc>, window_params = [{transform_indices = @transform_0, window_bounds = array<i64: 16, 16, 128>}, {pipeline_mode = #tpu.pipeline_mode<synchronous>, transform_indices = @transform_1, window_bounds = array<i64: 32, 112>}, {pipeline_mode = #tpu.pipeline_mode<synchronous>, transform_indices = @transform_2, window_bounds = array<i64: 32, 1>}, {pipeline_mode = #tpu.pipeline_mode<synchronous>, transform_indices = @transform_3, window_bounds = array<i64: 16, 1>}, {pipeline_mode = #tpu.pipeline_mode<synchronous>, transform_indices = @transform_4, window_bounds = array<i64: 16, 1>}, {transform_indices = @transform_5, window_bounds = array<i64: 8, 32, 128>}, {transform_indices = @transform_6, window_bounds = array<i64: 1, 32, 2>}]} {
    %c0_i32 = arith.constant 0 : i32
    %0 = arith.cmpi eq, %arg1, %c0_i32 : i32
    %1 = arith.extui %0 : i1 to i32
    %c0_i32_0 = arith.constant 0 : i32
    %2 = arith.cmpi ne, %1, %c0_i32_0 : i32
    scf.if %2 {
      %cst_83 = arith.constant 0.000000e+00 : bf16
      %206 = vector.broadcast %cst_83 : bf16 to vector<48x128xbf16>
      %c0_84 = arith.constant 0 : index
      %c0_85 = arith.constant 0 : index
      %207 = vector.load %arg9[%c0_84, %c0_85] : memref<352x128xbf16, #tpu.memory_space<vmem>>, vector<48x128xbf16>
      tpu.vector_store %arg9[%c0_84, %c0_85], %206 {strides = array<i32>} : memref<352x128xbf16, #tpu.memory_space<vmem>>, vector<48x128xbf16>,
      %cst_86 = arith.constant 0.000000e+00 : bf16
      %208 = vector.broadcast %cst_86 : bf16 to vector<48x128xbf16>
      %c304 = arith.constant 304 : index
      %c0_87 = arith.constant 0 : index
      %209 = vector.load %arg9[%c304, %c0_87] : memref<352x128xbf16, #tpu.memory_space<vmem>>, vector<48x128xbf16>
      tpu.vector_store %arg9[%c304, %c0_87], %208 {strides = array<i32>} : memref<352x128xbf16, #tpu.memory_space<vmem>>, vector<48x128xbf16>,
      %c0_88 = arith.constant 0 : index
      %c0_89 = arith.constant 0 : index
      %c0_90 = arith.constant 0 : index
      %210 = vector.load %arg2[%c0_88, %c0_89, %c0_90] : memref<16x16x128xf32, #tpu.memory_space<vmem>>, vector<1x16x128xf32>
      %211 = vector.shape_cast %210 : vector<1x16x128xf32> to vector<16x128xf32>
      %212 = arith.truncf %211 : vector<16x128xf32> to vector<16x128xbf16>
      %c48 = arith.constant 48 : index
      %c0_91 = arith.constant 0 : index
      %213 = vector.load %arg9[%c48, %c0_91] : memref<352x128xbf16, #tpu.memory_space<vmem>>, vector<16x128xbf16>
      tpu.vector_store %arg9[%c48, %c0_91], %212 {strides = array<i32>} : memref<352x128xbf16, #tpu.memory_space<vmem>>, vector<16x128xbf16>,
      %c1_92 = arith.constant 1 : index
      %c0_93 = arith.constant 0 : index
      %c0_94 = arith.constant 0 : index
      %214 = vector.load %arg2[%c1_92, %c0_93, %c0_94] : memref<16x16x128xf32, #tpu.memory_space<vmem>>, vector<1x16x128xf32>
      %215 = vector.shape_cast %214 : vector<1x16x128xf32> to vector<16x128xf32>
      %216 = arith.truncf %215 : vector<16x128xf32> to vector<16x128xbf16>
      %c64 = arith.constant 64 : index
      %c0_95 = arith.constant 0 : index
      %217 = vector.load %arg9[%c64, %c0_95] : memref<352x128xbf16, #tpu.memory_space<vmem>>, vector<16x128xbf16>
      tpu.vector_store %arg9[%c64, %c0_95], %216 {strides = array<i32>} : memref<352x128xbf16, #tpu.memory_space<vmem>>, vector<16x128xbf16>,
      %c2_96 = arith.constant 2 : index
      %c0_97 = arith.constant 0 : index
      %c0_98 = arith.constant 0 : index
      %218 = vector.load %arg2[%c2_96, %c0_97, %c0_98] : memref<16x16x128xf32, #tpu.memory_space<vmem>>, vector<1x16x128xf32>
      %219 = vector.shape_cast %218 : vector<1x16x128xf32> to vector<16x128xf32>
      %220 = arith.truncf %219 : vector<16x128xf32> to vector<16x128xbf16>
      %c80 = arith.constant 80 : index
      %c0_99 = arith.constant 0 : index
      %221 = vector.load %arg9[%c80, %c0_99] : memref<352x128xbf16, #tpu.memory_space<vmem>>, vector<16x128xbf16>
      tpu.vector_store %arg9[%c80, %c0_99], %220 {strides = array<i32>} : memref<352x128xbf16, #tpu.memory_space<vmem>>, vector<16x128xbf16>,
      %c3_100 = arith.constant 3 : index
      %c0_101 = arith.constant 0 : index
      %c0_102 = arith.constant 0 : index
      %222 = vector.load %arg2[%c3_100, %c0_101, %c0_102] : memref<16x16x128xf32, #tpu.memory_space<vmem>>, vector<1x16x128xf32>
      %223 = vector.shape_cast %222 : vector<1x16x128xf32> to vector<16x128xf32>
      %224 = arith.truncf %223 : vector<16x128xf32> to vector<16x128xbf16>
      %c96 = arith.constant 96 : index
      %c0_103 = arith.constant 0 : index
      %225 = vector.load %arg9[%c96, %c0_103] : memref<352x128xbf16, #tpu.memory_space<vmem>>, vector<16x128xbf16>
      tpu.vector_store %arg9[%c96, %c0_103], %224 {strides = array<i32>} : memref<352x128xbf16, #tpu.memory_space<vmem>>, vector<16x128xbf16>,
      %c4_104 = arith.constant 4 : index
      %c0_105 = arith.constant 0 : index
      %c0_106 = arith.constant 0 : index
      %226 = vector.load %arg2[%c4_104, %c0_105, %c0_106] : memref<16x16x128xf32, #tpu.memory_space<vmem>>, vector<1x16x128xf32>
      %227 = vector.shape_cast %226 : vector<1x16x128xf32> to vector<16x128xf32>
      %228 = arith.truncf %227 : vector<16x128xf32> to vector<16x128xbf16>
      %c112 = arith.constant 112 : index
      %c0_107 = arith.constant 0 : index
      %229 = vector.load %arg9[%c112, %c0_107] : memref<352x128xbf16, #tpu.memory_space<vmem>>, vector<16x128xbf16>
      tpu.vector_store %arg9[%c112, %c0_107], %228 {strides = array<i32>} : memref<352x128xbf16, #tpu.memory_space<vmem>>, vector<16x128xbf16>,
      %c5_108 = arith.constant 5 : index
      %c0_109 = arith.constant 0 : index
      %c0_110 = arith.constant 0 : index
      %230 = vector.load %arg2[%c5_108, %c0_109, %c0_110] : memref<16x16x128xf32, #tpu.memory_space<vmem>>, vector<1x16x128xf32>
      %231 = vector.shape_cast %230 : vector<1x16x128xf32> to vector<16x128xf32>
      %232 = arith.truncf %231 : vector<16x128xf32> to vector<16x128xbf16>
      %c128 = arith.constant 128 : index
      %c0_111 = arith.constant 0 : index
      %233 = vector.load %arg9[%c128, %c0_111] : memref<352x128xbf16, #tpu.memory_space<vmem>>, vector<16x128xbf16>
      tpu.vector_store %arg9[%c128, %c0_111], %232 {strides = array<i32>} : memref<352x128xbf16, #tpu.memory_space<vmem>>, vector<16x128xbf16>,
      %c6_112 = arith.constant 6 : index
      %c0_113 = arith.constant 0 : index
      %c0_114 = arith.constant 0 : index
      %234 = vector.load %arg2[%c6_112, %c0_113, %c0_114] : memref<16x16x128xf32, #tpu.memory_space<vmem>>, vector<1x16x128xf32>
      %235 = vector.shape_cast %234 : vector<1x16x128xf32> to vector<16x128xf32>
      %236 = arith.truncf %235 : vector<16x128xf32> to vector<16x128xbf16>
      %c144 = arith.constant 144 : index
      %c0_115 = arith.constant 0 : index
      %237 = vector.load %arg9[%c144, %c0_115] : memref<352x128xbf16, #tpu.memory_space<vmem>>, vector<16x128xbf16>
      tpu.vector_store %arg9[%c144, %c0_115], %236 {strides = array<i32>} : memref<352x128xbf16, #tpu.memory_space<vmem>>, vector<16x128xbf16>,
      %c7_116 = arith.constant 7 : index
      %c0_117 = arith.constant 0 : index
      %c0_118 = arith.constant 0 : index
      %238 = vector.load %arg2[%c7_116, %c0_117, %c0_118] : memref<16x16x128xf32, #tpu.memory_space<vmem>>, vector<1x16x128xf32>
      %239 = vector.shape_cast %238 : vector<1x16x128xf32> to vector<16x128xf32>
      %240 = arith.truncf %239 : vector<16x128xf32> to vector<16x128xbf16>
      %c160 = arith.constant 160 : index
      %c0_119 = arith.constant 0 : index
      %241 = vector.load %arg9[%c160, %c0_119] : memref<352x128xbf16, #tpu.memory_space<vmem>>, vector<16x128xbf16>
      tpu.vector_store %arg9[%c160, %c0_119], %240 {strides = array<i32>} : memref<352x128xbf16, #tpu.memory_space<vmem>>, vector<16x128xbf16>,
      %c8 = arith.constant 8 : index
      %c0_120 = arith.constant 0 : index
      %c0_121 = arith.constant 0 : index
      %242 = vector.load %arg2[%c8, %c0_120, %c0_121] : memref<16x16x128xf32, #tpu.memory_space<vmem>>, vector<1x16x128xf32>
      %243 = vector.shape_cast %242 : vector<1x16x128xf32> to vector<16x128xf32>
      %244 = arith.truncf %243 : vector<16x128xf32> to vector<16x128xbf16>
      %c176 = arith.constant 176 : index
      %c0_122 = arith.constant 0 : index
      %245 = vector.load %arg9[%c176, %c0_122] : memref<352x128xbf16, #tpu.memory_space<vmem>>, vector<16x128xbf16>
      tpu.vector_store %arg9[%c176, %c0_122], %244 {strides = array<i32>} : memref<352x128xbf16, #tpu.memory_space<vmem>>, vector<16x128xbf16>,
      %c9 = arith.constant 9 : index
      %c0_123 = arith.constant 0 : index
      %c0_124 = arith.constant 0 : index
      %246 = vector.load %arg2[%c9, %c0_123, %c0_124] : memref<16x16x128xf32, #tpu.memory_space<vmem>>, vector<1x16x128xf32>
      %247 = vector.shape_cast %246 : vector<1x16x128xf32> to vector<16x128xf32>
      %248 = arith.truncf %247 : vector<16x128xf32> to vector<16x128xbf16>
      %c192 = arith.constant 192 : index
      %c0_125 = arith.constant 0 : index
      %249 = vector.load %arg9[%c192, %c0_125] : memref<352x128xbf16, #tpu.memory_space<vmem>>, vector<16x128xbf16>
      tpu.vector_store %arg9[%c192, %c0_125], %248 {strides = array<i32>} : memref<352x128xbf16, #tpu.memory_space<vmem>>, vector<16x128xbf16>,
      %c10 = arith.constant 10 : index
      %c0_126 = arith.constant 0 : index
      %c0_127 = arith.constant 0 : index
      %250 = vector.load %arg2[%c10, %c0_126, %c0_127] : memref<16x16x128xf32, #tpu.memory_space<vmem>>, vector<1x16x128xf32>
      %251 = vector.shape_cast %250 : vector<1x16x128xf32> to vector<16x128xf32>
      %252 = arith.truncf %251 : vector<16x128xf32> to vector<16x128xbf16>
      %c208 = arith.constant 208 : index
      %c0_128 = arith.constant 0 : index
      %253 = vector.load %arg9[%c208, %c0_128] : memref<352x128xbf16, #tpu.memory_space<vmem>>, vector<16x128xbf16>
      tpu.vector_store %arg9[%c208, %c0_128], %252 {strides = array<i32>} : memref<352x128xbf16, #tpu.memory_space<vmem>>, vector<16x128xbf16>,
      %c11 = arith.constant 11 : index
      %c0_129 = arith.constant 0 : index
      %c0_130 = arith.constant 0 : index
      %254 = vector.load %arg2[%c11, %c0_129, %c0_130] : memref<16x16x128xf32, #tpu.memory_space<vmem>>, vector<1x16x128xf32>
      %255 = vector.shape_cast %254 : vector<1x16x128xf32> to vector<16x128xf32>
      %256 = arith.truncf %255 : vector<16x128xf32> to vector<16x128xbf16>
      %c224 = arith.constant 224 : index
      %c0_131 = arith.constant 0 : index
      %257 = vector.load %arg9[%c224, %c0_131] : memref<352x128xbf16, #tpu.memory_space<vmem>>, vector<16x128xbf16>
      tpu.vector_store %arg9[%c224, %c0_131], %256 {strides = array<i32>} : memref<352x128xbf16, #tpu.memory_space<vmem>>, vector<16x128xbf16>,
      %c12 = arith.constant 12 : index
      %c0_132 = arith.constant 0 : index
      %c0_133 = arith.constant 0 : index
      %258 = vector.load %arg2[%c12, %c0_132, %c0_133] : memref<16x16x128xf32, #tpu.memory_space<vmem>>, vector<1x16x128xf32>
      %259 = vector.shape_cast %258 : vector<1x16x128xf32> to vector<16x128xf32>
      %260 = arith.truncf %259 : vector<16x128xf32> to vector<16x128xbf16>
      %c240 = arith.constant 240 : index
      %c0_134 = arith.constant 0 : index
      %261 = vector.load %arg9[%c240, %c0_134] : memref<352x128xbf16, #tpu.memory_space<vmem>>, vector<16x128xbf16>
      tpu.vector_store %arg9[%c240, %c0_134], %260 {strides = array<i32>} : memref<352x128xbf16, #tpu.memory_space<vmem>>, vector<16x128xbf16>,
      %c13 = arith.constant 13 : index
      %c0_135 = arith.constant 0 : index
      %c0_136 = arith.constant 0 : index
      %262 = vector.load %arg2[%c13, %c0_135, %c0_136] : memref<16x16x128xf32, #tpu.memory_space<vmem>>, vector<1x16x128xf32>
      %263 = vector.shape_cast %262 : vector<1x16x128xf32> to vector<16x128xf32>
      %264 = arith.truncf %263 : vector<16x128xf32> to vector<16x128xbf16>
      %c256 = arith.constant 256 : index
      %c0_137 = arith.constant 0 : index
      %265 = vector.load %arg9[%c256, %c0_137] : memref<352x128xbf16, #tpu.memory_space<vmem>>, vector<16x128xbf16>
      tpu.vector_store %arg9[%c256, %c0_137], %264 {strides = array<i32>} : memref<352x128xbf16, #tpu.memory_space<vmem>>, vector<16x128xbf16>,
      %c14 = arith.constant 14 : index
      %c0_138 = arith.constant 0 : index
      %c0_139 = arith.constant 0 : index
      %266 = vector.load %arg2[%c14, %c0_138, %c0_139] : memref<16x16x128xf32, #tpu.memory_space<vmem>>, vector<1x16x128xf32>
      %267 = vector.shape_cast %266 : vector<1x16x128xf32> to vector<16x128xf32>
      %268 = arith.truncf %267 : vector<16x128xf32> to vector<16x128xbf16>
      %c272 = arith.constant 272 : index
      %c0_140 = arith.constant 0 : index
      %269 = vector.load %arg9[%c272, %c0_140] : memref<352x128xbf16, #tpu.memory_space<vmem>>, vector<16x128xbf16>
      tpu.vector_store %arg9[%c272, %c0_140], %268 {strides = array<i32>} : memref<352x128xbf16, #tpu.memory_space<vmem>>, vector<16x128xbf16>,
      %c15 = arith.constant 15 : index
      %c0_141 = arith.constant 0 : index
      %c0_142 = arith.constant 0 : index
      %270 = vector.load %arg2[%c15, %c0_141, %c0_142] : memref<16x16x128xf32, #tpu.memory_space<vmem>>, vector<1x16x128xf32>
      %271 = vector.shape_cast %270 : vector<1x16x128xf32> to vector<16x128xf32>
      %272 = arith.truncf %271 : vector<16x128xf32> to vector<16x128xbf16>
      %c288 = arith.constant 288 : index
      %c0_143 = arith.constant 0 : index
      %273 = vector.load %arg9[%c288, %c0_143] : memref<352x128xbf16, #tpu.memory_space<vmem>>, vector<16x128xbf16>
      tpu.vector_store %arg9[%c288, %c0_143], %272 {strides = array<i32>} : memref<352x128xbf16, #tpu.memory_space<vmem>>, vector<16x128xbf16>,
      %cst_144 = arith.constant 0.000000e+00 : f32
      %274 = vector.broadcast %cst_144 : f32 to vector<1x32x2xf32>
      %c0_145 = arith.constant 0 : index
      %c0_146 = arith.constant 0 : index
      %c0_147 = arith.constant 0 : index
      %275 = vector.load %arg8[%c0_145, %c0_146, %c0_147] : memref<1x32x2xf32, #tpu.memory_space<vmem>>, vector<1x32x2xf32>
      tpu.vector_store %arg8[%c0_145, %c0_146, %c0_147], %274 {strides = array<i32>} : memref<1x32x2xf32, #tpu.memory_space<vmem>>, vector<1x32x2xf32>,
    } else {
    }
    %c0 = arith.constant 0 : index
    %c0_1 = arith.constant 0 : index
    %3 = vector.load %arg3[%c0, %c0_1] : memref<32x112xbf16, #tpu.memory_space<vmem>>, vector<32x112xbf16>
    %c0_2 = arith.constant 0 : index
    %c0_3 = arith.constant 0 : index
    %4 = vector.load %arg4[%c0_2, %c0_3] : memref<32x1xf32, #tpu.memory_space<vmem>>, vector<32x1xf32>
    %5 = tpu.iota {dimensions = array<i32: 1>} : vector<1x128xi32>
    %c128_i32 = arith.constant 128 : i32
    %6 = arith.muli %arg0, %c128_i32 : i32
    %7 = vector.broadcast %6 : i32 to vector<1x128xi32>
    %8 = arith.addi %7, %5 : vector<1x128xi32>
    %c32_i32 = arith.constant 32 : i32
    %9 = vector.broadcast %c32_i32 : i32 to vector<1x128xi32>
    %10 = arith.cmpi slt, %8, %9 : vector<1x128xi32>
    %11 = arith.extui %10 : vector<1x128xi1> to vector<1x128xi32>
    %12 = arith.sitofp %11 : vector<1x128xi32> to vector<1x128xf32>
    %cst = arith.constant 0.000000e+00 : f32
    %13 = vector.broadcast %cst : f32 to vector<32x1xf32>
    %cst_4 = arith.constant 0.000000e+00 : f32
    %14 = vector.broadcast %cst_4 : f32 to vector<32x1xf32>
    %c8_i32 = arith.constant 8 : i32
    %15 = arith.muli %arg1, %c8_i32 : i32
    %c0_i32_5 = arith.constant 0 : i32
    %16 = arith.addi %15, %c0_i32_5 : i32
    %c1_i32 = arith.constant 1 : i32
    %17 = arith.muli %16, %c1_i32 : i32
    %c16_i32 = arith.constant 16 : i32
    %18 = arith.muli %17, %c16_i32 : i32
    %19 = tpu.assume_multiple %18, 16 : i32
    %20 = arith.index_cast %19 : i32 to index
    %c0_6 = arith.constant 0 : index
    %21 = vector.load %arg9[%20, %c0_6] : memref<352x128xbf16, #tpu.memory_space<vmem>>, vector<112x128xbf16>
    %cst_7 = arith.constant dense<0.000000e+00> : vector<32x128xf32>
    %22 = tpu.matmul %3, %21, %cst_7 {dimension_numbers = #tpu.dot_dimension_numbers<[1], [0], [0], [1], [0, 0, 1, 1], [], []>} : vector<32x112xbf16>, vector<112x128xbf16>, vector<32x128xf32> -> vector<32x128xf32>
    %23 = vector.broadcast %4 : vector<32x1xf32> to vector<32x128xf32>
    %24 = arith.addf %22, %23 : vector<32x128xf32>
    %25 = arith.truncf %24 : vector<32x128xf32> to vector<32x128xbf16>
    %c0_8 = arith.constant 0 : index
    %c0_9 = arith.constant 0 : index
    %c0_10 = arith.constant 0 : index
    %26 = vector.load %arg7[%c0_8, %c0_9, %c0_10] : memref<8x32x128xbf16, #tpu.memory_space<vmem>>, vector<1x32x128xbf16>
    %27 = vector.shape_cast %26 : vector<1x32x128xbf16> to vector<32x128xbf16>
    %28 = vector.shape_cast %25 : vector<32x128xbf16> to vector<1x32x128xbf16>
    tpu.vector_store %arg7[%c0_8, %c0_9, %c0_10], %28 {strides = array<i32>} : memref<8x32x128xbf16, #tpu.memory_space<vmem>>, vector<1x32x128xbf16>,
    %29 = vector.broadcast %12 : vector<1x128xf32> to vector<32x128xf32>
    %30 = arith.mulf %24, %29 : vector<32x128xf32>
    %cst_11 = arith.constant dense<0.000000e+00> : vector<32xf32>
    %31 = vector.multi_reduction <add>, %30, %cst_11 [1] : vector<32x128xf32> to vector<32xf32>
    %32 = vector.shape_cast %31 : vector<32xf32> to vector<32x1xf32>
    %33 = arith.addf %13, %32 : vector<32x1xf32>
    %34 = arith.mulf %30, %24 : vector<32x128xf32>
    %cst_12 = arith.constant dense<0.000000e+00> : vector<32xf32>
    %35 = vector.multi_reduction <add>, %34, %cst_12 [1] : vector<32x128xf32> to vector<32xf32>
    %36 = vector.shape_cast %35 : vector<32xf32> to vector<32x1xf32>
    %37 = arith.addf %14, %36 : vector<32x1xf32>
    %c8_i32_13 = arith.constant 8 : i32
    %38 = arith.muli %arg1, %c8_i32_13 : i32
    %c1_i32_14 = arith.constant 1 : i32
    %39 = arith.addi %38, %c1_i32_14 : i32
    %c1_i32_15 = arith.constant 1 : i32
    %40 = arith.muli %39, %c1_i32_15 : i32
    %c16_i32_16 = arith.constant 16 : i32
    %41 = arith.muli %40, %c16_i32_16 : i32
    %42 = tpu.assume_multiple %41, 16 : i32
    %43 = arith.index_cast %42 : i32 to index
    %c0_17 = arith.constant 0 : index
    %44 = vector.load %arg9[%43, %c0_17] : memref<352x128xbf16, #tpu.memory_space<vmem>>, vector<112x128xbf16>
    %cst_18 = arith.constant dense<0.000000e+00> : vector<32x128xf32>
    %45 = tpu.matmul %3, %44, %cst_18 {dimension_numbers = #tpu.dot_dimension_numbers<[1], [0], [0], [1], [0, 0, 1, 1], [], []>} : vector<32x112xbf16>, vector<112x128xbf16>, vector<32x128xf32> -> vector<32x128xf32>
    %46 = vector.broadcast %4 : vector<32x1xf32> to vector<32x128xf32>
    %47 = arith.addf %45, %46 : vector<32x128xf32>
    %48 = arith.truncf %47 : vector<32x128xf32> to vector<32x128xbf16>
    %c1 = arith.constant 1 : index
    %c0_19 = arith.constant 0 : index
    %c0_20 = arith.constant 0 : index
    %49 = vector.load %arg7[%c1, %c0_19, %c0_20] : memref<8x32x128xbf16, #tpu.memory_space<vmem>>, vector<1x32x128xbf16>
    %50 = vector.shape_cast %49 : vector<1x32x128xbf16> to vector<32x128xbf16>
    %51 = vector.shape_cast %48 : vector<32x128xbf16> to vector<1x32x128xbf16>
    tpu.vector_store %arg7[%c1, %c0_19, %c0_20], %51 {strides = array<i32>} : memref<8x32x128xbf16, #tpu.memory_space<vmem>>, vector<1x32x128xbf16>,
    %52 = vector.broadcast %12 : vector<1x128xf32> to vector<32x128xf32>
    %53 = arith.mulf %47, %52 : vector<32x128xf32>
    %cst_21 = arith.constant dense<0.000000e+00> : vector<32xf32>
    %54 = vector.multi_reduction <add>, %53, %cst_21 [1] : vector<32x128xf32> to vector<32xf32>
    %55 = vector.shape_cast %54 : vector<32xf32> to vector<32x1xf32>
    %56 = arith.addf %33, %55 : vector<32x1xf32>
    %57 = arith.mulf %53, %47 : vector<32x128xf32>
    %cst_22 = arith.constant dense<0.000000e+00> : vector<32xf32>
    %58 = vector.multi_reduction <add>, %57, %cst_22 [1] : vector<32x128xf32> to vector<32xf32>
    %59 = vector.shape_cast %58 : vector<32xf32> to vector<32x1xf32>
    %60 = arith.addf %37, %59 : vector<32x1xf32>
    %c8_i32_23 = arith.constant 8 : i32
    %61 = arith.muli %arg1, %c8_i32_23 : i32
    %c2_i32 = arith.constant 2 : i32
    %62 = arith.addi %61, %c2_i32 : i32
    %c1_i32_24 = arith.constant 1 : i32
    %63 = arith.muli %62, %c1_i32_24 : i32
    %c16_i32_25 = arith.constant 16 : i32
    %64 = arith.muli %63, %c16_i32_25 : i32
    %65 = tpu.assume_multiple %64, 16 : i32
    %66 = arith.index_cast %65 : i32 to index
    %c0_26 = arith.constant 0 : index
    %67 = vector.load %arg9[%66, %c0_26] : memref<352x128xbf16, #tpu.memory_space<vmem>>, vector<112x128xbf16>
    %cst_27 = arith.constant dense<0.000000e+00> : vector<32x128xf32>
    %68 = tpu.matmul %3, %67, %cst_27 {dimension_numbers = #tpu.dot_dimension_numbers<[1], [0], [0], [1], [0, 0, 1, 1], [], []>} : vector<32x112xbf16>, vector<112x128xbf16>, vector<32x128xf32> -> vector<32x128xf32>
    %69 = vector.broadcast %4 : vector<32x1xf32> to vector<32x128xf32>
    %70 = arith.addf %68, %69 : vector<32x128xf32>
    %71 = arith.truncf %70 : vector<32x128xf32> to vector<32x128xbf16>
    %c2 = arith.constant 2 : index
    %c0_28 = arith.constant 0 : index
    %c0_29 = arith.constant 0 : index
    %72 = vector.load %arg7[%c2, %c0_28, %c0_29] : memref<8x32x128xbf16, #tpu.memory_space<vmem>>, vector<1x32x128xbf16>
    %73 = vector.shape_cast %72 : vector<1x32x128xbf16> to vector<32x128xbf16>
    %74 = vector.shape_cast %71 : vector<32x128xbf16> to vector<1x32x128xbf16>
    tpu.vector_store %arg7[%c2, %c0_28, %c0_29], %74 {strides = array<i32>} : memref<8x32x128xbf16, #tpu.memory_space<vmem>>, vector<1x32x128xbf16>,
    %75 = vector.broadcast %12 : vector<1x128xf32> to vector<32x128xf32>
    %76 = arith.mulf %70, %75 : vector<32x128xf32>
    %cst_30 = arith.constant dense<0.000000e+00> : vector<32xf32>
    %77 = vector.multi_reduction <add>, %76, %cst_30 [1] : vector<32x128xf32> to vector<32xf32>
    %78 = vector.shape_cast %77 : vector<32xf32> to vector<32x1xf32>
    %79 = arith.addf %56, %78 : vector<32x1xf32>
    %80 = arith.mulf %76, %70 : vector<32x128xf32>
    %cst_31 = arith.constant dense<0.000000e+00> : vector<32xf32>
    %81 = vector.multi_reduction <add>, %80, %cst_31 [1] : vector<32x128xf32> to vector<32xf32>
    %82 = vector.shape_cast %81 : vector<32xf32> to vector<32x1xf32>
    %83 = arith.addf %60, %82 : vector<32x1xf32>
    %c8_i32_32 = arith.constant 8 : i32
    %84 = arith.muli %arg1, %c8_i32_32 : i32
    %c3_i32 = arith.constant 3 : i32
    %85 = arith.addi %84, %c3_i32 : i32
    %c1_i32_33 = arith.constant 1 : i32
    %86 = arith.muli %85, %c1_i32_33 : i32
    %c16_i32_34 = arith.constant 16 : i32
    %87 = arith.muli %86, %c16_i32_34 : i32
    %88 = tpu.assume_multiple %87, 16 : i32
    %89 = arith.index_cast %88 : i32 to index
    %c0_35 = arith.constant 0 : index
    %90 = vector.load %arg9[%89, %c0_35] : memref<352x128xbf16, #tpu.memory_space<vmem>>, vector<112x128xbf16>
    %cst_36 = arith.constant dense<0.000000e+00> : vector<32x128xf32>
    %91 = tpu.matmul %3, %90, %cst_36 {dimension_numbers = #tpu.dot_dimension_numbers<[1], [0], [0], [1], [0, 0, 1, 1], [], []>} : vector<32x112xbf16>, vector<112x128xbf16>, vector<32x128xf32> -> vector<32x128xf32>
    %92 = vector.broadcast %4 : vector<32x1xf32> to vector<32x128xf32>
    %93 = arith.addf %91, %92 : vector<32x128xf32>
    %94 = arith.truncf %93 : vector<32x128xf32> to vector<32x128xbf16>
    %c3 = arith.constant 3 : index
    %c0_37 = arith.constant 0 : index
    %c0_38 = arith.constant 0 : index
    %95 = vector.load %arg7[%c3, %c0_37, %c0_38] : memref<8x32x128xbf16, #tpu.memory_space<vmem>>, vector<1x32x128xbf16>
    %96 = vector.shape_cast %95 : vector<1x32x128xbf16> to vector<32x128xbf16>
    %97 = vector.shape_cast %94 : vector<32x128xbf16> to vector<1x32x128xbf16>
    tpu.vector_store %arg7[%c3, %c0_37, %c0_38], %97 {strides = array<i32>} : memref<8x32x128xbf16, #tpu.memory_space<vmem>>, vector<1x32x128xbf16>,
    %98 = vector.broadcast %12 : vector<1x128xf32> to vector<32x128xf32>
    %99 = arith.mulf %93, %98 : vector<32x128xf32>
    %cst_39 = arith.constant dense<0.000000e+00> : vector<32xf32>
    %100 = vector.multi_reduction <add>, %99, %cst_39 [1] : vector<32x128xf32> to vector<32xf32>
    %101 = vector.shape_cast %100 : vector<32xf32> to vector<32x1xf32>
    %102 = arith.addf %79, %101 : vector<32x1xf32>
    %103 = arith.mulf %99, %93 : vector<32x128xf32>
    %cst_40 = arith.constant dense<0.000000e+00> : vector<32xf32>
    %104 = vector.multi_reduction <add>, %103, %cst_40 [1] : vector<32x128xf32> to vector<32xf32>
    %105 = vector.shape_cast %104 : vector<32xf32> to vector<32x1xf32>
    %106 = arith.addf %83, %105 : vector<32x1xf32>
    %c8_i32_41 = arith.constant 8 : i32
    %107 = arith.muli %arg1, %c8_i32_41 : i32
    %c4_i32 = arith.constant 4 : i32
    %108 = arith.addi %107, %c4_i32 : i32
    %c1_i32_42 = arith.constant 1 : i32
    %109 = arith.muli %108, %c1_i32_42 : i32
    %c16_i32_43 = arith.constant 16 : i32
    %110 = arith.muli %109, %c16_i32_43 : i32
    %111 = tpu.assume_multiple %110, 16 : i32
    %112 = arith.index_cast %111 : i32 to index
    %c0_44 = arith.constant 0 : index
    %113 = vector.load %arg9[%112, %c0_44] : memref<352x128xbf16, #tpu.memory_space<vmem>>, vector<112x128xbf16>
    %cst_45 = arith.constant dense<0.000000e+00> : vector<32x128xf32>
    %114 = tpu.matmul %3, %113, %cst_45 {dimension_numbers = #tpu.dot_dimension_numbers<[1], [0], [0], [1], [0, 0, 1, 1], [], []>} : vector<32x112xbf16>, vector<112x128xbf16>, vector<32x128xf32> -> vector<32x128xf32>
    %115 = vector.broadcast %4 : vector<32x1xf32> to vector<32x128xf32>
    %116 = arith.addf %114, %115 : vector<32x128xf32>
    %117 = arith.truncf %116 : vector<32x128xf32> to vector<32x128xbf16>
    %c4 = arith.constant 4 : index
    %c0_46 = arith.constant 0 : index
    %c0_47 = arith.constant 0 : index
    %118 = vector.load %arg7[%c4, %c0_46, %c0_47] : memref<8x32x128xbf16, #tpu.memory_space<vmem>>, vector<1x32x128xbf16>
    %119 = vector.shape_cast %118 : vector<1x32x128xbf16> to vector<32x128xbf16>
    %120 = vector.shape_cast %117 : vector<32x128xbf16> to vector<1x32x128xbf16>
    tpu.vector_store %arg7[%c4, %c0_46, %c0_47], %120 {strides = array<i32>} : memref<8x32x128xbf16, #tpu.memory_space<vmem>>, vector<1x32x128xbf16>,
    %121 = vector.broadcast %12 : vector<1x128xf32> to vector<32x128xf32>
    %122 = arith.mulf %116, %121 : vector<32x128xf32>
    %cst_48 = arith.constant dense<0.000000e+00> : vector<32xf32>
    %123 = vector.multi_reduction <add>, %122, %cst_48 [1] : vector<32x128xf32> to vector<32xf32>
    %124 = vector.shape_cast %123 : vector<32xf32> to vector<32x1xf32>
    %125 = arith.addf %102, %124 : vector<32x1xf32>
    %126 = arith.mulf %122, %116 : vector<32x128xf32>
    %cst_49 = arith.constant dense<0.000000e+00> : vector<32xf32>
    %127 = vector.multi_reduction <add>, %126, %cst_49 [1] : vector<32x128xf32> to vector<32xf32>
    %128 = vector.shape_cast %127 : vector<32xf32> to vector<32x1xf32>
    %129 = arith.addf %106, %128 : vector<32x1xf32>
    %c8_i32_50 = arith.constant 8 : i32
    %130 = arith.muli %arg1, %c8_i32_50 : i32
    %c5_i32 = arith.constant 5 : i32
    %131 = arith.addi %130, %c5_i32 : i32
    %c1_i32_51 = arith.constant 1 : i32
    %132 = arith.muli %131, %c1_i32_51 : i32
    %c16_i32_52 = arith.constant 16 : i32
    %133 = arith.muli %132, %c16_i32_52 : i32
    %134 = tpu.assume_multiple %133, 16 : i32
    %135 = arith.index_cast %134 : i32 to index
    %c0_53 = arith.constant 0 : index
    %136 = vector.load %arg9[%135, %c0_53] : memref<352x128xbf16, #tpu.memory_space<vmem>>, vector<112x128xbf16>
    %cst_54 = arith.constant dense<0.000000e+00> : vector<32x128xf32>
    %137 = tpu.matmul %3, %136, %cst_54 {dimension_numbers = #tpu.dot_dimension_numbers<[1], [0], [0], [1], [0, 0, 1, 1], [], []>} : vector<32x112xbf16>, vector<112x128xbf16>, vector<32x128xf32> -> vector<32x128xf32>
    %138 = vector.broadcast %4 : vector<32x1xf32> to vector<32x128xf32>
    %139 = arith.addf %137, %138 : vector<32x128xf32>
    %140 = arith.truncf %139 : vector<32x128xf32> to vector<32x128xbf16>
    %c5 = arith.constant 5 : index
    %c0_55 = arith.constant 0 : index
    %c0_56 = arith.constant 0 : index
    %141 = vector.load %arg7[%c5, %c0_55, %c0_56] : memref<8x32x128xbf16, #tpu.memory_space<vmem>>, vector<1x32x128xbf16>
    %142 = vector.shape_cast %141 : vector<1x32x128xbf16> to vector<32x128xbf16>
    %143 = vector.shape_cast %140 : vector<32x128xbf16> to vector<1x32x128xbf16>
    tpu.vector_store %arg7[%c5, %c0_55, %c0_56], %143 {strides = array<i32>} : memref<8x32x128xbf16, #tpu.memory_space<vmem>>, vector<1x32x128xbf16>,
    %144 = vector.broadcast %12 : vector<1x128xf32> to vector<32x128xf32>
    %145 = arith.mulf %139, %144 : vector<32x128xf32>
    %cst_57 = arith.constant dense<0.000000e+00> : vector<32xf32>
    %146 = vector.multi_reduction <add>, %145, %cst_57 [1] : vector<32x128xf32> to vector<32xf32>
    %147 = vector.shape_cast %146 : vector<32xf32> to vector<32x1xf32>
    %148 = arith.addf %125, %147 : vector<32x1xf32>
    %149 = arith.mulf %145, %139 : vector<32x128xf32>
    %cst_58 = arith.constant dense<0.000000e+00> : vector<32xf32>
    %150 = vector.multi_reduction <add>, %149, %cst_58 [1] : vector<32x128xf32> to vector<32xf32>
    %151 = vector.shape_cast %150 : vector<32xf32> to vector<32x1xf32>
    %152 = arith.addf %129, %151 : vector<32x1xf32>
    %c8_i32_59 = arith.constant 8 : i32
    %153 = arith.muli %arg1, %c8_i32_59 : i32
    %c6_i32 = arith.constant 6 : i32
    %154 = arith.addi %153, %c6_i32 : i32
    %c1_i32_60 = arith.constant 1 : i32
    %155 = arith.muli %154, %c1_i32_60 : i32
    %c16_i32_61 = arith.constant 16 : i32
    %156 = arith.muli %155, %c16_i32_61 : i32
    %157 = tpu.assume_multiple %156, 16 : i32
    %158 = arith.index_cast %157 : i32 to index
    %c0_62 = arith.constant 0 : index
    %159 = vector.load %arg9[%158, %c0_62] : memref<352x128xbf16, #tpu.memory_space<vmem>>, vector<112x128xbf16>
    %cst_63 = arith.constant dense<0.000000e+00> : vector<32x128xf32>
    %160 = tpu.matmul %3, %159, %cst_63 {dimension_numbers = #tpu.dot_dimension_numbers<[1], [0], [0], [1], [0, 0, 1, 1], [], []>} : vector<32x112xbf16>, vector<112x128xbf16>, vector<32x128xf32> -> vector<32x128xf32>
    %161 = vector.broadcast %4 : vector<32x1xf32> to vector<32x128xf32>
    %162 = arith.addf %160, %161 : vector<32x128xf32>
    %163 = arith.truncf %162 : vector<32x128xf32> to vector<32x128xbf16>
    %c6 = arith.constant 6 : index
    %c0_64 = arith.constant 0 : index
    %c0_65 = arith.constant 0 : index
    %164 = vector.load %arg7[%c6, %c0_64, %c0_65] : memref<8x32x128xbf16, #tpu.memory_space<vmem>>, vector<1x32x128xbf16>
    %165 = vector.shape_cast %164 : vector<1x32x128xbf16> to vector<32x128xbf16>
    %166 = vector.shape_cast %163 : vector<32x128xbf16> to vector<1x32x128xbf16>
    tpu.vector_store %arg7[%c6, %c0_64, %c0_65], %166 {strides = array<i32>} : memref<8x32x128xbf16, #tpu.memory_space<vmem>>, vector<1x32x128xbf16>,
    %167 = vector.broadcast %12 : vector<1x128xf32> to vector<32x128xf32>
    %168 = arith.mulf %162, %167 : vector<32x128xf32>
    %cst_66 = arith.constant dense<0.000000e+00> : vector<32xf32>
    %169 = vector.multi_reduction <add>, %168, %cst_66 [1] : vector<32x128xf32> to vector<32xf32>
    %170 = vector.shape_cast %169 : vector<32xf32> to vector<32x1xf32>
    %171 = arith.addf %148, %170 : vector<32x1xf32>
    %172 = arith.mulf %168, %162 : vector<32x128xf32>
    %cst_67 = arith.constant dense<0.000000e+00> : vector<32xf32>
    %173 = vector.multi_reduction <add>, %172, %cst_67 [1] : vector<32x128xf32> to vector<32xf32>
    %174 = vector.shape_cast %173 : vector<32xf32> to vector<32x1xf32>
    %175 = arith.addf %152, %174 : vector<32x1xf32>
    %c8_i32_68 = arith.constant 8 : i32
    %176 = arith.muli %arg1, %c8_i32_68 : i32
    %c7_i32 = arith.constant 7 : i32
    %177 = arith.addi %176, %c7_i32 : i32
    %c1_i32_69 = arith.constant 1 : i32
    %178 = arith.muli %177, %c1_i32_69 : i32
    %c16_i32_70 = arith.constant 16 : i32
    %179 = arith.muli %178, %c16_i32_70 : i32
    %180 = tpu.assume_multiple %179, 16 : i32
    %181 = arith.index_cast %180 : i32 to index
    %c0_71 = arith.constant 0 : index
    %182 = vector.load %arg9[%181, %c0_71] : memref<352x128xbf16, #tpu.memory_space<vmem>>, vector<112x128xbf16>
    %cst_72 = arith.constant dense<0.000000e+00> : vector<32x128xf32>
    %183 = tpu.matmul %3, %182, %cst_72 {dimension_numbers = #tpu.dot_dimension_numbers<[1], [0], [0], [1], [0, 0, 1, 1], [], []>} : vector<32x112xbf16>, vector<112x128xbf16>, vector<32x128xf32> -> vector<32x128xf32>
    %184 = vector.broadcast %4 : vector<32x1xf32> to vector<32x128xf32>
    %185 = arith.addf %183, %184 : vector<32x128xf32>
    %186 = arith.truncf %185 : vector<32x128xf32> to vector<32x128xbf16>
    %c7 = arith.constant 7 : index
    %c0_73 = arith.constant 0 : index
    %c0_74 = arith.constant 0 : index
    %187 = vector.load %arg7[%c7, %c0_73, %c0_74] : memref<8x32x128xbf16, #tpu.memory_space<vmem>>, vector<1x32x128xbf16>
    %188 = vector.shape_cast %187 : vector<1x32x128xbf16> to vector<32x128xbf16>
    %189 = vector.shape_cast %186 : vector<32x128xbf16> to vector<1x32x128xbf16>
    tpu.vector_store %arg7[%c7, %c0_73, %c0_74], %189 {strides = array<i32>} : memref<8x32x128xbf16, #tpu.memory_space<vmem>>, vector<1x32x128xbf16>,
    %190 = vector.broadcast %12 : vector<1x128xf32> to vector<32x128xf32>
    %191 = arith.mulf %185, %190 : vector<32x128xf32>
    %cst_75 = arith.constant dense<0.000000e+00> : vector<32xf32>
    %192 = vector.multi_reduction <add>, %191, %cst_75 [1] : vector<32x128xf32> to vector<32xf32>
    %193 = vector.shape_cast %192 : vector<32xf32> to vector<32x1xf32>
    %194 = arith.addf %171, %193 : vector<32x1xf32>
    %195 = arith.mulf %191, %185 : vector<32x128xf32>
    %cst_76 = arith.constant dense<0.000000e+00> : vector<32xf32>
    %196 = vector.multi_reduction <add>, %195, %cst_76 [1] : vector<32x128xf32> to vector<32xf32>
    %197 = vector.shape_cast %196 : vector<32xf32> to vector<32x1xf32>
    %198 = arith.addf %175, %197 : vector<32x1xf32>
    %c0_77 = arith.constant 0 : index
    %c0_78 = arith.constant 0 : index
    %c0_79 = arith.constant 0 : index
    %199 = vector.load %arg8[%c0_77, %c0_78, %c0_79] : memref<1x32x2xf32, #tpu.memory_space<vmem>>, vector<1x32x2xf32>
    %200 = vector.shape_cast %199 : vector<1x32x2xf32> to vector<32x2xf32>
    %201 = tpu.concatenate %194, %198 in 1 : vector<32x1xf32>, vector<32x1xf32> -> vector<32x2xf32>
    %202 = arith.addf %200, %201 : vector<32x2xf32>
    %c0_80 = arith.constant 0 : index
    %c0_81 = arith.constant 0 : index
    %c0_82 = arith.constant 0 : index
    %203 = vector.load %arg8[%c0_80, %c0_81, %c0_82] : memref<1x32x2xf32, #tpu.memory_space<vmem>>, vector<1x32x2xf32>
    %204 = vector.shape_cast %203 : vector<1x32x2xf32> to vector<32x2xf32>
    %205 = vector.shape_cast %202 : vector<32x2xf32> to vector<1x32x2xf32>
    tpu.vector_store %arg8[%c0_80, %c0_81, %c0_82], %205 {strides = array<i32>} : memref<1x32x2xf32, #tpu.memory_space<vmem>>, vector<1x32x2xf32>,
    return
  }
  func.func @transform_0(%arg0: i32, %arg1: i32) -> (i32, i32, i32) {
    %c0_i32 = arith.constant 0 : i32
    %c0_i32_0 = arith.constant 0 : i32
    %c0_i32_1 = arith.constant 0 : i32
    return %c0_i32, %c0_i32_0, %arg0 : i32, i32, i32
  }
  func.func @transform_1(%arg0: i32, %arg1: i32) -> (i32, i32) {
    %c0_i32 = arith.constant 0 : i32
    %c0_i32_0 = arith.constant 0 : i32
    %c0_i32_1 = arith.constant 0 : i32
    return %c0_i32, %c0_i32_0 : i32, i32
  }
  func.func @transform_2(%arg0: i32, %arg1: i32) -> (i32, i32) {
    %c0_i32 = arith.constant 0 : i32
    %c0_i32_0 = arith.constant 0 : i32
    %c0_i32_1 = arith.constant 0 : i32
    return %c0_i32, %c0_i32_0 : i32, i32
  }
  func.func @transform_3(%arg0: i32, %arg1: i32) -> (i32, i32) {
    %c0_i32 = arith.constant 0 : i32
    %c0_i32_0 = arith.constant 0 : i32
    %c0_i32_1 = arith.constant 0 : i32
    return %c0_i32, %c0_i32_0 : i32, i32
  }
  func.func @transform_4(%arg0: i32, %arg1: i32) -> (i32, i32) {
    %c0_i32 = arith.constant 0 : i32
    %c0_i32_0 = arith.constant 0 : i32
    %c0_i32_1 = arith.constant 0 : i32
    return %c0_i32, %c0_i32_0 : i32, i32
  }
  func.func @transform_5(%arg0: i32, %arg1: i32) -> (i32, i32, i32) {
    %c0_i32 = arith.constant 0 : i32
    %c0_i32_0 = arith.constant 0 : i32
    return %arg1, %c0_i32, %arg0 : i32, i32, i32
  }
  func.func @transform_6(%arg0: i32, %arg1: i32) -> (i32, i32, i32) {
    %c0_i32 = arith.constant 0 : i32
    %c0_i32_0 = arith.constant 0 : i32
    %c0_i32_1 = arith.constant 0 : i32
    return %arg0, %c0_i32, %c0_i32_0 : i32, i32, i32
  }
}

module attributes {stable_mosaic.version = 11 : i64} {
  func.func @_conv_kernel(%arg0: i32, %arg1: i32, %arg2: memref<16x16x128xf32, #tpu.memory_space<vmem>>, %arg3: memref<32x16xbf16, #tpu.memory_space<vmem>>, %arg4: memref<32x1xf32, #tpu.memory_space<vmem>>, %arg5: memref<16x1xf32, #tpu.memory_space<vmem>>, %arg6: memref<16x1xf32, #tpu.memory_space<vmem>>, %arg7: memref<8x32x128xf32, #tpu.memory_space<vmem>>, %arg8: memref<1x32x2xf32, #tpu.memory_space<vmem>>, %arg9: memref<256x128xbf16, #tpu.memory_space<vmem>>) attributes {dimension_semantics = [#tpu.dimension_semantics<parallel>, #tpu.dimension_semantics<arbitrary>], iteration_bounds = array<i64: 1, 2>, scalar_prefetch = 0 : i64, scratch_operands = 1 : i64, tpu.core_type = #tpu.core_type<tc>, window_params = [{transform_indices = @transform_0, window_bounds = array<i64: 16, 16, 128>}, {pipeline_mode = #tpu.pipeline_mode<synchronous>, transform_indices = @transform_1, window_bounds = array<i64: 32, 16>}, {pipeline_mode = #tpu.pipeline_mode<synchronous>, transform_indices = @transform_2, window_bounds = array<i64: 32, 1>}, {pipeline_mode = #tpu.pipeline_mode<synchronous>, transform_indices = @transform_3, window_bounds = array<i64: 16, 1>}, {pipeline_mode = #tpu.pipeline_mode<synchronous>, transform_indices = @transform_4, window_bounds = array<i64: 16, 1>}, {transform_indices = @transform_5, window_bounds = array<i64: 8, 32, 128>}, {transform_indices = @transform_6, window_bounds = array<i64: 1, 32, 2>}]} {
    %c0_i32 = arith.constant 0 : i32
    %0 = arith.cmpi eq, %arg1, %c0_i32 : i32
    %1 = arith.extui %0 : i1 to i32
    %c0_i32_0 = arith.constant 0 : i32
    %2 = arith.cmpi ne, %1, %c0_i32_0 : i32
    scf.if %2 {
      %c0_83 = arith.constant 0 : index
      %c0_84 = arith.constant 0 : index
      %c0_85 = arith.constant 0 : index
      %198 = vector.load %arg2[%c0_83, %c0_84, %c0_85] : memref<16x16x128xf32, #tpu.memory_space<vmem>>, vector<1x16x128xf32>
      %199 = vector.shape_cast %198 : vector<1x16x128xf32> to vector<16x128xf32>
      %200 = arith.truncf %199 : vector<16x128xf32> to vector<16x128xbf16>
      %c0_86 = arith.constant 0 : index
      %c0_87 = arith.constant 0 : index
      %201 = vector.load %arg9[%c0_86, %c0_87] : memref<256x128xbf16, #tpu.memory_space<vmem>>, vector<16x128xbf16>
      tpu.vector_store %arg9[%c0_86, %c0_87], %200 {strides = array<i32>} : memref<256x128xbf16, #tpu.memory_space<vmem>>, vector<16x128xbf16>,
      %c1_88 = arith.constant 1 : index
      %c0_89 = arith.constant 0 : index
      %c0_90 = arith.constant 0 : index
      %202 = vector.load %arg2[%c1_88, %c0_89, %c0_90] : memref<16x16x128xf32, #tpu.memory_space<vmem>>, vector<1x16x128xf32>
      %203 = vector.shape_cast %202 : vector<1x16x128xf32> to vector<16x128xf32>
      %204 = arith.truncf %203 : vector<16x128xf32> to vector<16x128xbf16>
      %c16 = arith.constant 16 : index
      %c0_91 = arith.constant 0 : index
      %205 = vector.load %arg9[%c16, %c0_91] : memref<256x128xbf16, #tpu.memory_space<vmem>>, vector<16x128xbf16>
      tpu.vector_store %arg9[%c16, %c0_91], %204 {strides = array<i32>} : memref<256x128xbf16, #tpu.memory_space<vmem>>, vector<16x128xbf16>,
      %c2_92 = arith.constant 2 : index
      %c0_93 = arith.constant 0 : index
      %c0_94 = arith.constant 0 : index
      %206 = vector.load %arg2[%c2_92, %c0_93, %c0_94] : memref<16x16x128xf32, #tpu.memory_space<vmem>>, vector<1x16x128xf32>
      %207 = vector.shape_cast %206 : vector<1x16x128xf32> to vector<16x128xf32>
      %208 = arith.truncf %207 : vector<16x128xf32> to vector<16x128xbf16>
      %c32 = arith.constant 32 : index
      %c0_95 = arith.constant 0 : index
      %209 = vector.load %arg9[%c32, %c0_95] : memref<256x128xbf16, #tpu.memory_space<vmem>>, vector<16x128xbf16>
      tpu.vector_store %arg9[%c32, %c0_95], %208 {strides = array<i32>} : memref<256x128xbf16, #tpu.memory_space<vmem>>, vector<16x128xbf16>,
      %c3_96 = arith.constant 3 : index
      %c0_97 = arith.constant 0 : index
      %c0_98 = arith.constant 0 : index
      %210 = vector.load %arg2[%c3_96, %c0_97, %c0_98] : memref<16x16x128xf32, #tpu.memory_space<vmem>>, vector<1x16x128xf32>
      %211 = vector.shape_cast %210 : vector<1x16x128xf32> to vector<16x128xf32>
      %212 = arith.truncf %211 : vector<16x128xf32> to vector<16x128xbf16>
      %c48 = arith.constant 48 : index
      %c0_99 = arith.constant 0 : index
      %213 = vector.load %arg9[%c48, %c0_99] : memref<256x128xbf16, #tpu.memory_space<vmem>>, vector<16x128xbf16>
      tpu.vector_store %arg9[%c48, %c0_99], %212 {strides = array<i32>} : memref<256x128xbf16, #tpu.memory_space<vmem>>, vector<16x128xbf16>,
      %c4_100 = arith.constant 4 : index
      %c0_101 = arith.constant 0 : index
      %c0_102 = arith.constant 0 : index
      %214 = vector.load %arg2[%c4_100, %c0_101, %c0_102] : memref<16x16x128xf32, #tpu.memory_space<vmem>>, vector<1x16x128xf32>
      %215 = vector.shape_cast %214 : vector<1x16x128xf32> to vector<16x128xf32>
      %216 = arith.truncf %215 : vector<16x128xf32> to vector<16x128xbf16>
      %c64 = arith.constant 64 : index
      %c0_103 = arith.constant 0 : index
      %217 = vector.load %arg9[%c64, %c0_103] : memref<256x128xbf16, #tpu.memory_space<vmem>>, vector<16x128xbf16>
      tpu.vector_store %arg9[%c64, %c0_103], %216 {strides = array<i32>} : memref<256x128xbf16, #tpu.memory_space<vmem>>, vector<16x128xbf16>,
      %c5_104 = arith.constant 5 : index
      %c0_105 = arith.constant 0 : index
      %c0_106 = arith.constant 0 : index
      %218 = vector.load %arg2[%c5_104, %c0_105, %c0_106] : memref<16x16x128xf32, #tpu.memory_space<vmem>>, vector<1x16x128xf32>
      %219 = vector.shape_cast %218 : vector<1x16x128xf32> to vector<16x128xf32>
      %220 = arith.truncf %219 : vector<16x128xf32> to vector<16x128xbf16>
      %c80 = arith.constant 80 : index
      %c0_107 = arith.constant 0 : index
      %221 = vector.load %arg9[%c80, %c0_107] : memref<256x128xbf16, #tpu.memory_space<vmem>>, vector<16x128xbf16>
      tpu.vector_store %arg9[%c80, %c0_107], %220 {strides = array<i32>} : memref<256x128xbf16, #tpu.memory_space<vmem>>, vector<16x128xbf16>,
      %c6_108 = arith.constant 6 : index
      %c0_109 = arith.constant 0 : index
      %c0_110 = arith.constant 0 : index
      %222 = vector.load %arg2[%c6_108, %c0_109, %c0_110] : memref<16x16x128xf32, #tpu.memory_space<vmem>>, vector<1x16x128xf32>
      %223 = vector.shape_cast %222 : vector<1x16x128xf32> to vector<16x128xf32>
      %224 = arith.truncf %223 : vector<16x128xf32> to vector<16x128xbf16>
      %c96 = arith.constant 96 : index
      %c0_111 = arith.constant 0 : index
      %225 = vector.load %arg9[%c96, %c0_111] : memref<256x128xbf16, #tpu.memory_space<vmem>>, vector<16x128xbf16>
      tpu.vector_store %arg9[%c96, %c0_111], %224 {strides = array<i32>} : memref<256x128xbf16, #tpu.memory_space<vmem>>, vector<16x128xbf16>,
      %c7_112 = arith.constant 7 : index
      %c0_113 = arith.constant 0 : index
      %c0_114 = arith.constant 0 : index
      %226 = vector.load %arg2[%c7_112, %c0_113, %c0_114] : memref<16x16x128xf32, #tpu.memory_space<vmem>>, vector<1x16x128xf32>
      %227 = vector.shape_cast %226 : vector<1x16x128xf32> to vector<16x128xf32>
      %228 = arith.truncf %227 : vector<16x128xf32> to vector<16x128xbf16>
      %c112 = arith.constant 112 : index
      %c0_115 = arith.constant 0 : index
      %229 = vector.load %arg9[%c112, %c0_115] : memref<256x128xbf16, #tpu.memory_space<vmem>>, vector<16x128xbf16>
      tpu.vector_store %arg9[%c112, %c0_115], %228 {strides = array<i32>} : memref<256x128xbf16, #tpu.memory_space<vmem>>, vector<16x128xbf16>,
      %c8 = arith.constant 8 : index
      %c0_116 = arith.constant 0 : index
      %c0_117 = arith.constant 0 : index
      %230 = vector.load %arg2[%c8, %c0_116, %c0_117] : memref<16x16x128xf32, #tpu.memory_space<vmem>>, vector<1x16x128xf32>
      %231 = vector.shape_cast %230 : vector<1x16x128xf32> to vector<16x128xf32>
      %232 = arith.truncf %231 : vector<16x128xf32> to vector<16x128xbf16>
      %c128 = arith.constant 128 : index
      %c0_118 = arith.constant 0 : index
      %233 = vector.load %arg9[%c128, %c0_118] : memref<256x128xbf16, #tpu.memory_space<vmem>>, vector<16x128xbf16>
      tpu.vector_store %arg9[%c128, %c0_118], %232 {strides = array<i32>} : memref<256x128xbf16, #tpu.memory_space<vmem>>, vector<16x128xbf16>,
      %c9 = arith.constant 9 : index
      %c0_119 = arith.constant 0 : index
      %c0_120 = arith.constant 0 : index
      %234 = vector.load %arg2[%c9, %c0_119, %c0_120] : memref<16x16x128xf32, #tpu.memory_space<vmem>>, vector<1x16x128xf32>
      %235 = vector.shape_cast %234 : vector<1x16x128xf32> to vector<16x128xf32>
      %236 = arith.truncf %235 : vector<16x128xf32> to vector<16x128xbf16>
      %c144 = arith.constant 144 : index
      %c0_121 = arith.constant 0 : index
      %237 = vector.load %arg9[%c144, %c0_121] : memref<256x128xbf16, #tpu.memory_space<vmem>>, vector<16x128xbf16>
      tpu.vector_store %arg9[%c144, %c0_121], %236 {strides = array<i32>} : memref<256x128xbf16, #tpu.memory_space<vmem>>, vector<16x128xbf16>,
      %c10 = arith.constant 10 : index
      %c0_122 = arith.constant 0 : index
      %c0_123 = arith.constant 0 : index
      %238 = vector.load %arg2[%c10, %c0_122, %c0_123] : memref<16x16x128xf32, #tpu.memory_space<vmem>>, vector<1x16x128xf32>
      %239 = vector.shape_cast %238 : vector<1x16x128xf32> to vector<16x128xf32>
      %240 = arith.truncf %239 : vector<16x128xf32> to vector<16x128xbf16>
      %c160 = arith.constant 160 : index
      %c0_124 = arith.constant 0 : index
      %241 = vector.load %arg9[%c160, %c0_124] : memref<256x128xbf16, #tpu.memory_space<vmem>>, vector<16x128xbf16>
      tpu.vector_store %arg9[%c160, %c0_124], %240 {strides = array<i32>} : memref<256x128xbf16, #tpu.memory_space<vmem>>, vector<16x128xbf16>,
      %c11 = arith.constant 11 : index
      %c0_125 = arith.constant 0 : index
      %c0_126 = arith.constant 0 : index
      %242 = vector.load %arg2[%c11, %c0_125, %c0_126] : memref<16x16x128xf32, #tpu.memory_space<vmem>>, vector<1x16x128xf32>
      %243 = vector.shape_cast %242 : vector<1x16x128xf32> to vector<16x128xf32>
      %244 = arith.truncf %243 : vector<16x128xf32> to vector<16x128xbf16>
      %c176 = arith.constant 176 : index
      %c0_127 = arith.constant 0 : index
      %245 = vector.load %arg9[%c176, %c0_127] : memref<256x128xbf16, #tpu.memory_space<vmem>>, vector<16x128xbf16>
      tpu.vector_store %arg9[%c176, %c0_127], %244 {strides = array<i32>} : memref<256x128xbf16, #tpu.memory_space<vmem>>, vector<16x128xbf16>,
      %c12 = arith.constant 12 : index
      %c0_128 = arith.constant 0 : index
      %c0_129 = arith.constant 0 : index
      %246 = vector.load %arg2[%c12, %c0_128, %c0_129] : memref<16x16x128xf32, #tpu.memory_space<vmem>>, vector<1x16x128xf32>
      %247 = vector.shape_cast %246 : vector<1x16x128xf32> to vector<16x128xf32>
      %248 = arith.truncf %247 : vector<16x128xf32> to vector<16x128xbf16>
      %c192 = arith.constant 192 : index
      %c0_130 = arith.constant 0 : index
      %249 = vector.load %arg9[%c192, %c0_130] : memref<256x128xbf16, #tpu.memory_space<vmem>>, vector<16x128xbf16>
      tpu.vector_store %arg9[%c192, %c0_130], %248 {strides = array<i32>} : memref<256x128xbf16, #tpu.memory_space<vmem>>, vector<16x128xbf16>,
      %c13 = arith.constant 13 : index
      %c0_131 = arith.constant 0 : index
      %c0_132 = arith.constant 0 : index
      %250 = vector.load %arg2[%c13, %c0_131, %c0_132] : memref<16x16x128xf32, #tpu.memory_space<vmem>>, vector<1x16x128xf32>
      %251 = vector.shape_cast %250 : vector<1x16x128xf32> to vector<16x128xf32>
      %252 = arith.truncf %251 : vector<16x128xf32> to vector<16x128xbf16>
      %c208 = arith.constant 208 : index
      %c0_133 = arith.constant 0 : index
      %253 = vector.load %arg9[%c208, %c0_133] : memref<256x128xbf16, #tpu.memory_space<vmem>>, vector<16x128xbf16>
      tpu.vector_store %arg9[%c208, %c0_133], %252 {strides = array<i32>} : memref<256x128xbf16, #tpu.memory_space<vmem>>, vector<16x128xbf16>,
      %c14 = arith.constant 14 : index
      %c0_134 = arith.constant 0 : index
      %c0_135 = arith.constant 0 : index
      %254 = vector.load %arg2[%c14, %c0_134, %c0_135] : memref<16x16x128xf32, #tpu.memory_space<vmem>>, vector<1x16x128xf32>
      %255 = vector.shape_cast %254 : vector<1x16x128xf32> to vector<16x128xf32>
      %256 = arith.truncf %255 : vector<16x128xf32> to vector<16x128xbf16>
      %c224 = arith.constant 224 : index
      %c0_136 = arith.constant 0 : index
      %257 = vector.load %arg9[%c224, %c0_136] : memref<256x128xbf16, #tpu.memory_space<vmem>>, vector<16x128xbf16>
      tpu.vector_store %arg9[%c224, %c0_136], %256 {strides = array<i32>} : memref<256x128xbf16, #tpu.memory_space<vmem>>, vector<16x128xbf16>,
      %c15 = arith.constant 15 : index
      %c0_137 = arith.constant 0 : index
      %c0_138 = arith.constant 0 : index
      %258 = vector.load %arg2[%c15, %c0_137, %c0_138] : memref<16x16x128xf32, #tpu.memory_space<vmem>>, vector<1x16x128xf32>
      %259 = vector.shape_cast %258 : vector<1x16x128xf32> to vector<16x128xf32>
      %260 = arith.truncf %259 : vector<16x128xf32> to vector<16x128xbf16>
      %c240 = arith.constant 240 : index
      %c0_139 = arith.constant 0 : index
      %261 = vector.load %arg9[%c240, %c0_139] : memref<256x128xbf16, #tpu.memory_space<vmem>>, vector<16x128xbf16>
      tpu.vector_store %arg9[%c240, %c0_139], %260 {strides = array<i32>} : memref<256x128xbf16, #tpu.memory_space<vmem>>, vector<16x128xbf16>,
      %cst_140 = arith.constant 0.000000e+00 : f32
      %262 = vector.broadcast %cst_140 : f32 to vector<1x32x2xf32>
      %c0_141 = arith.constant 0 : index
      %c0_142 = arith.constant 0 : index
      %c0_143 = arith.constant 0 : index
      %263 = vector.load %arg8[%c0_141, %c0_142, %c0_143] : memref<1x32x2xf32, #tpu.memory_space<vmem>>, vector<1x32x2xf32>
      tpu.vector_store %arg8[%c0_141, %c0_142, %c0_143], %262 {strides = array<i32>} : memref<1x32x2xf32, #tpu.memory_space<vmem>>, vector<1x32x2xf32>,
    } else {
    }
    %c0 = arith.constant 0 : index
    %c0_1 = arith.constant 0 : index
    %3 = vector.load %arg3[%c0, %c0_1] : memref<32x16xbf16, #tpu.memory_space<vmem>>, vector<32x16xbf16>
    %c0_2 = arith.constant 0 : index
    %c0_3 = arith.constant 0 : index
    %4 = vector.load %arg4[%c0_2, %c0_3] : memref<32x1xf32, #tpu.memory_space<vmem>>, vector<32x1xf32>
    %5 = tpu.iota {dimensions = array<i32: 1>} : vector<1x128xi32>
    %c128_i32 = arith.constant 128 : i32
    %6 = arith.muli %arg0, %c128_i32 : i32
    %7 = vector.broadcast %6 : i32 to vector<1x128xi32>
    %8 = arith.addi %7, %5 : vector<1x128xi32>
    %c32_i32 = arith.constant 32 : i32
    %9 = vector.broadcast %c32_i32 : i32 to vector<1x128xi32>
    %10 = arith.cmpi slt, %8, %9 : vector<1x128xi32>
    %11 = arith.extui %10 : vector<1x128xi1> to vector<1x128xi32>
    %12 = arith.sitofp %11 : vector<1x128xi32> to vector<1x128xf32>
    %cst = arith.constant 0.000000e+00 : f32
    %13 = vector.broadcast %cst : f32 to vector<32x1xf32>
    %cst_4 = arith.constant 0.000000e+00 : f32
    %14 = vector.broadcast %cst_4 : f32 to vector<32x1xf32>
    %c8_i32 = arith.constant 8 : i32
    %15 = arith.muli %arg1, %c8_i32 : i32
    %c0_i32_5 = arith.constant 0 : i32
    %16 = arith.addi %15, %c0_i32_5 : i32
    %c1_i32 = arith.constant 1 : i32
    %17 = arith.muli %16, %c1_i32 : i32
    %c16_i32 = arith.constant 16 : i32
    %18 = arith.muli %17, %c16_i32 : i32
    %19 = tpu.assume_multiple %18, 16 : i32
    %20 = arith.index_cast %19 : i32 to index
    %c0_6 = arith.constant 0 : index
    %21 = vector.load %arg9[%20, %c0_6] : memref<256x128xbf16, #tpu.memory_space<vmem>>, vector<16x128xbf16>
    %cst_7 = arith.constant dense<0.000000e+00> : vector<32x128xf32>
    %22 = tpu.matmul %3, %21, %cst_7 {dimension_numbers = #tpu.dot_dimension_numbers<[1], [0], [0], [1], [0, 0, 1, 1], [], []>} : vector<32x16xbf16>, vector<16x128xbf16>, vector<32x128xf32> -> vector<32x128xf32>
    %23 = vector.broadcast %4 : vector<32x1xf32> to vector<32x128xf32>
    %24 = arith.addf %22, %23 : vector<32x128xf32>
    %c0_8 = arith.constant 0 : index
    %c0_9 = arith.constant 0 : index
    %c0_10 = arith.constant 0 : index
    %25 = vector.load %arg7[%c0_8, %c0_9, %c0_10] : memref<8x32x128xf32, #tpu.memory_space<vmem>>, vector<1x32x128xf32>
    %26 = vector.shape_cast %25 : vector<1x32x128xf32> to vector<32x128xf32>
    %27 = vector.shape_cast %24 : vector<32x128xf32> to vector<1x32x128xf32>
    tpu.vector_store %arg7[%c0_8, %c0_9, %c0_10], %27 {strides = array<i32>} : memref<8x32x128xf32, #tpu.memory_space<vmem>>, vector<1x32x128xf32>,
    %28 = vector.broadcast %12 : vector<1x128xf32> to vector<32x128xf32>
    %29 = arith.mulf %24, %28 : vector<32x128xf32>
    %cst_11 = arith.constant dense<0.000000e+00> : vector<32xf32>
    %30 = vector.multi_reduction <add>, %29, %cst_11 [1] : vector<32x128xf32> to vector<32xf32>
    %31 = vector.shape_cast %30 : vector<32xf32> to vector<32x1xf32>
    %32 = arith.addf %13, %31 : vector<32x1xf32>
    %33 = arith.mulf %29, %24 : vector<32x128xf32>
    %cst_12 = arith.constant dense<0.000000e+00> : vector<32xf32>
    %34 = vector.multi_reduction <add>, %33, %cst_12 [1] : vector<32x128xf32> to vector<32xf32>
    %35 = vector.shape_cast %34 : vector<32xf32> to vector<32x1xf32>
    %36 = arith.addf %14, %35 : vector<32x1xf32>
    %c8_i32_13 = arith.constant 8 : i32
    %37 = arith.muli %arg1, %c8_i32_13 : i32
    %c1_i32_14 = arith.constant 1 : i32
    %38 = arith.addi %37, %c1_i32_14 : i32
    %c1_i32_15 = arith.constant 1 : i32
    %39 = arith.muli %38, %c1_i32_15 : i32
    %c16_i32_16 = arith.constant 16 : i32
    %40 = arith.muli %39, %c16_i32_16 : i32
    %41 = tpu.assume_multiple %40, 16 : i32
    %42 = arith.index_cast %41 : i32 to index
    %c0_17 = arith.constant 0 : index
    %43 = vector.load %arg9[%42, %c0_17] : memref<256x128xbf16, #tpu.memory_space<vmem>>, vector<16x128xbf16>
    %cst_18 = arith.constant dense<0.000000e+00> : vector<32x128xf32>
    %44 = tpu.matmul %3, %43, %cst_18 {dimension_numbers = #tpu.dot_dimension_numbers<[1], [0], [0], [1], [0, 0, 1, 1], [], []>} : vector<32x16xbf16>, vector<16x128xbf16>, vector<32x128xf32> -> vector<32x128xf32>
    %45 = vector.broadcast %4 : vector<32x1xf32> to vector<32x128xf32>
    %46 = arith.addf %44, %45 : vector<32x128xf32>
    %c1 = arith.constant 1 : index
    %c0_19 = arith.constant 0 : index
    %c0_20 = arith.constant 0 : index
    %47 = vector.load %arg7[%c1, %c0_19, %c0_20] : memref<8x32x128xf32, #tpu.memory_space<vmem>>, vector<1x32x128xf32>
    %48 = vector.shape_cast %47 : vector<1x32x128xf32> to vector<32x128xf32>
    %49 = vector.shape_cast %46 : vector<32x128xf32> to vector<1x32x128xf32>
    tpu.vector_store %arg7[%c1, %c0_19, %c0_20], %49 {strides = array<i32>} : memref<8x32x128xf32, #tpu.memory_space<vmem>>, vector<1x32x128xf32>,
    %50 = vector.broadcast %12 : vector<1x128xf32> to vector<32x128xf32>
    %51 = arith.mulf %46, %50 : vector<32x128xf32>
    %cst_21 = arith.constant dense<0.000000e+00> : vector<32xf32>
    %52 = vector.multi_reduction <add>, %51, %cst_21 [1] : vector<32x128xf32> to vector<32xf32>
    %53 = vector.shape_cast %52 : vector<32xf32> to vector<32x1xf32>
    %54 = arith.addf %32, %53 : vector<32x1xf32>
    %55 = arith.mulf %51, %46 : vector<32x128xf32>
    %cst_22 = arith.constant dense<0.000000e+00> : vector<32xf32>
    %56 = vector.multi_reduction <add>, %55, %cst_22 [1] : vector<32x128xf32> to vector<32xf32>
    %57 = vector.shape_cast %56 : vector<32xf32> to vector<32x1xf32>
    %58 = arith.addf %36, %57 : vector<32x1xf32>
    %c8_i32_23 = arith.constant 8 : i32
    %59 = arith.muli %arg1, %c8_i32_23 : i32
    %c2_i32 = arith.constant 2 : i32
    %60 = arith.addi %59, %c2_i32 : i32
    %c1_i32_24 = arith.constant 1 : i32
    %61 = arith.muli %60, %c1_i32_24 : i32
    %c16_i32_25 = arith.constant 16 : i32
    %62 = arith.muli %61, %c16_i32_25 : i32
    %63 = tpu.assume_multiple %62, 16 : i32
    %64 = arith.index_cast %63 : i32 to index
    %c0_26 = arith.constant 0 : index
    %65 = vector.load %arg9[%64, %c0_26] : memref<256x128xbf16, #tpu.memory_space<vmem>>, vector<16x128xbf16>
    %cst_27 = arith.constant dense<0.000000e+00> : vector<32x128xf32>
    %66 = tpu.matmul %3, %65, %cst_27 {dimension_numbers = #tpu.dot_dimension_numbers<[1], [0], [0], [1], [0, 0, 1, 1], [], []>} : vector<32x16xbf16>, vector<16x128xbf16>, vector<32x128xf32> -> vector<32x128xf32>
    %67 = vector.broadcast %4 : vector<32x1xf32> to vector<32x128xf32>
    %68 = arith.addf %66, %67 : vector<32x128xf32>
    %c2 = arith.constant 2 : index
    %c0_28 = arith.constant 0 : index
    %c0_29 = arith.constant 0 : index
    %69 = vector.load %arg7[%c2, %c0_28, %c0_29] : memref<8x32x128xf32, #tpu.memory_space<vmem>>, vector<1x32x128xf32>
    %70 = vector.shape_cast %69 : vector<1x32x128xf32> to vector<32x128xf32>
    %71 = vector.shape_cast %68 : vector<32x128xf32> to vector<1x32x128xf32>
    tpu.vector_store %arg7[%c2, %c0_28, %c0_29], %71 {strides = array<i32>} : memref<8x32x128xf32, #tpu.memory_space<vmem>>, vector<1x32x128xf32>,
    %72 = vector.broadcast %12 : vector<1x128xf32> to vector<32x128xf32>
    %73 = arith.mulf %68, %72 : vector<32x128xf32>
    %cst_30 = arith.constant dense<0.000000e+00> : vector<32xf32>
    %74 = vector.multi_reduction <add>, %73, %cst_30 [1] : vector<32x128xf32> to vector<32xf32>
    %75 = vector.shape_cast %74 : vector<32xf32> to vector<32x1xf32>
    %76 = arith.addf %54, %75 : vector<32x1xf32>
    %77 = arith.mulf %73, %68 : vector<32x128xf32>
    %cst_31 = arith.constant dense<0.000000e+00> : vector<32xf32>
    %78 = vector.multi_reduction <add>, %77, %cst_31 [1] : vector<32x128xf32> to vector<32xf32>
    %79 = vector.shape_cast %78 : vector<32xf32> to vector<32x1xf32>
    %80 = arith.addf %58, %79 : vector<32x1xf32>
    %c8_i32_32 = arith.constant 8 : i32
    %81 = arith.muli %arg1, %c8_i32_32 : i32
    %c3_i32 = arith.constant 3 : i32
    %82 = arith.addi %81, %c3_i32 : i32
    %c1_i32_33 = arith.constant 1 : i32
    %83 = arith.muli %82, %c1_i32_33 : i32
    %c16_i32_34 = arith.constant 16 : i32
    %84 = arith.muli %83, %c16_i32_34 : i32
    %85 = tpu.assume_multiple %84, 16 : i32
    %86 = arith.index_cast %85 : i32 to index
    %c0_35 = arith.constant 0 : index
    %87 = vector.load %arg9[%86, %c0_35] : memref<256x128xbf16, #tpu.memory_space<vmem>>, vector<16x128xbf16>
    %cst_36 = arith.constant dense<0.000000e+00> : vector<32x128xf32>
    %88 = tpu.matmul %3, %87, %cst_36 {dimension_numbers = #tpu.dot_dimension_numbers<[1], [0], [0], [1], [0, 0, 1, 1], [], []>} : vector<32x16xbf16>, vector<16x128xbf16>, vector<32x128xf32> -> vector<32x128xf32>
    %89 = vector.broadcast %4 : vector<32x1xf32> to vector<32x128xf32>
    %90 = arith.addf %88, %89 : vector<32x128xf32>
    %c3 = arith.constant 3 : index
    %c0_37 = arith.constant 0 : index
    %c0_38 = arith.constant 0 : index
    %91 = vector.load %arg7[%c3, %c0_37, %c0_38] : memref<8x32x128xf32, #tpu.memory_space<vmem>>, vector<1x32x128xf32>
    %92 = vector.shape_cast %91 : vector<1x32x128xf32> to vector<32x128xf32>
    %93 = vector.shape_cast %90 : vector<32x128xf32> to vector<1x32x128xf32>
    tpu.vector_store %arg7[%c3, %c0_37, %c0_38], %93 {strides = array<i32>} : memref<8x32x128xf32, #tpu.memory_space<vmem>>, vector<1x32x128xf32>,
    %94 = vector.broadcast %12 : vector<1x128xf32> to vector<32x128xf32>
    %95 = arith.mulf %90, %94 : vector<32x128xf32>
    %cst_39 = arith.constant dense<0.000000e+00> : vector<32xf32>
    %96 = vector.multi_reduction <add>, %95, %cst_39 [1] : vector<32x128xf32> to vector<32xf32>
    %97 = vector.shape_cast %96 : vector<32xf32> to vector<32x1xf32>
    %98 = arith.addf %76, %97 : vector<32x1xf32>
    %99 = arith.mulf %95, %90 : vector<32x128xf32>
    %cst_40 = arith.constant dense<0.000000e+00> : vector<32xf32>
    %100 = vector.multi_reduction <add>, %99, %cst_40 [1] : vector<32x128xf32> to vector<32xf32>
    %101 = vector.shape_cast %100 : vector<32xf32> to vector<32x1xf32>
    %102 = arith.addf %80, %101 : vector<32x1xf32>
    %c8_i32_41 = arith.constant 8 : i32
    %103 = arith.muli %arg1, %c8_i32_41 : i32
    %c4_i32 = arith.constant 4 : i32
    %104 = arith.addi %103, %c4_i32 : i32
    %c1_i32_42 = arith.constant 1 : i32
    %105 = arith.muli %104, %c1_i32_42 : i32
    %c16_i32_43 = arith.constant 16 : i32
    %106 = arith.muli %105, %c16_i32_43 : i32
    %107 = tpu.assume_multiple %106, 16 : i32
    %108 = arith.index_cast %107 : i32 to index
    %c0_44 = arith.constant 0 : index
    %109 = vector.load %arg9[%108, %c0_44] : memref<256x128xbf16, #tpu.memory_space<vmem>>, vector<16x128xbf16>
    %cst_45 = arith.constant dense<0.000000e+00> : vector<32x128xf32>
    %110 = tpu.matmul %3, %109, %cst_45 {dimension_numbers = #tpu.dot_dimension_numbers<[1], [0], [0], [1], [0, 0, 1, 1], [], []>} : vector<32x16xbf16>, vector<16x128xbf16>, vector<32x128xf32> -> vector<32x128xf32>
    %111 = vector.broadcast %4 : vector<32x1xf32> to vector<32x128xf32>
    %112 = arith.addf %110, %111 : vector<32x128xf32>
    %c4 = arith.constant 4 : index
    %c0_46 = arith.constant 0 : index
    %c0_47 = arith.constant 0 : index
    %113 = vector.load %arg7[%c4, %c0_46, %c0_47] : memref<8x32x128xf32, #tpu.memory_space<vmem>>, vector<1x32x128xf32>
    %114 = vector.shape_cast %113 : vector<1x32x128xf32> to vector<32x128xf32>
    %115 = vector.shape_cast %112 : vector<32x128xf32> to vector<1x32x128xf32>
    tpu.vector_store %arg7[%c4, %c0_46, %c0_47], %115 {strides = array<i32>} : memref<8x32x128xf32, #tpu.memory_space<vmem>>, vector<1x32x128xf32>,
    %116 = vector.broadcast %12 : vector<1x128xf32> to vector<32x128xf32>
    %117 = arith.mulf %112, %116 : vector<32x128xf32>
    %cst_48 = arith.constant dense<0.000000e+00> : vector<32xf32>
    %118 = vector.multi_reduction <add>, %117, %cst_48 [1] : vector<32x128xf32> to vector<32xf32>
    %119 = vector.shape_cast %118 : vector<32xf32> to vector<32x1xf32>
    %120 = arith.addf %98, %119 : vector<32x1xf32>
    %121 = arith.mulf %117, %112 : vector<32x128xf32>
    %cst_49 = arith.constant dense<0.000000e+00> : vector<32xf32>
    %122 = vector.multi_reduction <add>, %121, %cst_49 [1] : vector<32x128xf32> to vector<32xf32>
    %123 = vector.shape_cast %122 : vector<32xf32> to vector<32x1xf32>
    %124 = arith.addf %102, %123 : vector<32x1xf32>
    %c8_i32_50 = arith.constant 8 : i32
    %125 = arith.muli %arg1, %c8_i32_50 : i32
    %c5_i32 = arith.constant 5 : i32
    %126 = arith.addi %125, %c5_i32 : i32
    %c1_i32_51 = arith.constant 1 : i32
    %127 = arith.muli %126, %c1_i32_51 : i32
    %c16_i32_52 = arith.constant 16 : i32
    %128 = arith.muli %127, %c16_i32_52 : i32
    %129 = tpu.assume_multiple %128, 16 : i32
    %130 = arith.index_cast %129 : i32 to index
    %c0_53 = arith.constant 0 : index
    %131 = vector.load %arg9[%130, %c0_53] : memref<256x128xbf16, #tpu.memory_space<vmem>>, vector<16x128xbf16>
    %cst_54 = arith.constant dense<0.000000e+00> : vector<32x128xf32>
    %132 = tpu.matmul %3, %131, %cst_54 {dimension_numbers = #tpu.dot_dimension_numbers<[1], [0], [0], [1], [0, 0, 1, 1], [], []>} : vector<32x16xbf16>, vector<16x128xbf16>, vector<32x128xf32> -> vector<32x128xf32>
    %133 = vector.broadcast %4 : vector<32x1xf32> to vector<32x128xf32>
    %134 = arith.addf %132, %133 : vector<32x128xf32>
    %c5 = arith.constant 5 : index
    %c0_55 = arith.constant 0 : index
    %c0_56 = arith.constant 0 : index
    %135 = vector.load %arg7[%c5, %c0_55, %c0_56] : memref<8x32x128xf32, #tpu.memory_space<vmem>>, vector<1x32x128xf32>
    %136 = vector.shape_cast %135 : vector<1x32x128xf32> to vector<32x128xf32>
    %137 = vector.shape_cast %134 : vector<32x128xf32> to vector<1x32x128xf32>
    tpu.vector_store %arg7[%c5, %c0_55, %c0_56], %137 {strides = array<i32>} : memref<8x32x128xf32, #tpu.memory_space<vmem>>, vector<1x32x128xf32>,
    %138 = vector.broadcast %12 : vector<1x128xf32> to vector<32x128xf32>
    %139 = arith.mulf %134, %138 : vector<32x128xf32>
    %cst_57 = arith.constant dense<0.000000e+00> : vector<32xf32>
    %140 = vector.multi_reduction <add>, %139, %cst_57 [1] : vector<32x128xf32> to vector<32xf32>
    %141 = vector.shape_cast %140 : vector<32xf32> to vector<32x1xf32>
    %142 = arith.addf %120, %141 : vector<32x1xf32>
    %143 = arith.mulf %139, %134 : vector<32x128xf32>
    %cst_58 = arith.constant dense<0.000000e+00> : vector<32xf32>
    %144 = vector.multi_reduction <add>, %143, %cst_58 [1] : vector<32x128xf32> to vector<32xf32>
    %145 = vector.shape_cast %144 : vector<32xf32> to vector<32x1xf32>
    %146 = arith.addf %124, %145 : vector<32x1xf32>
    %c8_i32_59 = arith.constant 8 : i32
    %147 = arith.muli %arg1, %c8_i32_59 : i32
    %c6_i32 = arith.constant 6 : i32
    %148 = arith.addi %147, %c6_i32 : i32
    %c1_i32_60 = arith.constant 1 : i32
    %149 = arith.muli %148, %c1_i32_60 : i32
    %c16_i32_61 = arith.constant 16 : i32
    %150 = arith.muli %149, %c16_i32_61 : i32
    %151 = tpu.assume_multiple %150, 16 : i32
    %152 = arith.index_cast %151 : i32 to index
    %c0_62 = arith.constant 0 : index
    %153 = vector.load %arg9[%152, %c0_62] : memref<256x128xbf16, #tpu.memory_space<vmem>>, vector<16x128xbf16>
    %cst_63 = arith.constant dense<0.000000e+00> : vector<32x128xf32>
    %154 = tpu.matmul %3, %153, %cst_63 {dimension_numbers = #tpu.dot_dimension_numbers<[1], [0], [0], [1], [0, 0, 1, 1], [], []>} : vector<32x16xbf16>, vector<16x128xbf16>, vector<32x128xf32> -> vector<32x128xf32>
    %155 = vector.broadcast %4 : vector<32x1xf32> to vector<32x128xf32>
    %156 = arith.addf %154, %155 : vector<32x128xf32>
    %c6 = arith.constant 6 : index
    %c0_64 = arith.constant 0 : index
    %c0_65 = arith.constant 0 : index
    %157 = vector.load %arg7[%c6, %c0_64, %c0_65] : memref<8x32x128xf32, #tpu.memory_space<vmem>>, vector<1x32x128xf32>
    %158 = vector.shape_cast %157 : vector<1x32x128xf32> to vector<32x128xf32>
    %159 = vector.shape_cast %156 : vector<32x128xf32> to vector<1x32x128xf32>
    tpu.vector_store %arg7[%c6, %c0_64, %c0_65], %159 {strides = array<i32>} : memref<8x32x128xf32, #tpu.memory_space<vmem>>, vector<1x32x128xf32>,
    %160 = vector.broadcast %12 : vector<1x128xf32> to vector<32x128xf32>
    %161 = arith.mulf %156, %160 : vector<32x128xf32>
    %cst_66 = arith.constant dense<0.000000e+00> : vector<32xf32>
    %162 = vector.multi_reduction <add>, %161, %cst_66 [1] : vector<32x128xf32> to vector<32xf32>
    %163 = vector.shape_cast %162 : vector<32xf32> to vector<32x1xf32>
    %164 = arith.addf %142, %163 : vector<32x1xf32>
    %165 = arith.mulf %161, %156 : vector<32x128xf32>
    %cst_67 = arith.constant dense<0.000000e+00> : vector<32xf32>
    %166 = vector.multi_reduction <add>, %165, %cst_67 [1] : vector<32x128xf32> to vector<32xf32>
    %167 = vector.shape_cast %166 : vector<32xf32> to vector<32x1xf32>
    %168 = arith.addf %146, %167 : vector<32x1xf32>
    %c8_i32_68 = arith.constant 8 : i32
    %169 = arith.muli %arg1, %c8_i32_68 : i32
    %c7_i32 = arith.constant 7 : i32
    %170 = arith.addi %169, %c7_i32 : i32
    %c1_i32_69 = arith.constant 1 : i32
    %171 = arith.muli %170, %c1_i32_69 : i32
    %c16_i32_70 = arith.constant 16 : i32
    %172 = arith.muli %171, %c16_i32_70 : i32
    %173 = tpu.assume_multiple %172, 16 : i32
    %174 = arith.index_cast %173 : i32 to index
    %c0_71 = arith.constant 0 : index
    %175 = vector.load %arg9[%174, %c0_71] : memref<256x128xbf16, #tpu.memory_space<vmem>>, vector<16x128xbf16>
    %cst_72 = arith.constant dense<0.000000e+00> : vector<32x128xf32>
    %176 = tpu.matmul %3, %175, %cst_72 {dimension_numbers = #tpu.dot_dimension_numbers<[1], [0], [0], [1], [0, 0, 1, 1], [], []>} : vector<32x16xbf16>, vector<16x128xbf16>, vector<32x128xf32> -> vector<32x128xf32>
    %177 = vector.broadcast %4 : vector<32x1xf32> to vector<32x128xf32>
    %178 = arith.addf %176, %177 : vector<32x128xf32>
    %c7 = arith.constant 7 : index
    %c0_73 = arith.constant 0 : index
    %c0_74 = arith.constant 0 : index
    %179 = vector.load %arg7[%c7, %c0_73, %c0_74] : memref<8x32x128xf32, #tpu.memory_space<vmem>>, vector<1x32x128xf32>
    %180 = vector.shape_cast %179 : vector<1x32x128xf32> to vector<32x128xf32>
    %181 = vector.shape_cast %178 : vector<32x128xf32> to vector<1x32x128xf32>
    tpu.vector_store %arg7[%c7, %c0_73, %c0_74], %181 {strides = array<i32>} : memref<8x32x128xf32, #tpu.memory_space<vmem>>, vector<1x32x128xf32>,
    %182 = vector.broadcast %12 : vector<1x128xf32> to vector<32x128xf32>
    %183 = arith.mulf %178, %182 : vector<32x128xf32>
    %cst_75 = arith.constant dense<0.000000e+00> : vector<32xf32>
    %184 = vector.multi_reduction <add>, %183, %cst_75 [1] : vector<32x128xf32> to vector<32xf32>
    %185 = vector.shape_cast %184 : vector<32xf32> to vector<32x1xf32>
    %186 = arith.addf %164, %185 : vector<32x1xf32>
    %187 = arith.mulf %183, %178 : vector<32x128xf32>
    %cst_76 = arith.constant dense<0.000000e+00> : vector<32xf32>
    %188 = vector.multi_reduction <add>, %187, %cst_76 [1] : vector<32x128xf32> to vector<32xf32>
    %189 = vector.shape_cast %188 : vector<32xf32> to vector<32x1xf32>
    %190 = arith.addf %168, %189 : vector<32x1xf32>
    %c0_77 = arith.constant 0 : index
    %c0_78 = arith.constant 0 : index
    %c0_79 = arith.constant 0 : index
    %191 = vector.load %arg8[%c0_77, %c0_78, %c0_79] : memref<1x32x2xf32, #tpu.memory_space<vmem>>, vector<1x32x2xf32>
    %192 = vector.shape_cast %191 : vector<1x32x2xf32> to vector<32x2xf32>
    %193 = tpu.concatenate %186, %190 in 1 : vector<32x1xf32>, vector<32x1xf32> -> vector<32x2xf32>
    %194 = arith.addf %192, %193 : vector<32x2xf32>
    %c0_80 = arith.constant 0 : index
    %c0_81 = arith.constant 0 : index
    %c0_82 = arith.constant 0 : index
    %195 = vector.load %arg8[%c0_80, %c0_81, %c0_82] : memref<1x32x2xf32, #tpu.memory_space<vmem>>, vector<1x32x2xf32>
    %196 = vector.shape_cast %195 : vector<1x32x2xf32> to vector<32x2xf32>
    %197 = vector.shape_cast %194 : vector<32x2xf32> to vector<1x32x2xf32>
    tpu.vector_store %arg8[%c0_80, %c0_81, %c0_82], %197 {strides = array<i32>} : memref<1x32x2xf32, #tpu.memory_space<vmem>>, vector<1x32x2xf32>,
    return
  }
  func.func @transform_0(%arg0: i32, %arg1: i32) -> (i32, i32, i32) {
    %c0_i32 = arith.constant 0 : i32
    %c0_i32_0 = arith.constant 0 : i32
    %c0_i32_1 = arith.constant 0 : i32
    return %c0_i32, %c0_i32_0, %arg0 : i32, i32, i32
  }
  func.func @transform_1(%arg0: i32, %arg1: i32) -> (i32, i32) {
    %c0_i32 = arith.constant 0 : i32
    %c0_i32_0 = arith.constant 0 : i32
    %c0_i32_1 = arith.constant 0 : i32
    return %c0_i32, %c0_i32_0 : i32, i32
  }
  func.func @transform_2(%arg0: i32, %arg1: i32) -> (i32, i32) {
    %c0_i32 = arith.constant 0 : i32
    %c0_i32_0 = arith.constant 0 : i32
    %c0_i32_1 = arith.constant 0 : i32
    return %c0_i32, %c0_i32_0 : i32, i32
  }
  func.func @transform_3(%arg0: i32, %arg1: i32) -> (i32, i32) {
    %c0_i32 = arith.constant 0 : i32
    %c0_i32_0 = arith.constant 0 : i32
    %c0_i32_1 = arith.constant 0 : i32
    return %c0_i32, %c0_i32_0 : i32, i32
  }
  func.func @transform_4(%arg0: i32, %arg1: i32) -> (i32, i32) {
    %c0_i32 = arith.constant 0 : i32
    %c0_i32_0 = arith.constant 0 : i32
    %c0_i32_1 = arith.constant 0 : i32
    return %c0_i32, %c0_i32_0 : i32, i32
  }
  func.func @transform_5(%arg0: i32, %arg1: i32) -> (i32, i32, i32) {
    %c0_i32 = arith.constant 0 : i32
    %c0_i32_0 = arith.constant 0 : i32
    return %arg1, %c0_i32, %arg0 : i32, i32, i32
  }
  func.func @transform_6(%arg0: i32, %arg1: i32) -> (i32, i32, i32) {
    %c0_i32 = arith.constant 0 : i32
    %c0_i32_0 = arith.constant 0 : i32
    %c0_i32_1 = arith.constant 0 : i32
    return %arg0, %c0_i32, %c0_i32_0 : i32, i32, i32
  }
}

module attributes {stable_mosaic.version = 11 : i64} {
  func.func @_conv_kernel(%arg0: i32, %arg1: i32, %arg2: memref<16x32x128xbf16, #tpu.memory_space<vmem>>, %arg3: memref<32x96xbf16, #tpu.memory_space<vmem>>, %arg4: memref<32x1xf32, #tpu.memory_space<vmem>>, %arg5: memref<32x1xf32, #tpu.memory_space<vmem>>, %arg6: memref<32x1xf32, #tpu.memory_space<vmem>>, %arg7: memref<8x32x128xbf16, #tpu.memory_space<vmem>>, %arg8: memref<1x32x2xf32, #tpu.memory_space<vmem>>, %arg9: memref<576x128xbf16, #tpu.memory_space<vmem>>) attributes {dimension_semantics = [#tpu.dimension_semantics<parallel>, #tpu.dimension_semantics<arbitrary>], iteration_bounds = array<i64: 1, 2>, scalar_prefetch = 0 : i64, scratch_operands = 1 : i64, tpu.core_type = #tpu.core_type<tc>, window_params = [{transform_indices = @transform_0, window_bounds = array<i64: 16, 32, 128>}, {pipeline_mode = #tpu.pipeline_mode<synchronous>, transform_indices = @transform_1, window_bounds = array<i64: 32, 96>}, {pipeline_mode = #tpu.pipeline_mode<synchronous>, transform_indices = @transform_2, window_bounds = array<i64: 32, 1>}, {pipeline_mode = #tpu.pipeline_mode<synchronous>, transform_indices = @transform_3, window_bounds = array<i64: 32, 1>}, {pipeline_mode = #tpu.pipeline_mode<synchronous>, transform_indices = @transform_4, window_bounds = array<i64: 32, 1>}, {transform_indices = @transform_5, window_bounds = array<i64: 8, 32, 128>}, {transform_indices = @transform_6, window_bounds = array<i64: 1, 32, 2>}]} {
    %c0_i32 = arith.constant 0 : i32
    %0 = arith.cmpi eq, %arg1, %c0_i32 : i32
    %1 = arith.extui %0 : i1 to i32
    %c0_i32_0 = arith.constant 0 : i32
    %2 = arith.cmpi ne, %1, %c0_i32_0 : i32
    scf.if %2 {
      %cst_84 = arith.constant 0.000000e+00 : bf16
      %206 = vector.broadcast %cst_84 : bf16 to vector<32x128xbf16>
      %c0_85 = arith.constant 0 : index
      %c0_86 = arith.constant 0 : index
      %207 = vector.load %arg9[%c0_85, %c0_86] : memref<576x128xbf16, #tpu.memory_space<vmem>>, vector<32x128xbf16>
      tpu.vector_store %arg9[%c0_85, %c0_86], %206 {strides = array<i32>} : memref<576x128xbf16, #tpu.memory_space<vmem>>, vector<32x128xbf16>,
      %cst_87 = arith.constant 0.000000e+00 : bf16
      %208 = vector.broadcast %cst_87 : bf16 to vector<32x128xbf16>
      %c544 = arith.constant 544 : index
      %c0_88 = arith.constant 0 : index
      %209 = vector.load %arg9[%c544, %c0_88] : memref<576x128xbf16, #tpu.memory_space<vmem>>, vector<32x128xbf16>
      tpu.vector_store %arg9[%c544, %c0_88], %208 {strides = array<i32>} : memref<576x128xbf16, #tpu.memory_space<vmem>>, vector<32x128xbf16>,
      %c0_89 = arith.constant 0 : index
      %c0_90 = arith.constant 0 : index
      %210 = vector.load %arg5[%c0_89, %c0_90] : memref<32x1xf32, #tpu.memory_space<vmem>>, vector<32x1xf32>
      %c0_91 = arith.constant 0 : index
      %c0_92 = arith.constant 0 : index
      %211 = vector.load %arg6[%c0_91, %c0_92] : memref<32x1xf32, #tpu.memory_space<vmem>>, vector<32x1xf32>
      %c0_93 = arith.constant 0 : index
      %c0_94 = arith.constant 0 : index
      %c0_95 = arith.constant 0 : index
      %212 = vector.load %arg2[%c0_93, %c0_94, %c0_95] : memref<16x32x128xbf16, #tpu.memory_space<vmem>>, vector<1x32x128xbf16>
      %213 = vector.shape_cast %212 : vector<1x32x128xbf16> to vector<32x128xbf16>
      %214 = arith.extf %213 : vector<32x128xbf16> to vector<32x128xf32>
      %215 = vector.broadcast %210 : vector<32x1xf32> to vector<32x128xf32>
      %216 = arith.subf %214, %215 : vector<32x128xf32>
      %217 = vector.broadcast %211 : vector<32x1xf32> to vector<32x128xf32>
      %218 = arith.mulf %216, %217 : vector<32x128xf32>
      %cst_96 = arith.constant 0.000000e+00 : f32
      %219 = vector.broadcast %cst_96 : f32 to vector<32x128xf32>
      %220 = arith.maximumf %218, %219 : vector<32x128xf32>
      %221 = arith.truncf %220 : vector<32x128xf32> to vector<32x128xbf16>
      %c32 = arith.constant 32 : index
      %c0_97 = arith.constant 0 : index
      %222 = vector.load %arg9[%c32, %c0_97] : memref<576x128xbf16, #tpu.memory_space<vmem>>, vector<32x128xbf16>
      tpu.vector_store %arg9[%c32, %c0_97], %221 {strides = array<i32>} : memref<576x128xbf16, #tpu.memory_space<vmem>>, vector<32x128xbf16>,
      %c1_98 = arith.constant 1 : index
      %c0_99 = arith.constant 0 : index
      %c0_100 = arith.constant 0 : index
      %223 = vector.load %arg2[%c1_98, %c0_99, %c0_100] : memref<16x32x128xbf16, #tpu.memory_space<vmem>>, vector<1x32x128xbf16>
      %224 = vector.shape_cast %223 : vector<1x32x128xbf16> to vector<32x128xbf16>
      %225 = arith.extf %224 : vector<32x128xbf16> to vector<32x128xf32>
      %226 = vector.broadcast %210 : vector<32x1xf32> to vector<32x128xf32>
      %227 = arith.subf %225, %226 : vector<32x128xf32>
      %228 = vector.broadcast %211 : vector<32x1xf32> to vector<32x128xf32>
      %229 = arith.mulf %227, %228 : vector<32x128xf32>
      %cst_101 = arith.constant 0.000000e+00 : f32
      %230 = vector.broadcast %cst_101 : f32 to vector<32x128xf32>
      %231 = arith.maximumf %229, %230 : vector<32x128xf32>
      %232 = arith.truncf %231 : vector<32x128xf32> to vector<32x128xbf16>
      %c64 = arith.constant 64 : index
      %c0_102 = arith.constant 0 : index
      %233 = vector.load %arg9[%c64, %c0_102] : memref<576x128xbf16, #tpu.memory_space<vmem>>, vector<32x128xbf16>
      tpu.vector_store %arg9[%c64, %c0_102], %232 {strides = array<i32>} : memref<576x128xbf16, #tpu.memory_space<vmem>>, vector<32x128xbf16>,
      %c2_103 = arith.constant 2 : index
      %c0_104 = arith.constant 0 : index
      %c0_105 = arith.constant 0 : index
      %234 = vector.load %arg2[%c2_103, %c0_104, %c0_105] : memref<16x32x128xbf16, #tpu.memory_space<vmem>>, vector<1x32x128xbf16>
      %235 = vector.shape_cast %234 : vector<1x32x128xbf16> to vector<32x128xbf16>
      %236 = arith.extf %235 : vector<32x128xbf16> to vector<32x128xf32>
      %237 = vector.broadcast %210 : vector<32x1xf32> to vector<32x128xf32>
      %238 = arith.subf %236, %237 : vector<32x128xf32>
      %239 = vector.broadcast %211 : vector<32x1xf32> to vector<32x128xf32>
      %240 = arith.mulf %238, %239 : vector<32x128xf32>
      %cst_106 = arith.constant 0.000000e+00 : f32
      %241 = vector.broadcast %cst_106 : f32 to vector<32x128xf32>
      %242 = arith.maximumf %240, %241 : vector<32x128xf32>
      %243 = arith.truncf %242 : vector<32x128xf32> to vector<32x128xbf16>
      %c96 = arith.constant 96 : index
      %c0_107 = arith.constant 0 : index
      %244 = vector.load %arg9[%c96, %c0_107] : memref<576x128xbf16, #tpu.memory_space<vmem>>, vector<32x128xbf16>
      tpu.vector_store %arg9[%c96, %c0_107], %243 {strides = array<i32>} : memref<576x128xbf16, #tpu.memory_space<vmem>>, vector<32x128xbf16>,
      %c3_108 = arith.constant 3 : index
      %c0_109 = arith.constant 0 : index
      %c0_110 = arith.constant 0 : index
      %245 = vector.load %arg2[%c3_108, %c0_109, %c0_110] : memref<16x32x128xbf16, #tpu.memory_space<vmem>>, vector<1x32x128xbf16>
      %246 = vector.shape_cast %245 : vector<1x32x128xbf16> to vector<32x128xbf16>
      %247 = arith.extf %246 : vector<32x128xbf16> to vector<32x128xf32>
      %248 = vector.broadcast %210 : vector<32x1xf32> to vector<32x128xf32>
      %249 = arith.subf %247, %248 : vector<32x128xf32>
      %250 = vector.broadcast %211 : vector<32x1xf32> to vector<32x128xf32>
      %251 = arith.mulf %249, %250 : vector<32x128xf32>
      %cst_111 = arith.constant 0.000000e+00 : f32
      %252 = vector.broadcast %cst_111 : f32 to vector<32x128xf32>
      %253 = arith.maximumf %251, %252 : vector<32x128xf32>
      %254 = arith.truncf %253 : vector<32x128xf32> to vector<32x128xbf16>
      %c128 = arith.constant 128 : index
      %c0_112 = arith.constant 0 : index
      %255 = vector.load %arg9[%c128, %c0_112] : memref<576x128xbf16, #tpu.memory_space<vmem>>, vector<32x128xbf16>
      tpu.vector_store %arg9[%c128, %c0_112], %254 {strides = array<i32>} : memref<576x128xbf16, #tpu.memory_space<vmem>>, vector<32x128xbf16>,
      %c4_113 = arith.constant 4 : index
      %c0_114 = arith.constant 0 : index
      %c0_115 = arith.constant 0 : index
      %256 = vector.load %arg2[%c4_113, %c0_114, %c0_115] : memref<16x32x128xbf16, #tpu.memory_space<vmem>>, vector<1x32x128xbf16>
      %257 = vector.shape_cast %256 : vector<1x32x128xbf16> to vector<32x128xbf16>
      %258 = arith.extf %257 : vector<32x128xbf16> to vector<32x128xf32>
      %259 = vector.broadcast %210 : vector<32x1xf32> to vector<32x128xf32>
      %260 = arith.subf %258, %259 : vector<32x128xf32>
      %261 = vector.broadcast %211 : vector<32x1xf32> to vector<32x128xf32>
      %262 = arith.mulf %260, %261 : vector<32x128xf32>
      %cst_116 = arith.constant 0.000000e+00 : f32
      %263 = vector.broadcast %cst_116 : f32 to vector<32x128xf32>
      %264 = arith.maximumf %262, %263 : vector<32x128xf32>
      %265 = arith.truncf %264 : vector<32x128xf32> to vector<32x128xbf16>
      %c160 = arith.constant 160 : index
      %c0_117 = arith.constant 0 : index
      %266 = vector.load %arg9[%c160, %c0_117] : memref<576x128xbf16, #tpu.memory_space<vmem>>, vector<32x128xbf16>
      tpu.vector_store %arg9[%c160, %c0_117], %265 {strides = array<i32>} : memref<576x128xbf16, #tpu.memory_space<vmem>>, vector<32x128xbf16>,
      %c5_118 = arith.constant 5 : index
      %c0_119 = arith.constant 0 : index
      %c0_120 = arith.constant 0 : index
      %267 = vector.load %arg2[%c5_118, %c0_119, %c0_120] : memref<16x32x128xbf16, #tpu.memory_space<vmem>>, vector<1x32x128xbf16>
      %268 = vector.shape_cast %267 : vector<1x32x128xbf16> to vector<32x128xbf16>
      %269 = arith.extf %268 : vector<32x128xbf16> to vector<32x128xf32>
      %270 = vector.broadcast %210 : vector<32x1xf32> to vector<32x128xf32>
      %271 = arith.subf %269, %270 : vector<32x128xf32>
      %272 = vector.broadcast %211 : vector<32x1xf32> to vector<32x128xf32>
      %273 = arith.mulf %271, %272 : vector<32x128xf32>
      %cst_121 = arith.constant 0.000000e+00 : f32
      %274 = vector.broadcast %cst_121 : f32 to vector<32x128xf32>
      %275 = arith.maximumf %273, %274 : vector<32x128xf32>
      %276 = arith.truncf %275 : vector<32x128xf32> to vector<32x128xbf16>
      %c192 = arith.constant 192 : index
      %c0_122 = arith.constant 0 : index
      %277 = vector.load %arg9[%c192, %c0_122] : memref<576x128xbf16, #tpu.memory_space<vmem>>, vector<32x128xbf16>
      tpu.vector_store %arg9[%c192, %c0_122], %276 {strides = array<i32>} : memref<576x128xbf16, #tpu.memory_space<vmem>>, vector<32x128xbf16>,
      %c6_123 = arith.constant 6 : index
      %c0_124 = arith.constant 0 : index
      %c0_125 = arith.constant 0 : index
      %278 = vector.load %arg2[%c6_123, %c0_124, %c0_125] : memref<16x32x128xbf16, #tpu.memory_space<vmem>>, vector<1x32x128xbf16>
      %279 = vector.shape_cast %278 : vector<1x32x128xbf16> to vector<32x128xbf16>
      %280 = arith.extf %279 : vector<32x128xbf16> to vector<32x128xf32>
      %281 = vector.broadcast %210 : vector<32x1xf32> to vector<32x128xf32>
      %282 = arith.subf %280, %281 : vector<32x128xf32>
      %283 = vector.broadcast %211 : vector<32x1xf32> to vector<32x128xf32>
      %284 = arith.mulf %282, %283 : vector<32x128xf32>
      %cst_126 = arith.constant 0.000000e+00 : f32
      %285 = vector.broadcast %cst_126 : f32 to vector<32x128xf32>
      %286 = arith.maximumf %284, %285 : vector<32x128xf32>
      %287 = arith.truncf %286 : vector<32x128xf32> to vector<32x128xbf16>
      %c224 = arith.constant 224 : index
      %c0_127 = arith.constant 0 : index
      %288 = vector.load %arg9[%c224, %c0_127] : memref<576x128xbf16, #tpu.memory_space<vmem>>, vector<32x128xbf16>
      tpu.vector_store %arg9[%c224, %c0_127], %287 {strides = array<i32>} : memref<576x128xbf16, #tpu.memory_space<vmem>>, vector<32x128xbf16>,
      %c7_128 = arith.constant 7 : index
      %c0_129 = arith.constant 0 : index
      %c0_130 = arith.constant 0 : index
      %289 = vector.load %arg2[%c7_128, %c0_129, %c0_130] : memref<16x32x128xbf16, #tpu.memory_space<vmem>>, vector<1x32x128xbf16>
      %290 = vector.shape_cast %289 : vector<1x32x128xbf16> to vector<32x128xbf16>
      %291 = arith.extf %290 : vector<32x128xbf16> to vector<32x128xf32>
      %292 = vector.broadcast %210 : vector<32x1xf32> to vector<32x128xf32>
      %293 = arith.subf %291, %292 : vector<32x128xf32>
      %294 = vector.broadcast %211 : vector<32x1xf32> to vector<32x128xf32>
      %295 = arith.mulf %293, %294 : vector<32x128xf32>
      %cst_131 = arith.constant 0.000000e+00 : f32
      %296 = vector.broadcast %cst_131 : f32 to vector<32x128xf32>
      %297 = arith.maximumf %295, %296 : vector<32x128xf32>
      %298 = arith.truncf %297 : vector<32x128xf32> to vector<32x128xbf16>
      %c256 = arith.constant 256 : index
      %c0_132 = arith.constant 0 : index
      %299 = vector.load %arg9[%c256, %c0_132] : memref<576x128xbf16, #tpu.memory_space<vmem>>, vector<32x128xbf16>
      tpu.vector_store %arg9[%c256, %c0_132], %298 {strides = array<i32>} : memref<576x128xbf16, #tpu.memory_space<vmem>>, vector<32x128xbf16>,
      %c8 = arith.constant 8 : index
      %c0_133 = arith.constant 0 : index
      %c0_134 = arith.constant 0 : index
      %300 = vector.load %arg2[%c8, %c0_133, %c0_134] : memref<16x32x128xbf16, #tpu.memory_space<vmem>>, vector<1x32x128xbf16>
      %301 = vector.shape_cast %300 : vector<1x32x128xbf16> to vector<32x128xbf16>
      %302 = arith.extf %301 : vector<32x128xbf16> to vector<32x128xf32>
      %303 = vector.broadcast %210 : vector<32x1xf32> to vector<32x128xf32>
      %304 = arith.subf %302, %303 : vector<32x128xf32>
      %305 = vector.broadcast %211 : vector<32x1xf32> to vector<32x128xf32>
      %306 = arith.mulf %304, %305 : vector<32x128xf32>
      %cst_135 = arith.constant 0.000000e+00 : f32
      %307 = vector.broadcast %cst_135 : f32 to vector<32x128xf32>
      %308 = arith.maximumf %306, %307 : vector<32x128xf32>
      %309 = arith.truncf %308 : vector<32x128xf32> to vector<32x128xbf16>
      %c288 = arith.constant 288 : index
      %c0_136 = arith.constant 0 : index
      %310 = vector.load %arg9[%c288, %c0_136] : memref<576x128xbf16, #tpu.memory_space<vmem>>, vector<32x128xbf16>
      tpu.vector_store %arg9[%c288, %c0_136], %309 {strides = array<i32>} : memref<576x128xbf16, #tpu.memory_space<vmem>>, vector<32x128xbf16>,
      %c9 = arith.constant 9 : index
      %c0_137 = arith.constant 0 : index
      %c0_138 = arith.constant 0 : index
      %311 = vector.load %arg2[%c9, %c0_137, %c0_138] : memref<16x32x128xbf16, #tpu.memory_space<vmem>>, vector<1x32x128xbf16>
      %312 = vector.shape_cast %311 : vector<1x32x128xbf16> to vector<32x128xbf16>
      %313 = arith.extf %312 : vector<32x128xbf16> to vector<32x128xf32>
      %314 = vector.broadcast %210 : vector<32x1xf32> to vector<32x128xf32>
      %315 = arith.subf %313, %314 : vector<32x128xf32>
      %316 = vector.broadcast %211 : vector<32x1xf32> to vector<32x128xf32>
      %317 = arith.mulf %315, %316 : vector<32x128xf32>
      %cst_139 = arith.constant 0.000000e+00 : f32
      %318 = vector.broadcast %cst_139 : f32 to vector<32x128xf32>
      %319 = arith.maximumf %317, %318 : vector<32x128xf32>
      %320 = arith.truncf %319 : vector<32x128xf32> to vector<32x128xbf16>
      %c320 = arith.constant 320 : index
      %c0_140 = arith.constant 0 : index
      %321 = vector.load %arg9[%c320, %c0_140] : memref<576x128xbf16, #tpu.memory_space<vmem>>, vector<32x128xbf16>
      tpu.vector_store %arg9[%c320, %c0_140], %320 {strides = array<i32>} : memref<576x128xbf16, #tpu.memory_space<vmem>>, vector<32x128xbf16>,
      %c10 = arith.constant 10 : index
      %c0_141 = arith.constant 0 : index
      %c0_142 = arith.constant 0 : index
      %322 = vector.load %arg2[%c10, %c0_141, %c0_142] : memref<16x32x128xbf16, #tpu.memory_space<vmem>>, vector<1x32x128xbf16>
      %323 = vector.shape_cast %322 : vector<1x32x128xbf16> to vector<32x128xbf16>
      %324 = arith.extf %323 : vector<32x128xbf16> to vector<32x128xf32>
      %325 = vector.broadcast %210 : vector<32x1xf32> to vector<32x128xf32>
      %326 = arith.subf %324, %325 : vector<32x128xf32>
      %327 = vector.broadcast %211 : vector<32x1xf32> to vector<32x128xf32>
      %328 = arith.mulf %326, %327 : vector<32x128xf32>
      %cst_143 = arith.constant 0.000000e+00 : f32
      %329 = vector.broadcast %cst_143 : f32 to vector<32x128xf32>
      %330 = arith.maximumf %328, %329 : vector<32x128xf32>
      %331 = arith.truncf %330 : vector<32x128xf32> to vector<32x128xbf16>
      %c352 = arith.constant 352 : index
      %c0_144 = arith.constant 0 : index
      %332 = vector.load %arg9[%c352, %c0_144] : memref<576x128xbf16, #tpu.memory_space<vmem>>, vector<32x128xbf16>
      tpu.vector_store %arg9[%c352, %c0_144], %331 {strides = array<i32>} : memref<576x128xbf16, #tpu.memory_space<vmem>>, vector<32x128xbf16>,
      %c11 = arith.constant 11 : index
      %c0_145 = arith.constant 0 : index
      %c0_146 = arith.constant 0 : index
      %333 = vector.load %arg2[%c11, %c0_145, %c0_146] : memref<16x32x128xbf16, #tpu.memory_space<vmem>>, vector<1x32x128xbf16>
      %334 = vector.shape_cast %333 : vector<1x32x128xbf16> to vector<32x128xbf16>
      %335 = arith.extf %334 : vector<32x128xbf16> to vector<32x128xf32>
      %336 = vector.broadcast %210 : vector<32x1xf32> to vector<32x128xf32>
      %337 = arith.subf %335, %336 : vector<32x128xf32>
      %338 = vector.broadcast %211 : vector<32x1xf32> to vector<32x128xf32>
      %339 = arith.mulf %337, %338 : vector<32x128xf32>
      %cst_147 = arith.constant 0.000000e+00 : f32
      %340 = vector.broadcast %cst_147 : f32 to vector<32x128xf32>
      %341 = arith.maximumf %339, %340 : vector<32x128xf32>
      %342 = arith.truncf %341 : vector<32x128xf32> to vector<32x128xbf16>
      %c384 = arith.constant 384 : index
      %c0_148 = arith.constant 0 : index
      %343 = vector.load %arg9[%c384, %c0_148] : memref<576x128xbf16, #tpu.memory_space<vmem>>, vector<32x128xbf16>
      tpu.vector_store %arg9[%c384, %c0_148], %342 {strides = array<i32>} : memref<576x128xbf16, #tpu.memory_space<vmem>>, vector<32x128xbf16>,
      %c12 = arith.constant 12 : index
      %c0_149 = arith.constant 0 : index
      %c0_150 = arith.constant 0 : index
      %344 = vector.load %arg2[%c12, %c0_149, %c0_150] : memref<16x32x128xbf16, #tpu.memory_space<vmem>>, vector<1x32x128xbf16>
      %345 = vector.shape_cast %344 : vector<1x32x128xbf16> to vector<32x128xbf16>
      %346 = arith.extf %345 : vector<32x128xbf16> to vector<32x128xf32>
      %347 = vector.broadcast %210 : vector<32x1xf32> to vector<32x128xf32>
      %348 = arith.subf %346, %347 : vector<32x128xf32>
      %349 = vector.broadcast %211 : vector<32x1xf32> to vector<32x128xf32>
      %350 = arith.mulf %348, %349 : vector<32x128xf32>
      %cst_151 = arith.constant 0.000000e+00 : f32
      %351 = vector.broadcast %cst_151 : f32 to vector<32x128xf32>
      %352 = arith.maximumf %350, %351 : vector<32x128xf32>
      %353 = arith.truncf %352 : vector<32x128xf32> to vector<32x128xbf16>
      %c416 = arith.constant 416 : index
      %c0_152 = arith.constant 0 : index
      %354 = vector.load %arg9[%c416, %c0_152] : memref<576x128xbf16, #tpu.memory_space<vmem>>, vector<32x128xbf16>
      tpu.vector_store %arg9[%c416, %c0_152], %353 {strides = array<i32>} : memref<576x128xbf16, #tpu.memory_space<vmem>>, vector<32x128xbf16>,
      %c13 = arith.constant 13 : index
      %c0_153 = arith.constant 0 : index
      %c0_154 = arith.constant 0 : index
      %355 = vector.load %arg2[%c13, %c0_153, %c0_154] : memref<16x32x128xbf16, #tpu.memory_space<vmem>>, vector<1x32x128xbf16>
      %356 = vector.shape_cast %355 : vector<1x32x128xbf16> to vector<32x128xbf16>
      %357 = arith.extf %356 : vector<32x128xbf16> to vector<32x128xf32>
      %358 = vector.broadcast %210 : vector<32x1xf32> to vector<32x128xf32>
      %359 = arith.subf %357, %358 : vector<32x128xf32>
      %360 = vector.broadcast %211 : vector<32x1xf32> to vector<32x128xf32>
      %361 = arith.mulf %359, %360 : vector<32x128xf32>
      %cst_155 = arith.constant 0.000000e+00 : f32
      %362 = vector.broadcast %cst_155 : f32 to vector<32x128xf32>
      %363 = arith.maximumf %361, %362 : vector<32x128xf32>
      %364 = arith.truncf %363 : vector<32x128xf32> to vector<32x128xbf16>
      %c448 = arith.constant 448 : index
      %c0_156 = arith.constant 0 : index
      %365 = vector.load %arg9[%c448, %c0_156] : memref<576x128xbf16, #tpu.memory_space<vmem>>, vector<32x128xbf16>
      tpu.vector_store %arg9[%c448, %c0_156], %364 {strides = array<i32>} : memref<576x128xbf16, #tpu.memory_space<vmem>>, vector<32x128xbf16>,
      %c14 = arith.constant 14 : index
      %c0_157 = arith.constant 0 : index
      %c0_158 = arith.constant 0 : index
      %366 = vector.load %arg2[%c14, %c0_157, %c0_158] : memref<16x32x128xbf16, #tpu.memory_space<vmem>>, vector<1x32x128xbf16>
      %367 = vector.shape_cast %366 : vector<1x32x128xbf16> to vector<32x128xbf16>
      %368 = arith.extf %367 : vector<32x128xbf16> to vector<32x128xf32>
      %369 = vector.broadcast %210 : vector<32x1xf32> to vector<32x128xf32>
      %370 = arith.subf %368, %369 : vector<32x128xf32>
      %371 = vector.broadcast %211 : vector<32x1xf32> to vector<32x128xf32>
      %372 = arith.mulf %370, %371 : vector<32x128xf32>
      %cst_159 = arith.constant 0.000000e+00 : f32
      %373 = vector.broadcast %cst_159 : f32 to vector<32x128xf32>
      %374 = arith.maximumf %372, %373 : vector<32x128xf32>
      %375 = arith.truncf %374 : vector<32x128xf32> to vector<32x128xbf16>
      %c480 = arith.constant 480 : index
      %c0_160 = arith.constant 0 : index
      %376 = vector.load %arg9[%c480, %c0_160] : memref<576x128xbf16, #tpu.memory_space<vmem>>, vector<32x128xbf16>
      tpu.vector_store %arg9[%c480, %c0_160], %375 {strides = array<i32>} : memref<576x128xbf16, #tpu.memory_space<vmem>>, vector<32x128xbf16>,
      %c15 = arith.constant 15 : index
      %c0_161 = arith.constant 0 : index
      %c0_162 = arith.constant 0 : index
      %377 = vector.load %arg2[%c15, %c0_161, %c0_162] : memref<16x32x128xbf16, #tpu.memory_space<vmem>>, vector<1x32x128xbf16>
      %378 = vector.shape_cast %377 : vector<1x32x128xbf16> to vector<32x128xbf16>
      %379 = arith.extf %378 : vector<32x128xbf16> to vector<32x128xf32>
      %380 = vector.broadcast %210 : vector<32x1xf32> to vector<32x128xf32>
      %381 = arith.subf %379, %380 : vector<32x128xf32>
      %382 = vector.broadcast %211 : vector<32x1xf32> to vector<32x128xf32>
      %383 = arith.mulf %381, %382 : vector<32x128xf32>
      %cst_163 = arith.constant 0.000000e+00 : f32
      %384 = vector.broadcast %cst_163 : f32 to vector<32x128xf32>
      %385 = arith.maximumf %383, %384 : vector<32x128xf32>
      %386 = arith.truncf %385 : vector<32x128xf32> to vector<32x128xbf16>
      %c512 = arith.constant 512 : index
      %c0_164 = arith.constant 0 : index
      %387 = vector.load %arg9[%c512, %c0_164] : memref<576x128xbf16, #tpu.memory_space<vmem>>, vector<32x128xbf16>
      tpu.vector_store %arg9[%c512, %c0_164], %386 {strides = array<i32>} : memref<576x128xbf16, #tpu.memory_space<vmem>>, vector<32x128xbf16>,
      %cst_165 = arith.constant 0.000000e+00 : f32
      %388 = vector.broadcast %cst_165 : f32 to vector<1x32x2xf32>
      %c0_166 = arith.constant 0 : index
      %c0_167 = arith.constant 0 : index
      %c0_168 = arith.constant 0 : index
      %389 = vector.load %arg8[%c0_166, %c0_167, %c0_168] : memref<1x32x2xf32, #tpu.memory_space<vmem>>, vector<1x32x2xf32>
      tpu.vector_store %arg8[%c0_166, %c0_167, %c0_168], %388 {strides = array<i32>} : memref<1x32x2xf32, #tpu.memory_space<vmem>>, vector<1x32x2xf32>,
    } else {
    }
    %c0 = arith.constant 0 : index
    %c0_1 = arith.constant 0 : index
    %3 = vector.load %arg3[%c0, %c0_1] : memref<32x96xbf16, #tpu.memory_space<vmem>>, vector<32x96xbf16>
    %c0_2 = arith.constant 0 : index
    %c0_3 = arith.constant 0 : index
    %4 = vector.load %arg4[%c0_2, %c0_3] : memref<32x1xf32, #tpu.memory_space<vmem>>, vector<32x1xf32>
    %5 = tpu.iota {dimensions = array<i32: 1>} : vector<1x128xi32>
    %c128_i32 = arith.constant 128 : i32
    %6 = arith.muli %arg0, %c128_i32 : i32
    %7 = vector.broadcast %6 : i32 to vector<1x128xi32>
    %8 = arith.addi %7, %5 : vector<1x128xi32>
    %c32_i32 = arith.constant 32 : i32
    %9 = vector.broadcast %c32_i32 : i32 to vector<1x128xi32>
    %10 = arith.cmpi slt, %8, %9 : vector<1x128xi32>
    %11 = arith.extui %10 : vector<1x128xi1> to vector<1x128xi32>
    %12 = arith.sitofp %11 : vector<1x128xi32> to vector<1x128xf32>
    %cst = arith.constant 0.000000e+00 : f32
    %13 = vector.broadcast %cst : f32 to vector<32x1xf32>
    %cst_4 = arith.constant 0.000000e+00 : f32
    %14 = vector.broadcast %cst_4 : f32 to vector<32x1xf32>
    %c8_i32 = arith.constant 8 : i32
    %15 = arith.muli %arg1, %c8_i32 : i32
    %c0_i32_5 = arith.constant 0 : i32
    %16 = arith.addi %15, %c0_i32_5 : i32
    %c1_i32 = arith.constant 1 : i32
    %17 = arith.muli %16, %c1_i32 : i32
    %c32_i32_6 = arith.constant 32 : i32
    %18 = arith.muli %17, %c32_i32_6 : i32
    %19 = tpu.assume_multiple %18, 32 : i32
    %20 = arith.index_cast %19 : i32 to index
    %c0_7 = arith.constant 0 : index
    %21 = vector.load %arg9[%20, %c0_7] : memref<576x128xbf16, #tpu.memory_space<vmem>>, vector<96x128xbf16>
    %cst_8 = arith.constant dense<0.000000e+00> : vector<32x128xf32>
    %22 = tpu.matmul %3, %21, %cst_8 {dimension_numbers = #tpu.dot_dimension_numbers<[1], [0], [0], [1], [0, 0, 1, 1], [], []>} : vector<32x96xbf16>, vector<96x128xbf16>, vector<32x128xf32> -> vector<32x128xf32>
    %23 = vector.broadcast %4 : vector<32x1xf32> to vector<32x128xf32>
    %24 = arith.addf %22, %23 : vector<32x128xf32>
    %25 = arith.truncf %24 : vector<32x128xf32> to vector<32x128xbf16>
    %c0_9 = arith.constant 0 : index
    %c0_10 = arith.constant 0 : index
    %c0_11 = arith.constant 0 : index
    %26 = vector.load %arg7[%c0_9, %c0_10, %c0_11] : memref<8x32x128xbf16, #tpu.memory_space<vmem>>, vector<1x32x128xbf16>
    %27 = vector.shape_cast %26 : vector<1x32x128xbf16> to vector<32x128xbf16>
    %28 = vector.shape_cast %25 : vector<32x128xbf16> to vector<1x32x128xbf16>
    tpu.vector_store %arg7[%c0_9, %c0_10, %c0_11], %28 {strides = array<i32>} : memref<8x32x128xbf16, #tpu.memory_space<vmem>>, vector<1x32x128xbf16>,
    %29 = vector.broadcast %12 : vector<1x128xf32> to vector<32x128xf32>
    %30 = arith.mulf %24, %29 : vector<32x128xf32>
    %cst_12 = arith.constant dense<0.000000e+00> : vector<32xf32>
    %31 = vector.multi_reduction <add>, %30, %cst_12 [1] : vector<32x128xf32> to vector<32xf32>
    %32 = vector.shape_cast %31 : vector<32xf32> to vector<32x1xf32>
    %33 = arith.addf %13, %32 : vector<32x1xf32>
    %34 = arith.mulf %30, %24 : vector<32x128xf32>
    %cst_13 = arith.constant dense<0.000000e+00> : vector<32xf32>
    %35 = vector.multi_reduction <add>, %34, %cst_13 [1] : vector<32x128xf32> to vector<32xf32>
    %36 = vector.shape_cast %35 : vector<32xf32> to vector<32x1xf32>
    %37 = arith.addf %14, %36 : vector<32x1xf32>
    %c8_i32_14 = arith.constant 8 : i32
    %38 = arith.muli %arg1, %c8_i32_14 : i32
    %c1_i32_15 = arith.constant 1 : i32
    %39 = arith.addi %38, %c1_i32_15 : i32
    %c1_i32_16 = arith.constant 1 : i32
    %40 = arith.muli %39, %c1_i32_16 : i32
    %c32_i32_17 = arith.constant 32 : i32
    %41 = arith.muli %40, %c32_i32_17 : i32
    %42 = tpu.assume_multiple %41, 32 : i32
    %43 = arith.index_cast %42 : i32 to index
    %c0_18 = arith.constant 0 : index
    %44 = vector.load %arg9[%43, %c0_18] : memref<576x128xbf16, #tpu.memory_space<vmem>>, vector<96x128xbf16>
    %cst_19 = arith.constant dense<0.000000e+00> : vector<32x128xf32>
    %45 = tpu.matmul %3, %44, %cst_19 {dimension_numbers = #tpu.dot_dimension_numbers<[1], [0], [0], [1], [0, 0, 1, 1], [], []>} : vector<32x96xbf16>, vector<96x128xbf16>, vector<32x128xf32> -> vector<32x128xf32>
    %46 = vector.broadcast %4 : vector<32x1xf32> to vector<32x128xf32>
    %47 = arith.addf %45, %46 : vector<32x128xf32>
    %48 = arith.truncf %47 : vector<32x128xf32> to vector<32x128xbf16>
    %c1 = arith.constant 1 : index
    %c0_20 = arith.constant 0 : index
    %c0_21 = arith.constant 0 : index
    %49 = vector.load %arg7[%c1, %c0_20, %c0_21] : memref<8x32x128xbf16, #tpu.memory_space<vmem>>, vector<1x32x128xbf16>
    %50 = vector.shape_cast %49 : vector<1x32x128xbf16> to vector<32x128xbf16>
    %51 = vector.shape_cast %48 : vector<32x128xbf16> to vector<1x32x128xbf16>
    tpu.vector_store %arg7[%c1, %c0_20, %c0_21], %51 {strides = array<i32>} : memref<8x32x128xbf16, #tpu.memory_space<vmem>>, vector<1x32x128xbf16>,
    %52 = vector.broadcast %12 : vector<1x128xf32> to vector<32x128xf32>
    %53 = arith.mulf %47, %52 : vector<32x128xf32>
    %cst_22 = arith.constant dense<0.000000e+00> : vector<32xf32>
    %54 = vector.multi_reduction <add>, %53, %cst_22 [1] : vector<32x128xf32> to vector<32xf32>
    %55 = vector.shape_cast %54 : vector<32xf32> to vector<32x1xf32>
    %56 = arith.addf %33, %55 : vector<32x1xf32>
    %57 = arith.mulf %53, %47 : vector<32x128xf32>
    %cst_23 = arith.constant dense<0.000000e+00> : vector<32xf32>
    %58 = vector.multi_reduction <add>, %57, %cst_23 [1] : vector<32x128xf32> to vector<32xf32>
    %59 = vector.shape_cast %58 : vector<32xf32> to vector<32x1xf32>
    %60 = arith.addf %37, %59 : vector<32x1xf32>
    %c8_i32_24 = arith.constant 8 : i32
    %61 = arith.muli %arg1, %c8_i32_24 : i32
    %c2_i32 = arith.constant 2 : i32
    %62 = arith.addi %61, %c2_i32 : i32
    %c1_i32_25 = arith.constant 1 : i32
    %63 = arith.muli %62, %c1_i32_25 : i32
    %c32_i32_26 = arith.constant 32 : i32
    %64 = arith.muli %63, %c32_i32_26 : i32
    %65 = tpu.assume_multiple %64, 32 : i32
    %66 = arith.index_cast %65 : i32 to index
    %c0_27 = arith.constant 0 : index
    %67 = vector.load %arg9[%66, %c0_27] : memref<576x128xbf16, #tpu.memory_space<vmem>>, vector<96x128xbf16>
    %cst_28 = arith.constant dense<0.000000e+00> : vector<32x128xf32>
    %68 = tpu.matmul %3, %67, %cst_28 {dimension_numbers = #tpu.dot_dimension_numbers<[1], [0], [0], [1], [0, 0, 1, 1], [], []>} : vector<32x96xbf16>, vector<96x128xbf16>, vector<32x128xf32> -> vector<32x128xf32>
    %69 = vector.broadcast %4 : vector<32x1xf32> to vector<32x128xf32>
    %70 = arith.addf %68, %69 : vector<32x128xf32>
    %71 = arith.truncf %70 : vector<32x128xf32> to vector<32x128xbf16>
    %c2 = arith.constant 2 : index
    %c0_29 = arith.constant 0 : index
    %c0_30 = arith.constant 0 : index
    %72 = vector.load %arg7[%c2, %c0_29, %c0_30] : memref<8x32x128xbf16, #tpu.memory_space<vmem>>, vector<1x32x128xbf16>
    %73 = vector.shape_cast %72 : vector<1x32x128xbf16> to vector<32x128xbf16>
    %74 = vector.shape_cast %71 : vector<32x128xbf16> to vector<1x32x128xbf16>
    tpu.vector_store %arg7[%c2, %c0_29, %c0_30], %74 {strides = array<i32>} : memref<8x32x128xbf16, #tpu.memory_space<vmem>>, vector<1x32x128xbf16>,
    %75 = vector.broadcast %12 : vector<1x128xf32> to vector<32x128xf32>
    %76 = arith.mulf %70, %75 : vector<32x128xf32>
    %cst_31 = arith.constant dense<0.000000e+00> : vector<32xf32>
    %77 = vector.multi_reduction <add>, %76, %cst_31 [1] : vector<32x128xf32> to vector<32xf32>
    %78 = vector.shape_cast %77 : vector<32xf32> to vector<32x1xf32>
    %79 = arith.addf %56, %78 : vector<32x1xf32>
    %80 = arith.mulf %76, %70 : vector<32x128xf32>
    %cst_32 = arith.constant dense<0.000000e+00> : vector<32xf32>
    %81 = vector.multi_reduction <add>, %80, %cst_32 [1] : vector<32x128xf32> to vector<32xf32>
    %82 = vector.shape_cast %81 : vector<32xf32> to vector<32x1xf32>
    %83 = arith.addf %60, %82 : vector<32x1xf32>
    %c8_i32_33 = arith.constant 8 : i32
    %84 = arith.muli %arg1, %c8_i32_33 : i32
    %c3_i32 = arith.constant 3 : i32
    %85 = arith.addi %84, %c3_i32 : i32
    %c1_i32_34 = arith.constant 1 : i32
    %86 = arith.muli %85, %c1_i32_34 : i32
    %c32_i32_35 = arith.constant 32 : i32
    %87 = arith.muli %86, %c32_i32_35 : i32
    %88 = tpu.assume_multiple %87, 32 : i32
    %89 = arith.index_cast %88 : i32 to index
    %c0_36 = arith.constant 0 : index
    %90 = vector.load %arg9[%89, %c0_36] : memref<576x128xbf16, #tpu.memory_space<vmem>>, vector<96x128xbf16>
    %cst_37 = arith.constant dense<0.000000e+00> : vector<32x128xf32>
    %91 = tpu.matmul %3, %90, %cst_37 {dimension_numbers = #tpu.dot_dimension_numbers<[1], [0], [0], [1], [0, 0, 1, 1], [], []>} : vector<32x96xbf16>, vector<96x128xbf16>, vector<32x128xf32> -> vector<32x128xf32>
    %92 = vector.broadcast %4 : vector<32x1xf32> to vector<32x128xf32>
    %93 = arith.addf %91, %92 : vector<32x128xf32>
    %94 = arith.truncf %93 : vector<32x128xf32> to vector<32x128xbf16>
    %c3 = arith.constant 3 : index
    %c0_38 = arith.constant 0 : index
    %c0_39 = arith.constant 0 : index
    %95 = vector.load %arg7[%c3, %c0_38, %c0_39] : memref<8x32x128xbf16, #tpu.memory_space<vmem>>, vector<1x32x128xbf16>
    %96 = vector.shape_cast %95 : vector<1x32x128xbf16> to vector<32x128xbf16>
    %97 = vector.shape_cast %94 : vector<32x128xbf16> to vector<1x32x128xbf16>
    tpu.vector_store %arg7[%c3, %c0_38, %c0_39], %97 {strides = array<i32>} : memref<8x32x128xbf16, #tpu.memory_space<vmem>>, vector<1x32x128xbf16>,
    %98 = vector.broadcast %12 : vector<1x128xf32> to vector<32x128xf32>
    %99 = arith.mulf %93, %98 : vector<32x128xf32>
    %cst_40 = arith.constant dense<0.000000e+00> : vector<32xf32>
    %100 = vector.multi_reduction <add>, %99, %cst_40 [1] : vector<32x128xf32> to vector<32xf32>
    %101 = vector.shape_cast %100 : vector<32xf32> to vector<32x1xf32>
    %102 = arith.addf %79, %101 : vector<32x1xf32>
    %103 = arith.mulf %99, %93 : vector<32x128xf32>
    %cst_41 = arith.constant dense<0.000000e+00> : vector<32xf32>
    %104 = vector.multi_reduction <add>, %103, %cst_41 [1] : vector<32x128xf32> to vector<32xf32>
    %105 = vector.shape_cast %104 : vector<32xf32> to vector<32x1xf32>
    %106 = arith.addf %83, %105 : vector<32x1xf32>
    %c8_i32_42 = arith.constant 8 : i32
    %107 = arith.muli %arg1, %c8_i32_42 : i32
    %c4_i32 = arith.constant 4 : i32
    %108 = arith.addi %107, %c4_i32 : i32
    %c1_i32_43 = arith.constant 1 : i32
    %109 = arith.muli %108, %c1_i32_43 : i32
    %c32_i32_44 = arith.constant 32 : i32
    %110 = arith.muli %109, %c32_i32_44 : i32
    %111 = tpu.assume_multiple %110, 32 : i32
    %112 = arith.index_cast %111 : i32 to index
    %c0_45 = arith.constant 0 : index
    %113 = vector.load %arg9[%112, %c0_45] : memref<576x128xbf16, #tpu.memory_space<vmem>>, vector<96x128xbf16>
    %cst_46 = arith.constant dense<0.000000e+00> : vector<32x128xf32>
    %114 = tpu.matmul %3, %113, %cst_46 {dimension_numbers = #tpu.dot_dimension_numbers<[1], [0], [0], [1], [0, 0, 1, 1], [], []>} : vector<32x96xbf16>, vector<96x128xbf16>, vector<32x128xf32> -> vector<32x128xf32>
    %115 = vector.broadcast %4 : vector<32x1xf32> to vector<32x128xf32>
    %116 = arith.addf %114, %115 : vector<32x128xf32>
    %117 = arith.truncf %116 : vector<32x128xf32> to vector<32x128xbf16>
    %c4 = arith.constant 4 : index
    %c0_47 = arith.constant 0 : index
    %c0_48 = arith.constant 0 : index
    %118 = vector.load %arg7[%c4, %c0_47, %c0_48] : memref<8x32x128xbf16, #tpu.memory_space<vmem>>, vector<1x32x128xbf16>
    %119 = vector.shape_cast %118 : vector<1x32x128xbf16> to vector<32x128xbf16>
    %120 = vector.shape_cast %117 : vector<32x128xbf16> to vector<1x32x128xbf16>
    tpu.vector_store %arg7[%c4, %c0_47, %c0_48], %120 {strides = array<i32>} : memref<8x32x128xbf16, #tpu.memory_space<vmem>>, vector<1x32x128xbf16>,
    %121 = vector.broadcast %12 : vector<1x128xf32> to vector<32x128xf32>
    %122 = arith.mulf %116, %121 : vector<32x128xf32>
    %cst_49 = arith.constant dense<0.000000e+00> : vector<32xf32>
    %123 = vector.multi_reduction <add>, %122, %cst_49 [1] : vector<32x128xf32> to vector<32xf32>
    %124 = vector.shape_cast %123 : vector<32xf32> to vector<32x1xf32>
    %125 = arith.addf %102, %124 : vector<32x1xf32>
    %126 = arith.mulf %122, %116 : vector<32x128xf32>
    %cst_50 = arith.constant dense<0.000000e+00> : vector<32xf32>
    %127 = vector.multi_reduction <add>, %126, %cst_50 [1] : vector<32x128xf32> to vector<32xf32>
    %128 = vector.shape_cast %127 : vector<32xf32> to vector<32x1xf32>
    %129 = arith.addf %106, %128 : vector<32x1xf32>
    %c8_i32_51 = arith.constant 8 : i32
    %130 = arith.muli %arg1, %c8_i32_51 : i32
    %c5_i32 = arith.constant 5 : i32
    %131 = arith.addi %130, %c5_i32 : i32
    %c1_i32_52 = arith.constant 1 : i32
    %132 = arith.muli %131, %c1_i32_52 : i32
    %c32_i32_53 = arith.constant 32 : i32
    %133 = arith.muli %132, %c32_i32_53 : i32
    %134 = tpu.assume_multiple %133, 32 : i32
    %135 = arith.index_cast %134 : i32 to index
    %c0_54 = arith.constant 0 : index
    %136 = vector.load %arg9[%135, %c0_54] : memref<576x128xbf16, #tpu.memory_space<vmem>>, vector<96x128xbf16>
    %cst_55 = arith.constant dense<0.000000e+00> : vector<32x128xf32>
    %137 = tpu.matmul %3, %136, %cst_55 {dimension_numbers = #tpu.dot_dimension_numbers<[1], [0], [0], [1], [0, 0, 1, 1], [], []>} : vector<32x96xbf16>, vector<96x128xbf16>, vector<32x128xf32> -> vector<32x128xf32>
    %138 = vector.broadcast %4 : vector<32x1xf32> to vector<32x128xf32>
    %139 = arith.addf %137, %138 : vector<32x128xf32>
    %140 = arith.truncf %139 : vector<32x128xf32> to vector<32x128xbf16>
    %c5 = arith.constant 5 : index
    %c0_56 = arith.constant 0 : index
    %c0_57 = arith.constant 0 : index
    %141 = vector.load %arg7[%c5, %c0_56, %c0_57] : memref<8x32x128xbf16, #tpu.memory_space<vmem>>, vector<1x32x128xbf16>
    %142 = vector.shape_cast %141 : vector<1x32x128xbf16> to vector<32x128xbf16>
    %143 = vector.shape_cast %140 : vector<32x128xbf16> to vector<1x32x128xbf16>
    tpu.vector_store %arg7[%c5, %c0_56, %c0_57], %143 {strides = array<i32>} : memref<8x32x128xbf16, #tpu.memory_space<vmem>>, vector<1x32x128xbf16>,
    %144 = vector.broadcast %12 : vector<1x128xf32> to vector<32x128xf32>
    %145 = arith.mulf %139, %144 : vector<32x128xf32>
    %cst_58 = arith.constant dense<0.000000e+00> : vector<32xf32>
    %146 = vector.multi_reduction <add>, %145, %cst_58 [1] : vector<32x128xf32> to vector<32xf32>
    %147 = vector.shape_cast %146 : vector<32xf32> to vector<32x1xf32>
    %148 = arith.addf %125, %147 : vector<32x1xf32>
    %149 = arith.mulf %145, %139 : vector<32x128xf32>
    %cst_59 = arith.constant dense<0.000000e+00> : vector<32xf32>
    %150 = vector.multi_reduction <add>, %149, %cst_59 [1] : vector<32x128xf32> to vector<32xf32>
    %151 = vector.shape_cast %150 : vector<32xf32> to vector<32x1xf32>
    %152 = arith.addf %129, %151 : vector<32x1xf32>
    %c8_i32_60 = arith.constant 8 : i32
    %153 = arith.muli %arg1, %c8_i32_60 : i32
    %c6_i32 = arith.constant 6 : i32
    %154 = arith.addi %153, %c6_i32 : i32
    %c1_i32_61 = arith.constant 1 : i32
    %155 = arith.muli %154, %c1_i32_61 : i32
    %c32_i32_62 = arith.constant 32 : i32
    %156 = arith.muli %155, %c32_i32_62 : i32
    %157 = tpu.assume_multiple %156, 32 : i32
    %158 = arith.index_cast %157 : i32 to index
    %c0_63 = arith.constant 0 : index
    %159 = vector.load %arg9[%158, %c0_63] : memref<576x128xbf16, #tpu.memory_space<vmem>>, vector<96x128xbf16>
    %cst_64 = arith.constant dense<0.000000e+00> : vector<32x128xf32>
    %160 = tpu.matmul %3, %159, %cst_64 {dimension_numbers = #tpu.dot_dimension_numbers<[1], [0], [0], [1], [0, 0, 1, 1], [], []>} : vector<32x96xbf16>, vector<96x128xbf16>, vector<32x128xf32> -> vector<32x128xf32>
    %161 = vector.broadcast %4 : vector<32x1xf32> to vector<32x128xf32>
    %162 = arith.addf %160, %161 : vector<32x128xf32>
    %163 = arith.truncf %162 : vector<32x128xf32> to vector<32x128xbf16>
    %c6 = arith.constant 6 : index
    %c0_65 = arith.constant 0 : index
    %c0_66 = arith.constant 0 : index
    %164 = vector.load %arg7[%c6, %c0_65, %c0_66] : memref<8x32x128xbf16, #tpu.memory_space<vmem>>, vector<1x32x128xbf16>
    %165 = vector.shape_cast %164 : vector<1x32x128xbf16> to vector<32x128xbf16>
    %166 = vector.shape_cast %163 : vector<32x128xbf16> to vector<1x32x128xbf16>
    tpu.vector_store %arg7[%c6, %c0_65, %c0_66], %166 {strides = array<i32>} : memref<8x32x128xbf16, #tpu.memory_space<vmem>>, vector<1x32x128xbf16>,
    %167 = vector.broadcast %12 : vector<1x128xf32> to vector<32x128xf32>
    %168 = arith.mulf %162, %167 : vector<32x128xf32>
    %cst_67 = arith.constant dense<0.000000e+00> : vector<32xf32>
    %169 = vector.multi_reduction <add>, %168, %cst_67 [1] : vector<32x128xf32> to vector<32xf32>
    %170 = vector.shape_cast %169 : vector<32xf32> to vector<32x1xf32>
    %171 = arith.addf %148, %170 : vector<32x1xf32>
    %172 = arith.mulf %168, %162 : vector<32x128xf32>
    %cst_68 = arith.constant dense<0.000000e+00> : vector<32xf32>
    %173 = vector.multi_reduction <add>, %172, %cst_68 [1] : vector<32x128xf32> to vector<32xf32>
    %174 = vector.shape_cast %173 : vector<32xf32> to vector<32x1xf32>
    %175 = arith.addf %152, %174 : vector<32x1xf32>
    %c8_i32_69 = arith.constant 8 : i32
    %176 = arith.muli %arg1, %c8_i32_69 : i32
    %c7_i32 = arith.constant 7 : i32
    %177 = arith.addi %176, %c7_i32 : i32
    %c1_i32_70 = arith.constant 1 : i32
    %178 = arith.muli %177, %c1_i32_70 : i32
    %c32_i32_71 = arith.constant 32 : i32
    %179 = arith.muli %178, %c32_i32_71 : i32
    %180 = tpu.assume_multiple %179, 32 : i32
    %181 = arith.index_cast %180 : i32 to index
    %c0_72 = arith.constant 0 : index
    %182 = vector.load %arg9[%181, %c0_72] : memref<576x128xbf16, #tpu.memory_space<vmem>>, vector<96x128xbf16>
    %cst_73 = arith.constant dense<0.000000e+00> : vector<32x128xf32>
    %183 = tpu.matmul %3, %182, %cst_73 {dimension_numbers = #tpu.dot_dimension_numbers<[1], [0], [0], [1], [0, 0, 1, 1], [], []>} : vector<32x96xbf16>, vector<96x128xbf16>, vector<32x128xf32> -> vector<32x128xf32>
    %184 = vector.broadcast %4 : vector<32x1xf32> to vector<32x128xf32>
    %185 = arith.addf %183, %184 : vector<32x128xf32>
    %186 = arith.truncf %185 : vector<32x128xf32> to vector<32x128xbf16>
    %c7 = arith.constant 7 : index
    %c0_74 = arith.constant 0 : index
    %c0_75 = arith.constant 0 : index
    %187 = vector.load %arg7[%c7, %c0_74, %c0_75] : memref<8x32x128xbf16, #tpu.memory_space<vmem>>, vector<1x32x128xbf16>
    %188 = vector.shape_cast %187 : vector<1x32x128xbf16> to vector<32x128xbf16>
    %189 = vector.shape_cast %186 : vector<32x128xbf16> to vector<1x32x128xbf16>
    tpu.vector_store %arg7[%c7, %c0_74, %c0_75], %189 {strides = array<i32>} : memref<8x32x128xbf16, #tpu.memory_space<vmem>>, vector<1x32x128xbf16>,
    %190 = vector.broadcast %12 : vector<1x128xf32> to vector<32x128xf32>
    %191 = arith.mulf %185, %190 : vector<32x128xf32>
    %cst_76 = arith.constant dense<0.000000e+00> : vector<32xf32>
    %192 = vector.multi_reduction <add>, %191, %cst_76 [1] : vector<32x128xf32> to vector<32xf32>
    %193 = vector.shape_cast %192 : vector<32xf32> to vector<32x1xf32>
    %194 = arith.addf %171, %193 : vector<32x1xf32>
    %195 = arith.mulf %191, %185 : vector<32x128xf32>
    %cst_77 = arith.constant dense<0.000000e+00> : vector<32xf32>
    %196 = vector.multi_reduction <add>, %195, %cst_77 [1] : vector<32x128xf32> to vector<32xf32>
    %197 = vector.shape_cast %196 : vector<32xf32> to vector<32x1xf32>
    %198 = arith.addf %175, %197 : vector<32x1xf32>
    %c0_78 = arith.constant 0 : index
    %c0_79 = arith.constant 0 : index
    %c0_80 = arith.constant 0 : index
    %199 = vector.load %arg8[%c0_78, %c0_79, %c0_80] : memref<1x32x2xf32, #tpu.memory_space<vmem>>, vector<1x32x2xf32>
    %200 = vector.shape_cast %199 : vector<1x32x2xf32> to vector<32x2xf32>
    %201 = tpu.concatenate %194, %198 in 1 : vector<32x1xf32>, vector<32x1xf32> -> vector<32x2xf32>
    %202 = arith.addf %200, %201 : vector<32x2xf32>
    %c0_81 = arith.constant 0 : index
    %c0_82 = arith.constant 0 : index
    %c0_83 = arith.constant 0 : index
    %203 = vector.load %arg8[%c0_81, %c0_82, %c0_83] : memref<1x32x2xf32, #tpu.memory_space<vmem>>, vector<1x32x2xf32>
    %204 = vector.shape_cast %203 : vector<1x32x2xf32> to vector<32x2xf32>
    %205 = vector.shape_cast %202 : vector<32x2xf32> to vector<1x32x2xf32>
    tpu.vector_store %arg8[%c0_81, %c0_82, %c0_83], %205 {strides = array<i32>} : memref<1x32x2xf32, #tpu.memory_space<vmem>>, vector<1x32x2xf32>,
    return
  }
  func.func @transform_0(%arg0: i32, %arg1: i32) -> (i32, i32, i32) {
    %c0_i32 = arith.constant 0 : i32
    %c0_i32_0 = arith.constant 0 : i32
    %c0_i32_1 = arith.constant 0 : i32
    return %c0_i32, %c0_i32_0, %arg0 : i32, i32, i32
  }
  func.func @transform_1(%arg0: i32, %arg1: i32) -> (i32, i32) {
    %c0_i32 = arith.constant 0 : i32
    %c0_i32_0 = arith.constant 0 : i32
    %c0_i32_1 = arith.constant 0 : i32
    return %c0_i32, %c0_i32_0 : i32, i32
  }
  func.func @transform_2(%arg0: i32, %arg1: i32) -> (i32, i32) {
    %c0_i32 = arith.constant 0 : i32
    %c0_i32_0 = arith.constant 0 : i32
    %c0_i32_1 = arith.constant 0 : i32
    return %c0_i32, %c0_i32_0 : i32, i32
  }
  func.func @transform_3(%arg0: i32, %arg1: i32) -> (i32, i32) {
    %c0_i32 = arith.constant 0 : i32
    %c0_i32_0 = arith.constant 0 : i32
    %c0_i32_1 = arith.constant 0 : i32
    return %c0_i32, %c0_i32_0 : i32, i32
  }
  func.func @transform_4(%arg0: i32, %arg1: i32) -> (i32, i32) {
    %c0_i32 = arith.constant 0 : i32
    %c0_i32_0 = arith.constant 0 : i32
    %c0_i32_1 = arith.constant 0 : i32
    return %c0_i32, %c0_i32_0 : i32, i32
  }
  func.func @transform_5(%arg0: i32, %arg1: i32) -> (i32, i32, i32) {
    %c0_i32 = arith.constant 0 : i32
    %c0_i32_0 = arith.constant 0 : i32
    return %arg1, %c0_i32, %arg0 : i32, i32, i32
  }
  func.func @transform_6(%arg0: i32, %arg1: i32) -> (i32, i32, i32) {
    %c0_i32 = arith.constant 0 : i32
    %c0_i32_0 = arith.constant 0 : i32
    %c0_i32_1 = arith.constant 0 : i32
    return %arg0, %c0_i32, %c0_i32_0 : i32, i32, i32
  }
}

module attributes {stable_mosaic.version = 11 : i64} {
  func.func @_attn_kernel(%arg0: i32, %arg1: memref<1x32x256xbf16, #tpu.memory_space<vmem>>, %arg2: memref<32x1xf32, #tpu.memory_space<vmem>>, %arg3: memref<32x1xf32, #tpu.memory_space<vmem>>, %arg4: memref<2x32xf32, #tpu.memory_space<vmem>>, %arg5: memref<2x1xf32, #tpu.memory_space<vmem>>, %arg6: memref<32x2xf32, #tpu.memory_space<vmem>>, %arg7: memref<32x1xf32, #tpu.memory_space<vmem>>, %arg8: memref<2x7xf32, #tpu.memory_space<vmem>>, %arg9: memref<1x1xf32, #tpu.memory_space<vmem>>, %arg10: memref<1x32x256xf32, #tpu.memory_space<vmem>>, %arg11: memref<32x1xf32, #tpu.memory_space<vmem>>, %arg12: memref<32x1xf32, #tpu.memory_space<vmem>>, %arg13: memref<1x32x256xf32, #tpu.memory_space<vmem>>) attributes {dimension_semantics = [#tpu.dimension_semantics<parallel>], iteration_bounds = array<i64: 2>, scalar_prefetch = 0 : i64, scratch_operands = 0 : i64, tpu.core_type = #tpu.core_type<tc>, window_params = [{transform_indices = @transform_0, window_bounds = array<i64: 1, 32, 256>}, {pipeline_mode = #tpu.pipeline_mode<synchronous>, transform_indices = @transform_1, window_bounds = array<i64: 32, 1>}, {pipeline_mode = #tpu.pipeline_mode<synchronous>, transform_indices = @transform_2, window_bounds = array<i64: 32, 1>}, {pipeline_mode = #tpu.pipeline_mode<synchronous>, transform_indices = @transform_3, window_bounds = array<i64: 2, 32>}, {pipeline_mode = #tpu.pipeline_mode<synchronous>, transform_indices = @transform_4, window_bounds = array<i64: 2, 1>}, {pipeline_mode = #tpu.pipeline_mode<synchronous>, transform_indices = @transform_5, window_bounds = array<i64: 32, 2>}, {pipeline_mode = #tpu.pipeline_mode<synchronous>, transform_indices = @transform_6, window_bounds = array<i64: 32, 1>}, {pipeline_mode = #tpu.pipeline_mode<synchronous>, transform_indices = @transform_7, window_bounds = array<i64: 2, 7>}, {pipeline_mode = #tpu.pipeline_mode<synchronous>, transform_indices = @transform_8, window_bounds = array<i64: 1, 1>}, {transform_indices = @transform_9, window_bounds = array<i64: 1, 32, 256>}, {pipeline_mode = #tpu.pipeline_mode<synchronous>, transform_indices = @transform_10, window_bounds = array<i64: 32, 1>}, {pipeline_mode = #tpu.pipeline_mode<synchronous>, transform_indices = @transform_11, window_bounds = array<i64: 32, 1>}, {transform_indices = @transform_12, window_bounds = array<i64: 1, 32, 256>}]} {
    %c0 = arith.constant 0 : index
    %c0_0 = arith.constant 0 : index
    %c0_1 = arith.constant 0 : index
    %0 = vector.load %arg1[%c0, %c0_0, %c0_1] : memref<1x32x256xbf16, #tpu.memory_space<vmem>>, vector<1x32x256xbf16>
    %1 = vector.shape_cast %0 : vector<1x32x256xbf16> to vector<32x256xbf16>
    %2 = arith.extf %1 : vector<32x256xbf16> to vector<32x256xf32>
    %c0_2 = arith.constant 0 : index
    %c0_3 = arith.constant 0 : index
    %3 = vector.load %arg2[%c0_2, %c0_3] : memref<32x1xf32, #tpu.memory_space<vmem>>, vector<32x1xf32>
    %4 = vector.broadcast %3 : vector<32x1xf32> to vector<32x256xf32>
    %5 = arith.subf %2, %4 : vector<32x256xf32>
    %c0_4 = arith.constant 0 : index
    %c0_5 = arith.constant 0 : index
    %6 = vector.load %arg3[%c0_4, %c0_5] : memref<32x1xf32, #tpu.memory_space<vmem>>, vector<32x1xf32>
    %7 = vector.broadcast %6 : vector<32x1xf32> to vector<32x256xf32>
    %8 = arith.mulf %5, %7 : vector<32x256xf32>
    %cst = arith.constant dense<0.000000e+00> : vector<32xf32>
    %9 = vector.multi_reduction <add>, %8, %cst [1] : vector<32x256xf32> to vector<32xf32>
    %10 = vector.shape_cast %9 : vector<32xf32> to vector<32x1xf32>
    %cst_6 = arith.constant 2.560000e+02 : f32
    %11 = vector.broadcast %cst_6 : f32 to vector<32x1xf32>
    %12 = arith.divf %10, %11 : vector<32x1xf32>
    %cst_7 = arith.constant dense<0xFF800000> : vector<32xf32>
    %13 = vector.multi_reduction <maximumf>, %8, %cst_7 [1] : vector<32x256xf32> to vector<32xf32>
    %14 = vector.shape_cast %13 : vector<32xf32> to vector<32x1xf32>
    %15 = tpu.concatenate %12, %14 in 1 : vector<32x1xf32>, vector<32x1xf32> -> vector<32x2xf32>
    %c0_8 = arith.constant 0 : index
    %c0_9 = arith.constant 0 : index
    %16 = vector.load %arg4[%c0_8, %c0_9] : memref<2x32xf32, #tpu.memory_space<vmem>>, vector<2x32xf32>
    %cst_10 = arith.constant dense<0.000000e+00> : vector<2x2xf32>
    %17 = tpu.matmul %16, %15, %cst_10 {dimension_numbers = #tpu.dot_dimension_numbers<[1], [0], [0], [1], [0, 0, 1, 1], [], []>} : vector<2x32xf32>, vector<32x2xf32>, vector<2x2xf32> -> vector<2x2xf32>
    %c0_11 = arith.constant 0 : index
    %c0_12 = arith.constant 0 : index
    %18 = vector.load %arg5[%c0_11, %c0_12] : memref<2x1xf32, #tpu.memory_space<vmem>>, vector<2x1xf32>
    %19 = vector.broadcast %18 : vector<2x1xf32> to vector<2x2xf32>
    %20 = arith.addf %17, %19 : vector<2x2xf32>
    %c0_13 = arith.constant 0 : index
    %c0_14 = arith.constant 0 : index
    %21 = vector.load %arg6[%c0_13, %c0_14] : memref<32x2xf32, #tpu.memory_space<vmem>>, vector<32x2xf32>
    %cst_15 = arith.constant dense<0.000000e+00> : vector<32x2xf32>
    %22 = tpu.matmul %21, %20, %cst_15 {dimension_numbers = #tpu.dot_dimension_numbers<[1], [0], [0], [1], [0, 0, 1, 1], [], []>} : vector<32x2xf32>, vector<2x2xf32>, vector<32x2xf32> -> vector<32x2xf32>
    %c0_16 = arith.constant 0 : index
    %c0_17 = arith.constant 0 : index
    %23 = vector.load %arg7[%c0_16, %c0_17] : memref<32x1xf32, #tpu.memory_space<vmem>>, vector<32x1xf32>
    %24 = vector.broadcast %23 : vector<32x1xf32> to vector<32x2xf32>
    %25 = arith.addf %22, %24 : vector<32x2xf32>
    %26 = vector.extract_strided_slice %25 {offsets = [0, 0], sizes = [32, 1], strides = [1, 1]} : vector<32x2xf32> to vector<32x1xf32>
    %cst_18 = arith.constant 0.000000e+00 : f32
    %27 = vector.broadcast %cst_18 : f32 to vector<32x1xf32>
    %28 = arith.maximumf %26, %27 : vector<32x1xf32>
    %29 = vector.extract_strided_slice %25 {offsets = [0, 1], sizes = [32, 1], strides = [1, 1]} : vector<32x2xf32> to vector<32x1xf32>
    %30 = arith.addf %28, %29 : vector<32x1xf32>
    %31 = arith.negf %30 : vector<32x1xf32>
    %32 = math.exp %31 : vector<32x1xf32>
    %cst_19 = arith.constant 1.000000e+00 : f32
    %33 = vector.broadcast %cst_19 : f32 to vector<32x1xf32>
    %34 = arith.addf %33, %32 : vector<32x1xf32>
    %35 = arith.divf %33, %34 : vector<32x1xf32>
    %36 = vector.broadcast %35 : vector<32x1xf32> to vector<32x256xf32>
    %37 = arith.mulf %36, %8 : vector<32x256xf32>
    %cst_20 = arith.constant dense<0.000000e+00> : vector<256xf32>
    %38 = vector.multi_reduction <add>, %37, %cst_20 [0] : vector<32x256xf32> to vector<256xf32>
    %39 = vector.shape_cast %38 : vector<256xf32> to vector<1x256xf32>
    %cst_21 = arith.constant 3.200000e+01 : f32
    %40 = vector.broadcast %cst_21 : f32 to vector<1x256xf32>
    %41 = arith.divf %39, %40 : vector<1x256xf32>
    %cst_22 = arith.constant dense<0xFF800000> : vector<256xf32>
    %42 = vector.multi_reduction <maximumf>, %37, %cst_22 [0] : vector<32x256xf32> to vector<256xf32>
    %43 = vector.shape_cast %42 : vector<256xf32> to vector<1x256xf32>
    %cst_23 = arith.constant 0.000000e+00 : f32
    %44 = vector.broadcast %cst_23 : f32 to vector<1x256xf32>
    %c0_24 = arith.constant 0 : index
    %c0_25 = arith.constant 0 : index
    %45 = vector.load %arg9[%c0_24, %c0_25] : memref<1x1xf32, #tpu.memory_space<vmem>>, vector<1x1xf32>
    %46 = vector.broadcast %45 : vector<1x1xf32> to vector<1x256xf32>
    %47 = arith.addf %44, %46 : vector<1x256xf32>
    %cst_26 = arith.constant 0.000000e+00 : f32
    %48 = vector.broadcast %cst_26 : f32 to vector<1x48xf32>
    %49 = vector.extract_strided_slice %41 {offsets = [0, 0], sizes = [1, 208], strides = [1, 1]} : vector<1x256xf32> to vector<1x208xf32>
    %50 = tpu.concatenate %48, %49 in 1 : vector<1x48xf32>, vector<1x208xf32> -> vector<1x256xf32>
    %51 = vector.extract_strided_slice %43 {offsets = [0, 0], sizes = [1, 208], strides = [1, 1]} : vector<1x256xf32> to vector<1x208xf32>
    %52 = tpu.concatenate %48, %51 in 1 : vector<1x48xf32>, vector<1x208xf32> -> vector<1x256xf32>
    %c0_27 = arith.constant 0 : index
    %c0_28 = arith.constant 0 : index
    %53 = vector.load %arg8[%c0_27, %c0_28] : memref<2x7xf32, #tpu.memory_space<vmem>>, vector<1x1xf32>
    %54 = vector.broadcast %53 : vector<1x1xf32> to vector<1x256xf32>
    %55 = arith.mulf %54, %50 : vector<1x256xf32>
    %56 = arith.addf %47, %55 : vector<1x256xf32>
    %c1 = arith.constant 1 : index
    %c0_29 = arith.constant 0 : index
    %57 = vector.load %arg8[%c1, %c0_29] : memref<2x7xf32, #tpu.memory_space<vmem>>, vector<1x1xf32>
    %58 = vector.broadcast %57 : vector<1x1xf32> to vector<1x256xf32>
    %59 = arith.mulf %58, %52 : vector<1x256xf32>
    %60 = arith.addf %56, %59 : vector<1x256xf32>
    %cst_30 = arith.constant 0.000000e+00 : f32
    %61 = vector.broadcast %cst_30 : f32 to vector<1x32xf32>
    %62 = vector.extract_strided_slice %41 {offsets = [0, 0], sizes = [1, 224], strides = [1, 1]} : vector<1x256xf32> to vector<1x224xf32>
    %63 = tpu.concatenate %61, %62 in 1 : vector<1x32xf32>, vector<1x224xf32> -> vector<1x256xf32>
    %64 = vector.extract_strided_slice %43 {offsets = [0, 0], sizes = [1, 224], strides = [1, 1]} : vector<1x256xf32> to vector<1x224xf32>
    %65 = tpu.concatenate %61, %64 in 1 : vector<1x32xf32>, vector<1x224xf32> -> vector<1x256xf32>
    %c0_31 = arith.constant 0 : index
    %c1_32 = arith.constant 1 : index
    %66 = vector.load %arg8[%c0_31, %c1_32] : memref<2x7xf32, #tpu.memory_space<vmem>>, vector<1x1xf32>
    %67 = vector.broadcast %66 : vector<1x1xf32> to vector<1x256xf32>
    %68 = arith.mulf %67, %63 : vector<1x256xf32>
    %69 = arith.addf %60, %68 : vector<1x256xf32>
    %c1_33 = arith.constant 1 : index
    %c1_34 = arith.constant 1 : index
    %70 = vector.load %arg8[%c1_33, %c1_34] : memref<2x7xf32, #tpu.memory_space<vmem>>, vector<1x1xf32>
    %71 = vector.broadcast %70 : vector<1x1xf32> to vector<1x256xf32>
    %72 = arith.mulf %71, %65 : vector<1x256xf32>
    %73 = arith.addf %69, %72 : vector<1x256xf32>
    %cst_35 = arith.constant 0.000000e+00 : f32
    %74 = vector.broadcast %cst_35 : f32 to vector<1x16xf32>
    %75 = vector.extract_strided_slice %41 {offsets = [0, 0], sizes = [1, 240], strides = [1, 1]} : vector<1x256xf32> to vector<1x240xf32>
    %76 = tpu.concatenate %74, %75 in 1 : vector<1x16xf32>, vector<1x240xf32> -> vector<1x256xf32>
    %77 = vector.extract_strided_slice %43 {offsets = [0, 0], sizes = [1, 240], strides = [1, 1]} : vector<1x256xf32> to vector<1x240xf32>
    %78 = tpu.concatenate %74, %77 in 1 : vector<1x16xf32>, vector<1x240xf32> -> vector<1x256xf32>
    %c0_36 = arith.constant 0 : index
    %c2 = arith.constant 2 : index
    %79 = vector.load %arg8[%c0_36, %c2] : memref<2x7xf32, #tpu.memory_space<vmem>>, vector<1x1xf32>
    %80 = vector.broadcast %79 : vector<1x1xf32> to vector<1x256xf32>
    %81 = arith.mulf %80, %76 : vector<1x256xf32>
    %82 = arith.addf %73, %81 : vector<1x256xf32>
    %c1_37 = arith.constant 1 : index
    %c2_38 = arith.constant 2 : index
    %83 = vector.load %arg8[%c1_37, %c2_38] : memref<2x7xf32, #tpu.memory_space<vmem>>, vector<1x1xf32>
    %84 = vector.broadcast %83 : vector<1x1xf32> to vector<1x256xf32>
    %85 = arith.mulf %84, %78 : vector<1x256xf32>
    %86 = arith.addf %82, %85 : vector<1x256xf32>
    %c0_39 = arith.constant 0 : index
    %c3 = arith.constant 3 : index
    %87 = vector.load %arg8[%c0_39, %c3] : memref<2x7xf32, #tpu.memory_space<vmem>>, vector<1x1xf32>
    %88 = vector.broadcast %87 : vector<1x1xf32> to vector<1x256xf32>
    %89 = arith.mulf %88, %41 : vector<1x256xf32>
    %90 = arith.addf %86, %89 : vector<1x256xf32>
    %c1_40 = arith.constant 1 : index
    %c3_41 = arith.constant 3 : index
    %91 = vector.load %arg8[%c1_40, %c3_41] : memref<2x7xf32, #tpu.memory_space<vmem>>, vector<1x1xf32>
    %92 = vector.broadcast %91 : vector<1x1xf32> to vector<1x256xf32>
    %93 = arith.mulf %92, %43 : vector<1x256xf32>
    %94 = arith.addf %90, %93 : vector<1x256xf32>
    %cst_42 = arith.constant 0.000000e+00 : f32
    %95 = vector.broadcast %cst_42 : f32 to vector<1x16xf32>
    %96 = vector.extract_strided_slice %41 {offsets = [0, 16], sizes = [1, 240], strides = [1, 1]} : vector<1x256xf32> to vector<1x240xf32>
    %97 = tpu.concatenate %96, %95 in 1 : vector<1x240xf32>, vector<1x16xf32> -> vector<1x256xf32>
    %98 = vector.extract_strided_slice %43 {offsets = [0, 16], sizes = [1, 240], strides = [1, 1]} : vector<1x256xf32> to vector<1x240xf32>
    %99 = tpu.concatenate %98, %95 in 1 : vector<1x240xf32>, vector<1x16xf32> -> vector<1x256xf32>
    %c0_43 = arith.constant 0 : index
    %c4 = arith.constant 4 : index
    %100 = vector.load %arg8[%c0_43, %c4] : memref<2x7xf32, #tpu.memory_space<vmem>>, vector<1x1xf32>
    %101 = vector.broadcast %100 : vector<1x1xf32> to vector<1x256xf32>
    %102 = arith.mulf %101, %97 : vector<1x256xf32>
    %103 = arith.addf %94, %102 : vector<1x256xf32>
    %c1_44 = arith.constant 1 : index
    %c4_45 = arith.constant 4 : index
    %104 = vector.load %arg8[%c1_44, %c4_45] : memref<2x7xf32, #tpu.memory_space<vmem>>, vector<1x1xf32>
    %105 = vector.broadcast %104 : vector<1x1xf32> to vector<1x256xf32>
    %106 = arith.mulf %105, %99 : vector<1x256xf32>
    %107 = arith.addf %103, %106 : vector<1x256xf32>
    %cst_46 = arith.constant 0.000000e+00 : f32
    %108 = vector.broadcast %cst_46 : f32 to vector<1x32xf32>
    %109 = vector.extract_strided_slice %41 {offsets = [0, 32], sizes = [1, 224], strides = [1, 1]} : vector<1x256xf32> to vector<1x224xf32>
    %110 = tpu.concatenate %109, %108 in 1 : vector<1x224xf32>, vector<1x32xf32> -> vector<1x256xf32>
    %111 = vector.extract_strided_slice %43 {offsets = [0, 32], sizes = [1, 224], strides = [1, 1]} : vector<1x256xf32> to vector<1x224xf32>
    %112 = tpu.concatenate %111, %108 in 1 : vector<1x224xf32>, vector<1x32xf32> -> vector<1x256xf32>
    %c0_47 = arith.constant 0 : index
    %c5 = arith.constant 5 : index
    %113 = vector.load %arg8[%c0_47, %c5] : memref<2x7xf32, #tpu.memory_space<vmem>>, vector<1x1xf32>
    %114 = vector.broadcast %113 : vector<1x1xf32> to vector<1x256xf32>
    %115 = arith.mulf %114, %110 : vector<1x256xf32>
    %116 = arith.addf %107, %115 : vector<1x256xf32>
    %c1_48 = arith.constant 1 : index
    %c5_49 = arith.constant 5 : index
    %117 = vector.load %arg8[%c1_48, %c5_49] : memref<2x7xf32, #tpu.memory_space<vmem>>, vector<1x1xf32>
    %118 = vector.broadcast %117 : vector<1x1xf32> to vector<1x256xf32>
    %119 = arith.mulf %118, %112 : vector<1x256xf32>
    %120 = arith.addf %116, %119 : vector<1x256xf32>
    %cst_50 = arith.constant 0.000000e+00 : f32
    %121 = vector.broadcast %cst_50 : f32 to vector<1x48xf32>
    %122 = vector.extract_strided_slice %41 {offsets = [0, 48], sizes = [1, 208], strides = [1, 1]} : vector<1x256xf32> to vector<1x208xf32>
    %123 = tpu.concatenate %122, %121 in 1 : vector<1x208xf32>, vector<1x48xf32> -> vector<1x256xf32>
    %124 = vector.extract_strided_slice %43 {offsets = [0, 48], sizes = [1, 208], strides = [1, 1]} : vector<1x256xf32> to vector<1x208xf32>
    %125 = tpu.concatenate %124, %121 in 1 : vector<1x208xf32>, vector<1x48xf32> -> vector<1x256xf32>
    %c0_51 = arith.constant 0 : index
    %c6 = arith.constant 6 : index
    %126 = vector.load %arg8[%c0_51, %c6] : memref<2x7xf32, #tpu.memory_space<vmem>>, vector<1x1xf32>
    %127 = vector.broadcast %126 : vector<1x1xf32> to vector<1x256xf32>
    %128 = arith.mulf %127, %123 : vector<1x256xf32>
    %129 = arith.addf %120, %128 : vector<1x256xf32>
    %c1_52 = arith.constant 1 : index
    %c6_53 = arith.constant 6 : index
    %130 = vector.load %arg8[%c1_52, %c6_53] : memref<2x7xf32, #tpu.memory_space<vmem>>, vector<1x1xf32>
    %131 = vector.broadcast %130 : vector<1x1xf32> to vector<1x256xf32>
    %132 = arith.mulf %131, %125 : vector<1x256xf32>
    %133 = arith.addf %129, %132 : vector<1x256xf32>
    %134 = arith.negf %133 : vector<1x256xf32>
    %135 = math.exp %134 : vector<1x256xf32>
    %cst_54 = arith.constant 1.000000e+00 : f32
    %136 = vector.broadcast %cst_54 : f32 to vector<1x256xf32>
    %137 = arith.addf %136, %135 : vector<1x256xf32>
    %138 = arith.divf %136, %137 : vector<1x256xf32>
    %c0_55 = arith.constant 0 : index
    %c0_56 = arith.constant 0 : index
    %c0_57 = arith.constant 0 : index
    %139 = vector.load %arg10[%c0_55, %c0_56, %c0_57] : memref<1x32x256xf32, #tpu.memory_space<vmem>>, vector<1x32x256xf32>
    %140 = vector.shape_cast %139 : vector<1x32x256xf32> to vector<32x256xf32>
    %c0_58 = arith.constant 0 : index
    %c0_59 = arith.constant 0 : index
    %141 = vector.load %arg11[%c0_58, %c0_59] : memref<32x1xf32, #tpu.memory_space<vmem>>, vector<32x1xf32>
    %142 = vector.broadcast %141 : vector<32x1xf32> to vector<32x256xf32>
    %143 = arith.subf %140, %142 : vector<32x256xf32>
    %c0_60 = arith.constant 0 : index
    %c0_61 = arith.constant 0 : index
    %144 = vector.load %arg12[%c0_60, %c0_61] : memref<32x1xf32, #tpu.memory_space<vmem>>, vector<32x1xf32>
    %145 = vector.broadcast %144 : vector<32x1xf32> to vector<32x256xf32>
    %146 = arith.mulf %143, %145 : vector<32x256xf32>
    %147 = vector.broadcast %138 : vector<1x256xf32> to vector<32x256xf32>
    %148 = arith.mulf %147, %37 : vector<32x256xf32>
    %149 = arith.addf %148, %146 : vector<32x256xf32>
    %cst_62 = arith.constant 0.000000e+00 : f32
    %150 = vector.broadcast %cst_62 : f32 to vector<32x256xf32>
    %151 = arith.maximumf %149, %150 : vector<32x256xf32>
    %c0_63 = arith.constant 0 : index
    %c0_64 = arith.constant 0 : index
    %c0_65 = arith.constant 0 : index
    %152 = vector.load %arg13[%c0_63, %c0_64, %c0_65] : memref<1x32x256xf32, #tpu.memory_space<vmem>>, vector<1x32x256xf32>
    %153 = vector.shape_cast %152 : vector<1x32x256xf32> to vector<32x256xf32>
    %154 = vector.shape_cast %151 : vector<32x256xf32> to vector<1x32x256xf32>
    tpu.vector_store %arg13[%c0_63, %c0_64, %c0_65], %154 {strides = array<i32>} : memref<1x32x256xf32, #tpu.memory_space<vmem>>, vector<1x32x256xf32>,
    return
  }
  func.func @transform_0(%arg0: i32) -> (i32, i32, i32) {
    %c0_i32 = arith.constant 0 : i32
    %c0_i32_0 = arith.constant 0 : i32
    %c0_i32_1 = arith.constant 0 : i32
    return %arg0, %c0_i32, %c0_i32_0 : i32, i32, i32
  }
  func.func @transform_1(%arg0: i32) -> (i32, i32) {
    %c0_i32 = arith.constant 0 : i32
    %c0_i32_0 = arith.constant 0 : i32
    %c0_i32_1 = arith.constant 0 : i32
    return %c0_i32, %c0_i32_0 : i32, i32
  }
  func.func @transform_2(%arg0: i32) -> (i32, i32) {
    %c0_i32 = arith.constant 0 : i32
    %c0_i32_0 = arith.constant 0 : i32
    %c0_i32_1 = arith.constant 0 : i32
    return %c0_i32, %c0_i32_0 : i32, i32
  }
  func.func @transform_3(%arg0: i32) -> (i32, i32) {
    %c0_i32 = arith.constant 0 : i32
    %c0_i32_0 = arith.constant 0 : i32
    %c0_i32_1 = arith.constant 0 : i32
    return %c0_i32, %c0_i32_0 : i32, i32
  }
  func.func @transform_4(%arg0: i32) -> (i32, i32) {
    %c0_i32 = arith.constant 0 : i32
    %c0_i32_0 = arith.constant 0 : i32
    %c0_i32_1 = arith.constant 0 : i32
    return %c0_i32, %c0_i32_0 : i32, i32
  }
  func.func @transform_5(%arg0: i32) -> (i32, i32) {
    %c0_i32 = arith.constant 0 : i32
    %c0_i32_0 = arith.constant 0 : i32
    %c0_i32_1 = arith.constant 0 : i32
    return %c0_i32, %c0_i32_0 : i32, i32
  }
  func.func @transform_6(%arg0: i32) -> (i32, i32) {
    %c0_i32 = arith.constant 0 : i32
    %c0_i32_0 = arith.constant 0 : i32
    %c0_i32_1 = arith.constant 0 : i32
    return %c0_i32, %c0_i32_0 : i32, i32
  }
  func.func @transform_7(%arg0: i32) -> (i32, i32) {
    %c0_i32 = arith.constant 0 : i32
    %c0_i32_0 = arith.constant 0 : i32
    %c0_i32_1 = arith.constant 0 : i32
    return %c0_i32, %c0_i32_0 : i32, i32
  }
  func.func @transform_8(%arg0: i32) -> (i32, i32) {
    %c0_i32 = arith.constant 0 : i32
    %c0_i32_0 = arith.constant 0 : i32
    %c0_i32_1 = arith.constant 0 : i32
    return %c0_i32, %c0_i32_0 : i32, i32
  }
  func.func @transform_9(%arg0: i32) -> (i32, i32, i32) {
    %c0_i32 = arith.constant 0 : i32
    %c0_i32_0 = arith.constant 0 : i32
    %c0_i32_1 = arith.constant 0 : i32
    return %arg0, %c0_i32, %c0_i32_0 : i32, i32, i32
  }
  func.func @transform_10(%arg0: i32) -> (i32, i32) {
    %c0_i32 = arith.constant 0 : i32
    %c0_i32_0 = arith.constant 0 : i32
    %c0_i32_1 = arith.constant 0 : i32
    return %c0_i32, %c0_i32_0 : i32, i32
  }
  func.func @transform_11(%arg0: i32) -> (i32, i32) {
    %c0_i32 = arith.constant 0 : i32
    %c0_i32_0 = arith.constant 0 : i32
    %c0_i32_1 = arith.constant 0 : i32
    return %c0_i32, %c0_i32_0 : i32, i32
  }
  func.func @transform_12(%arg0: i32) -> (i32, i32, i32) {
    %c0_i32 = arith.constant 0 : i32
    %c0_i32_0 = arith.constant 0 : i32
    %c0_i32_1 = arith.constant 0 : i32
    return %arg0, %c0_i32, %c0_i32_0 : i32, i32, i32
  }
}

</mosaic_0001>

<bundles_post_ra>
// kernel: basic_block_forward.6
= control target key start
LH: loop header
LB: loop body
LE: loop exit
PB: predicated region body
PF: predicated region fallthrough
CT: control target
= control target key end

     0   :  { %s1611_s21 = smov 0   ;;  %s1613_s22 = smov 0   ;;  %s2161_s0 = inlined_call_operand.vmem [shape: f32[16,16,128], index: 0, kind: input, shape index: {}]   ;;  %s2162_s1 = inlined_call_operand.vmem [shape: bf16[32,16], index: 1, kind: input, shape index: {}]   ;;  %s2163_s2 = inlined_call_operand.vmem [shape: f32[32,1], index: 2, kind: input, shape index: {}]   ;;  %s2164_s3 = inlined_call_operand.vmem [shape: f32[16,1], index: 3, kind: input, shape index: {}]   ;;  %s2165_s4 = inlined_call_operand.vmem [shape: f32[16,1], index: 4, kind: input, shape index: {}]   ;;  %s2166_s5 = inlined_call_operand.vmem [shape: f32[16,32,128], index: 5, kind: output, shape index: {0}]   ;;  %s2167_s6 = inlined_call_operand.vmem [shape: f32[1,32,2], index: 6, kind: output, shape index: {1}]  }
   0x1   :  { %s1615_s23 = smov 0  }
   0x2 LB: > { %s26_s3 = sadd.s32 1, %s1567_s22  ;;  %p1322_p0 = scmp.ge.s32.totalorder %s1571_s23, 1  ;;  %s1571_s23 = sphi %s1615_s23, %s17_s23   ;;  %s1567_s22 = sphi %s1613_s22, %s2169_s22   ;;  %s1563_s21 = sphi %s1611_s21, %s2168_s21  }
   0x3   : > { %p27_p1 = scmp.ge.s32.totalorder %s26_s3, 2  ;;  %p228_p2 = scmp.lt.s32.totalorder %s1571_s23, 3 }
   0x5   : > { %s2171_s3 = smov (%p27_p1, %s26_s3), 0  ;;  %p229_p3 = pnand %p1322_p0, %p228_p2 }
   0x6   : > { %s1323_s4 = sshll.u32 (!%p229_p3), %s1563_s21, 3  ;;  %p1326_p5 = scmp.ne.s32.totalorder (!%p229_p3), %s1563_s21, 0 }
   0x7   : > { %232 = sbr.rel (%p229_p3) target bundleno = 534 (0x216), region = 40  ;;  %p271_p4 = scmp.lt.s32.totalorder (!%p229_p3), %s1323_s4, 15 }
   0xe   : > { %s2173_s4 = smov (!%p271_p4, %s1323_s4), 15  ;;  %289 = sbr.rel (%p1326_p5) target bundleno = 31 (0x1f), region = 44 }
   0xf   : > { %s1424_s24 = sshll.u32 %s2173_s4, 5  ;;  %v290_v0 = vld [vmem:[%s2161_s0] sm:$0xff] (!%p1326_p5)  ;;  %v291_v1 = vld [vmem:[%s2161_s0 + $0x8] sm:$0xff] (!%p1326_p5)  ;;  %v1327_v2 = vld [vmem:[%s2161_s0 + $0x10] sm:$0xff] (!%p1326_p5)  ;;  %vm369_vm0 = vcmask (!%p1326_p5), 15360   ;;  %v1573_v7 = vmov (!%p1326_p5), 0.0  }
  0x10   : > { %s1635_s27 = scalar_lea.vmem %s2166_s5, %s1424_s24  ;;  %v292_v3 = vpack.c.bf16 (!%p1326_p5), %v291_v1, %v290_v0  ;;  %v1328_v4 = vld [vmem:[%s2161_s0 + $0x18] sm:$0xff] (!%p1326_p5)  ;;  %v1329_v5 = vld [vmem:[%s2161_s0 + $0x20] sm:$0xff] (!%p1326_p5)  ;;  %v1330_v6 = vld [vmem:[%s2161_s0 + $0x28] sm:$0xff] (!%p1326_p5)  ;;  %370 = vst.msk [vmem:[%s2167_s6] sm:$0xff] (!%p1326_p5), %vm369_vm0, %v1573_v7 }
  0x11   : > { %371 = vst.msk [vmem:[%s2167_s6 + $0x8] sm:$0xff] (!%p1326_p5), %vm369_vm0, %v1573_v7  ;;  %372 = vst.msk [vmem:[%s2167_s6 + $0x10] sm:$0xff] (!%p1326_p5), %vm369_vm0, %v1573_v7  ;;  %v297_v8 = vpack.c.bf16 (!%p1326_p5), %v1328_v4, %v1327_v2  ;;  %v302_v9 = vpack.c.bf16 (!%p1326_p5), %v1330_v6, %v1329_v5  ;;  %v1331_v10 = vld [vmem:[%s2161_s0 + $0x30] sm:$0xff] (!%p1326_p5)  ;;  %v1332_v11 = vld [vmem:[%s2161_s0 + $0x38] sm:$0xff] (!%p1326_p5) }
  0x12   : > { %373 = vst.msk [vmem:[%s2167_s6 + $0x18] sm:$0xff] (!%p1326_p5), %vm369_vm0, %v1573_v7  ;;  %v1333_v12 = vld [vmem:[%s2161_s0 + $0x40] sm:$0xff] (!%p1326_p5)  ;;  %293 = vst [vmem:[#allocation2] sm:$0xff] (!%p1326_p5), %v292_v3  ;;  %v307_v13 = vpack.c.bf16 (!%p1326_p5), %v1332_v11, %v1331_v10  ;;  %v1334_v14 = vld [vmem:[%s2161_s0 + $0x48] sm:$0xff] (!%p1326_p5) }
  0x13   : > { %v1335_v15 = vld [vmem:[%s2161_s0 + $0x50] sm:$0xff] (!%p1326_p5)  ;;  %v1336_v16 = vld [vmem:[%s2161_s0 + $0x58] sm:$0xff] (!%p1326_p5)  ;;  %298 = vst [vmem:[#allocation2 + $0x8] sm:$0xff] (!%p1326_p5), %v297_v8  ;;  %303 = vst [vmem:[#allocation2 + $0x10] sm:$0xff] (!%p1326_p5), %v302_v9  ;;  %v312_v17 = vpack.c.bf16 (!%p1326_p5), %v1334_v14, %v1333_v12 }
  0x14   : > { %v317_v18 = vpack.c.bf16 (!%p1326_p5), %v1336_v16, %v1335_v15  ;;  %v1337_v19 = vld [vmem:[%s2161_s0 + $0x60] sm:$0xff] (!%p1326_p5)  ;;  %v1338_v20 = vld [vmem:[%s2161_s0 + $0x68] sm:$0xff] (!%p1326_p5)  ;;  %v1339_v21 = vld [vmem:[%s2161_s0 + $0x70] sm:$0xff] (!%p1326_p5)  ;;  %308 = vst [vmem:[#allocation2 + $0x18] sm:$0xff] (!%p1326_p5), %v307_v13 }
  0x15   : > { %v322_v22 = vpack.c.bf16 %v1338_v20, %v1337_v19  ;;  %v1340_v23 = vld [vmem:[%s2161_s0 + $0x78] sm:$0xff]  ;;  %v1341_v24 = vld [vmem:[%s2161_s0 + $0x80] sm:$0xff]  ;;  %v1342_v25 = vld [vmem:[%s2161_s0 + $0x88] sm:$0xff]  ;;  %313 = vst [vmem:[#allocation2 + $0x20] sm:$0xff] %v312_v17 }
  0x16   : > { %318 = vst [vmem:[#allocation2 + $0x28] sm:$0xff] %v317_v18  ;;  %v327_v26 = vpack.c.bf16 %v1340_v23, %v1339_v21  ;;  %v332_v27 = vpack.c.bf16 %v1342_v25, %v1341_v24  ;;  %v1343_v28 = vld [vmem:[%s2161_s0 + $0x90] sm:$0xff]  ;;  %v1344_v29 = vld [vmem:[%s2161_s0 + $0x98] sm:$0xff]  ;;  %v1345_v30 = vld [vmem:[%s2161_s0 + $0xa0] sm:$0xff] }
  0x17   : > { %323 = vst [vmem:[#allocation2 + $0x30] sm:$0xff] %v322_v22  ;;  %v337_v31 = vpack.c.bf16 %v1344_v29, %v1343_v28  ;;  %v1346_v32 = vld [vmem:[%s2161_s0 + $0xa8] sm:$0xff]  ;;  %v1347_v33 = vld [vmem:[%s2161_s0 + $0xb0] sm:$0xff]  ;;  %v1348_v34 = vld [vmem:[%s2161_s0 + $0xb8] sm:$0xff] }
  0x18   : > { %328 = vst [vmem:[#allocation2 + $0x38] sm:$0xff] %v327_v26  ;;  %333 = vst [vmem:[#allocation2 + $0x40] sm:$0xff] %v332_v27  ;;  %v342_v35 = vpack.c.bf16 %v1346_v32, %v1345_v30  ;;  %v347_v36 = vpack.c.bf16 %v1348_v34, %v1347_v33  ;;  %v1349_v37 = vld [vmem:[%s2161_s0 + $0xc0] sm:$0xff]  ;;  %v1350_v38 = vld [vmem:[%s2161_s0 + $0xc8] sm:$0xff] }
  0x19   : > { %v1351_v39 = vld [vmem:[%s2161_s0 + $0xd0] sm:$0xff]  ;;  %338 = vst [vmem:[#allocation2 + $0x48] sm:$0xff] %v337_v31  ;;  %v352_v40 = vpack.c.bf16 %v1350_v38, %v1349_v37  ;;  %v1352_v41 = vld [vmem:[%s2161_s0 + $0xd8] sm:$0xff]  ;;  %v1353_v42 = vld [vmem:[%s2161_s0 + $0xe0] sm:$0xff] }
  0x1a   : > { %v1354_v43 = vld [vmem:[%s2161_s0 + $0xe8] sm:$0xff]  ;;  %343 = vst [vmem:[#allocation2 + $0x50] sm:$0xff] %v342_v35  ;;  %348 = vst [vmem:[#allocation2 + $0x58] sm:$0xff] %v347_v36  ;;  %v357_v44 = vpack.c.bf16 %v1352_v41, %v1351_v39  ;;  %v1355_v46 = vld [vmem:[%s2161_s0 + $0xf0] sm:$0xff] }
  0x1b   : > { %v362_v45 = vpack.c.bf16 %v1354_v43, %v1353_v42  ;;  %v1356_v47 = vld [vmem:[%s2161_s0 + $0xf8] sm:$0xff]  ;;  %353 = vst [vmem:[#allocation2 + $0x60] sm:$0xff] %v352_v40 }
  0x1c   : > { %v367_v48 = vpack.c.bf16 %v1356_v47, %v1355_v46  ;;  %358 = vst [vmem:[#allocation2 + $0x68] sm:$0xff] %v357_v44 }
  0x1d   : > { %363 = vst [vmem:[#allocation2 + $0x70] sm:$0xff] %v362_v45 }
  0x1e   : > { %368 = vst [vmem:[#allocation2 + $0x78] sm:$0xff] %v367_v48 }
  0x1f PF: > { %s1747_s13 = sshll.u32 %s1563_s21, 7  ;;  %v1752_v49 = vld [vmem:[%s2162_s1] sm:$0xff]   ;;  %vm426_vm1 = vcmask 130048   ;;  %v380_v50 = vld [vmem:[%s2163_s2 + $0x10] sm:$0xff]  ;;  %v1574_v51 = vmov 0   ;;  %v1769_v54 = vld [vmem:[%s2162_s1 + $0x8] sm:$0xff]   ;;  %v382_v0 = vlaneseq }
  0x20   : > { %s391_s16 = sshra.s32 %s1747_s13, 4  ;;  %s1426_s17 = sadd.s32 16, %s1747_s13  ;;  %1472 = vmatprep.mubr.msk.bf16.mxu0 %vm426_vm1, %v1752_v49  ;;  %1478 = vmatprep.mubr.msk.bf16.mxu1 %vm426_vm1, %v1752_v49  ;;  %v378_v52 = vld [vmem:[%s2163_s2] sm:$0xff]  ;;  %v381_v56 = vld [vmem:[%s2163_s2 + $0x18] sm:$0xff]  ;;  %v379_v57 = vld [vmem:[%s2163_s2 + $0x8] sm:$0xff]  ;;  %v1575_v7 = vmov 0.0  }
  0x21   : > { %s1359_s18 = sshll.u32 %s391_s16, 3  ;;  %s521_s19 = sshra.s32 %s1426_s17, 4  ;;  %1546 = vset.pattern.permute.xlu1 %v1574_v51  ;;  %1545 = vset.pattern.permute.xlu0 %v1574_v51  ;;  %v383_v2 = vand.u32 127, %v382_v0  ;;  %vm1174_vm3 = vcmask 7168   ;;  %vm1183_vm4 = vcmask 15360  }
  0x22   : > { %s1366_s4 = sshll.u32 %s521_s19, 3  ;;  %s394_s26 = scalar_lea.vmem [#allocation2], %s1359_s18  ;;  %408 = vperm.xlu1 %1546, %v380_v50   ;;  %398 = vperm.xlu0 %1545, %v378_v52  }
  0x23   : > { %s1428_s30 = sadd.s32 32, %s1747_s13  ;;  %s524_s7 = scalar_lea.vmem [#allocation2], %s1366_s4  ;;  %vm387_vm2 = vcmp.lt.s32.totalorder %v383_v2, 32 }
  0x24   : > { %s614_s8 = sshra.s32 %s1428_s30, 4  ;;  %s1430_s9 = sadd.s32 48, %s1747_s13  ;;  %v1819_v8 = vsel %vm387_vm2, 1.0, %v1575_v7 }
  0x25   : > { %v395_v53 = vld [vmem:[%s394_s26] sm:$0xff]  ;;  %s1374_s15 = sshll.u32 %s614_s8, 3  ;;  %s707_s16 = sshra.s32 %s1430_s9, 4 }
  0x26   : > { %1470 = vmatprep.subr.bf16.mxu0 %v395_v53  ;;  %v525_v55 = vld [vmem:[%s524_s7] sm:$0xff]  ;;  %s1382_s17 = sshll.u32 %s707_s16, 3  ;;  %s617_s18 = scalar_lea.vmem [#allocation2], %s1374_s15  ;;  %413 = vperm.xlu1 %1546, %v381_v56  }
  0x27   : > { %1471 = vmatpush3.bf16.msra.mxu0 %v395_v53  ;;  %1476 = vmatprep.subr.bf16.mxu1 %v525_v55  ;;  %v618_v58 = vld [vmem:[%s617_s18] sm:$0xff]  ;;  %s1432_s19 = sadd.s32 64, %s1747_s13  ;;  %s710_s21 = scalar_lea.vmem [#allocation2], %s1382_s17 }
  0x28   : > { %1477 = vmatpush3.bf16.msra.mxu1 %v525_v55  ;;  %403 = vperm.xlu0 %1545, %v379_v57   ;;  %v711_v59 = vld [vmem:[%s710_s21] sm:$0xff]  ;;  %s800_s20 = sshra.s32 %s1432_s19, 4  ;;  %s1434_s4 = sadd.s32 80, %s1747_s13 }
  0x29   : > { %1482 = vmatprep.subr.bf16.mxu0 %v618_v58  ;;  %s1390_s24 = sshll.u32 %s800_s20, 3  ;;  %s893_s25 = sshra.s32 %s1434_s4, 4  ;;  %1488 = vmatprep.subr.bf16.mxu1 %v711_v59 }
  0x2a   : > { %1473 = vmatmul.mubr.msk.bf16.vlgmr.msra.gmra.mrb[0].mxu0 %vm426_vm1, %v1769_v54  ;;  %s1398_s26 = sshll.u32 %s893_s25, 3  ;;  %s803_s28 = scalar_lea.vmem [#allocation2], %s1390_s24 }
  0x2b   : > { %1479 = vmatmul.mubr.msk.bf16.vlgmr.msra.gmra.mrb[0].mxu1 %vm426_vm1, %v1769_v54  ;;  %1483 = vmatpush3.bf16.msra.mxu0 %v618_v58  ;;  %v804_v60 = vld [vmem:[%s803_s28] sm:$0xff]  ;;  %s1436_s29 = sadd.s32 96, %s1747_s13  ;;  %s896_s30 = scalar_lea.vmem [#allocation2], %s1398_s26 }
  0x2c   : > { %1484 = vmatprep.mubr.msk.bf16.mxu0 %vm426_vm1, %v1752_v49  ;;  %1489 = vmatpush3.bf16.msra.mxu1 %v711_v59  ;;  %v897_v61 = vld [vmem:[%s896_s30] sm:$0xff]  ;;  %s986_s7 = sshra.s32 %s1436_s29, 4  ;;  %s1438_s8 = sadd.s32 112, %s1747_s13 }
  0x2d   : > { %1490 = vmatprep.mubr.msk.bf16.mxu1 %vm426_vm1, %v1752_v49  ;;  %1494 = vmatprep.subr.bf16.mxu0 %v804_v60  ;;  %s1406_s9 = sshll.u32 %s986_s7, 3  ;;  %s1079_s10 = sshra.s32 %s1438_s8, 4 }
  0x2e   : > { %1500 = vmatprep.subr.bf16.mxu1 %v897_v61  ;;  %s1414_s11 = sshll.u32 %s1079_s10, 3  ;;  %s989_s12 = scalar_lea.vmem [#allocation2], %s1406_s9 }
  0x2f   : > { %v990_v62 = vld [vmem:[%s989_s12] sm:$0xff]  ;;  %s1082_s14 = scalar_lea.vmem [#allocation2], %s1414_s11 }
  0x30   : > { %v1083_v63 = vld [vmem:[%s1082_s14] sm:$0xff] }
  0x32   : > { %1485 = vmatmul.mubr.msk.bf16.vlgmr.msra.gmra.mrb[4].mxu0 %vm426_vm1, %v1769_v54 }
  0x33   : > { %1491 = vmatmul.mubr.msk.bf16.vlgmr.msra.gmra.mrb[4].mxu1 %vm426_vm1, %v1769_v54  ;;  %1495 = vmatpush3.bf16.msra.mxu0 %v804_v60 }
  0x34   : > { %1501 = vmatpush3.bf16.msra.mxu1 %v897_v61  ;;  %1496 = vmatprep.mubr.msk.bf16.mxu0 %vm426_vm1, %v1752_v49 }
  0x35   : > { %1502 = vmatprep.mubr.msk.bf16.mxu1 %vm426_vm1, %v1752_v49  ;;  %1506 = vmatprep.subr.bf16.mxu0 %v990_v62 }
  0x36   : > { %1512 = vmatprep.subr.bf16.mxu1 %v1083_v63 }
  0x3a   : > { %1497 = vmatmul.mubr.msk.bf16.vlgmr.msra.gmra.mrb[8].mxu0 %vm426_vm1, %v1769_v54 }
  0x3b   : > { %1503 = vmatmul.mubr.msk.bf16.vlgmr.msra.gmra.mrb[8].mxu1 %vm426_vm1, %v1769_v54  ;;  %1507 = vmatpush3.bf16.msra.mxu0 %v990_v62 }
  0x3c   : > { %1513 = vmatpush3.bf16.msra.mxu1 %v1083_v63  ;;  %1508 = vmatprep.mubr.msk.bf16.mxu0 %vm426_vm1, %v1752_v49 }
  0x3d   : > { %1514 = vmatprep.mubr.msk.bf16.mxu1 %vm426_vm1, %v1752_v49 }
  0x42   : > { %1509 = vmatmul.mubr.msk.bf16.vlgmr.msra.gmra.mrb[12].mxu0 %vm426_vm1, %v1769_v54 }
  0x43   : > { %1515 = vmatmul.mubr.msk.bf16.vlgmr.msra.gmra.mrb[12].mxu1 %vm426_vm1, %v1769_v54 }
  0xa1   : > { %v1811_v1 = vpop.permute.xlu1 %408  ;;  %v1813_v3 = vpop.permute.xlu0 %398 }
  0xa5   : > { %v1815_v4 = vpop.permute.xlu1 %413 }
  0xa7   : > { %v1817_v6 = vpop.permute.xlu0 %403 }
  0xfd   : > { %v1474_v5 = vpop.f32.mrb[0].mxu0 }
  0xfe   : > { %v476_v9 = vadd.f32 %v1474_v5, %v1811_v1  ;;  %v467_v10 = vpop.f32.mrb[1].mxu0  ;;  %v1480_v11 = vpop.f32.mrb[0].mxu1 }
  0xff   : > { %v1823_v12 = vadd.f32 %v467_v10, %v1813_v3  ;;  %v1826_v13 = vadd.f32 %v1480_v11, %v1811_v1  ;;  %v1475_v14 = vpop.f32.mrb[2].mxu0  ;;  %v560_v15 = vpop.f32.mrb[1].mxu1 }
 0x100   : > { %484 = vst [vmem:[%s1635_s27 + $0x10] sm:$0xff] %v476_v9  ;;  %v1830_v16 = vadd.f32 %v1475_v14, %v1815_v4  ;;  %v1833_v17 = vadd.f32 %v560_v15, %v1813_v3  ;;  %v470_v18 = vpop.f32.mrb[3].mxu0  ;;  %v1481_v19 = vpop.f32.mrb[2].mxu1  ;;  %v488_v20 = vmul.f32 %v1819_v8, %v476_v9 }
 0x101   : > { %482 = vst [vmem:[%s1635_s27] sm:$0xff] %v1823_v12  ;;  %1371 = vst [vmem:[%s1635_s27 + $0x30] sm:$0xff] %v1826_v13  ;;  %v1841_v21 = vadd.f32 %v470_v18, %v1817_v6  ;;  %v1844_v22 = vadd.f32 %v1481_v19, %v1815_v4  ;;  %v563_v23 = vpop.f32.mrb[3].mxu1  ;;  %v1848_v24 = vmul.f32 %v1819_v8, %v1826_v13 }
 0x102   : > { %485 = vst [vmem:[%s1635_s27 + $0x18] sm:$0xff] %v1830_v16  ;;  %1369 = vst [vmem:[%s1635_s27 + $0x20] sm:$0xff] %v1833_v17  ;;  %v1855_v25 = vadd.f32 %v563_v23, %v1817_v6  ;;  %494 = vadd.xlane.f32.xlu0 %v488_v20  ;;  %v486_v26 = vmul.f32 %v1819_v8, %v1823_v12  ;;  %v504_v28 = vmul.f32 %v488_v20, %v476_v9 }
 0x103   : > { %483 = vst [vmem:[%s1635_s27 + $0x8] sm:$0xff] %v1841_v21  ;;  %1372 = vst [vmem:[%s1635_s27 + $0x38] sm:$0xff] %v1844_v22  ;;  %588 = vadd.xlane.f32.xlu1 %v1848_v24  ;;  %v489_v40 = vmul.f32 %v1819_v8, %v1830_v16  ;;  %v1897_v44 = vmul.f32 %v1819_v8, %v1833_v17  ;;  %v1915_v46 = vmul.f32 %v1819_v8, %v1844_v22 }
 0x104   : > { %1370 = vst [vmem:[%s1635_s27 + $0x28] sm:$0xff] %v1855_v25  ;;  %v487_v48 = vmul.f32 %v1819_v8, %v1841_v21  ;;  %v502_v61 = vmul.f32 %v486_v26, %v1823_v12 }
 0x105   : > { %v1486_v27 = vpop.f32.mrb[4].mxu0  ;;  %v505_v60 = vmul.f32 %v489_v40, %v1830_v16  ;;  %v581_v16 = vmul.f32 %v1819_v8, %v1855_v25 }
 0x106   : > { %v1867_v29 = vadd.f32 %v1486_v27, %v1811_v1  ;;  %v653_v30 = vpop.f32.mrb[5].mxu0  ;;  %v1492_v31 = vpop.f32.mrb[4].mxu1  ;;  %490 = vadd.xlane.f32.xlu0 %v486_v26  ;;  %v598_v26 = vmul.f32 %v1848_v24, %v1826_v13 }
 0x107   : > { %v1870_v32 = vadd.f32 %v653_v30, %v1813_v3  ;;  %v1873_v33 = vadd.f32 %v1492_v31, %v1811_v1  ;;  %v746_v34 = vpop.f32.mrb[5].mxu1  ;;  %510 = vadd.xlane.f32.xlu1 %v504_v28  ;;  %v1487_v35 = vpop.f32.mrb[6].mxu0 }
 0x108   : > { %1379 = vst [vmem:[%s1635_s27 + $0x50] sm:$0xff] %v1867_v29  ;;  %v1878_v36 = vadd.f32 %v746_v34, %v1813_v3  ;;  %v1881_v37 = vadd.f32 %v1487_v35, %v1815_v4  ;;  %v656_v38 = vpop.f32.mrb[7].mxu0  ;;  %v1493_v39 = vpop.f32.mrb[6].mxu1 }
 0x109   : > { %1377 = vst [vmem:[%s1635_s27 + $0x40] sm:$0xff] %v1870_v32  ;;  %1387 = vst [vmem:[%s1635_s27 + $0x70] sm:$0xff] %v1873_v33  ;;  %v1890_v41 = vadd.f32 %v656_v38, %v1817_v6  ;;  %v1893_v42 = vadd.f32 %v1493_v39, %v1815_v4  ;;  %v749_v43 = vpop.f32.mrb[7].mxu1 }
 0x10a   : > { %1385 = vst [vmem:[%s1635_s27 + $0x60] sm:$0xff] %v1878_v36  ;;  %1380 = vst [vmem:[%s1635_s27 + $0x58] sm:$0xff] %v1881_v37  ;;  %v1904_v45 = vadd.f32 %v749_v43, %v1817_v6  ;;  %496 = vadd.xlane.f32.xlu0 %v489_v40  ;;  %v596_v40 = vmul.f32 %v1897_v44, %v1833_v17 }
 0x10b   : > { %1378 = vst [vmem:[%s1635_s27 + $0x48] sm:$0xff] %v1890_v41  ;;  %1388 = vst [vmem:[%s1635_s27 + $0x78] sm:$0xff] %v1893_v42  ;;  %584 = vadd.xlane.f32.xlu1 %v1897_v44 }
 0x10c   : > { %1386 = vst [vmem:[%s1635_s27 + $0x68] sm:$0xff] %v1904_v45 }
 0x10d   : > { %v1498_v47 = vpop.f32.mrb[8].mxu0 }
 0x10e   : > { %v1920_v49 = vadd.f32 %v1498_v47, %v1811_v1  ;;  %v839_v50 = vpop.f32.mrb[9].mxu0  ;;  %v1504_v51 = vpop.f32.mrb[8].mxu1  ;;  %590 = vadd.xlane.f32.xlu0 %v1915_v46 }
 0x10f   : > { %v840_v52 = vadd.f32 %v839_v50, %v1813_v3  ;;  %v941_v53 = vadd.f32 %v1504_v51, %v1811_v1  ;;  %v1499_v54 = vpop.f32.mrb[10].mxu0  ;;  %v932_v55 = vpop.f32.mrb[9].mxu1  ;;  %492 = vadd.xlane.f32.xlu1 %v487_v48 }
 0x110   : > { %1395 = vst [vmem:[%s1635_s27 + $0x90] sm:$0xff] %v1920_v49  ;;  %v851_v56 = vadd.f32 %v1499_v54, %v1815_v4  ;;  %v933_v57 = vadd.f32 %v932_v55, %v1813_v3  ;;  %v842_v58 = vpop.f32.mrb[11].mxu0  ;;  %v1505_v59 = vpop.f32.mrb[10].mxu1 }
 0x111   : > { %1393 = vst [vmem:[%s1635_s27 + $0x80] sm:$0xff] %v840_v52  ;;  %1403 = vst [vmem:[%s1635_s27 + $0xb0] sm:$0xff] %v941_v53  ;;  %v843_v62 = vadd.f32 %v842_v58, %v1817_v6  ;;  %v944_v63 = vadd.f32 %v1505_v59, %v1815_v4  ;;  %v935_v0 = vpop.f32.mrb[11].mxu1  ;;  %v1936_v2 = vmul.f32 %v1819_v8, %v840_v52 }
 0x112   : > { %v1939_v5 = vmul.f32 %v1819_v8, %v941_v53  ;;  %1396 = vst [vmem:[%s1635_s27 + $0x98] sm:$0xff] %v851_v56  ;;  %1401 = vst [vmem:[%s1635_s27 + $0xa0] sm:$0xff] %v933_v57  ;;  %v936_v7 = vadd.f32 %v935_v0, %v1817_v6  ;;  %512 = vadd.xlane.f32.xlu0 %v505_v60  ;;  %v1945_v9 = vmul.f32 %v1819_v8, %v851_v56 }
 0x113   : > { %v1948_v10 = vmul.f32 %v1819_v8, %v933_v57  ;;  %1394 = vst [vmem:[%s1635_s27 + $0x88] sm:$0xff] %v843_v62  ;;  %1404 = vst [vmem:[%s1635_s27 + $0xb8] sm:$0xff] %v944_v63  ;;  %506 = vadd.xlane.f32.xlu1 %v502_v61  ;;  %v1953_v11 = vmul.f32 %v1819_v8, %v843_v62  ;;  %v1956_v12 = vmul.f32 %v1819_v8, %v944_v63 }
 0x114   : > { %v1959_v14 = vmul.f32 %v1936_v2, %v840_v52  ;;  %v1962_v15 = vmul.f32 %v1939_v5, %v941_v53  ;;  %1402 = vst [vmem:[%s1635_s27 + $0xa8] sm:$0xff] %v936_v7  ;;  %v1968_v18 = vmul.f32 %v1945_v9, %v851_v56  ;;  %v1971_v19 = vmul.f32 %v1819_v8, %v936_v7 }
 0x115   : > { %v1974_v20 = vmul.f32 %v1948_v10, %v933_v57  ;;  %v1510_v23 = vpop.f32.mrb[12].mxu0  ;;  %v1979_v27 = vmul.f32 %v1953_v11, %v843_v62  ;;  %v1982_v28 = vmul.f32 %v1956_v12, %v944_v63  ;;  %v503_v52 = vmul.f32 %v487_v48, %v1841_v21 }
 0x116   : > { %v1034_v30 = vadd.f32 %v1510_v23, %v1811_v1  ;;  %v1025_v31 = vpop.f32.mrb[13].mxu0  ;;  %v1516_v34 = vpop.f32.mrb[12].mxu1  ;;  %586 = vadd.xlane.f32.xlu0 %v581_v16  ;;  %v1986_v35 = vmul.f32 %v1971_v19, %v936_v7  ;;  %v599_v59 = vmul.f32 %v1915_v46, %v1844_v22  ;;  %v675_v63 = vmul.f32 %v1819_v8, %v1867_v29 }
 0x117   : > { %v1026_v38 = vadd.f32 %v1025_v31, %v1813_v3  ;;  %v1127_v13 = vadd.f32 %v1516_v34, %v1811_v1  ;;  %v1511_v24 = vpop.f32.mrb[14].mxu0  ;;  %v1118_v39 = vpop.f32.mrb[13].mxu1  ;;  %604 = vadd.xlane.f32.xlu1 %v598_v26  ;;  %v597_v46 = vmul.f32 %v581_v16, %v1855_v25  ;;  %v673_v23 = vmul.f32 %v1819_v8, %v1870_v32 }
 0x118   : > { %1411 = vst [vmem:[%s1635_s27 + $0xd0] sm:$0xff] %v1034_v30  ;;  %v1037_v43 = vadd.f32 %v1511_v24, %v1815_v4  ;;  %v1119_v47 = vadd.f32 %v1118_v39, %v1813_v3  ;;  %v1028_v50 = vpop.f32.mrb[15].mxu0  ;;  %v1517_v51 = vpop.f32.mrb[14].mxu1  ;;  %v1997_v1 = vmul.f32 %v1819_v8, %v1034_v30  ;;  %v676_v26 = vmul.f32 %v1819_v8, %v1881_v37 }
 0x119   : > { %1409 = vst [vmem:[%s1635_s27 + $0xc0] sm:$0xff] %v1026_v38  ;;  %1419 = vst [vmem:[%s1635_s27 + $0xf0] sm:$0xff] %v1127_v13  ;;  %v1029_v53 = vadd.f32 %v1028_v50, %v1817_v6  ;;  %v1130_v17 = vadd.f32 %v1517_v51, %v1815_v4  ;;  %v1121_v44 = vpop.f32.mrb[15].mxu1  ;;  %v2004_v54 = vmul.f32 %v1819_v8, %v1026_v38 }
 0x11a   : > { %v2007_v3 = vmul.f32 %v1819_v8, %v1127_v13  ;;  %1412 = vst [vmem:[%s1635_s27 + $0xd8] sm:$0xff] %v1037_v43  ;;  %1417 = vst [vmem:[%s1635_s27 + $0xe0] sm:$0xff] %v1119_v47  ;;  %v1122_v21 = vadd.f32 %v1121_v44, %v1817_v6  ;;  %508 = vadd.xlane.f32.xlu0 %v503_v52  ;;  %v2013_v48 = vmul.f32 %v1819_v8, %v1037_v43 }
 0x11b   : > { %v2016_v55 = vmul.f32 %v1997_v1, %v1034_v30  ;;  %v2019_v4 = vmul.f32 %v1819_v8, %v1119_v47  ;;  %1410 = vst [vmem:[%s1635_s27 + $0xc8] sm:$0xff] %v1029_v53  ;;  %1420 = vst [vmem:[%s1635_s27 + $0xf8] sm:$0xff] %v1130_v17  ;;  %600 = vadd.xlane.f32.xlu1 %v596_v40  ;;  %v2024_v56 = vmul.f32 %v1819_v8, %v1029_v53 }
 0x11c   : > { %v2027_v57 = vmul.f32 %v1819_v8, %v1130_v17  ;;  %v2030_v6 = vmul.f32 %v2004_v54, %v1026_v38  ;;  %v2033_v58 = vmul.f32 %v2007_v3, %v1127_v13  ;;  %1418 = vst [vmem:[%s1635_s27 + $0xe8] sm:$0xff] %v1122_v21  ;;  %v2039_v60 = vmul.f32 %v2013_v48, %v1037_v43 }
 0x11d   : > { %v2042_v61 = vmul.f32 %v1819_v8, %v1122_v21  ;;  %v2045_v62 = vmul.f32 %v2019_v4, %v1119_v47  ;;  %v2050_v0 = vmul.f32 %v2024_v56, %v1029_v53  ;;  %v768_v30 = vmul.f32 %v1819_v8, %v1873_v33 }
 0x11e   : > { %v2053_v7 = vmul.f32 %v2027_v57, %v1130_v17  ;;  %606 = vadd.xlane.f32.xlu0 %v599_v59  ;;  %v674_v31 = vmul.f32 %v1819_v8, %v1890_v41  ;;  %v691_v34 = vmul.f32 %v675_v63, %v1867_v29  ;;  %v769_v25 = vmul.f32 %v1819_v8, %v1893_v42 }
 0x11f   : > { %v2056_v22 = vmul.f32 %v2042_v61, %v1122_v21  ;;  %681 = vadd.xlane.f32.xlu1 %v675_v63  ;;  %v766_v16 = vmul.f32 %v1819_v8, %v1878_v36  ;;  %v692_v38 = vmul.f32 %v676_v26, %v1881_v37  ;;  %v689_v13 = vmul.f32 %v673_v23, %v1870_v32 }
 0x120   : > { %v767_v24 = vmul.f32 %v1819_v8, %v1904_v45  ;;  %v784_v29 = vmul.f32 %v768_v30, %v1873_v33  ;;  %v690_v39 = vmul.f32 %v674_v31, %v1890_v41  ;;  %v785_v43 = vmul.f32 %v769_v25, %v1893_v42 }
 0x121   : > { %v782_v40 = vmul.f32 %v766_v16, %v1878_v36  ;;  %v861_v32 = vmul.f32 %v1819_v8, %v1920_v49 }
 0x122   : > { %602 = vadd.xlane.f32.xlu0 %v597_v46  ;;  %v783_v37 = vmul.f32 %v767_v24, %v1904_v45 }
 0x123   : > { %677 = vadd.xlane.f32.xlu1 %v673_v23  ;;  %v877_v33 = vmul.f32 %v861_v32, %v1920_v49 }
 0x126   : > { %683 = vadd.xlane.f32.xlu0 %v676_v26 }
 0x127   : > { %774 = vadd.xlane.f32.xlu1 %v768_v30 }
 0x12a   : > { %679 = vadd.xlane.f32.xlu0 %v674_v31 }
 0x12b   : > { %697 = vadd.xlane.f32.xlu1 %v691_v34 }
 0x12e   : > { %776 = vadd.xlane.f32.xlu0 %v769_v25 }
 0x12f   : > { %770 = vadd.xlane.f32.xlu1 %v766_v16 }
 0x132   : > { %699 = vadd.xlane.f32.xlu0 %v692_v38 }
 0x133   : > { %693 = vadd.xlane.f32.xlu1 %v689_v13 }
 0x136   : > { %772 = vadd.xlane.f32.xlu0 %v767_v24 }
 0x137   : > { %790 = vadd.xlane.f32.xlu1 %v784_v29 }
 0x13a   : > { %695 = vadd.xlane.f32.xlu0 %v690_v39 }
 0x13b   : > { %786 = vadd.xlane.f32.xlu1 %v782_v40 }
 0x13e   : > { %792 = vadd.xlane.f32.xlu0 %v785_v43 }
 0x13f   : > { %867 = vadd.xlane.f32.xlu1 %v861_v32 }
 0x142   : > { %788 = vadd.xlane.f32.xlu0 %v783_v37 }
 0x143   : > { %863 = vadd.xlane.f32.xlu1 %v1936_v2 }
 0x146   : > { %869 = vadd.xlane.f32.xlu0 %v1945_v9 }
 0x147   : > { %960 = vadd.xlane.f32.xlu1 %v1939_v5 }
 0x14a   : > { %865 = vadd.xlane.f32.xlu0 %v1953_v11 }
 0x14b   : > { %883 = vadd.xlane.f32.xlu1 %v877_v33 }
 0x14e   : > { %962 = vadd.xlane.f32.xlu0 %v1956_v12 }
 0x14f   : > { %956 = vadd.xlane.f32.xlu1 %v1948_v10 }
 0x152   : > { %885 = vadd.xlane.f32.xlu0 %v1968_v18 }
 0x153   : > { %879 = vadd.xlane.f32.xlu1 %v1959_v14 }
 0x156   : > { %958 = vadd.xlane.f32.xlu0 %v1971_v19 }
 0x157   : > { %976 = vadd.xlane.f32.xlu1 %v1962_v15 }
 0x15a   : > { %881 = vadd.xlane.f32.xlu0 %v1979_v27 }
 0x15b   : > { %972 = vadd.xlane.f32.xlu1 %v1974_v20 }
 0x15e   : > { %978 = vadd.xlane.f32.xlu0 %v1982_v28 }
 0x15f   : > { %1053 = vadd.xlane.f32.xlu1 %v1997_v1 }
 0x162   : > { %974 = vadd.xlane.f32.xlu0 %v1986_v35 }
 0x163   : > { %1049 = vadd.xlane.f32.xlu1 %v2004_v54 }
 0x166   : > { %1055 = vadd.xlane.f32.xlu0 %v2013_v48 }
 0x167   : > { %1146 = vadd.xlane.f32.xlu1 %v2007_v3 }
 0x16a   : > { %1051 = vadd.xlane.f32.xlu0 %v2024_v56 }
 0x16b   : > { %1069 = vadd.xlane.f32.xlu1 %v2016_v55 }
 0x16e   : > { %1148 = vadd.xlane.f32.xlu0 %v2027_v57 }
 0x16f   : > { %1142 = vadd.xlane.f32.xlu1 %v2019_v4 }
 0x172   : > { %1071 = vadd.xlane.f32.xlu0 %v2039_v60 }
 0x173   : > { %1065 = vadd.xlane.f32.xlu1 %v2030_v6 }
 0x176   : > { %1144 = vadd.xlane.f32.xlu0 %v2042_v61 }
 0x177   : > { %1158 = vadd.xlane.f32.xlu1 %v2045_v62 }
 0x17a   : > { %1067 = vadd.xlane.f32.xlu0 %v2050_v0 }
 0x17b   : > { %1162 = vadd.xlane.f32.xlu1 %v2033_v58 }
 0x17e   : > { %1160 = vadd.xlane.f32.xlu0 %v2056_v22 }
 0x182   : > { %1164 = vadd.xlane.f32.xlu0 %v2053_v7 }
 0x18f   : > { %v495_v8 = vpop.xlane.xlu0 %494 }
 0x190   : > { %v589_v36 = vpop.xlane.xlu1 %588 }
 0x191   : > { %v594_v41 = vadd.f32 %v589_v36, %v495_v8 }
 0x193   : > { %v491_v42 = vpop.xlane.xlu0 %490 }
 0x194   : > { %v511_v45 = vpop.xlane.xlu1 %510 }
 0x197   : > { %v497_v49 = vpop.xlane.xlu0 %496 }
 0x198   : > { %v585_v2 = vpop.xlane.xlu1 %584 }
 0x199   : > { %v592_v5 = vadd.f32 %v585_v2, %v491_v42 }
 0x19b   : > { %v591_v9 = vpop.xlane.xlu0 %590 }
 0x19c   : > { %v595_v10 = vadd.f32 %v591_v9, %v497_v49  ;;  %v493_v11 = vpop.xlane.xlu1 %492 }
 0x19f   : > { %v513_v12 = vpop.xlane.xlu0 %512 }
 0x1a0   : > { %v507_v14 = vpop.xlane.xlu1 %506 }
 0x1a3   : > { %v587_v15 = vpop.xlane.xlu0 %586 }
 0x1a4   : > { %v593_v18 = vadd.f32 %v587_v15, %v493_v11  ;;  %v605_v19 = vpop.xlane.xlu1 %604 }
 0x1a5   : > { %v610_v20 = vadd.f32 %v605_v19, %v511_v45 }
 0x1a7   : > { %v509_v27 = vpop.xlane.xlu0 %508 }
 0x1a8   : > { %v601_v28 = vpop.xlane.xlu1 %600 }
 0x1a9   : > { %v608_v35 = vadd.f32 %v601_v28, %v507_v14 }
 0x1ab   : > { %v607_v47 = vpop.xlane.xlu0 %606 }
 0x1ac   : > { %v611_v50 = vadd.f32 %v607_v47, %v513_v12  ;;  %v682_v51 = vpop.xlane.xlu1 %681 }
 0x1ad   : > { %v687_v52 = vadd.f32 %v682_v51, %v594_v41 }
 0x1af   : > { %v603_v1 = vpop.xlane.xlu0 %602 }
 0x1b0   : > { %v609_v53 = vadd.f32 %v603_v1, %v509_v27  ;;  %v678_v17 = vpop.xlane.xlu1 %677 }
 0x1b1   : > { %v685_v44 = vadd.f32 %v678_v17, %v592_v5 }
 0x1b3   : > { %v684_v54 = vpop.xlane.xlu0 %683 }
 0x1b4   : > { %v688_v3 = vadd.f32 %v684_v54, %v595_v10  ;;  %v775_v21 = vpop.xlane.xlu1 %774 }
 0x1b5   : > { %v780_v48 = vadd.f32 %v775_v21, %v687_v52 }
 0x1b7   : > { %v680_v55 = vpop.xlane.xlu0 %679 }
 0x1b8   : > { %v686_v4 = vadd.f32 %v680_v55, %v593_v18  ;;  %v698_v56 = vpop.xlane.xlu1 %697  ;;  %v1170_v55 = vld [vmem:[%s2167_s6] sm:$0xff] }
 0x1b9   : > { %v703_v57 = vadd.f32 %v698_v56, %v610_v20 }
 0x1bb   : > { %v777_v6 = vpop.xlane.xlu0 %776 }
 0x1bc   : > { %v2114_v58 = vadd.f32 %v777_v6, %v688_v3  ;;  %v771_v59 = vpop.xlane.xlu1 %770 }
 0x1bd   : > { %v778_v60 = vadd.f32 %v771_v59, %v685_v44 }
 0x1bf   : > { %v700_v61 = vpop.xlane.xlu0 %699 }
 0x1c0   : > { %v2116_v62 = vadd.f32 %v700_v61, %v611_v50  ;;  %v694_v63 = vpop.xlane.xlu1 %693 }
 0x1c1   : > { %v701_v9 = vadd.f32 %v694_v63, %v608_v35 }
 0x1c3   : > { %v773_v0 = vpop.xlane.xlu0 %772 }
 0x1c4   : > { %v779_v7 = vadd.f32 %v773_v0, %v686_v4  ;;  %v791_v22 = vpop.xlane.xlu1 %790 }
 0x1c5   : > { %v796_v20 = vadd.f32 %v791_v22, %v703_v57 }
 0x1c7   : > { %v696_v46 = vpop.xlane.xlu0 %695 }
 0x1c8   : > { %v787_v23 = vpop.xlane.xlu1 %786  ;;  %v702_v47 = vadd.f32 %v696_v46, %v609_v53 }
 0x1c9   : > { %v794_v12 = vadd.f32 %v787_v23, %v701_v9 }
 0x1cb   : > { %v793_v26 = vpop.xlane.xlu0 %792 }
 0x1cc   : > { %v868_v30 = vpop.xlane.xlu1 %867 }
 0x1cd   : > { %v873_v50 = vadd.f32 %v868_v30, %v780_v48 }
 0x1cf   : > { %v789_v31 = vpop.xlane.xlu0 %788 }
 0x1d0   : > { %v864_v34 = vpop.xlane.xlu1 %863  ;;  %v795_v44 = vadd.f32 %v789_v31, %v702_v47 }
 0x1d1   : > { %v871_v14 = vadd.f32 %v864_v34, %v778_v60  ;;  %v797_v60 = vadd.f32 %v793_v26, %v2116_v62 }
 0x1d3   : > { %v870_v25 = vpop.xlane.xlu0 %869 }
 0x1d4   : > { %v961_v16 = vpop.xlane.xlu1 %960  ;;  %v874_v46 = vadd.f32 %v870_v25, %v2114_v58 }
 0x1d5   : > { %v966_v35 = vadd.f32 %v961_v16, %v873_v50 }
 0x1d7   : > { %v866_v38 = vpop.xlane.xlu0 %865 }
 0x1d8   : > { %v884_v13 = vpop.xlane.xlu1 %883  ;;  %v872_v56 = vadd.f32 %v866_v38, %v779_v7  ;;  %v1172_v7 = vld [vmem:[%s2167_s6 + $0x10] sm:$0xff] }
 0x1d9   : > { %v889_v51 = vadd.f32 %v884_v13, %v796_v20 }
 0x1db   : > { %v963_v24 = vpop.xlane.xlu0 %962 }
 0x1dc   : > { %v957_v29 = vpop.xlane.xlu1 %956  ;;  %v967_v26 = vadd.f32 %v963_v24, %v874_v46 }
 0x1dd   : > { %v964_v27 = vadd.f32 %v957_v29, %v871_v14  ;;  %v1171_v29 = vld [vmem:[%s2167_s6 + $0x8] sm:$0xff] }
 0x1df   : > { %v886_v39 = vpop.xlane.xlu0 %885 }
 0x1e0   : > { %v880_v40 = vpop.xlane.xlu1 %879  ;;  %v890_v31 = vadd.f32 %v886_v39, %v797_v60 }
 0x1e1   : > { %v887_v15 = vadd.f32 %v880_v40, %v794_v12 }
 0x1e3   : > { %v959_v43 = vpop.xlane.xlu0 %958 }
 0x1e4   : > { %v977_v32 = vpop.xlane.xlu1 %976  ;;  %v965_v61 = vadd.f32 %v959_v43, %v872_v56 }
 0x1e5   : > { %v982_v3 = vadd.f32 %v977_v32, %v889_v51 }
 0x1e7   : > { %v882_v37 = vpop.xlane.xlu0 %881 }
 0x1e8   : > { %v973_v33 = vpop.xlane.xlu1 %972  ;;  %v888_v57 = vadd.f32 %v882_v37, %v795_v44 }
 0x1e9   : > { %v980_v28 = vadd.f32 %v973_v33, %v887_v15 }
 0x1eb   : > { %v979_v8 = vpop.xlane.xlu0 %978 }
 0x1ec   : > { %v1054_v36 = vpop.xlane.xlu1 %1053  ;;  %v983_v13 = vadd.f32 %v979_v8, %v890_v31  ;;  %v1173_v8 = vld [vmem:[%s2167_s6 + $0x18] sm:$0xff] }
 0x1ed   : > { %v1059_v6 = vadd.f32 %v1054_v36, %v966_v35 }
 0x1ef   : > { %v975_v41 = vpop.xlane.xlu0 %974 }
 0x1f0   : > { %v1050_v42 = vpop.xlane.xlu1 %1049  ;;  %v981_v63 = vadd.f32 %v975_v41, %v888_v57 }
 0x1f1   : > { %v1057_v52 = vadd.f32 %v1050_v42, %v964_v27 }
 0x1f3   : > { %v1056_v45 = vpop.xlane.xlu0 %1055 }
 0x1f4   : > { %v1147_v49 = vpop.xlane.xlu1 %1146  ;;  %v1060_v39 = vadd.f32 %v1056_v45, %v967_v26 }
 0x1f5   : > { %v1152_v23 = vadd.f32 %v1147_v49, %v1059_v6 }
 0x1f7   : > { %v1052_v2 = vpop.xlane.xlu0 %1051 }
 0x1f8   : > { %v1070_v5 = vpop.xlane.xlu1 %1069  ;;  %v1058_v34 = vadd.f32 %v1052_v2, %v965_v61 }
 0x1f9   : > { %v1075_v53 = vadd.f32 %v1070_v5, %v982_v3 }
 0x1fb   : > { %v1149_v10 = vpop.xlane.xlu0 %1148 }
 0x1fc   : > { %v1143_v11 = vpop.xlane.xlu1 %1142  ;;  %v1153_v33 = vadd.f32 %v1149_v10, %v1060_v39 }
 0x1fd   : > { %v1150_v21 = vadd.f32 %v1143_v11, %v1057_v52 }
 0x1ff   : > { %v1072_v18 = vpop.xlane.xlu0 %1071 }
 0x200   : > { %v1066_v19 = vpop.xlane.xlu1 %1065  ;;  %v1076_v43 = vadd.f32 %v1072_v18, %v983_v13 }
 0x201   : > { %v1073_v1 = vadd.f32 %v1066_v19, %v980_v28 }
 0x203   : > { %v1145_v17 = vpop.xlane.xlu0 %1144 }
 0x204   : > { %v1159_v54 = vpop.xlane.xlu1 %1158  ;;  %v1151_v58 = vadd.f32 %v1145_v17, %v1058_v34 }
 0x205   : > { %v1166_v4 = vadd.f32 %v1159_v54, %v1073_v1 }
 0x207   : > { %v1175_v48 = vsel %vm1174_vm3, %v1150_v21, %v1166_v4  ;;  %v1068_v59 = vpop.xlane.xlu0 %1067 }
 0x208   : > { %v1179_v0 = vadd.f32 %v1175_v48, %v1170_v55  ;;  %v1163_v22 = vpop.xlane.xlu1 %1162  ;;  %v1074_v62 = vadd.f32 %v1068_v59, %v981_v63 }
 0x209   : > { %v1168_v30 = vadd.f32 %v1163_v22, %v1075_v53 }
 0x20a   : > { %1184 = vst.msk [vmem:[%s2167_s6] sm:$0xff] %vm1183_vm4, %v1179_v0 }
 0x20b   : > { %v1177_v16 = vsel %vm1174_vm3, %v1152_v23, %v1168_v30  ;;  %v1161_v38 = vpop.xlane.xlu0 %1160 }
 0x20c   : > { %v1181_v25 = vadd.f32 %v1177_v16, %v1172_v7  ;;  %v1167_v40 = vadd.f32 %v1161_v38, %v1074_v62 }
 0x20e   : > { %1186 = vst.msk [vmem:[%s2167_s6 + $0x10] sm:$0xff] %vm1183_vm4, %v1181_v25  ;;  %v1176_v24 = vsel %vm1174_vm3, %v1151_v58, %v1167_v40 }
 0x20f   : > { %v1180_v32 = vadd.f32 %v1176_v24, %v1171_v29  ;;  %v1165_v37 = vpop.xlane.xlu0 %1164 }
 0x210   : > { %v1169_v36 = vadd.f32 %v1165_v37, %v1076_v43 }
 0x211   : > { %1185 = vst.msk [vmem:[%s2167_s6 + $0x8] sm:$0xff] %vm1183_vm4, %v1180_v32 }
 0x212   : > { %v1178_v41 = vsel %vm1174_vm3, %v1153_v33, %v1169_v36 }
 0x213   : > { %v1182_v42 = vadd.f32 %v1178_v41, %v1173_v8 }
 0x215   : > { %1187 = vst.msk [vmem:[%s2167_s6 + $0x18] sm:$0xff] %vm1183_vm4, %v1182_v42 }
 0x216 PF: > { %s17_s23 = sadd.s32 1, %s1571_s23   ;;  %s2168_s21 = smov %s1567_s22 }
 0x217   : > { %p14_p6 = scmp.ge.s32.totalorder %s17_s23, 4   ;;  %s2169_s22 = smov %s2171_s3 }
 0x219   :  { %16 = sbr.rel (!%p14_p6) target bundleno = 2 (0x2), region = 116 }

// kernel: basic_block_forward.4
= control target key start
LH: loop header
LB: loop body
LE: loop exit
PB: predicated region body
PF: predicated region fallthrough
CT: control target
= control target key end

     0   :  { %s2098_s21 = smov 0   ;;  %s2100_s22 = smov 0   ;;  %s2541_s0 = inlined_call_operand.vmem [shape: f32[16,16,128], index: 0, kind: input, shape index: {}]   ;;  %s2542_s1 = inlined_call_operand.vmem [shape: bf16[32,112], index: 1, kind: input, shape index: {}]   ;;  %s2543_s2 = inlined_call_operand.vmem [shape: f32[32,1], index: 2, kind: input, shape index: {}]   ;;  %s2544_s3 = inlined_call_operand.vmem [shape: f32[16,1], index: 3, kind: input, shape index: {}]   ;;  %s2545_s4 = inlined_call_operand.vmem [shape: f32[16,1], index: 4, kind: input, shape index: {}]   ;;  %s2546_s5 = inlined_call_operand.vmem [shape: bf16[16,32,128], index: 5, kind: output, shape index: {0}]   ;;  %s2547_s6 = inlined_call_operand.vmem [shape: f32[1,32,2], index: 6, kind: output, shape index: {1}]  }
   0x1   :  { %s2102_s23 = smov 0  }
   0x2 LB: > { %s26_s3 = sadd.s32 1, %s2053_s22  ;;  %p1504_p0 = scmp.ge.s32.totalorder %s2057_s23, 1  ;;  %s2057_s23 = sphi %s2102_s23, %s17_s23   ;;  %s2053_s22 = sphi %s2100_s22, %s2549_s22   ;;  %s2049_s21 = sphi %s2098_s21, %s2548_s21  }
   0x3   : > { %p27_p1 = scmp.ge.s32.totalorder %s26_s3, 2  ;;  %p228_p2 = scmp.lt.s32.totalorder %s2057_s23, 3 }
   0x5   : > { %s2551_s3 = smov (%p27_p1, %s26_s3), 0  ;;  %p229_p3 = pnand %p1504_p0, %p228_p2 }
   0x6   : > { %s1505_s4 = sshll.u32 (!%p229_p3), %s2049_s21, 3  ;;  %p1508_p5 = scmp.ne.s32.totalorder (!%p229_p3), %s2049_s21, 0 }
   0x7   : > { %232 = sbr.rel (%p229_p3) target bundleno = 559 (0x22f), region = 40  ;;  %p271_p4 = scmp.lt.s32.totalorder (!%p229_p3), %s1505_s4, 15 }
   0xe   : > { %s2553_s4 = smov (!%p271_p4, %s1505_s4), 15  ;;  %289 = sbr.rel (%p1508_p5) target bundleno = 32 (0x20), region = 44 }
   0xf   : > { %s1638_s24 = sshll.u32 %s2553_s4, 4  ;;  %v296_v0 = vld [vmem:[%s2541_s0] sm:$0xff] (!%p1508_p5)  ;;  %v297_v1 = vld [vmem:[%s2541_s0 + $0x8] sm:$0xff] (!%p1508_p5)  ;;  %v1509_v2 = vld [vmem:[%s2541_s0 + $0x10] sm:$0xff] (!%p1508_p5)  ;;  %vm375_vm0 = vcmask (!%p1508_p5), 15360   ;;  %v2059_v3 = vmov (!%p1508_p5), 0  }
  0x10   : > { %s2122_s27 = scalar_lea.vmem %s2546_s5, %s1638_s24  ;;  %290 = vst [vmem:[#allocation2] sm:$0xff] (!%p1508_p5), %v2059_v3  ;;  %291 = vst [vmem:[#allocation2 + $0x8] sm:$0xff] (!%p1508_p5), %v2059_v3  ;;  %v298_v4 = vpack.c.bf16 (!%p1508_p5), %v297_v1, %v296_v0  ;;  %v1510_v5 = vld [vmem:[%s2541_s0 + $0x18] sm:$0xff] (!%p1508_p5)  ;;  %v1511_v6 = vld [vmem:[%s2541_s0 + $0x20] sm:$0xff] (!%p1508_p5)  ;;  %v2060_v8 = vmov (!%p1508_p5), 0.0  }
  0x11   : > { %292 = vst [vmem:[#allocation2 + $0x10] sm:$0xff] (!%p1508_p5), %v2059_v3  ;;  %293 = vst [vmem:[#allocation2 + $0x98] sm:$0xff] (!%p1508_p5), %v2059_v3  ;;  %v1512_v7 = vld [vmem:[%s2541_s0 + $0x28] sm:$0xff] (!%p1508_p5)  ;;  %v303_v9 = vpack.c.bf16 (!%p1508_p5), %v1510_v5, %v1509_v2  ;;  %v1513_v11 = vld [vmem:[%s2541_s0 + $0x30] sm:$0xff] (!%p1508_p5) }
  0x12   : > { %294 = vst [vmem:[#allocation2 + $0xa0] sm:$0xff] (!%p1508_p5), %v2059_v3  ;;  %295 = vst [vmem:[#allocation2 + $0xa8] sm:$0xff] (!%p1508_p5), %v2059_v3  ;;  %v308_v10 = vpack.c.bf16 (!%p1508_p5), %v1512_v7, %v1511_v6  ;;  %v1514_v12 = vld [vmem:[%s2541_s0 + $0x38] sm:$0xff] (!%p1508_p5)  ;;  %v1515_v13 = vld [vmem:[%s2541_s0 + $0x40] sm:$0xff] (!%p1508_p5) }
  0x13   : > { %376 = vst.msk [vmem:[%s2547_s6] sm:$0xff] (!%p1508_p5), %vm375_vm0, %v2060_v8  ;;  %377 = vst.msk [vmem:[%s2547_s6 + $0x8] sm:$0xff] (!%p1508_p5), %vm375_vm0, %v2060_v8  ;;  %v313_v14 = vpack.c.bf16 (!%p1508_p5), %v1514_v12, %v1513_v11  ;;  %v1516_v15 = vld [vmem:[%s2541_s0 + $0x48] sm:$0xff] (!%p1508_p5)  ;;  %v1517_v16 = vld [vmem:[%s2541_s0 + $0x50] sm:$0xff] (!%p1508_p5) }
  0x14   : > { %378 = vst.msk [vmem:[%s2547_s6 + $0x10] sm:$0xff] (!%p1508_p5), %vm375_vm0, %v2060_v8  ;;  %379 = vst.msk [vmem:[%s2547_s6 + $0x18] sm:$0xff] (!%p1508_p5), %vm375_vm0, %v2060_v8  ;;  %v1518_v17 = vld [vmem:[%s2541_s0 + $0x58] sm:$0xff] (!%p1508_p5)  ;;  %v318_v18 = vpack.c.bf16 (!%p1508_p5), %v1516_v15, %v1515_v13  ;;  %v1519_v20 = vld [vmem:[%s2541_s0 + $0x60] sm:$0xff] (!%p1508_p5) }
  0x15   : > { %299 = vst [vmem:[#allocation2 + $0x18] sm:$0xff] %v298_v4  ;;  %304 = vst [vmem:[#allocation2 + $0x20] sm:$0xff] %v303_v9  ;;  %v323_v19 = vpack.c.bf16 %v1518_v17, %v1517_v16  ;;  %v1520_v21 = vld [vmem:[%s2541_s0 + $0x68] sm:$0xff]  ;;  %v1521_v22 = vld [vmem:[%s2541_s0 + $0x70] sm:$0xff] }
  0x16   : > { %309 = vst [vmem:[#allocation2 + $0x28] sm:$0xff] %v308_v10  ;;  %314 = vst [vmem:[#allocation2 + $0x30] sm:$0xff] %v313_v14  ;;  %v328_v23 = vpack.c.bf16 %v1520_v21, %v1519_v20  ;;  %v1522_v24 = vld [vmem:[%s2541_s0 + $0x78] sm:$0xff]  ;;  %v1523_v25 = vld [vmem:[%s2541_s0 + $0x80] sm:$0xff] }
  0x17   : > { %v1524_v26 = vld [vmem:[%s2541_s0 + $0x88] sm:$0xff]  ;;  %319 = vst [vmem:[#allocation2 + $0x38] sm:$0xff] %v318_v18  ;;  %324 = vst [vmem:[#allocation2 + $0x40] sm:$0xff] %v323_v19  ;;  %v333_v27 = vpack.c.bf16 %v1522_v24, %v1521_v22  ;;  %v1525_v29 = vld [vmem:[%s2541_s0 + $0x90] sm:$0xff] }
  0x18   : > { %v338_v28 = vpack.c.bf16 %v1524_v26, %v1523_v25  ;;  %v1526_v30 = vld [vmem:[%s2541_s0 + $0x98] sm:$0xff]  ;;  %v1527_v31 = vld [vmem:[%s2541_s0 + $0xa0] sm:$0xff]  ;;  %329 = vst [vmem:[#allocation2 + $0x48] sm:$0xff] %v328_v23  ;;  %v1528_v33 = vld [vmem:[%s2541_s0 + $0xa8] sm:$0xff] }
  0x19   : > { %v343_v32 = vpack.c.bf16 %v1526_v30, %v1525_v29  ;;  %v1529_v34 = vld [vmem:[%s2541_s0 + $0xb0] sm:$0xff]  ;;  %v1530_v35 = vld [vmem:[%s2541_s0 + $0xb8] sm:$0xff]  ;;  %334 = vst [vmem:[#allocation2 + $0x50] sm:$0xff] %v333_v27  ;;  %v348_v36 = vpack.c.bf16 %v1528_v33, %v1527_v31  ;;  %v1531_v38 = vld [vmem:[%s2541_s0 + $0xc0] sm:$0xff] }
  0x1a   : > { %339 = vst [vmem:[#allocation2 + $0x58] sm:$0xff] %v338_v28  ;;  %v353_v37 = vpack.c.bf16 %v1530_v35, %v1529_v34  ;;  %v1532_v39 = vld [vmem:[%s2541_s0 + $0xc8] sm:$0xff]  ;;  %v1533_v40 = vld [vmem:[%s2541_s0 + $0xd0] sm:$0xff]  ;;  %v1534_v42 = vld [vmem:[%s2541_s0 + $0xd8] sm:$0xff] }
  0x1b   : > { %344 = vst [vmem:[#allocation2 + $0x60] sm:$0xff] %v343_v32  ;;  %v358_v41 = vpack.c.bf16 %v1532_v39, %v1531_v38  ;;  %v1535_v43 = vld [vmem:[%s2541_s0 + $0xe0] sm:$0xff]  ;;  %v1536_v44 = vld [vmem:[%s2541_s0 + $0xe8] sm:$0xff]  ;;  %349 = vst [vmem:[#allocation2 + $0x68] sm:$0xff] %v348_v36  ;;  %v363_v45 = vpack.c.bf16 %v1534_v42, %v1533_v40 }
  0x1c   : > { %354 = vst [vmem:[#allocation2 + $0x70] sm:$0xff] %v353_v37  ;;  %v368_v46 = vpack.c.bf16 %v1536_v44, %v1535_v43  ;;  %v1537_v47 = vld [vmem:[%s2541_s0 + $0xf0] sm:$0xff]  ;;  %v1538_v48 = vld [vmem:[%s2541_s0 + $0xf8] sm:$0xff] }
  0x1d   : > { %359 = vst [vmem:[#allocation2 + $0x78] sm:$0xff] %v358_v41  ;;  %v373_v49 = vpack.c.bf16 %v1538_v48, %v1537_v47  ;;  %364 = vst [vmem:[#allocation2 + $0x80] sm:$0xff] %v363_v45 }
  0x1e   : > { %369 = vst [vmem:[#allocation2 + $0x88] sm:$0xff] %v368_v46 }
  0x1f   : > { %374 = vst [vmem:[#allocation2 + $0x90] sm:$0xff] %v373_v49 }
  0x20 PF: > { %s2238_s13 = sshll.u32 %s2049_s21, 7  ;;  %v2243_v50 = vld [vmem:[%s2542_s1] sm:$0xff]   ;;  %vm438_vm1 = vcmask 916480   ;;  %v386_v51 = vld [vmem:[%s2543_s2 + $0x10] sm:$0xff]  ;;  %v2061_v52 = vmov 0   ;;  %v387_v58 = vld [vmem:[%s2543_s2 + $0x18] sm:$0xff]  ;;  %v388_v49 = vlaneseq }
  0x21   : > { %s397_s16 = sshra.s32 %s2238_s13, 4  ;;  %s1644_s17 = sadd.s32 16, %s2238_s13  ;;  %1873 = vmatprep.mubr.msk.bf16.mxu0 %vm438_vm1, %v2243_v50  ;;  %1891 = vmatprep.mubr.msk.bf16.mxu1 %vm438_vm1, %v2243_v50  ;;  %v384_v53 = vld [vmem:[%s2543_s2] sm:$0xff]  ;;  %v385_v59 = vld [vmem:[%s2543_s2 + $0x8] sm:$0xff]  ;;  %vm1356_vm3 = vcmask 7168   ;;  %vm1365_vm4 = vcmask 15360  }
  0x22   : > { %s1541_s18 = sshll.u32 %s397_s16, 3  ;;  %s549_s19 = sshra.s32 %s1644_s17, 4  ;;  %2032 = vset.pattern.permute.xlu1 %v2061_v52  ;;  %2031 = vset.pattern.permute.xlu0 %v2061_v52  ;;  %v2289_v7 = vld [vmem:[%s2542_s1 + $0x8] sm:$0xff]  }
  0x23   : > { %s1552_s4 = sshll.u32 %s549_s19, 3  ;;  %s2257_s26 = scalar_lea.vmem [#allocation2], %s1541_s18  ;;  %420 = vperm.xlu1 %2032, %v386_v51   ;;  %410 = vperm.xlu0 %2031, %v384_v53   ;;  %v389_v51 = vand.u32 127, %v388_v49 }
  0x24   : > { %s2261_s28 = scalar_lea.vmem [#allocation2], %s1552_s4  ;;  %s1650_s9 = sadd.s32 32, %s2238_s13 }
  0x25   : > { %s1656_s10 = sadd.s32 48, %s2238_s13  ;;  %s664_s11 = sshra.s32 %s1650_s9, 4  ;;  %vm393_vm2 = vcmp.lt.s32.totalorder %v389_v51, 32 }
  0x26   : > { %v401_v54 = vld [vmem:[%s2257_s26] sm:$0xff]  ;;  %v402_v55 = vld [vmem:[%s2257_s26 + $0x8] sm:$0xff]  ;;  %v403_v60 = vld [vmem:[%s2257_s26 + $0x10] sm:$0xff]  ;;  %s779_s12 = sshra.s32 %s1656_s10, 4  ;;  %s1564_s14 = sshll.u32 %s664_s11, 3 }
  0x27   : > { %1859 = vmatprep.subr.bf16.mxu0 %v401_v54  ;;  %v553_v56 = vld [vmem:[%s2261_s28] sm:$0xff]  ;;  %v554_v57 = vld [vmem:[%s2261_s28 + $0x8] sm:$0xff]  ;;  %425 = vperm.xlu1 %2032, %v387_v58   ;;  %v555_v61 = vld [vmem:[%s2261_s28 + $0x10] sm:$0xff]  ;;  %s1576_s15 = sshll.u32 %s779_s12, 3  ;;  %s2283_s16 = scalar_lea.vmem [#allocation2], %s1564_s14 }
  0x28   : > { %1860 = vmatpush3.bf16.msra.mxu0 %v401_v54  ;;  %1877 = vmatprep.subr.bf16.mxu1 %v553_v56  ;;  %v404_v62 = vld [vmem:[%s2257_s26 + $0x18] sm:$0xff]  ;;  %v405_v0 = vld [vmem:[%s2257_s26 + $0x20] sm:$0xff]  ;;  %v406_v2 = vld [vmem:[%s2257_s26 + $0x28] sm:$0xff]  ;;  %s2291_s19 = scalar_lea.vmem [#allocation2], %s1576_s15  ;;  %s1662_s21 = sadd.s32 64, %s2238_s13 }
  0x29   : > { %1878 = vmatpush3.bf16.msra.mxu1 %v553_v56  ;;  %1861 = vmatprep.subr.bf16.mxu0 %v402_v55  ;;  %v556_v63 = vld [vmem:[%s2261_s28 + $0x18] sm:$0xff]  ;;  %v557_v1 = vld [vmem:[%s2261_s28 + $0x20] sm:$0xff]  ;;  %v558_v3 = vld [vmem:[%s2261_s28 + $0x28] sm:$0xff]  ;;  %s1668_s20 = sadd.s32 80, %s2238_s13  ;;  %s894_s4 = sshra.s32 %s1662_s21, 4  ;;  %v2062_v56 = vmov 0.0  }
  0x2a   : > { %1879 = vmatprep.subr.bf16.mxu1 %v554_v57  ;;  %415 = vperm.xlu0 %2031, %v385_v59   ;;  %v407_v4 = vld [vmem:[%s2257_s26 + $0x30] sm:$0xff]  ;;  %v668_v6 = vld [vmem:[%s2283_s16] sm:$0xff]  ;;  %v669_v9 = vld [vmem:[%s2283_s16 + $0x8] sm:$0xff]  ;;  %s1009_s24 = sshra.s32 %s1668_s20, 4  ;;  %s1588_s25 = sshll.u32 %s894_s4, 3 }
  0x2b   : > { %v559_v5 = vld [vmem:[%s2261_s28 + $0x30] sm:$0xff]  ;;  %v783_v8 = vld [vmem:[%s2291_s19] sm:$0xff]  ;;  %v784_v10 = vld [vmem:[%s2291_s19 + $0x8] sm:$0xff]  ;;  %s1600_s26 = sshll.u32 %s1009_s24, 3  ;;  %s2316_s28 = scalar_lea.vmem [#allocation2], %s1588_s25 }
  0x2c   : > { %1862 = vmatpush3.bf16.msra.mxu0 %v402_v55  ;;  %v670_v11 = vld [vmem:[%s2283_s16 + $0x10] sm:$0xff]  ;;  %v671_v13 = vld [vmem:[%s2283_s16 + $0x18] sm:$0xff]  ;;  %v672_v15 = vld [vmem:[%s2283_s16 + $0x20] sm:$0xff]  ;;  %s2319_s29 = scalar_lea.vmem [#allocation2], %s1600_s26  ;;  %s1674_s30 = sadd.s32 96, %s2238_s13 }
  0x2d   : > { %1880 = vmatpush3.bf16.msra.mxu1 %v554_v57  ;;  %1863 = vmatprep.subr.bf16.mxu0 %v403_v60  ;;  %v785_v12 = vld [vmem:[%s2291_s19 + $0x10] sm:$0xff]  ;;  %v786_v14 = vld [vmem:[%s2291_s19 + $0x18] sm:$0xff]  ;;  %v787_v16 = vld [vmem:[%s2291_s19 + $0x20] sm:$0xff]  ;;  %s1680_s7 = sadd.s32 112, %s2238_s13  ;;  %s1124_s8 = sshra.s32 %s1674_s30, 4  ;;  %v2382_v57 = vsel %vm393_vm2, 1.0, %v2062_v56 }
  0x2e   : > { %1881 = vmatprep.subr.bf16.mxu1 %v555_v61  ;;  %v673_v17 = vld [vmem:[%s2283_s16 + $0x28] sm:$0xff]  ;;  %v674_v19 = vld [vmem:[%s2283_s16 + $0x30] sm:$0xff]  ;;  %v898_v21 = vld [vmem:[%s2316_s28] sm:$0xff]  ;;  %s1239_s9 = sshra.s32 %s1680_s7, 4  ;;  %s1612_s10 = sshll.u32 %s1124_s8, 3 }
  0x2f   : > { %v788_v18 = vld [vmem:[%s2291_s19 + $0x28] sm:$0xff]  ;;  %v789_v20 = vld [vmem:[%s2291_s19 + $0x30] sm:$0xff]  ;;  %v1013_v22 = vld [vmem:[%s2319_s29] sm:$0xff]  ;;  %s1624_s11 = sshll.u32 %s1239_s9, 3  ;;  %s2344_s13 = scalar_lea.vmem [#allocation2], %s1612_s10 }
  0x30   : > { %1864 = vmatpush3.bf16.msra.mxu0 %v403_v60  ;;  %v899_v23 = vld [vmem:[%s2316_s28 + $0x8] sm:$0xff]  ;;  %v900_v25 = vld [vmem:[%s2316_s28 + $0x10] sm:$0xff]  ;;  %v901_v27 = vld [vmem:[%s2316_s28 + $0x18] sm:$0xff]  ;;  %s2347_s12 = scalar_lea.vmem [#allocation2], %s1624_s11 }
  0x31   : > { %1882 = vmatpush3.bf16.msra.mxu1 %v555_v61  ;;  %1865 = vmatprep.subr.bf16.mxu0 %v404_v62  ;;  %v1014_v24 = vld [vmem:[%s2319_s29 + $0x8] sm:$0xff]  ;;  %v1015_v26 = vld [vmem:[%s2319_s29 + $0x10] sm:$0xff]  ;;  %v1016_v28 = vld [vmem:[%s2319_s29 + $0x18] sm:$0xff] }
  0x32   : > { %1883 = vmatprep.subr.bf16.mxu1 %v556_v63  ;;  %v902_v29 = vld [vmem:[%s2316_s28 + $0x20] sm:$0xff]  ;;  %v903_v31 = vld [vmem:[%s2316_s28 + $0x28] sm:$0xff]  ;;  %v904_v33 = vld [vmem:[%s2316_s28 + $0x30] sm:$0xff] }
  0x33   : > { %v1017_v30 = vld [vmem:[%s2319_s29 + $0x20] sm:$0xff]  ;;  %v1018_v32 = vld [vmem:[%s2319_s29 + $0x28] sm:$0xff]  ;;  %v1019_v34 = vld [vmem:[%s2319_s29 + $0x30] sm:$0xff] }
  0x34   : > { %1866 = vmatpush3.bf16.msra.mxu0 %v404_v62  ;;  %v1128_v35 = vld [vmem:[%s2344_s13] sm:$0xff]  ;;  %v1129_v37 = vld [vmem:[%s2344_s13 + $0x8] sm:$0xff]  ;;  %v1130_v39 = vld [vmem:[%s2344_s13 + $0x10] sm:$0xff] }
  0x35   : > { %1884 = vmatpush3.bf16.msra.mxu1 %v556_v63  ;;  %1867 = vmatprep.subr.bf16.mxu0 %v405_v0  ;;  %v1243_v36 = vld [vmem:[%s2347_s12] sm:$0xff]  ;;  %v1244_v38 = vld [vmem:[%s2347_s12 + $0x8] sm:$0xff]  ;;  %v1245_v40 = vld [vmem:[%s2347_s12 + $0x10] sm:$0xff] }
  0x36   : > { %1885 = vmatprep.subr.bf16.mxu1 %v557_v1  ;;  %v1131_v41 = vld [vmem:[%s2344_s13 + $0x18] sm:$0xff]  ;;  %v1132_v43 = vld [vmem:[%s2344_s13 + $0x20] sm:$0xff]  ;;  %v1133_v45 = vld [vmem:[%s2344_s13 + $0x28] sm:$0xff] }
  0x37   : > { %v1246_v42 = vld [vmem:[%s2347_s12 + $0x18] sm:$0xff]  ;;  %v1247_v44 = vld [vmem:[%s2347_s12 + $0x20] sm:$0xff]  ;;  %v1248_v46 = vld [vmem:[%s2347_s12 + $0x28] sm:$0xff] }
  0x38   : > { %1868 = vmatpush3.bf16.msra.mxu0 %v405_v0  ;;  %v1134_v47 = vld [vmem:[%s2344_s13 + $0x30] sm:$0xff] }
  0x39   : > { %1886 = vmatpush3.bf16.msra.mxu1 %v557_v1  ;;  %1869 = vmatprep.subr.bf16.mxu0 %v406_v2  ;;  %v1249_v48 = vld [vmem:[%s2347_s12 + $0x30] sm:$0xff] }
  0x3a   : > { %1887 = vmatprep.subr.bf16.mxu1 %v558_v3 }
  0x3c   : > { %1870 = vmatpush3.bf16.msra.mxu0 %v406_v2 }
  0x3d   : > { %1888 = vmatpush3.bf16.msra.mxu1 %v558_v3  ;;  %1871 = vmatprep.subr.bf16.mxu0 %v407_v4 }
  0x3e   : > { %1889 = vmatprep.subr.bf16.mxu1 %v559_v5 }
  0x40   : > { %1872 = vmatpush3.bf16.msra.mxu0 %v407_v4 }
  0x41   : > { %1890 = vmatpush3.bf16.msra.mxu1 %v559_v5  ;;  %1895 = vmatprep.subr.bf16.mxu0 %v668_v6 }
  0x42   : > { %1913 = vmatprep.subr.bf16.mxu1 %v783_v8 }
  0x43   : > { %1874 = vmatmul.mubr.msk.bf16.vlgmr.msra.gmra.mrb[0].mxu0 %vm438_vm1, %v2289_v7 }
  0x44   : > { %1892 = vmatmul.mubr.msk.bf16.vlgmr.msra.gmra.mrb[0].mxu1 %vm438_vm1, %v2289_v7  ;;  %1896 = vmatpush3.bf16.msra.mxu0 %v668_v6 }
  0x45   : > { %1914 = vmatpush3.bf16.msra.mxu1 %v783_v8  ;;  %1897 = vmatprep.subr.bf16.mxu0 %v669_v9 }
  0x46   : > { %1915 = vmatprep.subr.bf16.mxu1 %v784_v10  ;;  %1909 = vmatprep.mubr.msk.bf16.mxu0 %vm438_vm1, %v2243_v50 }
  0x47   : > { %1927 = vmatprep.mubr.msk.bf16.mxu1 %vm438_vm1, %v2243_v50 }
  0x48   : > { %1898 = vmatpush3.bf16.msra.mxu0 %v669_v9 }
  0x49   : > { %1916 = vmatpush3.bf16.msra.mxu1 %v784_v10  ;;  %1899 = vmatprep.subr.bf16.mxu0 %v670_v11 }
  0x4a   : > { %1917 = vmatprep.subr.bf16.mxu1 %v785_v12 }
  0x4c   : > { %1900 = vmatpush3.bf16.msra.mxu0 %v670_v11 }
  0x4d   : > { %1918 = vmatpush3.bf16.msra.mxu1 %v785_v12  ;;  %1901 = vmatprep.subr.bf16.mxu0 %v671_v13 }
  0x4e   : > { %1919 = vmatprep.subr.bf16.mxu1 %v786_v14 }
  0x50   : > { %1902 = vmatpush3.bf16.msra.mxu0 %v671_v13 }
  0x51   : > { %1920 = vmatpush3.bf16.msra.mxu1 %v786_v14  ;;  %1903 = vmatprep.subr.bf16.mxu0 %v672_v15 }
  0x52   : > { %1921 = vmatprep.subr.bf16.mxu1 %v787_v16 }
  0x54   : > { %1904 = vmatpush3.bf16.msra.mxu0 %v672_v15 }
  0x55   : > { %1922 = vmatpush3.bf16.msra.mxu1 %v787_v16  ;;  %1905 = vmatprep.subr.bf16.mxu0 %v673_v17 }
  0x56   : > { %1923 = vmatprep.subr.bf16.mxu1 %v788_v18 }
  0x58   : > { %1906 = vmatpush3.bf16.msra.mxu0 %v673_v17 }
  0x59   : > { %1924 = vmatpush3.bf16.msra.mxu1 %v788_v18  ;;  %1907 = vmatprep.subr.bf16.mxu0 %v674_v19 }
  0x5a   : > { %1925 = vmatprep.subr.bf16.mxu1 %v789_v20 }
  0x5c   : > { %1908 = vmatpush3.bf16.msra.mxu0 %v674_v19 }
  0x5d   : > { %1926 = vmatpush3.bf16.msra.mxu1 %v789_v20  ;;  %1931 = vmatprep.subr.bf16.mxu0 %v898_v21 }
  0x5e   : > { %1949 = vmatprep.subr.bf16.mxu1 %v1013_v22 }
  0x5f   : > { %1910 = vmatmul.mubr.msk.bf16.vlgmr.msra.gmra.mrb[4].mxu0 %vm438_vm1, %v2289_v7 }
  0x60   : > { %1928 = vmatmul.mubr.msk.bf16.vlgmr.msra.gmra.mrb[4].mxu1 %vm438_vm1, %v2289_v7  ;;  %1932 = vmatpush3.bf16.msra.mxu0 %v898_v21 }
  0x61   : > { %1950 = vmatpush3.bf16.msra.mxu1 %v1013_v22  ;;  %1933 = vmatprep.subr.bf16.mxu0 %v899_v23 }
  0x62   : > { %1951 = vmatprep.subr.bf16.mxu1 %v1014_v24  ;;  %1945 = vmatprep.mubr.msk.bf16.mxu0 %vm438_vm1, %v2243_v50 }
  0x63   : > { %1963 = vmatprep.mubr.msk.bf16.mxu1 %vm438_vm1, %v2243_v50 }
  0x64   : > { %1934 = vmatpush3.bf16.msra.mxu0 %v899_v23 }
  0x65   : > { %1952 = vmatpush3.bf16.msra.mxu1 %v1014_v24  ;;  %1935 = vmatprep.subr.bf16.mxu0 %v900_v25 }
  0x66   : > { %1953 = vmatprep.subr.bf16.mxu1 %v1015_v26 }
  0x68   : > { %1936 = vmatpush3.bf16.msra.mxu0 %v900_v25 }
  0x69   : > { %1954 = vmatpush3.bf16.msra.mxu1 %v1015_v26  ;;  %1937 = vmatprep.subr.bf16.mxu0 %v901_v27 }
  0x6a   : > { %1955 = vmatprep.subr.bf16.mxu1 %v1016_v28 }
  0x6c   : > { %1938 = vmatpush3.bf16.msra.mxu0 %v901_v27 }
  0x6d   : > { %1956 = vmatpush3.bf16.msra.mxu1 %v1016_v28  ;;  %1939 = vmatprep.subr.bf16.mxu0 %v902_v29 }
  0x6e   : > { %1957 = vmatprep.subr.bf16.mxu1 %v1017_v30 }
  0x70   : > { %1940 = vmatpush3.bf16.msra.mxu0 %v902_v29 }
  0x71   : > { %1958 = vmatpush3.bf16.msra.mxu1 %v1017_v30  ;;  %1941 = vmatprep.subr.bf16.mxu0 %v903_v31 }
  0x72   : > { %1959 = vmatprep.subr.bf16.mxu1 %v1018_v32 }
  0x74   : > { %1942 = vmatpush3.bf16.msra.mxu0 %v903_v31 }
  0x75   : > { %1960 = vmatpush3.bf16.msra.mxu1 %v1018_v32  ;;  %1943 = vmatprep.subr.bf16.mxu0 %v904_v33 }
  0x76   : > { %1961 = vmatprep.subr.bf16.mxu1 %v1019_v34 }
  0x78   : > { %1944 = vmatpush3.bf16.msra.mxu0 %v904_v33 }
  0x79   : > { %1962 = vmatpush3.bf16.msra.mxu1 %v1019_v34  ;;  %1967 = vmatprep.subr.bf16.mxu0 %v1128_v35 }
  0x7a   : > { %1985 = vmatprep.subr.bf16.mxu1 %v1243_v36 }
  0x7b   : > { %1946 = vmatmul.mubr.msk.bf16.vlgmr.msra.gmra.mrb[8].mxu0 %vm438_vm1, %v2289_v7 }
  0x7c   : > { %1964 = vmatmul.mubr.msk.bf16.vlgmr.msra.gmra.mrb[8].mxu1 %vm438_vm1, %v2289_v7  ;;  %1968 = vmatpush3.bf16.msra.mxu0 %v1128_v35 }
  0x7d   : > { %1986 = vmatpush3.bf16.msra.mxu1 %v1243_v36  ;;  %1969 = vmatprep.subr.bf16.mxu0 %v1129_v37 }
  0x7e   : > { %1987 = vmatprep.subr.bf16.mxu1 %v1244_v38  ;;  %1981 = vmatprep.mubr.msk.bf16.mxu0 %vm438_vm1, %v2243_v50 }
  0x7f   : > { %1999 = vmatprep.mubr.msk.bf16.mxu1 %vm438_vm1, %v2243_v50 }
  0x80   : > { %1970 = vmatpush3.bf16.msra.mxu0 %v1129_v37 }
  0x81   : > { %1988 = vmatpush3.bf16.msra.mxu1 %v1244_v38  ;;  %1971 = vmatprep.subr.bf16.mxu0 %v1130_v39 }
  0x82   : > { %1989 = vmatprep.subr.bf16.mxu1 %v1245_v40 }
  0x84   : > { %1972 = vmatpush3.bf16.msra.mxu0 %v1130_v39 }
  0x85   : > { %1990 = vmatpush3.bf16.msra.mxu1 %v1245_v40  ;;  %1973 = vmatprep.subr.bf16.mxu0 %v1131_v41 }
  0x86   : > { %1991 = vmatprep.subr.bf16.mxu1 %v1246_v42 }
  0x88   : > { %1974 = vmatpush3.bf16.msra.mxu0 %v1131_v41 }
  0x89   : > { %1992 = vmatpush3.bf16.msra.mxu1 %v1246_v42  ;;  %1975 = vmatprep.subr.bf16.mxu0 %v1132_v43 }
  0x8a   : > { %1993 = vmatprep.subr.bf16.mxu1 %v1247_v44 }
  0x8c   : > { %1976 = vmatpush3.bf16.msra.mxu0 %v1132_v43 }
  0x8d   : > { %1994 = vmatpush3.bf16.msra.mxu1 %v1247_v44  ;;  %1977 = vmatprep.subr.bf16.mxu0 %v1133_v45 }
  0x8e   : > { %1995 = vmatprep.subr.bf16.mxu1 %v1248_v46 }
  0x90   : > { %1978 = vmatpush3.bf16.msra.mxu0 %v1133_v45 }
  0x91   : > { %1996 = vmatpush3.bf16.msra.mxu1 %v1248_v46  ;;  %1979 = vmatprep.subr.bf16.mxu0 %v1134_v47 }
  0x92   : > { %1997 = vmatprep.subr.bf16.mxu1 %v1249_v48 }
  0x94   : > { %1980 = vmatpush3.bf16.msra.mxu0 %v1134_v47 }
  0x95   : > { %1998 = vmatpush3.bf16.msra.mxu1 %v1249_v48 }
  0x97   : > { %1982 = vmatmul.mubr.msk.bf16.vlgmr.msra.gmra.mrb[12].mxu0 %vm438_vm1, %v2289_v7 }
  0x98   : > { %2000 = vmatmul.mubr.msk.bf16.vlgmr.msra.gmra.mrb[12].mxu1 %vm438_vm1, %v2289_v7 }
  0xa2   : > { %v2374_v50 = vpop.permute.xlu1 %420  ;;  %v2376_v52 = vpop.permute.xlu0 %410 }
  0xa6   : > { %v2378_v53 = vpop.permute.xlu1 %425 }
  0xa9   : > { %v2380_v55 = vpop.permute.xlu0 %415 }
 0x116   : > { %v1875_v54 = vpop.f32.mrb[0].mxu0 }
 0x117   : > { %v488_v58 = vadd.f32 %v1875_v54, %v2374_v50  ;;  %v479_v59 = vpop.f32.mrb[1].mxu0  ;;  %v1893_v60 = vpop.f32.mrb[0].mxu1 }
 0x118   : > { %v603_v61 = vadd.f32 %v1893_v60, %v2374_v50  ;;  %v1876_v62 = vpop.f32.mrb[2].mxu0  ;;  %v594_v63 = vpop.f32.mrb[1].mxu1  ;;  %v480_v0 = vadd.f32 %v479_v59, %v2376_v52 }
 0x119   : > { %v491_v1 = vadd.f32 %v1876_v62, %v2378_v53  ;;  %v482_v2 = vpop.f32.mrb[3].mxu0  ;;  %v1894_v3 = vpop.f32.mrb[2].mxu1  ;;  %v516_v4 = vmul.f32 %v2382_v57, %v488_v58  ;;  %v595_v10 = vadd.f32 %v594_v63, %v2376_v52 }
 0x11a   : > { %v483_v5 = vadd.f32 %v482_v2, %v2380_v55  ;;  %v606_v6 = vadd.f32 %v1894_v3, %v2378_v53  ;;  %v597_v7 = vpop.f32.mrb[3].mxu1  ;;  %v632_v8 = vmul.f32 %v2382_v57, %v603_v61  ;;  %v514_v15 = vmul.f32 %v2382_v57, %v480_v0 }
 0x11b   : > { %v1693_v9 = vpack.c.bf16 %v491_v1, %v488_v58  ;;  %v598_v11 = vadd.f32 %v597_v7, %v2380_v55  ;;  %522 = vadd.xlane.f32.xlu0 %v516_v4  ;;  %v532_v16 = vmul.f32 %v516_v4, %v488_v58  ;;  %v517_v17 = vmul.f32 %v2382_v57, %v491_v1 }
 0x11c   : > { %v1688_v12 = vpack.c.bf16 %v483_v5, %v480_v0  ;;  %v1703_v13 = vpack.c.bf16 %v606_v6, %v603_v61  ;;  %638 = vadd.xlane.f32.xlu1 %v632_v8  ;;  %v630_v18 = vmul.f32 %v2382_v57, %v595_v10  ;;  %v633_v19 = vmul.f32 %v2382_v57, %v606_v6 }
 0x11d   : > { %1765 = vst [vmem:[%s2122_s27 + $0x8] sm:$0xff] %v1693_v9   ;;  %v1698_v14 = vpack.c.bf16 %v598_v11, %v595_v10  ;;  %v515_v20 = vmul.f32 %v2382_v57, %v483_v5  ;;  %v533_v21 = vmul.f32 %v517_v17, %v491_v1  ;;  %v530_v22 = vmul.f32 %v514_v15, %v480_v0 }
 0x11e   : > { %1689 = vst [vmem:[%s2122_s27] sm:$0xff] %v1688_v12   ;;  %1768 = vst [vmem:[%s2122_s27 + $0x18] sm:$0xff] %v1703_v13   ;;  %v631_v23 = vmul.f32 %v2382_v57, %v598_v11  ;;  %v648_v24 = vmul.f32 %v632_v8, %v603_v61  ;;  %v646_v27 = vmul.f32 %v630_v18, %v595_v10 }
 0x11f   : > { %1767 = vst [vmem:[%s2122_s27 + $0x10] sm:$0xff] %v1698_v14   ;;  %518 = vadd.xlane.f32.xlu0 %v514_v15  ;;  %v531_v25 = vmul.f32 %v515_v20, %v483_v5  ;;  %v649_v36 = vmul.f32 %v633_v19, %v606_v6 }
 0x120   : > { %538 = vadd.xlane.f32.xlu1 %v532_v16  ;;  %v647_v49 = vmul.f32 %v631_v23, %v598_v11 }
 0x123   : > { %524 = vadd.xlane.f32.xlu0 %v517_v17 }
 0x124   : > { %634 = vadd.xlane.f32.xlu1 %v630_v18 }
 0x127   : > { %640 = vadd.xlane.f32.xlu0 %v633_v19 }
 0x128   : > { %520 = vadd.xlane.f32.xlu1 %v515_v20 }
 0x12b   : > { %540 = vadd.xlane.f32.xlu0 %v533_v21 }
 0x12c   : > { %534 = vadd.xlane.f32.xlu1 %v530_v22 }
 0x12f   : > { %636 = vadd.xlane.f32.xlu0 %v631_v23 }
 0x130   : > { %654 = vadd.xlane.f32.xlu1 %v648_v24 }
 0x132   : > { %v1911_v26 = vpop.f32.mrb[4].mxu0 }
 0x133   : > { %v718_v28 = vadd.f32 %v1911_v26, %v2374_v50  ;;  %v709_v29 = vpop.f32.mrb[5].mxu0  ;;  %v1929_v30 = vpop.f32.mrb[4].mxu1  ;;  %536 = vadd.xlane.f32.xlu0 %v531_v25 }
 0x134   : > { %v1912_v31 = vpop.f32.mrb[6].mxu0  ;;  %v824_v32 = vpop.f32.mrb[5].mxu1  ;;  %650 = vadd.xlane.f32.xlu1 %v646_v27  ;;  %v710_v38 = vadd.f32 %v709_v29, %v2376_v52  ;;  %v833_v39 = vadd.f32 %v1929_v30, %v2374_v50 }
 0x135   : > { %v721_v33 = vadd.f32 %v1912_v31, %v2378_v53  ;;  %v712_v34 = vpop.f32.mrb[7].mxu0  ;;  %v1930_v35 = vpop.f32.mrb[6].mxu1  ;;  %v747_v37 = vmul.f32 %v2382_v57, %v718_v28  ;;  %v825_v44 = vadd.f32 %v824_v32, %v2376_v52 }
 0x136   : > { %v713_v40 = vadd.f32 %v712_v34, %v2380_v55  ;;  %v2411_v41 = vadd.f32 %v1930_v35, %v2378_v53  ;;  %v827_v42 = vpop.f32.mrb[7].mxu1  ;;  %v745_v51 = vmul.f32 %v2382_v57, %v710_v38  ;;  %v862_v56 = vmul.f32 %v2382_v57, %v833_v39 }
 0x137   : > { %v1713_v43 = vpack.c.bf16 %v721_v33, %v718_v28  ;;  %v2415_v45 = vadd.f32 %v827_v42, %v2380_v55  ;;  %656 = vadd.xlane.f32.xlu0 %v649_v36  ;;  %v748_v54 = vmul.f32 %v2382_v57, %v721_v33  ;;  %v763_v59 = vmul.f32 %v747_v37, %v718_v28 }
 0x138   : > { %v1708_v46 = vpack.c.bf16 %v713_v40, %v710_v38  ;;  %v1723_v47 = vpack.c.bf16 %v2411_v41, %v833_v39  ;;  %753 = vadd.xlane.f32.xlu1 %v747_v37  ;;  %v746_v58 = vmul.f32 %v2382_v57, %v713_v40  ;;  %v863_v60 = vmul.f32 %v2382_v57, %v2411_v41 }
 0x139   : > { %1771 = vst [vmem:[%s2122_s27 + $0x28] sm:$0xff] %v1713_v43   ;;  %v1718_v48 = vpack.c.bf16 %v2415_v45, %v825_v44  ;;  %v860_v61 = vmul.f32 %v2382_v57, %v825_v44  ;;  %v764_v62 = vmul.f32 %v748_v54, %v721_v33  ;;  %v761_v63 = vmul.f32 %v745_v51, %v710_v38 }
 0x13a   : > { %1770 = vst [vmem:[%s2122_s27 + $0x20] sm:$0xff] %v1708_v46   ;;  %1774 = vst [vmem:[%s2122_s27 + $0x38] sm:$0xff] %v1723_v47   ;;  %v861_v0 = vmul.f32 %v2382_v57, %v2415_v45  ;;  %v878_v2 = vmul.f32 %v862_v56, %v833_v39  ;;  %v762_v11 = vmul.f32 %v746_v58, %v713_v40 }
 0x13b   : > { %1773 = vst [vmem:[%s2122_s27 + $0x30] sm:$0xff] %v1718_v48   ;;  %652 = vadd.xlane.f32.xlu0 %v647_v49  ;;  %v876_v12 = vmul.f32 %v860_v61, %v825_v44  ;;  %v879_v24 = vmul.f32 %v863_v60, %v2411_v41 }
 0x13c   : > { %749 = vadd.xlane.f32.xlu1 %v745_v51  ;;  %v877_v26 = vmul.f32 %v861_v0, %v2415_v45 }
 0x13f   : > { %755 = vadd.xlane.f32.xlu0 %v748_v54 }
 0x140   : > { %868 = vadd.xlane.f32.xlu1 %v862_v56 }
 0x143   : > { %751 = vadd.xlane.f32.xlu0 %v746_v58 }
 0x144   : > { %769 = vadd.xlane.f32.xlu1 %v763_v59 }
 0x147   : > { %870 = vadd.xlane.f32.xlu0 %v863_v60 }
 0x148   : > { %864 = vadd.xlane.f32.xlu1 %v860_v61 }
 0x14b   : > { %771 = vadd.xlane.f32.xlu0 %v764_v62 }
 0x14c   : > { %765 = vadd.xlane.f32.xlu1 %v761_v63 }
 0x14e   : > { %v1947_v1 = vpop.f32.mrb[8].mxu0 }
 0x14f   : > { %v939_v3 = vpop.f32.mrb[9].mxu0  ;;  %v1965_v4 = vpop.f32.mrb[8].mxu1  ;;  %866 = vadd.xlane.f32.xlu0 %v861_v0  ;;  %v948_v7 = vadd.f32 %v1947_v1, %v2374_v50 }
 0x150   : > { %v1948_v5 = vpop.f32.mrb[10].mxu0  ;;  %v1054_v6 = vpop.f32.mrb[9].mxu1  ;;  %884 = vadd.xlane.f32.xlu1 %v878_v2  ;;  %v940_v13 = vadd.f32 %v939_v3, %v2376_v52  ;;  %v1063_v14 = vadd.f32 %v1965_v4, %v2374_v50 }
 0x151   : > { %v951_v8 = vadd.f32 %v1948_v5, %v2378_v53  ;;  %v942_v9 = vpop.f32.mrb[11].mxu0  ;;  %v1966_v10 = vpop.f32.mrb[10].mxu1  ;;  %v2443_v19 = vadd.f32 %v1054_v6, %v2376_v52  ;;  %v977_v25 = vmul.f32 %v2382_v57, %v948_v7 }
 0x152   : > { %v2437_v15 = vadd.f32 %v942_v9, %v2380_v55  ;;  %v2440_v16 = vadd.f32 %v1966_v10, %v2378_v53  ;;  %v1057_v17 = vpop.f32.mrb[11].mxu1  ;;  %v975_v27 = vmul.f32 %v2382_v57, %v940_v13  ;;  %v1092_v29 = vmul.f32 %v2382_v57, %v1063_v14 }
 0x153   : > { %v1733_v18 = vpack.c.bf16 %v951_v8, %v948_v7  ;;  %v2446_v20 = vadd.f32 %v1057_v17, %v2380_v55  ;;  %767 = vadd.xlane.f32.xlu0 %v762_v11  ;;  %v978_v28 = vmul.f32 %v2382_v57, %v951_v8  ;;  %v993_v31 = vmul.f32 %v977_v25, %v948_v7 }
 0x154   : > { %v1728_v21 = vpack.c.bf16 %v2437_v15, %v940_v13  ;;  %v1743_v22 = vpack.c.bf16 %v2440_v16, %v1063_v14  ;;  %880 = vadd.xlane.f32.xlu1 %v876_v12  ;;  %v976_v30 = vmul.f32 %v2382_v57, %v2437_v15  ;;  %v1093_v32 = vmul.f32 %v2382_v57, %v2440_v16 }
 0x155   : > { %1777 = vst [vmem:[%s2122_s27 + $0x48] sm:$0xff] %v1733_v18   ;;  %v1738_v23 = vpack.c.bf16 %v2446_v20, %v2443_v19  ;;  %v1090_v33 = vmul.f32 %v2382_v57, %v2443_v19  ;;  %v994_v34 = vmul.f32 %v978_v28, %v951_v8  ;;  %v991_v36 = vmul.f32 %v975_v27, %v940_v13 }
 0x156   : > { %1776 = vst [vmem:[%s2122_s27 + $0x40] sm:$0xff] %v1728_v21   ;;  %1780 = vst [vmem:[%s2122_s27 + $0x58] sm:$0xff] %v1743_v22   ;;  %v1091_v45 = vmul.f32 %v2382_v57, %v2446_v20  ;;  %v1108_v46 = vmul.f32 %v1092_v29, %v1063_v14  ;;  %v992_v63 = vmul.f32 %v976_v30, %v2437_v15 }
 0x157   : > { %1779 = vst [vmem:[%s2122_s27 + $0x50] sm:$0xff] %v1738_v23   ;;  %886 = vadd.xlane.f32.xlu0 %v879_v24 }
 0x158   : > { %983 = vadd.xlane.f32.xlu1 %v977_v25 }
 0x15b   : > { %882 = vadd.xlane.f32.xlu0 %v877_v26 }
 0x15c   : > { %979 = vadd.xlane.f32.xlu1 %v975_v27 }
 0x15f   : > { %985 = vadd.xlane.f32.xlu0 %v978_v28 }
 0x160   : > { %1098 = vadd.xlane.f32.xlu1 %v1092_v29 }
 0x163   : > { %981 = vadd.xlane.f32.xlu0 %v976_v30 }
 0x164   : > { %999 = vadd.xlane.f32.xlu1 %v993_v31 }
 0x167   : > { %1100 = vadd.xlane.f32.xlu0 %v1093_v32 }
 0x168   : > { %1094 = vadd.xlane.f32.xlu1 %v1090_v33 }
 0x16a   : > { %v1983_v35 = vpop.f32.mrb[12].mxu0 }
 0x16b   : > { %v1169_v37 = vpop.f32.mrb[13].mxu0  ;;  %v2001_v38 = vpop.f32.mrb[12].mxu1  ;;  %1001 = vadd.xlane.f32.xlu0 %v994_v34  ;;  %v1178_v41 = vadd.f32 %v1983_v35, %v2374_v50 }
 0x16c   : > { %v1984_v39 = vpop.f32.mrb[14].mxu0  ;;  %v1284_v40 = vpop.f32.mrb[13].mxu1  ;;  %995 = vadd.xlane.f32.xlu1 %v991_v36  ;;  %v1170_v47 = vadd.f32 %v1169_v37, %v2376_v52  ;;  %v1293_v48 = vadd.f32 %v2001_v38, %v2374_v50  ;;  %v1106_v50 = vmul.f32 %v1090_v33, %v2443_v19 }
 0x16d   : > { %v1181_v42 = vadd.f32 %v1984_v39, %v2378_v53  ;;  %v1172_v43 = vpop.f32.mrb[15].mxu0  ;;  %v2002_v44 = vpop.f32.mrb[14].mxu1  ;;  %v1285_v58 = vadd.f32 %v1284_v40, %v2376_v52  ;;  %v1207_v52 = vmul.f32 %v2382_v57, %v1178_v41 }
 0x16e   : > { %v1173_v49 = vadd.f32 %v1172_v43, %v2380_v55  ;;  %v1296_v51 = vadd.f32 %v2002_v44, %v2378_v53  ;;  %v1287_v54 = vpop.f32.mrb[15].mxu1  ;;  %v1109_v53 = vmul.f32 %v1093_v32, %v2440_v16  ;;  %v1205_v0 = vmul.f32 %v2382_v57, %v1170_v47 }
 0x16f   : > { %v1753_v56 = vpack.c.bf16 %v1181_v42, %v1178_v41  ;;  %v1288_v59 = vadd.f32 %v1287_v54, %v2380_v55  ;;  %1096 = vadd.xlane.f32.xlu0 %v1091_v45  ;;  %v1107_v55 = vmul.f32 %v1091_v45, %v2446_v20  ;;  %v1208_v1 = vmul.f32 %v2382_v57, %v1181_v42 }
 0x170   : > { %v1748_v60 = vpack.c.bf16 %v1173_v49, %v1170_v47  ;;  %v1763_v61 = vpack.c.bf16 %v1296_v51, %v1293_v48  ;;  %1114 = vadd.xlane.f32.xlu1 %v1108_v46  ;;  %v1322_v2 = vmul.f32 %v2382_v57, %v1293_v48  ;;  %v1206_v3 = vmul.f32 %v2382_v57, %v1173_v49 }
 0x171   : > { %1783 = vst [vmem:[%s2122_s27 + $0x68] sm:$0xff] %v1753_v56   ;;  %v1758_v62 = vpack.c.bf16 %v1288_v59, %v1285_v58  ;;  %v1223_v4 = vmul.f32 %v1207_v52, %v1178_v41  ;;  %v1323_v5 = vmul.f32 %v2382_v57, %v1296_v51  ;;  %v1320_v6 = vmul.f32 %v2382_v57, %v1285_v58 }
 0x172   : > { %1782 = vst [vmem:[%s2122_s27 + $0x60] sm:$0xff] %v1748_v60   ;;  %1786 = vst [vmem:[%s2122_s27 + $0x78] sm:$0xff] %v1763_v61   ;;  %v1224_v7 = vmul.f32 %v1208_v1, %v1181_v42  ;;  %v1221_v8 = vmul.f32 %v1205_v0, %v1170_v47  ;;  %v1321_v9 = vmul.f32 %v2382_v57, %v1288_v59 }
 0x173   : > { %1785 = vst [vmem:[%s2122_s27 + $0x70] sm:$0xff] %v1758_v62   ;;  %997 = vadd.xlane.f32.xlu0 %v992_v63  ;;  %v1336_v10 = vmul.f32 %v1320_v6, %v1285_v58  ;;  %v1222_v11 = vmul.f32 %v1206_v3, %v1173_v49  ;;  %v1338_v12 = vmul.f32 %v1322_v2, %v1293_v48 }
 0x174   : > { %1110 = vadd.xlane.f32.xlu1 %v1106_v50  ;;  %v1337_v13 = vmul.f32 %v1321_v9, %v1288_v59  ;;  %v1339_v14 = vmul.f32 %v1323_v5, %v1296_v51 }
 0x177   : > { %1116 = vadd.xlane.f32.xlu0 %v1109_v53 }
 0x178   : > { %1213 = vadd.xlane.f32.xlu1 %v1207_v52 }
 0x17b   : > { %1112 = vadd.xlane.f32.xlu0 %v1107_v55 }
 0x17c   : > { %1209 = vadd.xlane.f32.xlu1 %v1205_v0 }
 0x17f   : > { %1215 = vadd.xlane.f32.xlu0 %v1208_v1 }
 0x180   : > { %1328 = vadd.xlane.f32.xlu1 %v1322_v2 }
 0x183   : > { %1211 = vadd.xlane.f32.xlu0 %v1206_v3 }
 0x184   : > { %1229 = vadd.xlane.f32.xlu1 %v1223_v4 }
 0x187   : > { %1330 = vadd.xlane.f32.xlu0 %v1323_v5 }
 0x188   : > { %1324 = vadd.xlane.f32.xlu1 %v1320_v6 }
 0x18b   : > { %1231 = vadd.xlane.f32.xlu0 %v1224_v7 }
 0x18c   : > { %1225 = vadd.xlane.f32.xlu1 %v1221_v8 }
 0x18f   : > { %1326 = vadd.xlane.f32.xlu0 %v1321_v9 }
 0x190   : > { %1340 = vadd.xlane.f32.xlu1 %v1336_v10 }
 0x193   : > { %1227 = vadd.xlane.f32.xlu0 %v1222_v11 }
 0x194   : > { %1344 = vadd.xlane.f32.xlu1 %v1338_v12 }
 0x197   : > { %1342 = vadd.xlane.f32.xlu0 %v1337_v13 }
 0x19b   : > { %1346 = vadd.xlane.f32.xlu0 %v1339_v14 }
 0x1a8   : > { %v523_v15 = vpop.xlane.xlu0 %522 }
 0x1a9   : > { %v639_v16 = vpop.xlane.xlu1 %638 }
 0x1aa   : > { %v644_v17 = vadd.f32 %v639_v16, %v523_v15 }
 0x1ac   : > { %v519_v18 = vpop.xlane.xlu0 %518 }
 0x1ad   : > { %v539_v19 = vpop.xlane.xlu1 %538 }
 0x1b0   : > { %v525_v20 = vpop.xlane.xlu0 %524 }
 0x1b1   : > { %v635_v21 = vpop.xlane.xlu1 %634 }
 0x1b2   : > { %v642_v22 = vadd.f32 %v635_v21, %v519_v18 }
 0x1b4   : > { %v641_v57 = vpop.xlane.xlu0 %640 }
 0x1b5   : > { %v645_v23 = vadd.f32 %v641_v57, %v525_v20  ;;  %v521_v24 = vpop.xlane.xlu1 %520 }
 0x1b8   : > { %v541_v25 = vpop.xlane.xlu0 %540 }
 0x1b9   : > { %v535_v26 = vpop.xlane.xlu1 %534 }
 0x1bc   : > { %v637_v27 = vpop.xlane.xlu0 %636 }
 0x1bd   : > { %v643_v28 = vadd.f32 %v637_v27, %v521_v24  ;;  %v655_v29 = vpop.xlane.xlu1 %654 }
 0x1be   : > { %v660_v30 = vadd.f32 %v655_v29, %v539_v19 }
 0x1c0   : > { %v537_v31 = vpop.xlane.xlu0 %536 }
 0x1c1   : > { %v651_v32 = vpop.xlane.xlu1 %650 }
 0x1c2   : > { %v658_v33 = vadd.f32 %v651_v32, %v535_v26 }
 0x1c4   : > { %v657_v34 = vpop.xlane.xlu0 %656 }
 0x1c5   : > { %v661_v35 = vadd.f32 %v657_v34, %v541_v25  ;;  %v754_v36 = vpop.xlane.xlu1 %753 }
 0x1c6   : > { %v759_v37 = vadd.f32 %v754_v36, %v644_v17 }
 0x1c8   : > { %v653_v38 = vpop.xlane.xlu0 %652 }
 0x1c9   : > { %v659_v39 = vadd.f32 %v653_v38, %v537_v31  ;;  %v750_v40 = vpop.xlane.xlu1 %749 }
 0x1ca   : > { %v757_v41 = vadd.f32 %v750_v40, %v642_v22 }
 0x1cc   : > { %v756_v42 = vpop.xlane.xlu0 %755 }
 0x1cd   : > { %v760_v43 = vadd.f32 %v756_v42, %v645_v23  ;;  %v869_v44 = vpop.xlane.xlu1 %868 }
 0x1ce   : > { %v874_v45 = vadd.f32 %v869_v44, %v759_v37 }
 0x1d0   : > { %v752_v46 = vpop.xlane.xlu0 %751 }
 0x1d1   : > { %v758_v47 = vadd.f32 %v752_v46, %v643_v28  ;;  %v770_v48 = vpop.xlane.xlu1 %769  ;;  %v1352_v46 = vld [vmem:[%s2547_s6] sm:$0xff] }
 0x1d2   : > { %v775_v49 = vadd.f32 %v770_v48, %v660_v30 }
 0x1d4   : > { %v871_v51 = vpop.xlane.xlu0 %870 }
 0x1d5   : > { %v2494_v54 = vadd.f32 %v871_v51, %v760_v43  ;;  %v865_v56 = vpop.xlane.xlu1 %864 }
 0x1d6   : > { %v872_v58 = vadd.f32 %v865_v56, %v757_v41 }
 0x1d8   : > { %v772_v59 = vpop.xlane.xlu0 %771 }
 0x1d9   : > { %v2496_v60 = vadd.f32 %v772_v59, %v661_v35  ;;  %v766_v61 = vpop.xlane.xlu1 %765 }
 0x1da   : > { %v773_v57 = vadd.f32 %v766_v61, %v658_v33 }
 0x1dc   : > { %v867_v62 = vpop.xlane.xlu0 %866 }
 0x1dd   : > { %v873_v63 = vadd.f32 %v867_v62, %v758_v47  ;;  %v885_v50 = vpop.xlane.xlu1 %884 }
 0x1de   : > { %v890_v30 = vadd.f32 %v885_v50, %v775_v49 }
 0x1e0   : > { %v768_v53 = vpop.xlane.xlu0 %767 }
 0x1e1   : > { %v881_v52 = vpop.xlane.xlu1 %880  ;;  %v774_v34 = vadd.f32 %v768_v53, %v659_v39 }
 0x1e2   : > { %v888_v25 = vadd.f32 %v881_v52, %v773_v57 }
 0x1e4   : > { %v887_v55 = vpop.xlane.xlu0 %886 }
 0x1e5   : > { %v984_v0 = vpop.xlane.xlu1 %983 }
 0x1e6   : > { %v989_v35 = vadd.f32 %v984_v0, %v874_v45 }
 0x1e8   : > { %v883_v1 = vpop.xlane.xlu0 %882 }
 0x1e9   : > { %v980_v2 = vpop.xlane.xlu1 %979  ;;  %v889_v41 = vadd.f32 %v883_v1, %v774_v34 }
 0x1ea   : > { %v987_v26 = vadd.f32 %v980_v2, %v872_v58  ;;  %v891_v58 = vadd.f32 %v887_v55, %v2496_v60 }
 0x1ec   : > { %v986_v3 = vpop.xlane.xlu0 %985 }
 0x1ed   : > { %v1099_v4 = vpop.xlane.xlu1 %1098  ;;  %v990_v53 = vadd.f32 %v986_v3, %v2494_v54 }
 0x1ee   : > { %v1104_v33 = vadd.f32 %v1099_v4, %v989_v35 }
 0x1f0   : > { %v982_v5 = vpop.xlane.xlu0 %981 }
 0x1f1   : > { %v1000_v6 = vpop.xlane.xlu1 %999  ;;  %v988_v48 = vadd.f32 %v982_v5, %v873_v63  ;;  %v1354_v63 = vld [vmem:[%s2547_s6 + $0x10] sm:$0xff] }
 0x1f2   : > { %v1005_v36 = vadd.f32 %v1000_v6, %v890_v30 }
 0x1f4   : > { %v1101_v7 = vpop.xlane.xlu0 %1100 }
 0x1f5   : > { %v1095_v8 = vpop.xlane.xlu1 %1094  ;;  %v1105_v55 = vadd.f32 %v1101_v7, %v990_v53 }
 0x1f6   : > { %v1102_v31 = vadd.f32 %v1095_v8, %v987_v26  ;;  %v1353_v8 = vld [vmem:[%s2547_s6 + $0x8] sm:$0xff] }
 0x1f8   : > { %v1002_v9 = vpop.xlane.xlu0 %1001 }
 0x1f9   : > { %v996_v10 = vpop.xlane.xlu1 %995  ;;  %v1006_v1 = vadd.f32 %v1002_v9, %v891_v58 }
 0x1fa   : > { %v1003_v27 = vadd.f32 %v996_v10, %v888_v25 }
 0x1fc   : > { %v1097_v11 = vpop.xlane.xlu0 %1096 }
 0x1fd   : > { %v1115_v12 = vpop.xlane.xlu1 %1114  ;;  %v1103_v59 = vadd.f32 %v1097_v11, %v988_v48 }
 0x1fe   : > { %v1120_v43 = vadd.f32 %v1115_v12, %v1005_v36 }
 0x200   : > { %v998_v13 = vpop.xlane.xlu0 %997 }
 0x201   : > { %v1111_v14 = vpop.xlane.xlu1 %1110  ;;  %v1004_v49 = vadd.f32 %v998_v13, %v889_v41 }
 0x202   : > { %v1118_v32 = vadd.f32 %v1111_v14, %v1003_v27 }
 0x204   : > { %v1117_v15 = vpop.xlane.xlu0 %1116 }
 0x205   : > { %v1214_v16 = vpop.xlane.xlu1 %1213  ;;  %v1121_v6 = vadd.f32 %v1117_v15, %v1006_v1  ;;  %v1355_v15 = vld [vmem:[%s2547_s6 + $0x18] sm:$0xff] }
 0x206   : > { %v1219_v51 = vadd.f32 %v1214_v16, %v1104_v33 }
 0x208   : > { %v1113_v17 = vpop.xlane.xlu0 %1112 }
 0x209   : > { %v1210_v18 = vpop.xlane.xlu1 %1209  ;;  %v1119_v61 = vadd.f32 %v1113_v17, %v1004_v49 }
 0x20a   : > { %v1217_v37 = vadd.f32 %v1210_v18, %v1102_v31 }
 0x20c   : > { %v1216_v19 = vpop.xlane.xlu0 %1215 }
 0x20d   : > { %v1329_v20 = vpop.xlane.xlu1 %1328  ;;  %v1220_v9 = vadd.f32 %v1216_v19, %v1105_v55 }
 0x20e   : > { %v1334_v52 = vadd.f32 %v1329_v20, %v1219_v51 }
 0x210   : > { %v1212_v21 = vpop.xlane.xlu0 %1211 }
 0x211   : > { %v1230_v22 = vpop.xlane.xlu1 %1229  ;;  %v1218_v2 = vadd.f32 %v1212_v21, %v1103_v59 }
 0x212   : > { %v1235_v39 = vadd.f32 %v1230_v22, %v1120_v43 }
 0x214   : > { %v1331_v23 = vpop.xlane.xlu0 %1330 }
 0x215   : > { %v1325_v24 = vpop.xlane.xlu1 %1324  ;;  %v1335_v14 = vadd.f32 %v1331_v23, %v1220_v9 }
 0x216   : > { %v1332_v44 = vadd.f32 %v1325_v24, %v1217_v37 }
 0x218   : > { %v1232_v28 = vpop.xlane.xlu0 %1231 }
 0x219   : > { %v1226_v29 = vpop.xlane.xlu1 %1225  ;;  %v1236_v11 = vadd.f32 %v1232_v28, %v1121_v6 }
 0x21a   : > { %v1233_v38 = vadd.f32 %v1226_v29, %v1118_v32 }
 0x21c   : > { %v1327_v40 = vpop.xlane.xlu0 %1326 }
 0x21d   : > { %v1341_v42 = vpop.xlane.xlu1 %1340  ;;  %v1333_v54 = vadd.f32 %v1327_v40, %v1218_v2 }
 0x21e   : > { %v1348_v47 = vadd.f32 %v1341_v42, %v1233_v38 }
 0x220   : > { %v1357_v45 = vsel %vm1356_vm3, %v1332_v44, %v1348_v47  ;;  %v1228_v56 = vpop.xlane.xlu0 %1227 }
 0x221   : > { %v1361_v62 = vadd.f32 %v1357_v45, %v1352_v46  ;;  %v1345_v50 = vpop.xlane.xlu1 %1344  ;;  %v1234_v60 = vadd.f32 %v1228_v56, %v1119_v61 }
 0x222   : > { %v1350_v0 = vadd.f32 %v1345_v50, %v1235_v39 }
 0x223   : > { %1366 = vst.msk [vmem:[%s2547_s6] sm:$0xff] %vm1365_vm4, %v1361_v62 }
 0x224   : > { %v1359_v4 = vsel %vm1356_vm3, %v1334_v52, %v1350_v0  ;;  %v1343_v5 = vpop.xlane.xlu0 %1342 }
 0x225   : > { %v1363_v3 = vadd.f32 %v1359_v4, %v1354_v63  ;;  %v1349_v10 = vadd.f32 %v1343_v5, %v1234_v60 }
 0x227   : > { %1368 = vst.msk [vmem:[%s2547_s6 + $0x10] sm:$0xff] %vm1365_vm4, %v1363_v3  ;;  %v1358_v7 = vsel %vm1356_vm3, %v1333_v54, %v1349_v10 }
 0x228   : > { %v1362_v12 = vadd.f32 %v1358_v7, %v1353_v8  ;;  %v1347_v13 = vpop.xlane.xlu0 %1346 }
 0x229   : > { %v1351_v16 = vadd.f32 %v1347_v13, %v1236_v11 }
 0x22a   : > { %1367 = vst.msk [vmem:[%s2547_s6 + $0x8] sm:$0xff] %vm1365_vm4, %v1362_v12 }
 0x22b   : > { %v1360_v17 = vsel %vm1356_vm3, %v1335_v14, %v1351_v16 }
 0x22c   : > { %v1364_v18 = vadd.f32 %v1360_v17, %v1355_v15 }
 0x22e   : > { %1369 = vst.msk [vmem:[%s2547_s6 + $0x18] sm:$0xff] %vm1365_vm4, %v1364_v18 }
 0x22f PF: > { %s17_s23 = sadd.s32 1, %s2057_s23   ;;  %s2548_s21 = smov %s2053_s22 }
 0x230   : > { %p14_p6 = scmp.ge.s32.totalorder %s17_s23, 4   ;;  %s2549_s22 = smov %s2551_s3 }
 0x232   :  { %16 = sbr.rel (!%p14_p6) target bundleno = 2 (0x2), region = 116 }

// kernel: basic_block_forward.5
= control target key start
LH: loop header
LB: loop body
LE: loop exit
PB: predicated region body
PF: predicated region fallthrough
CT: control target
= control target key end

     0   :  { %s2623_s21 = smov 0   ;;  %s2625_s22 = smov 0   ;;  %s3541_s0 = inlined_call_operand.vmem [shape: bf16[16,32,128], index: 0, kind: input, shape index: {}]   ;;  %s3542_s1 = inlined_call_operand.vmem [shape: bf16[32,96], index: 1, kind: input, shape index: {}]   ;;  %s3543_s2 = inlined_call_operand.vmem [shape: f32[32,1], index: 2, kind: input, shape index: {}]   ;;  %s3544_s3 = inlined_call_operand.vmem [shape: f32[32,1], index: 3, kind: input, shape index: {}]   ;;  %s3545_s4 = inlined_call_operand.vmem [shape: f32[32,1], index: 4, kind: input, shape index: {}]   ;;  %s3546_s5 = inlined_call_operand.vmem [shape: bf16[16,32,128], index: 5, kind: output, shape index: {0}]   ;;  %s3547_s6 = inlined_call_operand.vmem [shape: f32[1,32,2], index: 6, kind: output, shape index: {1}]  }
   0x1   :  { %s2627_s23 = smov 0  }
   0x2 LB: > { %s26_s24 = sadd.s32 1, %s2578_s22  ;;  %p1862_p0 = scmp.ge.s32.totalorder %s2582_s23, 1  ;;  %s2582_s23 = sphi %s2627_s23, %s17_s23   ;;  %s2578_s22 = sphi %s2625_s22, %s3619_s22   ;;  %s2574_s21 = sphi %s2623_s21, %s3618_s21  }
   0x3   : > { %p27_p1 = scmp.ge.s32.totalorder %s26_s24, 2  ;;  %p228_p2 = scmp.lt.s32.totalorder %s2582_s23, 3 }
   0x5   : > { %s3621_s24 = smov (%p27_p1, %s26_s24), 0  ;;  %p229_p3 = pnand %p1862_p0, %p228_p2 }
   0x6   : > { %s1863_s25 = sshll.u32 (!%p229_p3), %s2574_s21, 3  ;;  %p1866_p5 = scmp.ne.s32.totalorder (!%p229_p3), %s2574_s21, 0 }
   0x7   : > { %232 = sbr.rel (%p229_p3) target bundleno = 743 (0x2e7), region = 40  ;;  %p271_p4 = scmp.lt.s32.totalorder (!%p229_p3), %s1863_s25, 15 }
   0xe   : > { %s3623_s25 = smov (!%p271_p4, %s1863_s25), 15  ;;  %289 = sbr.rel (%p1866_p5) target bundleno = 220 (0xdc), region = 44 }
   0xf   : > { %s2026_s26 = sshll.u32 %s3623_s25, 4 }
  0x10   : > { %s2647_s29 = scalar_lea.vmem %s3546_s5, %s2026_s26 }
  0x15   : > { %v296_v0 = vld [vmem:[%s3544_s3 + $0x10] sm:$0xff]  ;;  %v294_v1 = vld [vmem:[%s3544_s3] sm:$0xff]  ;;  %v2584_v2 = vmov 0   ;;  %v297_v3 = vld [vmem:[%s3544_s3 + $0x18] sm:$0xff]  ;;  %vm741_vm0 = vcmask 15360   ;;  %v2585_v9 = vmov 0.0  }
  0x16   : > { %2555 = vset.pattern.permute.xlu1 %v2584_v2  ;;  %290 = vst [vmem:[#allocation2] sm:$0xff] %v2584_v2  ;;  %291 = vst [vmem:[#allocation2 + $0x8] sm:$0xff] %v2584_v2  ;;  %2554 = vset.pattern.permute.xlu0 %v2584_v2  ;;  %v295_v4 = vld [vmem:[%s3544_s3 + $0x8] sm:$0xff]  ;;  %v298_v6 = vld [vmem:[%s3545_s4] sm:$0xff] }
  0x17   : > { %292 = vst [vmem:[#allocation2 + $0x110] sm:$0xff] %v2584_v2  ;;  %293 = vst [vmem:[#allocation2 + $0x118] sm:$0xff] %v2584_v2  ;;  %322 = vperm.xlu1 %2555, %v296_v0   ;;  %312 = vperm.xlu0 %2554, %v294_v1   ;;  %v299_v5 = vld [vmem:[%s3545_s4 + $0x8] sm:$0xff]  ;;  %v301_v7 = vld [vmem:[%s3545_s4 + $0x18] sm:$0xff] }
  0x18   : > { %v300_v8 = vld [vmem:[%s3545_s4 + $0x10] sm:$0xff]  ;;  %742 = vst.msk [vmem:[%s3547_s6] sm:$0xff] %vm741_vm0, %v2585_v9  ;;  %743 = vst.msk [vmem:[%s3547_s6 + $0x8] sm:$0xff] %vm741_vm0, %v2585_v9  ;;  %v2689_v10 = vld [vmem:[%s3541_s0] sm:$0xff]  }
  0x19   : > { %744 = vst.msk [vmem:[%s3547_s6 + $0x10] sm:$0xff] %vm741_vm0, %v2585_v9  ;;  %745 = vst.msk [vmem:[%s3547_s6 + $0x18] sm:$0xff] %vm741_vm0, %v2585_v9  ;;  %v2694_v11 = vld [vmem:[%s3541_s0 + $0x10] sm:$0xff]   ;;  %v2699_v12 = vld [vmem:[%s3541_s0 + $0x20] sm:$0xff]   ;;  %v2075_v20 = vunpack.c.l.bf16 %v2689_v10  ;;  %v2076_v33 = vunpack.c.h.bf16 %v2689_v10 }
  0x1a   : > { %v2704_v13 = vld [vmem:[%s3541_s0 + $0x30] sm:$0xff]   ;;  %v2709_v14 = vld [vmem:[%s3541_s0 + $0x40] sm:$0xff]   ;;  %v2083_v21 = vunpack.c.l.bf16 %v2694_v11  ;;  %v2091_v22 = vunpack.c.l.bf16 %v2699_v12  ;;  %v2084_v37 = vunpack.c.h.bf16 %v2694_v11  ;;  %v2092_v41 = vunpack.c.h.bf16 %v2699_v12  ;;  %v2793_v50 = vld [vmem:[%s3541_s0 + $0x8] sm:$0xff]  }
  0x1b   : > { %327 = vperm.xlu1 %2555, %v297_v3   ;;  %317 = vperm.xlu0 %2554, %v295_v4   ;;  %v2714_v15 = vld [vmem:[%s3541_s0 + $0x50] sm:$0xff]   ;;  %v2719_v16 = vld [vmem:[%s3541_s0 + $0x60] sm:$0xff]   ;;  %v2099_v23 = vunpack.c.l.bf16 %v2704_v13  ;;  %v2107_v27 = vunpack.c.l.bf16 %v2709_v14  ;;  %v2100_v45 = vunpack.c.h.bf16 %v2704_v13  ;;  %v2108_v46 = vunpack.c.h.bf16 %v2709_v14  ;;  %v2802_v55 = vld [vmem:[%s3541_s0 + $0x18] sm:$0xff]  }
  0x1c   : > { %v2724_v17 = vld [vmem:[%s3541_s0 + $0x70] sm:$0xff]   ;;  %v2729_v18 = vld [vmem:[%s3541_s0 + $0x80] sm:$0xff]   ;;  %v2115_v28 = vunpack.c.l.bf16 %v2714_v15  ;;  %v2123_v29 = vunpack.c.l.bf16 %v2719_v16  ;;  %v2807_v56 = vld [vmem:[%s3541_s0 + $0x28] sm:$0xff]   ;;  %v3569_v58 = vunpack.c.h.bf16 %v2719_v16 }
  0x1d   : > { %v2734_v19 = vld [vmem:[%s3541_s0 + $0x90] sm:$0xff]   ;;  %v2743_v24 = vld [vmem:[%s3541_s0 + $0xa0] sm:$0xff]   ;;  %v2131_v34 = vunpack.c.l.bf16 %v2724_v17  ;;  %v2139_v35 = vunpack.c.l.bf16 %v2729_v18  ;;  %v2816_v61 = vld [vmem:[%s3541_s0 + $0x38] sm:$0xff]   ;;  %v3570_v10 = vunpack.c.h.bf16 %v2724_v17  ;;  %v3571_v11 = vunpack.c.h.bf16 %v2729_v18 }
  0x1e   : > { %v2748_v25 = vld [vmem:[%s3541_s0 + $0xb0] sm:$0xff]   ;;  %v2753_v26 = vld [vmem:[%s3541_s0 + $0xc0] sm:$0xff]   ;;  %v2147_v36 = vunpack.c.l.bf16 %v2734_v19  ;;  %v2155_v38 = vunpack.c.l.bf16 %v2743_v24  ;;  %v2821_v62 = vld [vmem:[%s3541_s0 + $0x48] sm:$0xff]   ;;  %v3572_v12 = vunpack.c.h.bf16 %v2734_v19  ;;  %v3573_v13 = vunpack.c.h.bf16 %v2743_v24 }
  0x1f   : > { %341 = vperm.xlu1 %2555, %v299_v5   ;;  %336 = vperm.xlu0 %2554, %v298_v6   ;;  %v2761_v30 = vld [vmem:[%s3541_s0 + $0xd0] sm:$0xff]   ;;  %v2766_v31 = vld [vmem:[%s3541_s0 + $0xe0] sm:$0xff]   ;;  %v2163_v39 = vunpack.c.l.bf16 %v2748_v25  ;;  %v2171_v40 = vunpack.c.l.bf16 %v2753_v26  ;;  %v2826_v63 = vld [vmem:[%s3541_s0 + $0x58] sm:$0xff]   ;;  %v3574_v14 = vunpack.c.h.bf16 %v2748_v25 }
  0x20   : > { %v2771_v32 = vld [vmem:[%s3541_s0 + $0xf0] sm:$0xff]   ;;  %v2179_v42 = vunpack.c.l.bf16 %v2761_v30  ;;  %v2187_v43 = vunpack.c.l.bf16 %v2766_v31  ;;  %v2834_v3 = vld [vmem:[%s3541_s0 + $0x68] sm:$0xff]   ;;  %v2839_v4 = vld [vmem:[%s3541_s0 + $0x78] sm:$0xff]   ;;  %v3576_v16 = vunpack.c.h.bf16 %v2761_v30  ;;  %v3577_v17 = vunpack.c.h.bf16 %v2766_v31 }
  0x21   : > { %v2195_v44 = vunpack.c.l.bf16 %v2771_v32  ;;  %v2844_v5 = vld [vmem:[%s3541_s0 + $0x88] sm:$0xff]   ;;  %v2854_v1 = vld [vmem:[%s3541_s0 + $0x98] sm:$0xff]   ;;  %v3578_v18 = vunpack.c.h.bf16 %v2771_v32 }
  0x22   : > { %v2859_v0 = vld [vmem:[%s3541_s0 + $0xa8] sm:$0xff]   ;;  %v2864_v6 = vld [vmem:[%s3541_s0 + $0xb8] sm:$0xff]  }
  0x23   : > { %351 = vperm.xlu1 %2555, %v301_v7   ;;  %346 = vperm.xlu0 %2554, %v300_v8   ;;  %3561 = vst [vmem:[#allocation3_spill] sm:$0xff] %v2859_v0  ;;  %3562 = vst [vmem:[#allocation4_spill] sm:$0xff] %v2864_v6  ;;  %v2873_v60 = vld [vmem:[%s3541_s0 + $0xc8] sm:$0xff]   ;;  %v2878_v59 = vld [vmem:[%s3541_s0 + $0xd8] sm:$0xff]  }
  0x24   : > { %3563 = vst [vmem:[#allocation5_spill] sm:$0xff] %v2873_v60  ;;  %3564 = vst [vmem:[#allocation6_spill] sm:$0xff] %v2878_v59  ;;  %v2883_v8 = vld [vmem:[%s3541_s0 + $0xe8] sm:$0xff]   ;;  %v2892_v57 = vld [vmem:[%s3541_s0 + $0xf8] sm:$0xff]  }
  0x25   : > { %3565 = vst [vmem:[#allocation7_spill] sm:$0xff] %v2883_v8  ;;  %3566 = vst [vmem:[#allocation8_spill] sm:$0xff] %v2892_v57 }
  0x96   : > { %v2906_v47 = vpop.permute.xlu1 %322  ;;  %v313_v52 = vpop.permute.xlu0 %312 }
  0x97   : > { %3567 = vst [vmem:[#allocation9_spill] sm:$0xff] %v2906_v47  ;;  %v2914_v49 = vsub.f32 %v2075_v20, %v313_v52  ;;  %v2918_v54 = vsub.f32 %v2083_v21, %v313_v52  ;;  %v2922_v53 = vsub.f32 %v2091_v22, %v313_v52  ;;  %v2926_v51 = vsub.f32 %v2099_v23, %v313_v52 }
  0x98   : > { %v2930_v2 = vsub.f32 %v2107_v27, %v313_v52  ;;  %v2934_v20 = vsub.f32 %v2115_v28, %v313_v52  ;;  %v2938_v21 = vsub.f32 %v2123_v29, %v313_v52  ;;  %v2942_v22 = vsub.f32 %v2131_v34, %v313_v52 }
  0x99   : > { %v2946_v23 = vsub.f32 %v2139_v35, %v313_v52  ;;  %v2950_v27 = vsub.f32 %v2147_v36, %v313_v52  ;;  %v2954_v28 = vsub.f32 %v2155_v38, %v313_v52  ;;  %v2958_v29 = vsub.f32 %v2163_v39, %v313_v52 }
  0x9a   : > { %v2962_v34 = vsub.f32 %v2171_v40, %v313_v52  ;;  %v2966_v35 = vsub.f32 %v2179_v42, %v313_v52  ;;  %v2970_v36 = vsub.f32 %v2187_v43, %v313_v52  ;;  %v2974_v38 = vsub.f32 %v2195_v44, %v313_v52  ;;  %v2976_v7 = vpop.permute.xlu1 %327  ;;  %v318_v39 = vpop.permute.xlu0 %317 }
  0x9b   : > { %v331_v9 = vsub.f32 %v2076_v33, %v318_v39  ;;  %v376_v40 = vsub.f32 %v2084_v37, %v318_v39  ;;  %v401_v42 = vsub.f32 %v2092_v41, %v318_v39  ;;  %v426_v43 = vsub.f32 %v2100_v45, %v318_v39 }
  0x9c   : > { %v451_v48 = vsub.f32 %v2108_v46, %v318_v39  ;;  %v3568_v44 = vunpack.c.h.bf16 %v2714_v15  ;;  %v501_v47 = vsub.f32 %v3569_v58, %v318_v39  ;;  %v526_v33 = vsub.f32 %v3570_v10, %v318_v39 }
  0x9d   : > { %v551_v37 = vsub.f32 %v3571_v11, %v318_v39  ;;  %v576_v41 = vsub.f32 %v3572_v12, %v318_v39  ;;  %v601_v45 = vsub.f32 %v3573_v13, %v318_v39  ;;  %v626_v46 = vsub.f32 %v3574_v14, %v318_v39 }
  0x9e   : > { %v476_v52 = vsub.f32 %v3568_v44, %v318_v39  ;;  %v3575_v15 = vunpack.c.h.bf16 %v2753_v26  ;;  %v676_v58 = vsub.f32 %v3576_v16, %v318_v39  ;;  %v701_v10 = vsub.f32 %v3577_v17, %v318_v39  ;;  %v342_v19 = vpop.permute.xlu1 %341 }
  0x9f   : > { %v726_v11 = vsub.f32 %v3578_v18, %v318_v39  ;;  %v355_v12 = vmul.f32 %v342_v19, %v331_v9  ;;  %v380_v57 = vmul.f32 %v376_v40, %v342_v19  ;;  %v405_v24 = vmul.f32 %v401_v42, %v342_v19 }
  0xa0   : > { %v651_v44 = vsub.f32 %v3575_v15, %v318_v39  ;;  %v430_v13 = vmul.f32 %v426_v43, %v342_v19  ;;  %v455_v8 = vmul.f32 %v451_v48, %v342_v19  ;;  %v480_v25 = vmul.f32 %v476_v52, %v342_v19 }
  0xa1   : > { %v505_v14 = vmul.f32 %v501_v47, %v342_v19  ;;  %v530_v59 = vmul.f32 %v526_v33, %v342_v19  ;;  %v359_v26 = vmax.f32 %v355_v12, 0.0  ;;  %v384_v15 = vmax.f32 %v380_v57, 0.0 }
  0xa2   : > { %v409_v60 = vmax.f32 %v405_v24, 0.0  ;;  %v434_v30 = vmax.f32 %v430_v13, 0.0  ;;  %v459_v16 = vmax.f32 %v455_v8, 0.0  ;;  %v484_v6 = vmax.f32 %v480_v25, 0.0  ;;  %v337_v8 = vpop.permute.xlu0 %336 }
  0xa3   : > { %v509_v31 = vmax.f32 %v505_v14, 0.0  ;;  %v534_v17 = vmax.f32 %v530_v59, 0.0  ;;  %v3010_v0 = vmul.f32 %v551_v37, %v342_v19  ;;  %v3012_v32 = vmul.f32 %v576_v41, %v342_v19 }
  0xa4   : > { %v3014_v9 = vmul.f32 %v601_v45, %v342_v19  ;;  %v3016_v39 = vmul.f32 %v626_v46, %v342_v19  ;;  %v3018_v48 = vmul.f32 %v651_v44, %v342_v19  ;;  %v3020_v47 = vmul.f32 %v676_v58, %v342_v19 }
  0xa5   : > { %v3022_v40 = vmul.f32 %v701_v10, %v342_v19  ;;  %v3024_v57 = vmul.f32 %v726_v11, %v342_v19  ;;  %v559_v42 = vmax.f32 %v3010_v0, 0.0  ;;  %v584_v59 = vmax.f32 %v3012_v32, 0.0 }
  0xa6   : > { %v609_v43 = vmax.f32 %v3014_v9, 0.0  ;;  %v634_v52 = vmax.f32 %v3016_v39, 0.0  ;;  %v659_v33 = vmax.f32 %v3018_v48, 0.0  ;;  %v684_v37 = vmax.f32 %v3020_v47, 0.0 }
  0xa7   : > { %v709_v41 = vmax.f32 %v3022_v40, 0.0  ;;  %v734_v45 = vmax.f32 %v3024_v57, 0.0  ;;  %v354_v46 = vmul.f32 %v337_v8, %v2914_v49  ;;  %v379_v44 = vmul.f32 %v2918_v54, %v337_v8 }
  0xa8   : > { %v404_v0 = vmul.f32 %v2922_v53, %v337_v8  ;;  %v429_v58 = vmul.f32 %v2926_v51, %v337_v8  ;;  %v454_v10 = vmul.f32 %v2930_v2, %v337_v8  ;;  %v479_v18 = vmul.f32 %v2934_v20, %v337_v8 }
  0xa9   : > { %v504_v11 = vmul.f32 %v2938_v21, %v337_v8  ;;  %v529_v19 = vmul.f32 %v2942_v22, %v337_v8  ;;  %v358_v12 = vmax.f32 %v354_v46, 0.0  ;;  %v383_v24 = vmax.f32 %v379_v44, 0.0 }
  0xaa   : > { %v408_v13 = vmax.f32 %v404_v0, 0.0  ;;  %v433_v25 = vmax.f32 %v429_v58, 0.0  ;;  %v458_v14 = vmax.f32 %v454_v10, 0.0  ;;  %v483_v49 = vmax.f32 %v479_v18, 0.0 }
  0xab   : > { %v508_v32 = vmax.f32 %v504_v11, 0.0  ;;  %v533_v54 = vmax.f32 %v529_v19, 0.0  ;;  %v362_v9 = vpack.c.bf16 %v359_v26, %v358_v12  ;;  %v387_v53 = vpack.c.bf16 %v384_v15, %v383_v24 }
  0xac   : > { %v412_v39 = vpack.c.bf16 %v409_v60, %v408_v13  ;;  %v437_v51 = vpack.c.bf16 %v434_v30, %v433_v25  ;;  %v462_v48 = vpack.c.bf16 %v459_v16, %v458_v14  ;;  %v487_v2 = vpack.c.bf16 %v484_v6, %v483_v49  ;;  %v352_v25 = vpop.permute.xlu1 %351 }
  0xad   : > { %v512_v47 = vpack.c.bf16 %v509_v31, %v508_v32  ;;  %v537_v20 = vpack.c.bf16 %v534_v17, %v533_v54  ;;  %364 = vst [vmem:[#allocation2 + $0x10] sm:$0xff] %v362_v9  ;;  %389 = vst [vmem:[#allocation2 + $0x20] sm:$0xff] %v387_v53  ;;  %v554_v21 = vmul.f32 %v2946_v23, %v337_v8  ;;  %v3585_v19 = vunpack.c.h.bf16 %v2834_v3  ;;  %v3589_v9 = vld [vmem:[#allocation3_spill] sm:$0xff] }
  0xae   : > { %414 = vst [vmem:[#allocation2 + $0x30] sm:$0xff] %v412_v39  ;;  %439 = vst [vmem:[#allocation2 + $0x40] sm:$0xff] %v437_v51  ;;  %v579_v22 = vmul.f32 %v2950_v27, %v337_v8  ;;  %v604_v40 = vmul.f32 %v2954_v28, %v337_v8  ;;  %v629_v57 = vmul.f32 %v2958_v29, %v337_v8  ;;  %v3586_v24 = vunpack.c.h.bf16 %v2839_v4  ;;  %v3591_v51 = vld [vmem:[#allocation4_spill] sm:$0xff] }
  0xaf   : > { %464 = vst [vmem:[#allocation2 + $0x50] sm:$0xff] %v462_v48  ;;  %489 = vst [vmem:[#allocation2 + $0x60] sm:$0xff] %v487_v2  ;;  %v654_v60 = vmul.f32 %v2962_v34, %v337_v8  ;;  %v679_v6 = vmul.f32 %v2966_v35, %v337_v8  ;;  %v704_v26 = vmul.f32 %v2970_v36, %v337_v8  ;;  %v558_v30 = vmax.f32 %v554_v21, 0.0 }
  0xb0   : > { %514 = vst [vmem:[#allocation2 + $0x70] sm:$0xff] %v512_v47  ;;  %539 = vst [vmem:[#allocation2 + $0x80] sm:$0xff] %v537_v20  ;;  %v729_v15 = vmul.f32 %v2974_v38, %v337_v8  ;;  %v583_v23 = vmax.f32 %v579_v22, 0.0  ;;  %v608_v16 = vmax.f32 %v604_v40, 0.0  ;;  %v633_v27 = vmax.f32 %v629_v57, 0.0  ;;  %v3593_v47 = vld [vmem:[#allocation5_spill] sm:$0xff] }
  0xb1   : > { %v658_v31 = vmax.f32 %v654_v60, 0.0  ;;  %v683_v28 = vmax.f32 %v679_v6, 0.0  ;;  %v708_v17 = vmax.f32 %v704_v26, 0.0  ;;  %v562_v46 = vpack.c.bf16 %v559_v42, %v558_v30  ;;  %v3595_v22 = vld [vmem:[#allocation6_spill] sm:$0xff]  ;;  %v3597_v60 = vld [vmem:[#allocation7_spill] sm:$0xff] }
  0xb2   : > { %v733_v29 = vmax.f32 %v729_v15, 0.0  ;;  %v587_v44 = vpack.c.bf16 %v584_v59, %v583_v23  ;;  %v612_v0 = vpack.c.bf16 %v609_v43, %v608_v16  ;;  %v637_v58 = vpack.c.bf16 %v634_v52, %v633_v27  ;;  %v3599_v15 = vld [vmem:[#allocation8_spill] sm:$0xff] }
  0xb3   : > { %v662_v10 = vpack.c.bf16 %v659_v33, %v658_v31  ;;  %v687_v34 = vpack.c.bf16 %v684_v37, %v683_v28  ;;  %v712_v18 = vpack.c.bf16 %v709_v41, %v708_v17  ;;  %564 = vst [vmem:[#allocation2 + $0x90] sm:$0xff] %v562_v46  ;;  %v3579_v36 = vunpack.c.h.bf16 %v2793_v50 }
  0xb4   : > { %v737_v35 = vpack.c.bf16 %v734_v45, %v733_v29  ;;  %589 = vst [vmem:[#allocation2 + $0xa0] sm:$0xff] %v587_v44  ;;  %614 = vst [vmem:[#allocation2 + $0xb0] sm:$0xff] %v612_v0  ;;  %v3580_v8 = vunpack.c.h.bf16 %v2802_v55  ;;  %v3581_v42 = vunpack.c.h.bf16 %v2807_v56  ;;  %v3582_v43 = vunpack.c.h.bf16 %v2816_v61 }
  0xb5   : > { %639 = vst [vmem:[#allocation2 + $0xc0] sm:$0xff] %v637_v58  ;;  %v333_v38 = vsub.f32 %v3579_v36, %v2976_v7  ;;  %664 = vst [vmem:[#allocation2 + $0xd0] sm:$0xff] %v662_v10  ;;  %v3583_v33 = vunpack.c.h.bf16 %v2821_v62  ;;  %v3584_v41 = vunpack.c.h.bf16 %v2826_v63  ;;  %v503_v12 = vsub.f32 %v3585_v19, %v2976_v7 }
  0xb6   : > { %v378_v11 = vsub.f32 %v3580_v8, %v2976_v7  ;;  %v403_v59 = vsub.f32 %v3581_v42, %v2976_v7  ;;  %v428_v52 = vsub.f32 %v3582_v43, %v2976_v7  ;;  %689 = vst [vmem:[#allocation2 + $0xe0] sm:$0xff] %v687_v34  ;;  %714 = vst [vmem:[#allocation2 + $0xf0] sm:$0xff] %v712_v18  ;;  %v3587_v14 = vunpack.c.h.bf16 %v2844_v5 }
  0xb7   : > { %739 = vst [vmem:[#allocation2 + $0x100] sm:$0xff] %v737_v35  ;;  %v453_v37 = vsub.f32 %v3583_v33, %v2976_v7  ;;  %v478_v45 = vsub.f32 %v3584_v41, %v2976_v7  ;;  %v528_v13 = vsub.f32 %v3586_v24, %v2976_v7  ;;  %v3588_v32 = vunpack.c.h.bf16 %v2854_v1 }
  0xb8   : > { %v553_v49 = vsub.f32 %v3587_v14, %v2976_v7  ;;  %v3590_v53 = vunpack.c.h.bf16 %v3589_v9  ;;  %v3592_v48 = vunpack.c.h.bf16 %v3591_v51  ;;  %v3594_v20 = vunpack.c.h.bf16 %v3593_v47 }
  0xb9   : > { %v578_v54 = vsub.f32 %v3588_v32, %v2976_v7  ;;  %v3596_v40 = vunpack.c.h.bf16 %v3595_v22  ;;  %v3598_v6 = vunpack.c.h.bf16 %v3597_v60  ;;  %v3600_v30 = vunpack.c.h.bf16 %v3599_v15 }
  0xba   : > { %v603_v39 = vsub.f32 %v3590_v53, %v2976_v7  ;;  %v628_v2 = vsub.f32 %v3592_v48, %v2976_v7  ;;  %v653_v21 = vsub.f32 %v3594_v20, %v2976_v7  ;;  %v3098_v16 = vmul.f32 %v352_v25, %v333_v38 }
  0xbb   : > { %v678_v57 = vsub.f32 %v3596_v40, %v2976_v7  ;;  %v703_v26 = vsub.f32 %v3598_v6, %v2976_v7  ;;  %v728_v23 = vsub.f32 %v3600_v30, %v2976_v7  ;;  %v3100_v27 = vmul.f32 %v378_v11, %v352_v25  ;;  %v347_v30 = vpop.permute.xlu0 %346 }
  0xbc   : > { %v3102_v31 = vmul.f32 %v403_v59, %v352_v25  ;;  %v3104_v28 = vmul.f32 %v428_v52, %v352_v25  ;;  %v3106_v17 = vmul.f32 %v453_v37, %v352_v25  ;;  %v3108_v29 = vmul.f32 %v478_v45, %v352_v25 }
  0xbd   : > { %v3110_v46 = vmul.f32 %v503_v12, %v352_v25  ;;  %v3112_v44 = vmul.f32 %v528_v13, %v352_v25  ;;  %v361_v0 = vmax.f32 %v3098_v16, 0.0  ;;  %v386_v7 = vmax.f32 %v3100_v27, 0.0 }
  0xbe   : > { %v411_v58 = vmax.f32 %v3102_v31, 0.0  ;;  %v436_v10 = vmax.f32 %v3104_v28, 0.0  ;;  %v461_v34 = vmax.f32 %v3106_v17, 0.0  ;;  %v486_v18 = vmax.f32 %v3108_v29, 0.0 }
  0xbf   : > { %v511_v35 = vmax.f32 %v3110_v46, 0.0  ;;  %v536_v36 = vmax.f32 %v3112_v44, 0.0  ;;  %v3122_v38 = vmul.f32 %v553_v49, %v352_v25  ;;  %v3124_v8 = vmul.f32 %v578_v54, %v352_v25  ;;  %v3601_v49 = vld [vmem:[#allocation9_spill] sm:$0xff] }
  0xc0   : > { %v3126_v11 = vmul.f32 %v603_v39, %v352_v25  ;;  %v3128_v42 = vmul.f32 %v628_v2, %v352_v25  ;;  %v3130_v59 = vmul.f32 %v653_v21, %v352_v25  ;;  %v3132_v43 = vmul.f32 %v678_v57, %v352_v25 }
  0xc1   : > { %v3134_v52 = vmul.f32 %v703_v26, %v352_v25  ;;  %v3136_v33 = vmul.f32 %v728_v23, %v352_v25  ;;  %v561_v37 = vmax.f32 %v3122_v38, 0.0  ;;  %v586_v41 = vmax.f32 %v3124_v8, 0.0 }
  0xc2   : > { %v611_v45 = vmax.f32 %v3126_v11, 0.0  ;;  %v636_v19 = vmax.f32 %v3128_v42, 0.0  ;;  %v661_v12 = vmax.f32 %v3130_v59, 0.0  ;;  %v686_v24 = vmax.f32 %v3132_v43, 0.0 }
  0xc3   : > { %v711_v13 = vmax.f32 %v3134_v52, 0.0  ;;  %v736_v14 = vmax.f32 %v3136_v33, 0.0  ;;  %v3602_v25 = vunpack.c.l.bf16 %v2793_v50  ;;  %v3603_v54 = vunpack.c.l.bf16 %v2802_v55 }
  0xc4   : > { %v3604_v39 = vunpack.c.l.bf16 %v2807_v56  ;;  %v3605_v2 = vunpack.c.l.bf16 %v2816_v61  ;;  %v3606_v21 = vunpack.c.l.bf16 %v2821_v62  ;;  %v3607_v50 = vunpack.c.l.bf16 %v2826_v63 }
  0xc5   : > { %v332_v32 = vsub.f32 %v3602_v25, %v3601_v49  ;;  %v377_v53 = vsub.f32 %v3603_v54, %v3601_v49  ;;  %v3608_v55 = vunpack.c.l.bf16 %v2834_v3  ;;  %v3609_v56 = vunpack.c.l.bf16 %v2839_v4 }
  0xc6   : > { %v402_v48 = vsub.f32 %v3604_v39, %v3601_v49  ;;  %v427_v20 = vsub.f32 %v3605_v2, %v3601_v49  ;;  %v452_v40 = vsub.f32 %v3606_v21, %v3601_v49  ;;  %v477_v57 = vsub.f32 %v3607_v50, %v3601_v49 }
  0xc7   : > { %v502_v6 = vsub.f32 %v3608_v55, %v3601_v49  ;;  %v527_v26 = vsub.f32 %v3609_v56, %v3601_v49  ;;  %v3610_v61 = vunpack.c.l.bf16 %v2844_v5  ;;  %v3611_v62 = vunpack.c.l.bf16 %v2854_v1 }
  0xc8   : > { %v3612_v63 = vunpack.c.l.bf16 %v3589_v9  ;;  %v3613_v3 = vunpack.c.l.bf16 %v3591_v51  ;;  %v3614_v4 = vunpack.c.l.bf16 %v3593_v47  ;;  %v3615_v5 = vunpack.c.l.bf16 %v3595_v22 }
  0xc9   : > { %v552_v23 = vsub.f32 %v3610_v61, %v3601_v49  ;;  %v577_v16 = vsub.f32 %v3611_v62, %v3601_v49  ;;  %v3616_v1 = vunpack.c.l.bf16 %v3597_v60  ;;  %v3617_v9 = vunpack.c.l.bf16 %v3599_v15 }
  0xca   : > { %v602_v27 = vsub.f32 %v3612_v63, %v3601_v49  ;;  %v627_v31 = vsub.f32 %v3613_v3, %v3601_v49  ;;  %v652_v28 = vsub.f32 %v3614_v4, %v3601_v49  ;;  %v677_v17 = vsub.f32 %v3615_v5, %v3601_v49 }
  0xcb   : > { %v702_v29 = vsub.f32 %v3616_v1, %v3601_v49  ;;  %v727_v46 = vsub.f32 %v3617_v9, %v3601_v49  ;;  %v356_v44 = vmul.f32 %v347_v30, %v332_v32  ;;  %v381_v25 = vmul.f32 %v377_v53, %v347_v30 }
  0xcc   : > { %v406_v51 = vmul.f32 %v402_v48, %v347_v30  ;;  %v431_v54 = vmul.f32 %v427_v20, %v347_v30  ;;  %v456_v39 = vmul.f32 %v452_v40, %v347_v30  ;;  %v481_v2 = vmul.f32 %v477_v57, %v347_v30 }
  0xcd   : > { %v506_v47 = vmul.f32 %v502_v6, %v347_v30  ;;  %v531_v21 = vmul.f32 %v527_v26, %v347_v30  ;;  %v360_v50 = vmax.f32 %v356_v44, 0.0  ;;  %v385_v55 = vmax.f32 %v381_v25, 0.0 }
  0xce   : > { %v410_v22 = vmax.f32 %v406_v51, 0.0  ;;  %v435_v56 = vmax.f32 %v431_v54, 0.0  ;;  %v460_v61 = vmax.f32 %v456_v39, 0.0  ;;  %v485_v62 = vmax.f32 %v481_v2, 0.0 }
  0xcf   : > { %v510_v60 = vmax.f32 %v506_v47, 0.0  ;;  %v535_v63 = vmax.f32 %v531_v21, 0.0  ;;  %v363_v3 = vpack.c.bf16 %v361_v0, %v360_v50  ;;  %v388_v4 = vpack.c.bf16 %v386_v7, %v385_v55 }
  0xd0   : > { %v413_v15 = vpack.c.bf16 %v411_v58, %v410_v22  ;;  %v438_v49 = vpack.c.bf16 %v436_v10, %v435_v56  ;;  %v463_v32 = vpack.c.bf16 %v461_v34, %v460_v61  ;;  %v488_v53 = vpack.c.bf16 %v486_v18, %v485_v62 }
  0xd1   : > { %v513_v48 = vpack.c.bf16 %v511_v35, %v510_v60  ;;  %v538_v20 = vpack.c.bf16 %v536_v36, %v535_v63  ;;  %365 = vst [vmem:[#allocation2 + $0x18] sm:$0xff] %v363_v3  ;;  %390 = vst [vmem:[#allocation2 + $0x28] sm:$0xff] %v388_v4  ;;  %v556_v40 = vmul.f32 %v552_v23, %v347_v30 }
  0xd2   : > { %415 = vst [vmem:[#allocation2 + $0x38] sm:$0xff] %v413_v15  ;;  %440 = vst [vmem:[#allocation2 + $0x48] sm:$0xff] %v438_v49  ;;  %v581_v57 = vmul.f32 %v577_v16, %v347_v30  ;;  %v606_v6 = vmul.f32 %v602_v27, %v347_v30  ;;  %v631_v26 = vmul.f32 %v627_v31, %v347_v30 }
  0xd3   : > { %465 = vst [vmem:[#allocation2 + $0x58] sm:$0xff] %v463_v32  ;;  %490 = vst [vmem:[#allocation2 + $0x68] sm:$0xff] %v488_v53  ;;  %v656_v0 = vmul.f32 %v652_v28, %v347_v30  ;;  %v681_v7 = vmul.f32 %v677_v17, %v347_v30  ;;  %v706_v58 = vmul.f32 %v702_v29, %v347_v30  ;;  %v560_v34 = vmax.f32 %v556_v40, 0.0 }
  0xd4   : > { %515 = vst [vmem:[#allocation2 + $0x78] sm:$0xff] %v513_v48  ;;  %540 = vst [vmem:[#allocation2 + $0x88] sm:$0xff] %v538_v20  ;;  %v731_v10 = vmul.f32 %v727_v46, %v347_v30  ;;  %v585_v18 = vmax.f32 %v581_v57, 0.0  ;;  %v610_v35 = vmax.f32 %v606_v6, 0.0  ;;  %v635_v36 = vmax.f32 %v631_v26, 0.0 }
  0xd5   : > { %v660_v5 = vmax.f32 %v656_v0, 0.0  ;;  %v685_v1 = vmax.f32 %v681_v7, 0.0  ;;  %v710_v9 = vmax.f32 %v706_v58, 0.0  ;;  %v563_v23 = vpack.c.bf16 %v561_v37, %v560_v34 }
  0xd6   : > { %v735_v44 = vmax.f32 %v731_v10, 0.0  ;;  %v588_v16 = vpack.c.bf16 %v586_v41, %v585_v18  ;;  %v613_v27 = vpack.c.bf16 %v611_v45, %v610_v35  ;;  %v638_v30 = vpack.c.bf16 %v636_v19, %v635_v36 }
  0xd7   : > { %v663_v31 = vpack.c.bf16 %v661_v12, %v660_v5  ;;  %v688_v28 = vpack.c.bf16 %v686_v24, %v685_v1  ;;  %v713_v17 = vpack.c.bf16 %v711_v13, %v710_v9  ;;  %565 = vst [vmem:[#allocation2 + $0x98] sm:$0xff] %v563_v23 }
  0xd8   : > { %v738_v38 = vpack.c.bf16 %v736_v14, %v735_v44  ;;  %590 = vst [vmem:[#allocation2 + $0xa8] sm:$0xff] %v588_v16  ;;  %615 = vst [vmem:[#allocation2 + $0xb8] sm:$0xff] %v613_v27 }
  0xd9   : > { %640 = vst [vmem:[#allocation2 + $0xc8] sm:$0xff] %v638_v30  ;;  %665 = vst [vmem:[#allocation2 + $0xd8] sm:$0xff] %v663_v31 }
  0xda   : > { %690 = vst [vmem:[#allocation2 + $0xe8] sm:$0xff] %v688_v28  ;;  %715 = vst [vmem:[#allocation2 + $0xf8] sm:$0xff] %v713_v17 }
  0xdb   : > { %740 = vst [vmem:[#allocation2 + $0x108] sm:$0xff] %v738_v38 }
  0xdc PF: > { %s3211_s18 = sshll.u32 %s2574_s21, 8  ;;  %v3216_v8 = vld [vmem:[%s3542_s1] sm:$0xff]   ;;  %vm803_vm1 = vcmask 785408   ;;  %v752_v11 = vld [vmem:[%s3543_s2 + $0x10] sm:$0xff]  ;;  %v2586_v42 = vmov 0   ;;  %v753_v41 = vld [vmem:[%s3543_s2 + $0x18] sm:$0xff]  ;;  %v754_v44 = vlaneseq }
  0xdd   : > { %s763_s25 = sshra.s32 %s3211_s18, 4  ;;  %s2032_s26 = sadd.s32 32, %s3211_s18  ;;  %2410 = vmatprep.mubr.msk.bf16.mxu0 %vm803_vm1, %v3216_v8  ;;  %2426 = vmatprep.mubr.msk.bf16.mxu1 %vm803_vm1, %v3216_v8  ;;  %v750_v59 = vld [vmem:[%s3543_s2] sm:$0xff]  ;;  %v751_v45 = vld [vmem:[%s3543_s2 + $0x8] sm:$0xff]  ;;  %v2587_v17 = vmov 0.0   ;;  %vm1714_vm3 = vcmask 7168  }
  0xde   : > { %s1929_s27 = sshll.u32 %s763_s25, 3  ;;  %s914_s28 = sshra.s32 %s2032_s26, 4  ;;  %2557 = vset.pattern.permute.xlu1 %v2586_v42  ;;  %2556 = vset.pattern.permute.xlu0 %v2586_v42  ;;  %v3260_v54 = vld [vmem:[%s3542_s1 + $0x8] sm:$0xff]   ;;  %v755_v16 = vand.u32 127, %v754_v44  ;;  %vm1723_vm4 = vcmask 15360  }
  0xdf   : > { %s1940_s7 = sshll.u32 %s914_s28, 3  ;;  %s3230_s10 = scalar_lea.vmem [#allocation2], %s1929_s27  ;;  %785 = vperm.xlu1 %2557, %v752_v11   ;;  %775 = vperm.xlu0 %2556, %v750_v59  }
  0xe0   : > { %s3234_s11 = scalar_lea.vmem [#allocation2], %s1940_s7  ;;  %s2038_s16 = sadd.s32 64, %s3211_s18  ;;  %vm759_vm2 = vcmp.lt.s32.totalorder %v755_v16, 32 }
  0xe1   : > { %s2044_s17 = sadd.s32 96, %s3211_s18  ;;  %s1028_s19 = sshra.s32 %s2038_s16, 4  ;;  %v3347_v38 = vsel %vm759_vm2, 1.0, %v2587_v17 }
  0xe2   : > { %v767_v43 = vld [vmem:[%s3230_s10] sm:$0xff]  ;;  %v768_v52 = vld [vmem:[%s3230_s10 + $0x8] sm:$0xff]  ;;  %v769_v19 = vld [vmem:[%s3230_s10 + $0x10] sm:$0xff]  ;;  %s1142_s20 = sshra.s32 %s2044_s17, 4  ;;  %s1952_s25 = sshll.u32 %s1028_s19, 3 }
  0xe3   : > { %2398 = vmatprep.subr.bf16.mxu0 %v767_v43  ;;  %v918_v33 = vld [vmem:[%s3234_s11] sm:$0xff]  ;;  %v919_v37 = vld [vmem:[%s3234_s11 + $0x8] sm:$0xff]  ;;  %790 = vperm.xlu1 %2557, %v753_v41   ;;  %v920_v12 = vld [vmem:[%s3234_s11 + $0x10] sm:$0xff]  ;;  %s1964_s26 = sshll.u32 %s1142_s20, 3  ;;  %s3254_s27 = scalar_lea.vmem [#allocation2], %s1952_s25 }
  0xe4   : > { %2399 = vmatpush3.bf16.msra.mxu0 %v767_v43  ;;  %2414 = vmatprep.subr.bf16.mxu1 %v918_v33  ;;  %v770_v24 = vld [vmem:[%s3230_s10 + $0x18] sm:$0xff]  ;;  %v771_v14 = vld [vmem:[%s3230_s10 + $0x20] sm:$0xff]  ;;  %v772_v46 = vld [vmem:[%s3230_s10 + $0x28] sm:$0xff]  ;;  %s3262_s30 = scalar_lea.vmem [#allocation2], %s1964_s26  ;;  %s2050_s7 = sadd.s32 128, %s3211_s18 }
  0xe5   : > { %2415 = vmatpush3.bf16.msra.mxu1 %v918_v33  ;;  %2400 = vmatprep.subr.bf16.mxu0 %v768_v52  ;;  %v921_v13 = vld [vmem:[%s3234_s11 + $0x18] sm:$0xff]  ;;  %v922_v29 = vld [vmem:[%s3234_s11 + $0x20] sm:$0xff]  ;;  %v923_v25 = vld [vmem:[%s3234_s11 + $0x28] sm:$0xff]  ;;  %s2056_s8 = sadd.s32 160, %s3211_s18  ;;  %s1256_s9 = sshra.s32 %s2050_s7, 4 }
  0xe6   : > { %2416 = vmatprep.subr.bf16.mxu1 %v919_v37  ;;  %780 = vperm.xlu0 %2556, %v751_v45   ;;  %v1032_v51 = vld [vmem:[%s3254_s27] sm:$0xff]  ;;  %v1033_v2 = vld [vmem:[%s3254_s27 + $0x8] sm:$0xff]  ;;  %v1034_v21 = vld [vmem:[%s3254_s27 + $0x10] sm:$0xff]  ;;  %s1370_s10 = sshra.s32 %s2056_s8, 4  ;;  %s1976_s11 = sshll.u32 %s1256_s9, 3 }
  0xe7   : > { %v1146_v39 = vld [vmem:[%s3262_s30] sm:$0xff]  ;;  %v1147_v47 = vld [vmem:[%s3262_s30 + $0x8] sm:$0xff]  ;;  %v1148_v50 = vld [vmem:[%s3262_s30 + $0x10] sm:$0xff]  ;;  %s1988_s12 = sshll.u32 %s1370_s10, 3  ;;  %s3285_s13 = scalar_lea.vmem [#allocation2], %s1976_s11 }
  0xe8   : > { %2401 = vmatpush3.bf16.msra.mxu0 %v768_v52  ;;  %v1035_v55 = vld [vmem:[%s3254_s27 + $0x18] sm:$0xff]  ;;  %v1036_v56 = vld [vmem:[%s3254_s27 + $0x20] sm:$0xff]  ;;  %v1037_v62 = vld [vmem:[%s3254_s27 + $0x28] sm:$0xff]  ;;  %s3288_s14 = scalar_lea.vmem [#allocation2], %s1988_s12  ;;  %s2062_s15 = sadd.s32 192, %s3211_s18 }
  0xe9   : > { %2417 = vmatpush3.bf16.msra.mxu1 %v919_v37  ;;  %2402 = vmatprep.subr.bf16.mxu0 %v769_v19  ;;  %v1149_v22 = vld [vmem:[%s3262_s30 + $0x18] sm:$0xff]  ;;  %v1150_v61 = vld [vmem:[%s3262_s30 + $0x20] sm:$0xff]  ;;  %v1151_v60 = vld [vmem:[%s3262_s30 + $0x28] sm:$0xff]  ;;  %s2068_s16 = sadd.s32 224, %s3211_s18  ;;  %s1484_s17 = sshra.s32 %s2062_s15, 4 }
  0xea   : > { %2418 = vmatprep.subr.bf16.mxu1 %v920_v12  ;;  %v1260_v63 = vld [vmem:[%s3285_s13] sm:$0xff]  ;;  %v1261_v4 = vld [vmem:[%s3285_s13 + $0x8] sm:$0xff]  ;;  %v1262_v49 = vld [vmem:[%s3285_s13 + $0x10] sm:$0xff]  ;;  %s1598_s19 = sshra.s32 %s2068_s16, 4  ;;  %s2000_s20 = sshll.u32 %s1484_s17, 3 }
  0xeb   : > { %v1374_v3 = vld [vmem:[%s3288_s14] sm:$0xff]  ;;  %v1375_v15 = vld [vmem:[%s3288_s14 + $0x8] sm:$0xff]  ;;  %v1376_v32 = vld [vmem:[%s3288_s14 + $0x10] sm:$0xff]  ;;  %s2012_s25 = sshll.u32 %s1598_s19, 3  ;;  %s3311_s18 = scalar_lea.vmem [#allocation2], %s2000_s20 }
  0xec   : > { %2403 = vmatpush3.bf16.msra.mxu0 %v769_v19  ;;  %v1263_v53 = vld [vmem:[%s3285_s13 + $0x18] sm:$0xff]  ;;  %v1264_v20 = vld [vmem:[%s3285_s13 + $0x20] sm:$0xff]  ;;  %v1265_v57 = vld [vmem:[%s3285_s13 + $0x28] sm:$0xff]  ;;  %s3314_s26 = scalar_lea.vmem [#allocation2], %s2012_s25 }
  0xed   : > { %2419 = vmatpush3.bf16.msra.mxu1 %v920_v12  ;;  %2404 = vmatprep.subr.bf16.mxu0 %v770_v24  ;;  %v1377_v48 = vld [vmem:[%s3288_s14 + $0x18] sm:$0xff]  ;;  %v1378_v40 = vld [vmem:[%s3288_s14 + $0x20] sm:$0xff]  ;;  %v1379_v6 = vld [vmem:[%s3288_s14 + $0x28] sm:$0xff] }
  0xee   : > { %2420 = vmatprep.subr.bf16.mxu1 %v921_v13  ;;  %v1488_v26 = vld [vmem:[%s3311_s18] sm:$0xff]  ;;  %v1489_v7 = vld [vmem:[%s3311_s18 + $0x8] sm:$0xff]  ;;  %v1490_v10 = vld [vmem:[%s3311_s18 + $0x10] sm:$0xff] }
  0xef   : > { %v1602_v0 = vld [vmem:[%s3314_s26] sm:$0xff]  ;;  %v1603_v58 = vld [vmem:[%s3314_s26 + $0x8] sm:$0xff]  ;;  %v1604_v34 = vld [vmem:[%s3314_s26 + $0x10] sm:$0xff] }
  0xf0   : > { %2405 = vmatpush3.bf16.msra.mxu0 %v770_v24  ;;  %v1491_v18 = vld [vmem:[%s3311_s18 + $0x18] sm:$0xff]  ;;  %v1492_v36 = vld [vmem:[%s3311_s18 + $0x20] sm:$0xff]  ;;  %v1493_v1 = vld [vmem:[%s3311_s18 + $0x28] sm:$0xff] }
  0xf1   : > { %2421 = vmatpush3.bf16.msra.mxu1 %v921_v13  ;;  %2406 = vmatprep.subr.bf16.mxu0 %v771_v14  ;;  %v1605_v35 = vld [vmem:[%s3314_s26 + $0x18] sm:$0xff]  ;;  %v1606_v5 = vld [vmem:[%s3314_s26 + $0x20] sm:$0xff]  ;;  %v1607_v9 = vld [vmem:[%s3314_s26 + $0x28] sm:$0xff] }
  0xf2   : > { %2422 = vmatprep.subr.bf16.mxu1 %v922_v29 }
  0xf4   : > { %2407 = vmatpush3.bf16.msra.mxu0 %v771_v14 }
  0xf5   : > { %2423 = vmatpush3.bf16.msra.mxu1 %v922_v29  ;;  %2408 = vmatprep.subr.bf16.mxu0 %v772_v46 }
  0xf6   : > { %2424 = vmatprep.subr.bf16.mxu1 %v923_v25 }
  0xf8   : > { %2409 = vmatpush3.bf16.msra.mxu0 %v772_v46 }
  0xf9   : > { %2425 = vmatpush3.bf16.msra.mxu1 %v923_v25  ;;  %2430 = vmatprep.subr.bf16.mxu0 %v1032_v51 }
  0xfa   : > { %2446 = vmatprep.subr.bf16.mxu1 %v1146_v39 }
  0xfb   : > { %2411 = vmatmul.mubr.msk.bf16.vlgmr.msra.gmra.mrb[0].mxu0 %vm803_vm1, %v3260_v54 }
  0xfc   : > { %2427 = vmatmul.mubr.msk.bf16.vlgmr.msra.gmra.mrb[0].mxu1 %vm803_vm1, %v3260_v54  ;;  %2431 = vmatpush3.bf16.msra.mxu0 %v1032_v51 }
  0xfd   : > { %2447 = vmatpush3.bf16.msra.mxu1 %v1146_v39  ;;  %2432 = vmatprep.subr.bf16.mxu0 %v1033_v2 }
  0xfe   : > { %2448 = vmatprep.subr.bf16.mxu1 %v1147_v47  ;;  %2442 = vmatprep.mubr.msk.bf16.mxu0 %vm803_vm1, %v3216_v8 }
  0xff   : > { %2458 = vmatprep.mubr.msk.bf16.mxu1 %vm803_vm1, %v3216_v8 }
 0x100   : > { %2433 = vmatpush3.bf16.msra.mxu0 %v1033_v2 }
 0x101   : > { %2449 = vmatpush3.bf16.msra.mxu1 %v1147_v47  ;;  %2434 = vmatprep.subr.bf16.mxu0 %v1034_v21 }
 0x102   : > { %2450 = vmatprep.subr.bf16.mxu1 %v1148_v50 }
 0x104   : > { %2435 = vmatpush3.bf16.msra.mxu0 %v1034_v21 }
 0x105   : > { %2451 = vmatpush3.bf16.msra.mxu1 %v1148_v50  ;;  %2436 = vmatprep.subr.bf16.mxu0 %v1035_v55 }
 0x106   : > { %2452 = vmatprep.subr.bf16.mxu1 %v1149_v22 }
 0x108   : > { %2437 = vmatpush3.bf16.msra.mxu0 %v1035_v55 }
 0x109   : > { %2453 = vmatpush3.bf16.msra.mxu1 %v1149_v22  ;;  %2438 = vmatprep.subr.bf16.mxu0 %v1036_v56 }
 0x10a   : > { %2454 = vmatprep.subr.bf16.mxu1 %v1150_v61 }
 0x10c   : > { %2439 = vmatpush3.bf16.msra.mxu0 %v1036_v56 }
 0x10d   : > { %2455 = vmatpush3.bf16.msra.mxu1 %v1150_v61  ;;  %2440 = vmatprep.subr.bf16.mxu0 %v1037_v62 }
 0x10e   : > { %2456 = vmatprep.subr.bf16.mxu1 %v1151_v60 }
 0x110   : > { %2441 = vmatpush3.bf16.msra.mxu0 %v1037_v62 }
 0x111   : > { %2457 = vmatpush3.bf16.msra.mxu1 %v1151_v60  ;;  %2462 = vmatprep.subr.bf16.mxu0 %v1260_v63 }
 0x112   : > { %2478 = vmatprep.subr.bf16.mxu1 %v1374_v3 }
 0x113   : > { %2443 = vmatmul.mubr.msk.bf16.vlgmr.msra.gmra.mrb[4].mxu0 %vm803_vm1, %v3260_v54 }
 0x114   : > { %2459 = vmatmul.mubr.msk.bf16.vlgmr.msra.gmra.mrb[4].mxu1 %vm803_vm1, %v3260_v54  ;;  %2463 = vmatpush3.bf16.msra.mxu0 %v1260_v63 }
 0x115   : > { %2479 = vmatpush3.bf16.msra.mxu1 %v1374_v3  ;;  %2464 = vmatprep.subr.bf16.mxu0 %v1261_v4 }
 0x116   : > { %2480 = vmatprep.subr.bf16.mxu1 %v1375_v15  ;;  %2474 = vmatprep.mubr.msk.bf16.mxu0 %vm803_vm1, %v3216_v8 }
 0x117   : > { %2490 = vmatprep.mubr.msk.bf16.mxu1 %vm803_vm1, %v3216_v8 }
 0x118   : > { %2465 = vmatpush3.bf16.msra.mxu0 %v1261_v4 }
 0x119   : > { %2481 = vmatpush3.bf16.msra.mxu1 %v1375_v15  ;;  %2466 = vmatprep.subr.bf16.mxu0 %v1262_v49 }
 0x11a   : > { %2482 = vmatprep.subr.bf16.mxu1 %v1376_v32 }
 0x11c   : > { %2467 = vmatpush3.bf16.msra.mxu0 %v1262_v49 }
 0x11d   : > { %2483 = vmatpush3.bf16.msra.mxu1 %v1376_v32  ;;  %2468 = vmatprep.subr.bf16.mxu0 %v1263_v53 }
 0x11e   : > { %2484 = vmatprep.subr.bf16.mxu1 %v1377_v48 }
 0x120   : > { %2469 = vmatpush3.bf16.msra.mxu0 %v1263_v53 }
 0x121   : > { %2485 = vmatpush3.bf16.msra.mxu1 %v1377_v48  ;;  %2470 = vmatprep.subr.bf16.mxu0 %v1264_v20 }
 0x122   : > { %2486 = vmatprep.subr.bf16.mxu1 %v1378_v40 }
 0x124   : > { %2471 = vmatpush3.bf16.msra.mxu0 %v1264_v20 }
 0x125   : > { %2487 = vmatpush3.bf16.msra.mxu1 %v1378_v40  ;;  %2472 = vmatprep.subr.bf16.mxu0 %v1265_v57 }
 0x126   : > { %2488 = vmatprep.subr.bf16.mxu1 %v1379_v6 }
 0x128   : > { %2473 = vmatpush3.bf16.msra.mxu0 %v1265_v57 }
 0x129   : > { %2489 = vmatpush3.bf16.msra.mxu1 %v1379_v6  ;;  %2494 = vmatprep.subr.bf16.mxu0 %v1488_v26 }
 0x12a   : > { %2510 = vmatprep.subr.bf16.mxu1 %v1602_v0 }
 0x12b   : > { %2475 = vmatmul.mubr.msk.bf16.vlgmr.msra.gmra.mrb[8].mxu0 %vm803_vm1, %v3260_v54 }
 0x12c   : > { %2491 = vmatmul.mubr.msk.bf16.vlgmr.msra.gmra.mrb[8].mxu1 %vm803_vm1, %v3260_v54  ;;  %2495 = vmatpush3.bf16.msra.mxu0 %v1488_v26 }
 0x12d   : > { %2511 = vmatpush3.bf16.msra.mxu1 %v1602_v0  ;;  %2496 = vmatprep.subr.bf16.mxu0 %v1489_v7 }
 0x12e   : > { %2512 = vmatprep.subr.bf16.mxu1 %v1603_v58  ;;  %2506 = vmatprep.mubr.msk.bf16.mxu0 %vm803_vm1, %v3216_v8 }
 0x12f   : > { %2522 = vmatprep.mubr.msk.bf16.mxu1 %vm803_vm1, %v3216_v8 }
 0x130   : > { %2497 = vmatpush3.bf16.msra.mxu0 %v1489_v7 }
 0x131   : > { %2513 = vmatpush3.bf16.msra.mxu1 %v1603_v58  ;;  %2498 = vmatprep.subr.bf16.mxu0 %v1490_v10 }
 0x132   : > { %2514 = vmatprep.subr.bf16.mxu1 %v1604_v34 }
 0x134   : > { %2499 = vmatpush3.bf16.msra.mxu0 %v1490_v10 }
 0x135   : > { %2515 = vmatpush3.bf16.msra.mxu1 %v1604_v34  ;;  %2500 = vmatprep.subr.bf16.mxu0 %v1491_v18 }
 0x136   : > { %2516 = vmatprep.subr.bf16.mxu1 %v1605_v35 }
 0x138   : > { %2501 = vmatpush3.bf16.msra.mxu0 %v1491_v18 }
 0x139   : > { %2517 = vmatpush3.bf16.msra.mxu1 %v1605_v35  ;;  %2502 = vmatprep.subr.bf16.mxu0 %v1492_v36 }
 0x13a   : > { %2518 = vmatprep.subr.bf16.mxu1 %v1606_v5 }
 0x13c   : > { %2503 = vmatpush3.bf16.msra.mxu0 %v1492_v36 }
 0x13d   : > { %2519 = vmatpush3.bf16.msra.mxu1 %v1606_v5  ;;  %2504 = vmatprep.subr.bf16.mxu0 %v1493_v1 }
 0x13e   : > { %2520 = vmatprep.subr.bf16.mxu1 %v1607_v9 }
 0x140   : > { %2505 = vmatpush3.bf16.msra.mxu0 %v1493_v1 }
 0x141   : > { %2521 = vmatpush3.bf16.msra.mxu1 %v1607_v9 }
 0x143   : > { %2507 = vmatmul.mubr.msk.bf16.vlgmr.msra.gmra.mrb[12].mxu0 %vm803_vm1, %v3260_v54 }
 0x144   : > { %2523 = vmatmul.mubr.msk.bf16.vlgmr.msra.gmra.mrb[12].mxu1 %vm803_vm1, %v3260_v54 }
 0x15e   : > { %v3339_v23 = vpop.permute.xlu1 %785  ;;  %v3341_v27 = vpop.permute.xlu0 %775 }
 0x162   : > { %v3343_v30 = vpop.permute.xlu1 %790 }
 0x165   : > { %v3345_v28 = vpop.permute.xlu0 %780 }
 0x1ce   : > { %v2412_v31 = vpop.f32.mrb[0].mxu0 }
 0x1cf   : > { %v853_v8 = vadd.f32 %v2412_v31, %v3339_v23  ;;  %v844_v11 = vpop.f32.mrb[1].mxu0  ;;  %v2428_v42 = vpop.f32.mrb[0].mxu1 }
 0x1d0   : > { %v967_v59 = vadd.f32 %v2428_v42, %v3339_v23  ;;  %v2413_v43 = vpop.f32.mrb[2].mxu0  ;;  %v958_v52 = vpop.f32.mrb[1].mxu1  ;;  %v845_v33 = vadd.f32 %v844_v11, %v3341_v27 }
 0x1d1   : > { %v856_v37 = vadd.f32 %v2413_v43, %v3343_v30  ;;  %v847_v41 = vpop.f32.mrb[3].mxu0  ;;  %v2429_v45 = vpop.f32.mrb[2].mxu1  ;;  %v881_v19 = vmul.f32 %v3347_v38, %v853_v8  ;;  %v959_v46 = vadd.f32 %v958_v52, %v3341_v27 }
 0x1d2   : > { %v848_v12 = vadd.f32 %v847_v41, %v3345_v28  ;;  %v970_v24 = vadd.f32 %v2429_v45, %v3343_v30  ;;  %v961_v13 = vpop.f32.mrb[3].mxu1  ;;  %v996_v14 = vmul.f32 %v3347_v38, %v967_v59  ;;  %v879_v2 = vmul.f32 %v3347_v38, %v845_v33 }
 0x1d3   : > { %v2209_v29 = vpack.c.bf16 %v856_v37, %v853_v8  ;;  %v962_v25 = vadd.f32 %v961_v13, %v3345_v28  ;;  %887 = vadd.xlane.f32.xlu0 %v881_v19  ;;  %v897_v47 = vmul.f32 %v881_v19, %v853_v8  ;;  %v882_v21 = vmul.f32 %v3347_v38, %v856_v37 }
 0x1d4   : > { %v2204_v51 = vpack.c.bf16 %v848_v12, %v845_v33  ;;  %v2219_v54 = vpack.c.bf16 %v970_v24, %v967_v59  ;;  %1002 = vadd.xlane.f32.xlu1 %v996_v14  ;;  %v994_v50 = vmul.f32 %v3347_v38, %v959_v46  ;;  %v997_v55 = vmul.f32 %v3347_v38, %v970_v24 }
 0x1d5   : > { %2312 = vst [vmem:[%s2647_s29 + $0x8] sm:$0xff] %v2209_v29   ;;  %v2214_v39 = vpack.c.bf16 %v962_v25, %v959_v46  ;;  %v880_v22 = vmul.f32 %v3347_v38, %v848_v12  ;;  %v898_v56 = vmul.f32 %v882_v21, %v856_v37  ;;  %v895_v61 = vmul.f32 %v879_v2, %v845_v33 }
 0x1d6   : > { %2205 = vst [vmem:[%s2647_s29] sm:$0xff] %v2204_v51   ;;  %2315 = vst [vmem:[%s2647_s29 + $0x18] sm:$0xff] %v2219_v54   ;;  %v995_v62 = vmul.f32 %v3347_v38, %v962_v25  ;;  %v1012_v63 = vmul.f32 %v996_v14, %v967_v59  ;;  %v1010_v57 = vmul.f32 %v994_v50, %v959_v46 }
 0x1d7   : > { %2314 = vst [vmem:[%s2647_s29 + $0x10] sm:$0xff] %v2214_v39   ;;  %883 = vadd.xlane.f32.xlu0 %v879_v2  ;;  %v896_v40 = vmul.f32 %v880_v22, %v848_v12  ;;  %v1013_v1 = vmul.f32 %v997_v55, %v970_v24 }
 0x1d8   : > { %903 = vadd.xlane.f32.xlu1 %v897_v47  ;;  %v1011_v44 = vmul.f32 %v995_v62, %v962_v25 }
 0x1db   : > { %889 = vadd.xlane.f32.xlu0 %v882_v21 }
 0x1dc   : > { %998 = vadd.xlane.f32.xlu1 %v994_v50 }
 0x1df   : > { %1004 = vadd.xlane.f32.xlu0 %v997_v55 }
 0x1e0   : > { %885 = vadd.xlane.f32.xlu1 %v880_v22 }
 0x1e3   : > { %905 = vadd.xlane.f32.xlu0 %v898_v56 }
 0x1e4   : > { %899 = vadd.xlane.f32.xlu1 %v895_v61 }
 0x1e6   : > { %v2444_v60 = vpop.f32.mrb[4].mxu0 }
 0x1e7   : > { %v1072_v3 = vpop.f32.mrb[5].mxu0  ;;  %v2460_v4 = vpop.f32.mrb[4].mxu1  ;;  %1000 = vadd.xlane.f32.xlu0 %v995_v62  ;;  %v1081_v32 = vadd.f32 %v2444_v60, %v3339_v23 }
 0x1e8   : > { %v2445_v15 = vpop.f32.mrb[6].mxu0  ;;  %v1186_v49 = vpop.f32.mrb[5].mxu1  ;;  %1018 = vadd.xlane.f32.xlu1 %v1012_v63  ;;  %v1073_v6 = vadd.f32 %v1072_v3, %v3341_v27  ;;  %v3373_v26 = vadd.f32 %v2460_v4, %v3339_v23 }
 0x1e9   : > { %v1084_v53 = vadd.f32 %v2445_v15, %v3343_v30  ;;  %v1075_v48 = vpop.f32.mrb[7].mxu0  ;;  %v2461_v20 = vpop.f32.mrb[6].mxu1  ;;  %v3382_v34 = vadd.f32 %v1186_v49, %v3341_v27  ;;  %v1110_v9 = vmul.f32 %v3347_v38, %v1081_v32 }
 0x1ea   : > { %v3376_v0 = vadd.f32 %v1075_v48, %v3345_v28  ;;  %v3379_v7 = vadd.f32 %v2461_v20, %v3343_v30  ;;  %v1189_v58 = vpop.f32.mrb[7].mxu1  ;;  %v1108_v16 = vmul.f32 %v3347_v38, %v1073_v6  ;;  %v1224_v17 = vmul.f32 %v3347_v38, %v3373_v26 }
 0x1eb   : > { %v2229_v10 = vpack.c.bf16 %v1084_v53, %v1081_v32  ;;  %v3385_v18 = vadd.f32 %v1189_v58, %v3345_v28  ;;  %901 = vadd.xlane.f32.xlu0 %v896_v40  ;;  %v1111_v31 = vmul.f32 %v3347_v38, %v1084_v53  ;;  %v1126_v11 = vmul.f32 %v1110_v9, %v1081_v32 }
 0x1ec   : > { %v2224_v35 = vpack.c.bf16 %v3376_v0, %v1073_v6  ;;  %v2239_v36 = vpack.c.bf16 %v3379_v7, %v3373_v26  ;;  %1014 = vadd.xlane.f32.xlu1 %v1010_v57  ;;  %v1109_v8 = vmul.f32 %v3347_v38, %v3376_v0  ;;  %v1225_v42 = vmul.f32 %v3347_v38, %v3379_v7 }
 0x1ed   : > { %2318 = vst [vmem:[%s2647_s29 + $0x28] sm:$0xff] %v2229_v10   ;;  %v2234_v5 = vpack.c.bf16 %v3385_v18, %v3382_v34  ;;  %v1222_v43 = vmul.f32 %v3347_v38, %v3382_v34  ;;  %v1127_v13 = vmul.f32 %v1111_v31, %v1084_v53  ;;  %v1124_v14 = vmul.f32 %v1108_v16, %v1073_v6 }
 0x1ee   : > { %2317 = vst [vmem:[%s2647_s29 + $0x20] sm:$0xff] %v2224_v35   ;;  %2321 = vst [vmem:[%s2647_s29 + $0x38] sm:$0xff] %v2239_v36   ;;  %v1223_v22 = vmul.f32 %v3347_v38, %v3385_v18  ;;  %v1240_v56 = vmul.f32 %v1224_v17, %v3373_v26  ;;  %v1125_v61 = vmul.f32 %v1109_v8, %v3376_v0 }
 0x1ef   : > { %2320 = vst [vmem:[%s2647_s29 + $0x30] sm:$0xff] %v2234_v5   ;;  %1020 = vadd.xlane.f32.xlu0 %v1013_v1  ;;  %v1238_v62 = vmul.f32 %v1222_v43, %v3382_v34  ;;  %v1241_v60 = vmul.f32 %v1225_v42, %v3379_v7 }
 0x1f0   : > { %1116 = vadd.xlane.f32.xlu1 %v1110_v9  ;;  %v1239_v3 = vmul.f32 %v1223_v22, %v3385_v18 }
 0x1f3   : > { %1016 = vadd.xlane.f32.xlu0 %v1011_v44 }
 0x1f4   : > { %1112 = vadd.xlane.f32.xlu1 %v1108_v16 }
 0x1f7   : > { %1118 = vadd.xlane.f32.xlu0 %v1111_v31 }
 0x1f8   : > { %1230 = vadd.xlane.f32.xlu1 %v1224_v17 }
 0x1fb   : > { %1114 = vadd.xlane.f32.xlu0 %v1109_v8 }
 0x1fc   : > { %1132 = vadd.xlane.f32.xlu1 %v1126_v11 }
 0x1fe   : > { %v2476_v59 = vpop.f32.mrb[8].mxu0 }
 0x1ff   : > { %v1300_v52 = vpop.f32.mrb[9].mxu0  ;;  %v2492_v33 = vpop.f32.mrb[8].mxu1  ;;  %1232 = vadd.xlane.f32.xlu0 %v1225_v42  ;;  %v1309_v45 = vadd.f32 %v2476_v59, %v3339_v23 }
 0x200   : > { %v2477_v37 = vpop.f32.mrb[10].mxu0  ;;  %v1414_v41 = vpop.f32.mrb[9].mxu1  ;;  %1226 = vadd.xlane.f32.xlu1 %v1222_v43  ;;  %v3412_v29 = vadd.f32 %v1300_v52, %v3341_v27  ;;  %v3415_v46 = vadd.f32 %v2492_v33, %v3339_v23 }
 0x201   : > { %v3409_v19 = vadd.f32 %v2477_v37, %v3343_v30  ;;  %v1303_v12 = vpop.f32.mrb[11].mxu0  ;;  %v2493_v24 = vpop.f32.mrb[10].mxu1  ;;  %v3425_v2 = vadd.f32 %v1414_v41, %v3341_v27  ;;  %v1338_v63 = vmul.f32 %v3347_v38, %v1309_v45 }
 0x202   : > { %v3418_v25 = vadd.f32 %v1303_v12, %v3345_v28  ;;  %v3421_v51 = vadd.f32 %v2493_v24, %v3343_v30  ;;  %v1417_v54 = vpop.f32.mrb[11].mxu1  ;;  %v1336_v4 = vmul.f32 %v3347_v38, %v3412_v29  ;;  %v1452_v32 = vmul.f32 %v3347_v38, %v3415_v46 }
 0x203   : > { %v2249_v39 = vpack.c.bf16 %v3409_v19, %v1309_v45  ;;  %v3428_v47 = vadd.f32 %v1417_v54, %v3345_v28  ;;  %1134 = vadd.xlane.f32.xlu0 %v1127_v13  ;;  %v1339_v15 = vmul.f32 %v3347_v38, %v3409_v19  ;;  %v1354_v58 = vmul.f32 %v1338_v63, %v1309_v45 }
 0x204   : > { %v2244_v21 = vpack.c.bf16 %v3418_v25, %v3412_v29  ;;  %v2259_v50 = vpack.c.bf16 %v3421_v51, %v3415_v46  ;;  %1128 = vadd.xlane.f32.xlu1 %v1124_v14  ;;  %v1337_v7 = vmul.f32 %v3347_v38, %v3418_v25  ;;  %v1468_v8 = vmul.f32 %v1452_v32, %v3415_v46 }
 0x205   : > { %2324 = vst [vmem:[%s2647_s29 + $0x48] sm:$0xff] %v2249_v39   ;;  %v2254_v55 = vpack.c.bf16 %v3428_v47, %v3425_v2  ;;  %v1451_v17 = vmul.f32 %v3347_v38, %v3428_v47 }
 0x206   : > { %2323 = vst [vmem:[%s2647_s29 + $0x40] sm:$0xff] %v2244_v21   ;;  %2327 = vst [vmem:[%s2647_s29 + $0x58] sm:$0xff] %v2259_v50   ;;  %v1353_v11 = vmul.f32 %v1337_v7, %v3418_v25 }
 0x207   : > { %2326 = vst [vmem:[%s2647_s29 + $0x50] sm:$0xff] %v2254_v55   ;;  %1228 = vadd.xlane.f32.xlu0 %v1223_v22  ;;  %v1467_v52 = vmul.f32 %v1451_v17, %v3428_v47 }
 0x208   : > { %1246 = vadd.xlane.f32.xlu1 %v1240_v56 }
 0x20b   : > { %1130 = vadd.xlane.f32.xlu0 %v1125_v61 }
 0x20c   : > { %1242 = vadd.xlane.f32.xlu1 %v1238_v62 }
 0x20f   : > { %1248 = vadd.xlane.f32.xlu0 %v1241_v60 }
 0x210   : > { %1344 = vadd.xlane.f32.xlu1 %v1338_v63 }
 0x213   : > { %1244 = vadd.xlane.f32.xlu0 %v1239_v3 }
 0x214   : > { %1340 = vadd.xlane.f32.xlu1 %v1336_v4 }
 0x216   : > { %v2508_v49 = vpop.f32.mrb[12].mxu0 }
 0x217   : > { %v1528_v53 = vpop.f32.mrb[13].mxu0  ;;  %v2524_v48 = vpop.f32.mrb[12].mxu1  ;;  %1346 = vadd.xlane.f32.xlu0 %v1339_v15  ;;  %v1537_v57 = vadd.f32 %v2508_v49, %v3339_v23 }
 0x218   : > { %v2509_v20 = vpop.f32.mrb[14].mxu0  ;;  %v1642_v40 = vpop.f32.mrb[13].mxu1  ;;  %1458 = vadd.xlane.f32.xlu1 %v1452_v32  ;;  %v1529_v10 = vadd.f32 %v1528_v53, %v3341_v27  ;;  %v1651_v34 = vadd.f32 %v2524_v48, %v3339_v23  ;;  %v1453_v23 = vmul.f32 %v3347_v38, %v3421_v51 }
 0x219   : > { %v1540_v6 = vadd.f32 %v2509_v20, %v3343_v30  ;;  %v1531_v26 = vpop.f32.mrb[15].mxu0  ;;  %v2525_v0 = vpop.f32.mrb[14].mxu1  ;;  %v1643_v1 = vadd.f32 %v1642_v40, %v3341_v27  ;;  %v1355_v27 = vmul.f32 %v1339_v15, %v3409_v19  ;;  %v1566_v43 = vmul.f32 %v3347_v38, %v1537_v57 }
 0x21a   : > { %v1532_v18 = vadd.f32 %v1531_v26, %v3345_v28  ;;  %v3462_v35 = vadd.f32 %v2525_v0, %v3343_v30  ;;  %v1645_v36 = vpop.f32.mrb[15].mxu1  ;;  %v1450_v30 = vmul.f32 %v3347_v38, %v3425_v2  ;;  %v1469_v59 = vmul.f32 %v1453_v23, %v3421_v51 }
 0x21b   : > { %v2269_v5 = vpack.c.bf16 %v1540_v6, %v1537_v57  ;;  %v1646_v9 = vadd.f32 %v1645_v36, %v3345_v28  ;;  %1342 = vadd.xlane.f32.xlu0 %v1337_v7  ;;  %v1352_v28 = vmul.f32 %v1336_v4, %v3412_v29  ;;  %v1564_v33 = vmul.f32 %v3347_v38, %v1529_v10 }
 0x21c   : > { %v2264_v44 = vpack.c.bf16 %v1532_v18, %v1529_v10  ;;  %v2279_v16 = vpack.c.bf16 %v3462_v35, %v1651_v34  ;;  %1360 = vadd.xlane.f32.xlu1 %v1354_v58  ;;  %v1466_v42 = vmul.f32 %v1450_v30, %v3425_v2  ;;  %v1567_v37 = vmul.f32 %v3347_v38, %v1540_v6 }
 0x21d   : > { %2330 = vst [vmem:[%s2647_s29 + $0x68] sm:$0xff] %v2269_v5   ;;  %v2274_v31 = vpack.c.bf16 %v1646_v9, %v1643_v1  ;;  %v1680_v41 = vmul.f32 %v3347_v38, %v1651_v34  ;;  %v1565_v45 = vmul.f32 %v3347_v38, %v1532_v18  ;;  %v1582_v19 = vmul.f32 %v1566_v43, %v1537_v57 }
 0x21e   : > { %2329 = vst [vmem:[%s2647_s29 + $0x60] sm:$0xff] %v2264_v44   ;;  %2333 = vst [vmem:[%s2647_s29 + $0x78] sm:$0xff] %v2279_v16   ;;  %v1681_v12 = vmul.f32 %v3347_v38, %v3462_v35  ;;  %v1678_v24 = vmul.f32 %v3347_v38, %v1643_v1  ;;  %v1583_v13 = vmul.f32 %v1567_v37, %v1540_v6 }
 0x21f   : > { %2332 = vst [vmem:[%s2647_s29 + $0x70] sm:$0xff] %v2274_v31   ;;  %1460 = vadd.xlane.f32.xlu0 %v1453_v23  ;;  %v1580_v14 = vmul.f32 %v1564_v33, %v1529_v10  ;;  %v1679_v29 = vmul.f32 %v3347_v38, %v1646_v9  ;;  %v1581_v25 = vmul.f32 %v1565_v45, %v1532_v18 }
 0x220   : > { %1454 = vadd.xlane.f32.xlu1 %v1450_v30  ;;  %v1694_v46 = vmul.f32 %v1678_v24, %v1643_v1  ;;  %v1696_v51 = vmul.f32 %v1680_v41, %v1651_v34  ;;  %v1697_v39 = vmul.f32 %v1681_v12, %v3462_v35 }
 0x221   : > { %v1695_v54 = vmul.f32 %v1679_v29, %v1646_v9 }
 0x223   : > { %1362 = vadd.xlane.f32.xlu0 %v1355_v27 }
 0x224   : > { %1356 = vadd.xlane.f32.xlu1 %v1352_v28 }
 0x227   : > { %1456 = vadd.xlane.f32.xlu0 %v1451_v17 }
 0x228   : > { %1474 = vadd.xlane.f32.xlu1 %v1468_v8 }
 0x22b   : > { %1358 = vadd.xlane.f32.xlu0 %v1353_v11 }
 0x22c   : > { %1470 = vadd.xlane.f32.xlu1 %v1466_v42 }
 0x22f   : > { %1476 = vadd.xlane.f32.xlu0 %v1469_v59 }
 0x230   : > { %1572 = vadd.xlane.f32.xlu1 %v1566_v43 }
 0x233   : > { %1472 = vadd.xlane.f32.xlu0 %v1467_v52 }
 0x234   : > { %1568 = vadd.xlane.f32.xlu1 %v1564_v33 }
 0x237   : > { %1574 = vadd.xlane.f32.xlu0 %v1567_v37 }
 0x238   : > { %1686 = vadd.xlane.f32.xlu1 %v1680_v41 }
 0x23b   : > { %1570 = vadd.xlane.f32.xlu0 %v1565_v45 }
 0x23c   : > { %1588 = vadd.xlane.f32.xlu1 %v1582_v19 }
 0x23f   : > { %1688 = vadd.xlane.f32.xlu0 %v1681_v12 }
 0x240   : > { %1682 = vadd.xlane.f32.xlu1 %v1678_v24 }
 0x243   : > { %1590 = vadd.xlane.f32.xlu0 %v1583_v13 }
 0x244   : > { %1584 = vadd.xlane.f32.xlu1 %v1580_v14 }
 0x247   : > { %1684 = vadd.xlane.f32.xlu0 %v1679_v29 }
 0x248   : > { %1698 = vadd.xlane.f32.xlu1 %v1694_v46 }
 0x24b   : > { %1586 = vadd.xlane.f32.xlu0 %v1581_v25 }
 0x24c   : > { %1702 = vadd.xlane.f32.xlu1 %v1696_v51 }
 0x24f   : > { %1700 = vadd.xlane.f32.xlu0 %v1695_v54 }
 0x253   : > { %1704 = vadd.xlane.f32.xlu0 %v1697_v39 }
 0x260   : > { %v888_v2 = vpop.xlane.xlu0 %887 }
 0x261   : > { %v1003_v47 = vpop.xlane.xlu1 %1002 }
 0x262   : > { %v1008_v21 = vadd.f32 %v1003_v47, %v888_v2 }
 0x264   : > { %v884_v50 = vpop.xlane.xlu0 %883 }
 0x265   : > { %v904_v55 = vpop.xlane.xlu1 %903 }
 0x268   : > { %v890_v22 = vpop.xlane.xlu0 %889 }
 0x269   : > { %v999_v56 = vpop.xlane.xlu1 %998 }
 0x26a   : > { %v1006_v38 = vadd.f32 %v999_v56, %v884_v50 }
 0x26c   : > { %v1005_v61 = vpop.xlane.xlu0 %1004 }
 0x26d   : > { %v1009_v62 = vadd.f32 %v1005_v61, %v890_v22  ;;  %v886_v60 = vpop.xlane.xlu1 %885 }
 0x270   : > { %v906_v63 = vpop.xlane.xlu0 %905 }
 0x271   : > { %v900_v3 = vpop.xlane.xlu1 %899 }
 0x274   : > { %v1001_v4 = vpop.xlane.xlu0 %1000 }
 0x275   : > { %v1007_v15 = vadd.f32 %v1001_v4, %v886_v60  ;;  %v1019_v49 = vpop.xlane.xlu1 %1018 }
 0x276   : > { %v1024_v32 = vadd.f32 %v1019_v49, %v904_v55 }
 0x278   : > { %v902_v53 = vpop.xlane.xlu0 %901 }
 0x279   : > { %v1015_v48 = vpop.xlane.xlu1 %1014 }
 0x27a   : > { %v1022_v20 = vadd.f32 %v1015_v48, %v900_v3 }
 0x27c   : > { %v1021_v40 = vpop.xlane.xlu0 %1020 }
 0x27d   : > { %v1025_v57 = vadd.f32 %v1021_v40, %v906_v63  ;;  %v1117_v6 = vpop.xlane.xlu1 %1116 }
 0x27e   : > { %v1122_v26 = vadd.f32 %v1117_v6, %v1008_v21 }
 0x280   : > { %v1017_v0 = vpop.xlane.xlu0 %1016 }
 0x281   : > { %v1023_v7 = vadd.f32 %v1017_v0, %v902_v53  ;;  %v1113_v58 = vpop.xlane.xlu1 %1112 }
 0x282   : > { %v1120_v10 = vadd.f32 %v1113_v58, %v1006_v38 }
 0x284   : > { %v1119_v34 = vpop.xlane.xlu0 %1118 }
 0x285   : > { %v1123_v18 = vadd.f32 %v1119_v34, %v1009_v62  ;;  %v1231_v35 = vpop.xlane.xlu1 %1230 }
 0x286   : > { %v1236_v36 = vadd.f32 %v1231_v35, %v1122_v26 }
 0x288   : > { %v1115_v5 = vpop.xlane.xlu0 %1114 }
 0x289   : > { %v1121_v1 = vadd.f32 %v1115_v5, %v1007_v15  ;;  %v1133_v9 = vpop.xlane.xlu1 %1132  ;;  %v1710_v5 = vld [vmem:[%s3547_s6] sm:$0xff] }
 0x28a   : > { %v1138_v44 = vadd.f32 %v1133_v9, %v1024_v32 }
 0x28c   : > { %v1233_v16 = vpop.xlane.xlu0 %1232 }
 0x28d   : > { %v3494_v31 = vadd.f32 %v1233_v16, %v1123_v18  ;;  %v1227_v23 = vpop.xlane.xlu1 %1226 }
 0x28e   : > { %v1234_v30 = vadd.f32 %v1227_v23, %v1120_v10 }
 0x290   : > { %v1135_v27 = vpop.xlane.xlu0 %1134 }
 0x291   : > { %v3496_v28 = vadd.f32 %v1135_v27, %v1025_v57  ;;  %v1129_v17 = vpop.xlane.xlu1 %1128 }
 0x292   : > { %v1136_v61 = vadd.f32 %v1129_v17, %v1022_v20 }
 0x294   : > { %v1229_v8 = vpop.xlane.xlu0 %1228 }
 0x295   : > { %v1235_v11 = vadd.f32 %v1229_v8, %v1121_v1  ;;  %v1247_v42 = vpop.xlane.xlu1 %1246 }
 0x296   : > { %v1252_v32 = vadd.f32 %v1247_v42, %v1138_v44 }
 0x298   : > { %v1131_v59 = vpop.xlane.xlu0 %1130 }
 0x299   : > { %v1243_v43 = vpop.xlane.xlu1 %1242  ;;  %v1137_v40 = vadd.f32 %v1131_v59, %v1023_v7 }
 0x29a   : > { %v1250_v63 = vadd.f32 %v1243_v43, %v1136_v61 }
 0x29c   : > { %v1249_v52 = vpop.xlane.xlu0 %1248 }
 0x29d   : > { %v1345_v33 = vpop.xlane.xlu1 %1344 }
 0x29e   : > { %v1350_v57 = vadd.f32 %v1345_v33, %v1236_v36 }
 0x2a0   : > { %v1245_v37 = vpop.xlane.xlu0 %1244 }
 0x2a1   : > { %v1341_v41 = vpop.xlane.xlu1 %1340  ;;  %v1251_v10 = vadd.f32 %v1245_v37, %v1137_v40 }
 0x2a2   : > { %v1348_v3 = vadd.f32 %v1341_v41, %v1234_v30  ;;  %v1253_v30 = vadd.f32 %v1249_v52, %v3496_v28 }
 0x2a4   : > { %v1347_v45 = vpop.xlane.xlu0 %1346 }
 0x2a5   : > { %v1459_v19 = vpop.xlane.xlu1 %1458  ;;  %v1351_v59 = vadd.f32 %v1347_v45, %v3494_v31 }
 0x2a6   : > { %v1464_v20 = vadd.f32 %v1459_v19, %v1350_v57 }
 0x2a8   : > { %v1343_v12 = vpop.xlane.xlu0 %1342 }
 0x2a9   : > { %v1361_v24 = vpop.xlane.xlu1 %1360  ;;  %v1349_v9 = vadd.f32 %v1343_v12, %v1235_v11  ;;  %v1712_v11 = vld [vmem:[%s3547_s6 + $0x10] sm:$0xff] }
 0x2aa   : > { %v1366_v6 = vadd.f32 %v1361_v24, %v1252_v32 }
 0x2ac   : > { %v1461_v13 = vpop.xlane.xlu0 %1460 }
 0x2ad   : > { %v1455_v14 = vpop.xlane.xlu1 %1454  ;;  %v1465_v52 = vadd.f32 %v1461_v13, %v1351_v59 }
 0x2ae   : > { %v1462_v53 = vadd.f32 %v1455_v14, %v1348_v3  ;;  %v1711_v14 = vld [vmem:[%s3547_s6 + $0x8] sm:$0xff] }
 0x2b0   : > { %v1363_v29 = vpop.xlane.xlu0 %1362 }
 0x2b1   : > { %v1357_v46 = vpop.xlane.xlu1 %1356  ;;  %v1367_v37 = vadd.f32 %v1363_v29, %v1253_v30 }
 0x2b2   : > { %v1364_v4 = vadd.f32 %v1357_v46, %v1250_v63 }
 0x2b4   : > { %v1457_v25 = vpop.xlane.xlu0 %1456 }
 0x2b5   : > { %v1475_v51 = vpop.xlane.xlu1 %1474  ;;  %v1463_v27 = vadd.f32 %v1457_v25, %v1349_v9 }
 0x2b6   : > { %v1480_v18 = vadd.f32 %v1475_v51, %v1366_v6 }
 0x2b8   : > { %v1359_v54 = vpop.xlane.xlu0 %1358 }
 0x2b9   : > { %v1471_v39 = vpop.xlane.xlu1 %1470  ;;  %v1365_v44 = vadd.f32 %v1359_v54, %v1251_v10 }
 0x2ba   : > { %v1478_v48 = vadd.f32 %v1471_v39, %v1364_v4 }
 0x2bc   : > { %v1477_v2 = vpop.xlane.xlu0 %1476 }
 0x2bd   : > { %v1573_v47 = vpop.xlane.xlu1 %1572  ;;  %v1481_v24 = vadd.f32 %v1477_v2, %v1367_v37  ;;  %v1713_v2 = vld [vmem:[%s3547_s6 + $0x18] sm:$0xff] }
 0x2be   : > { %v1578_v16 = vadd.f32 %v1573_v47, %v1464_v20 }
 0x2c0   : > { %v1473_v21 = vpop.xlane.xlu0 %1472 }
 0x2c1   : > { %v1569_v50 = vpop.xlane.xlu1 %1568  ;;  %v1479_v17 = vadd.f32 %v1473_v21, %v1365_v44 }
 0x2c2   : > { %v1576_v26 = vadd.f32 %v1569_v50, %v1462_v53 }
 0x2c4   : > { %v1575_v55 = vpop.xlane.xlu0 %1574 }
 0x2c5   : > { %v1687_v22 = vpop.xlane.xlu1 %1686  ;;  %v1579_v29 = vadd.f32 %v1575_v55, %v1465_v52 }
 0x2c6   : > { %v1692_v43 = vadd.f32 %v1687_v22, %v1578_v16 }
 0x2c8   : > { %v1571_v56 = vpop.xlane.xlu0 %1570 }
 0x2c9   : > { %v1589_v38 = vpop.xlane.xlu1 %1588  ;;  %v1577_v41 = vadd.f32 %v1571_v56, %v1463_v27 }
 0x2ca   : > { %v1594_v7 = vadd.f32 %v1589_v38, %v1480_v18 }
 0x2cc   : > { %v1689_v62 = vpop.xlane.xlu0 %1688 }
 0x2cd   : > { %v1683_v60 = vpop.xlane.xlu1 %1682  ;;  %v1693_v39 = vadd.f32 %v1689_v62, %v1579_v29 }
 0x2ce   : > { %v1690_v35 = vadd.f32 %v1683_v60, %v1576_v26 }
 0x2d0   : > { %v1591_v15 = vpop.xlane.xlu0 %1590 }
 0x2d1   : > { %v1585_v49 = vpop.xlane.xlu1 %1584  ;;  %v1595_v25 = vadd.f32 %v1591_v15, %v1481_v24 }
 0x2d2   : > { %v1592_v0 = vadd.f32 %v1585_v49, %v1478_v48 }
 0x2d4   : > { %v1685_v58 = vpop.xlane.xlu0 %1684 }
 0x2d5   : > { %v1699_v34 = vpop.xlane.xlu1 %1698  ;;  %v1691_v31 = vadd.f32 %v1685_v58, %v1577_v41 }
 0x2d6   : > { %v1706_v1 = vadd.f32 %v1699_v34, %v1592_v0 }
 0x2d8   : > { %v1715_v36 = vsel %vm1714_vm3, %v1690_v35, %v1706_v1  ;;  %v1587_v23 = vpop.xlane.xlu0 %1586 }
 0x2d9   : > { %v1719_v8 = vadd.f32 %v1715_v36, %v1710_v5  ;;  %v1703_v42 = vpop.xlane.xlu1 %1702  ;;  %v1593_v28 = vadd.f32 %v1587_v23, %v1479_v17 }
 0x2da   : > { %v1708_v33 = vadd.f32 %v1703_v42, %v1594_v7 }
 0x2db   : > { %1724 = vst.msk [vmem:[%s3547_s6] sm:$0xff] %vm1723_vm4, %v1719_v8 }
 0x2dc   : > { %v1717_v19 = vsel %vm1714_vm3, %v1692_v43, %v1708_v33  ;;  %v1701_v12 = vpop.xlane.xlu0 %1700 }
 0x2dd   : > { %v1721_v45 = vadd.f32 %v1717_v19, %v1712_v11  ;;  %v1707_v46 = vadd.f32 %v1701_v12, %v1593_v28 }
 0x2df   : > { %1726 = vst.msk [vmem:[%s3547_s6 + $0x10] sm:$0xff] %vm1723_vm4, %v1721_v45  ;;  %v1716_v13 = vsel %vm1714_vm3, %v1691_v31, %v1707_v46 }
 0x2e0   : > { %v1720_v51 = vadd.f32 %v1716_v13, %v1711_v14  ;;  %v1705_v54 = vpop.xlane.xlu0 %1704 }
 0x2e1   : > { %v1709_v47 = vadd.f32 %v1705_v54, %v1595_v25 }
 0x2e2   : > { %1725 = vst.msk [vmem:[%s3547_s6 + $0x8] sm:$0xff] %vm1723_vm4, %v1720_v51 }
 0x2e3   : > { %v1718_v21 = vsel %vm1714_vm3, %v1693_v39, %v1709_v47 }
 0x2e4   : > { %v1722_v50 = vadd.f32 %v1718_v21, %v1713_v2 }
 0x2e6   : > { %1727 = vst.msk [vmem:[%s3547_s6 + $0x18] sm:$0xff] %vm1723_vm4, %v1722_v50 }
 0x2e7 PF: > { %s17_s23 = sadd.s32 1, %s2582_s23   ;;  %s3618_s21 = smov %s2578_s22 }
 0x2e8   : > { %p14_p6 = scmp.ge.s32.totalorder %s17_s23, 4   ;;  %s3619_s22 = smov %s3621_s24 }
 0x2ea   :  { %16 = sbr.rel (!%p14_p6) target bundleno = 2 (0x2), region = 116 }

// kernel: basic_block_forward.7
= control target key start
LH: loop header
LB: loop body
LE: loop exit
PB: predicated region body
PF: predicated region fallthrough
CT: control target
= control target key end

     0   :  { %s1513_s23 = smov 0   ;;  %s1827_s0 = inlined_call_operand.vmem [shape: bf16[2,32,256], index: 0, kind: input, shape index: {}]   ;;  %s1828_s1 = inlined_call_operand.vmem [shape: f32[32,1], index: 1, kind: input, shape index: {}]   ;;  %s1829_s2 = inlined_call_operand.vmem [shape: f32[32,1], index: 2, kind: input, shape index: {}]   ;;  %s1830_s3 = inlined_call_operand.vmem [shape: f32[2,32], index: 3, kind: input, shape index: {}]   ;;  %s1831_s4 = inlined_call_operand.vmem [shape: f32[2,1], index: 4, kind: input, shape index: {}]   ;;  %s1832_s5 = inlined_call_operand.vmem [shape: f32[32,2], index: 5, kind: input, shape index: {}]   ;;  %s1833_s6 = inlined_call_operand.vmem [shape: f32[32,1], index: 6, kind: input, shape index: {}]   ;;  %s1834_s7 = inlined_call_operand.vmem [shape: f32[2,7], index: 7, kind: input, shape index: {}]   ;;  %s1835_s8 = inlined_call_operand.<no memory space> [shape: f32[1,1], index: 8, kind: input, shape index: {}]   ;;  %s1836_s9 = inlined_call_operand.vmem [shape: f32[2,32,256], index: 9, kind: input, shape index: {}]   ;;  %s1837_s10 = inlined_call_operand.vmem [shape: f32[32,1], index: 10, kind: input, shape index: {}]   ;;  %s1838_s11 = inlined_call_operand.vmem [shape: f32[32,1], index: 11, kind: input, shape index: {}]   ;;  %s1839_s12 = inlined_call_operand.vmem [shape: f32[2,32,256], index: 12, kind: output, shape index: {}]  }
   0x1   :  { %v17_v0 = vstv %s1835_s8 }
   0x2   :  { %18 = vst [vmem:[#allocation2] sm:$0x1] %v17_v0 }
   0x3 LB: > { %s1295_s24 = sadd.s32 4294967295, %s1426_s23   ;;  %p1299_p0 = scmp.ge.s32.totalorder %s1426_s23, 1  ;;  %s1426_s23 = sphi %s1513_s23, %s24_s23  }
   0x4   : > { %p374_p1 = scmp.lt.s32.totalorder %s1426_s23, 3 }
   0x6   : > { %p375_p2 = pnand %p1299_p0, %p374_p1 }
   0x7   : > { %v480_v1 = vld [vmem:[%s1829_s2] sm:$0xff] (!%p375_p2)  ;;  %v1428_v3 = vmov (!%p375_p2), 0   ;;  %v481_v4 = vld [vmem:[%s1829_s2 + $0x8] sm:$0xff] (!%p375_p2)  ;;  %v451_v6 = vld [vmem:[%s1828_s1 + $0x18] sm:$0xff] (!%p375_p2)  ;;  %p421_p3 = scmp.lt.s32.totalorder (!%p375_p2), %s1295_s24, 1  ;;  %v1429_v54 = vmov (!%p375_p2), 0.0|0.0  }
   0x8   : > { %378 = sbr.rel (%p375_p2) target bundleno = 1245 (0x4dd), region = 68  ;;  %v448_v2 = vld [vmem:[%s1828_s1] sm:$0xff] (!%p375_p2)  ;;  %1384 = vset.pattern.permute.xlu1 (!%p375_p2), %v1428_v3  ;;  %1383 = vset.pattern.permute.xlu0 (!%p375_p2), %v1428_v3  ;;  %v449_v5 = vld [vmem:[%s1828_s1 + $0x8] sm:$0xff] (!%p375_p2)  ;;  %v450_v7 = vld [vmem:[%s1828_s1 + $0x10] sm:$0xff] (!%p375_p2)  ;;  %vm1430_vm0 = vmmov (!%p375_p2), 0   ;;  %v1431_v57 = vmov (!%p375_p2), 0.0  }
   0x9   : > { %486 = vperm.xlu1 (!%p375_p2), %1384, %v480_v1   ;;  %454 = vperm.xlu0 (!%p375_p2), %1383, %v448_v2   ;;  %v483_v8 = vld [vmem:[%s1829_s2 + $0x18] sm:$0xff] (!%p375_p2)  ;;  %v482_v9 = vld [vmem:[%s1829_s2 + $0x10] sm:$0xff] (!%p375_p2)  ;;  %v547_v55 = vld [vmem:[%s1831_s4] sm:$0x3] (!%p375_p2)  ;;  %vm541_vm1 = vcmask (!%p375_p2), 7168   ;;  %vm553_vm2 = vcmask (!%p375_p2), 261120  }
   0xa   : > { %1352 = vmatprep.subr.bf16.mxu0 (!%p375_p2), %v1429_v54  ;;  %v632_v56 = vld [vmem:[%s1833_s6 + $0x8] sm:$0xff] (!%p375_p2)  ;;  %1341 = vmatprep.mubr.msk.f32.mxu0 (!%p375_p2), %vm1430_vm0, %v1431_v57  ;;  %v631_v58 = vld [vmem:[%s1833_s6] sm:$0xff] (!%p375_p2)  ;;  %v633_v59 = vld [vmem:[%s1833_s6 + $0x10] sm:$0xff] (!%p375_p2)  ;;  %vm655_vm3 = vcmask (!%p375_p2), 15360   ;;  %vm668_vm4 = vcmask (!%p375_p2), 1041408   ;;  %s1432_s30 = smov (!%p375_p2), 127  }
   0xb   : > { %v634_v60 = vld [vmem:[%s1833_s6 + $0x18] sm:$0xff] (!%p375_p2)  ;;  %s1439_s17 = smov (!%p375_p2), 48   ;;  %s1440_s18 = smov (!%p375_p2), 32   ;;  %vm889_vm5 = vcmask (!%p375_p2), 392192   ;;  %vm960_vm6 = vcmask (!%p375_p2), 130048   ;;  %vm1009_vm7 = vcmask (!%p375_p2), 916480  }
   0xc   : > { %s1441_s19 = smov (!%p375_p2), 16   ;;  %s1442_s20 = smov (!%p375_p2), 112   ;;  %vm1042_vm8 = vcmask (!%p375_p2), 785408   ;;  %vm1075_vm9 = vcmask (!%p375_p2), 654336  }
   0xd   : > { %491 = vperm.xlu1 (!%p375_p2), %1384, %v481_v4   ;;  %459 = vperm.xlu0 (!%p375_p2), %1383, %v449_v5   ;;  %s1443_s21 = smov (!%p375_p2), 96  }
   0xf   : > { %s1841_s24 = smov (!%p421_p3, %s1295_s24), 1 }
  0x10   : > { %s1320_s22 = sshll.u32 %s1841_s24, 5 }
  0x11   : > { %469 = vperm.xlu1 %1384, %v451_v6   ;;  %464 = vperm.xlu0 %1383, %v450_v7   ;;  %s425_s8 = scalar_lea.vmem %s1827_s0, %s1320_s22  ;;  %s1444_s22 = smov 80  }
  0x12   : > { %v436_v10 = vld [vmem:[%s425_s8] sm:$0xff]  ;;  %v437_v13 = vld [vmem:[%s425_s8 + $0x8] sm:$0xff]  ;;  %v439_v22 = vld [vmem:[%s425_s8 + $0x18] sm:$0xff] }
  0x13   : > { %v440_v11 = vunpack.c.l.bf16 %v436_v10  ;;  %v441_v12 = vunpack.c.h.bf16 %v436_v10  ;;  %v442_v18 = vunpack.c.l.bf16 %v437_v13  ;;  %v443_v19 = vunpack.c.h.bf16 %v437_v13  ;;  %v438_v25 = vld [vmem:[%s425_s8 + $0x10] sm:$0xff] }
  0x14   : > { %v446_v29 = vunpack.c.l.bf16 %v439_v22  ;;  %v447_v30 = vunpack.c.h.bf16 %v439_v22  ;;  %v444_v33 = vunpack.c.l.bf16 %v438_v25  ;;  %v445_v34 = vunpack.c.h.bf16 %v438_v25  ;;  %v629_v25 = vld [vmem:[%s1832_s5 + $0x10] sm:$0xff] }
  0x15   : > { %501 = vperm.xlu1 %1384, %v483_v8   ;;  %496 = vperm.xlu0 %1383, %v482_v9  }
  0x88   : > { %v487_v14 = vpop.permute.xlu1 %486  ;;  %v455_v15 = vpop.permute.xlu0 %454 }
  0x89   : > { %v472_v16 = vsub.f32 %v440_v11, %v455_v15  ;;  %v473_v17 = vsub.f32 %v441_v12, %v455_v15 }
  0x8b   : > { %v1553_v20 = vmul.f32 %v487_v14, %v472_v16  ;;  %v1555_v21 = vmul.f32 %v487_v14, %v473_v17  ;;  %v546_v16 = vld [vmem:[%s1830_s3] sm:$0x3] }
  0x8c   : > { %v492_v23 = vpop.permute.xlu1 %491  ;;  %v460_v24 = vpop.permute.xlu0 %459  ;;  %v627_v17 = vld [vmem:[%s1832_s5] sm:$0xff] }
  0x8d   : > { %v474_v26 = vsub.f32 %v442_v18, %v460_v24  ;;  %v475_v27 = vsub.f32 %v443_v19, %v460_v24  ;;  %v512_v28 = vadd.f32 %v1555_v21, %v1553_v20  ;;  %v529_v37 = vmax.f32 %v1553_v20, %v1555_v21  ;;  %1346 = vmatprep.mubr.msk.f32.mxu1 %vm655_vm3, %v627_v17  ;;  %v628_v24 = vld [vmem:[%s1832_s5 + $0x8] sm:$0xff] }
  0x8e   : > { %v1437_v17 = vmov 5  }
  0x8f   : > { %v1559_v31 = vmul.f32 %v492_v23, %v474_v26  ;;  %v1561_v32 = vmul.f32 %v492_v23, %v475_v27  ;;  %513 = vadd.xlane.f32.xlu0 %v512_v28  ;;  %v630_v26 = vld [vmem:[%s1832_s5 + $0x18] sm:$0xff] }
  0x90   : > { %v470_v35 = vpop.permute.xlu1 %469  ;;  %v465_v36 = vpop.permute.xlu0 %464 }
  0x91   : > { %v515_v38 = vadd.f32 %v1561_v32, %v1559_v31  ;;  %v478_v39 = vsub.f32 %v446_v29, %v470_v35  ;;  %v479_v40 = vsub.f32 %v447_v30, %v470_v35  ;;  %v476_v41 = vsub.f32 %v444_v33, %v465_v36 }
  0x92   : > { %v477_v42 = vsub.f32 %v445_v34, %v465_v36  ;;  %v532_v45 = vmax.f32 %v1559_v31, %v1561_v32 }
  0x93   : > { %530 = vmax.xlane.f32.xlu0 %v529_v37  ;;  %516 = vadd.xlane.f32.xlu1 %v515_v38 }
  0x94   : > { %v502_v43 = vpop.permute.xlu1 %501  ;;  %v497_v44 = vpop.permute.xlu0 %496 }
  0x95   : > { %v1569_v46 = vmul.f32 %v502_v43, %v478_v39  ;;  %v1571_v47 = vmul.f32 %v502_v43, %v479_v40  ;;  %v1573_v48 = vmul.f32 %v497_v44, %v476_v41  ;;  %v1575_v49 = vmul.f32 %v497_v44, %v477_v42 }
  0x97   : > { %533 = vmax.xlane.f32.xlu0 %v532_v45  ;;  %v518_v50 = vadd.f32 %v1575_v49, %v1573_v48  ;;  %v521_v51 = vadd.f32 %v1571_v47, %v1569_v46  ;;  %v535_v52 = vmax.f32 %v1573_v48, %v1575_v49  ;;  %v538_v53 = vmax.f32 %v1569_v46, %v1571_v47 }
  0x99   : > { %519 = vadd.xlane.f32.xlu1 %v518_v50 }
  0x9b   : > { %522 = vadd.xlane.f32.xlu0 %v521_v51 }
  0x9d   : > { %536 = vmax.xlane.f32.xlu1 %v535_v52 }
  0x9f   : > { %539 = vmax.xlane.f32.xlu0 %v538_v53 }
  0xae   : > { %550 = vperm.xlu1 %1384, %v547_v55  }
  0xb2   : > { %642 = vperm.xlu1 %1384, %v632_v56  }
  0xb5   : > { %637 = vperm.xlu0 %1383, %v631_v58  }
  0xb6   : > { %647 = vperm.xlu1 %1384, %v633_v59  }
  0xb9   : > { %652 = vperm.xlu0 %1383, %v634_v60  }
 0x11c   : > { %v514_v61 = vpop.xlane.xlu0 %513 }
 0x11d   : > { %v525_v0 = vmul.f32 0.00390625, %v514_v61 }
 0x120   : > { %v531_v62 = vpop.xlane.xlu0 %530  ;;  %v517_v63 = vpop.xlane.xlu1 %516 }
 0x121   : > { %v526_v1 = vmul.f32 0.00390625, %v517_v63  ;;  %v542_v4 = vsel %vm541_vm1, %v525_v0, %v531_v62 }
 0x124   : > { %v534_v2 = vpop.xlane.xlu0 %533 }
 0x125   : > { %v543_v5 = vsel %vm541_vm1, %v526_v1, %v534_v2 }
 0x126   : > { %v520_v6 = vpop.xlane.xlu1 %519  ;;  %v1353_v7 = vpack.c.bf16 %v543_v5, %v542_v4 }
 0x127   : > { %v527_v10 = vmul.f32 0.00390625, %v520_v6 }
 0x128   : > { %1354 = vmatpush3.bf16.msra.mxu0 %v1353_v7  ;;  %v523_v8 = vpop.xlane.xlu0 %522 }
 0x129   : > { %1355 = vmatprep.subr.bf16.mxu0 %v1429_v54  ;;  %v528_v11 = vmul.f32 0.00390625, %v523_v8 }
 0x12a   : > { %v537_v9 = vpop.xlane.xlu1 %536 }
 0x12b   : > { %v544_v13 = vsel %vm541_vm1, %v527_v10, %v537_v9  ;;  %v904_v10 = vld [vmem:[%s1834_s7] sm:$0x1] }
 0x12c   : > { %v540_v12 = vpop.xlane.xlu0 %539 }
 0x12d   : > { %v545_v14 = vsel %vm541_vm1, %v528_v11, %v540_v12  ;;  %v872_v11 = vld [vmem:[#allocation2] sm:$0x1]  ;;  %v1626_v12 = vld [vmem:[%s1834_s7 + $0x1] sm:$0x1] }
 0x12e   : > { %v1356_v15 = vpack.c.bf16 %v545_v14, %v544_v13  ;;  %v551_v18 = vpop.permute.xlu1 %550  ;;  %v1433_v13 = vmov 1   ;;  %v1434_v14 = vmov 2  }
 0x130   : > { %1357 = vmatpush3.bf16.msra.mxu0 %v1356_v15  ;;  %v1435_v15 = vmov 3  }
 0x132   : > { %v643_v28 = vpop.permute.xlu1 %642 }
 0x133   : > { %1342 = vmatmul.mubr.msk.f32.vlgmr.msra.gmra.mrb[0].mxu0 %vm553_vm2, %v546_v16  ;;  %v1436_v16 = vmov 4  }
 0x134   : > { %v638_v27 = vpop.permute.xlu0 %637 }
 0x136   : > { %v648_v37 = vpop.permute.xlu1 %647 }
 0x138   : > { %v653_v35 = vpop.permute.xlu0 %652 }
 0x206   : > { %v623_v19 = vpop.f32.mrb[0].mxu0 }
 0x207   : > { %v624_v22 = vadd.f32 %v623_v19, %v551_v18  ;;  %v1343_v23 = vpop.f32.mrb[1].mxu0  ;;  %v1438_v18 = vmov 6  }
 0x209   : > { %1344 = vmatprep.subr.msk.mxu1 %vm668_vm4, %v624_v22 }
 0x20a   : > { %1345 = vmatpush3.msk.msra.mxu1 %vm668_vm4, %v624_v22 }
 0x20b   : > { %1347 = vmatmul.mubr.msk.f32.vlgmr.msra.gmra.mrb[0].mxu1 %vm655_vm3, %v628_v24 }
 0x20c   : > { %1349 = vmatprep.mubr.msk.f32.mxu1 %vm655_vm3, %v629_v25 }
 0x20f   : > { %1350 = vmatmul.mubr.msk.f32.gmra.mrb[2].mxu1 %vm655_vm3, %v630_v26 }
 0x2de   : > { %v1348_v29 = vpop.f32.mrb[0].mxu1 }
 0x2df   : > { %v744_v30 = vadd.f32 %v1348_v29, %v643_v28  ;;  %v738_v33 = vpop.f32.mrb[1].mxu1 }
 0x2e0   : > { %v739_v34 = vadd.f32 %v738_v33, %v638_v27 }
 0x2e1   : > { %767 = vrot.lane.b32.xlu0 %v744_v30, %s1432_s30  ;;  %v758_v41 = vmax.f32 %v744_v30, 0.0 }
 0x2e2   : > { %v1351_v36 = vpop.f32.mrb[2].mxu1  ;;  %765 = vrot.lane.b32.xlu1 %v739_v34, %s1432_s30  ;;  %v757_v43 = vmax.f32 %v739_v34, 0.0 }
 0x2e3   : > { %v754_v38 = vadd.f32 %v1351_v36, %v653_v35  ;;  %v748_v39 = vpop.f32.mrb[3].mxu1 }
 0x2e4   : > { %v749_v40 = vadd.f32 %v748_v39, %v648_v37 }
 0x2e5   : > { %771 = vrot.lane.b32.xlu0 %v754_v38, %s1432_s30  ;;  %v760_v52 = vmax.f32 %v754_v38, 0.0 }
 0x2e6   : > { %769 = vrot.lane.b32.xlu1 %v749_v40, %s1432_s30  ;;  %v759_v55 = vmax.f32 %v749_v40, 0.0 }
 0x353   : > { %v768_v42 = vpop.permute.xlu0 %767 }
 0x354   : > { %v778_v44 = vadd.f32 %v768_v42, %v758_v41  ;;  %v766_v45 = vpop.permute.xlu1 %765 }
 0x355   : > { %v777_v50 = vadd.f32 %v766_v45, %v757_v43 }
 0x356   : > { %v1313_v51 = vmul.f32 -1.442695, %v778_v44 }
 0x357   : > { %v1312_v53 = vmul.f32 -1.442695, %v777_v50  ;;  %v772_v54 = vpop.permute.xlu0 %771 }
 0x358   : > { %1396 = vpow2.f32 %v1313_v51  ;;  %v780_v56 = vadd.f32 %v772_v54, %v760_v52  ;;  %v770_v57 = vpop.permute.xlu1 %769 }
 0x359   : > { %1398 = vpow2.f32 %v1312_v53  ;;  %v779_v58 = vadd.f32 %v770_v57, %v759_v55 }
 0x35a   : > { %v1315_v59 = vmul.f32 -1.442695, %v780_v56 }
 0x35b   : > { %v1314_v60 = vmul.f32 -1.442695, %v779_v58 }
 0x35c   : > { %1400 = vpow2.f32 %v1315_v59 }
 0x35d   : > { %1402 = vpow2.f32 %v1314_v60 }
 0x362   : > { %v1397_v61 = vpop.eup %1396 }
 0x363   : > { %v1399_v62 = vpop.eup %1398  ;;  %v794_v63 = vadd.f32 1.0, %v1397_v61 }
 0x364   : > { %v793_v0 = vadd.f32 1.0, %v1399_v62 }
 0x365   : > { %1404 = vrcp.f32 %v794_v63 }
 0x366   : > { %v1401_v1 = vpop.eup %1400  ;;  %1406 = vrcp.f32 %v793_v0 }
 0x367   : > { %v1403_v2 = vpop.eup %1402  ;;  %v796_v4 = vadd.f32 1.0, %v1401_v1 }
 0x368   : > { %v795_v5 = vadd.f32 1.0, %v1403_v2 }
 0x369   : > { %1408 = vrcp.f32 %v796_v4 }
 0x36a   : > { %1410 = vrcp.f32 %v795_v5 }
 0x36f   : > { %v1405_v6 = vpop.eup %1404 }
 0x370   : > { %v1407_v7 = vpop.eup %1406  ;;  %812 = vperm.xlu0 %1383, %v1405_v6   ;;  %v1125_v6 = vld [vmem:[%s1837_s10 + $0x8] sm:$0xff] }
 0x371   : > { %807 = vperm.xlu1 %1384, %v1407_v7   ;;  %v1158_v7 = vld [vmem:[%s1838_s11 + $0x10] sm:$0xff] }
 0x373   : > { %v1409_v8 = vpop.eup %1408 }
 0x374   : > { %v1411_v9 = vpop.eup %1410  ;;  %822 = vperm.xlu0 %1383, %v1409_v8   ;;  %v1124_v8 = vld [vmem:[%s1837_s10] sm:$0xff] }
 0x375   : > { %817 = vperm.xlu1 %1384, %v1411_v9   ;;  %v1126_v9 = vld [vmem:[%s1837_s10 + $0x10] sm:$0xff] }
 0x378   : > { %907 = vperm.xlu0 %1383, %v904_v10  }
 0x379   : > { %875 = vperm.xlu1 %1384, %v872_v11   ;;  %v1157_v11 = vld [vmem:[%s1838_s11 + $0x8] sm:$0xff] }
 0x37c   : > { %1385 = vset.pattern.permute.xlu0 %v1433_v13 }
 0x37d   : > { %917 = vperm.xlu1 %1384, %v1626_v12   ;;  %941 = vperm.xlu0 %1385, %v904_v10  }
 0x381   : > { %1388 = vset.pattern.permute.xlu0 %v1434_v14  ;;  %1386 = vset.pattern.permute.xlu1 %v1433_v13 }
 0x382   : > { %982 = vperm.xlu0 %1388, %v1626_v12   ;;  %949 = vperm.xlu1 %1386, %v1626_v12  }
 0x386   : > { %1389 = vset.pattern.permute.xlu0 %v1435_v15  ;;  %1387 = vset.pattern.permute.xlu1 %v1434_v14 }
 0x387   : > { %990 = vperm.xlu0 %1389, %v904_v10   ;;  %974 = vperm.xlu1 %1387, %v904_v10  }
 0x38b   : > { %998 = vperm.xlu0 %1389, %v1626_v12   ;;  %1390 = vset.pattern.permute.xlu1 %v1436_v16 }
 0x38c   : > { %1023 = vperm.xlu1 %1390, %v904_v10  }
 0x38f   : > { %1391 = vset.pattern.permute.xlu0 %v1436_v16 }
 0x390   : > { %1392 = vset.pattern.permute.xlu1 %v1437_v17  ;;  %1031 = vperm.xlu0 %1391, %v1626_v12  }
 0x391   : > { %1056 = vperm.xlu1 %1392, %v904_v10  }
 0x394   : > { %1393 = vset.pattern.permute.xlu0 %v1438_v18 }
 0x395   : > { %1064 = vperm.xlu1 %1392, %v1626_v12   ;;  %1089 = vperm.xlu0 %1393, %v904_v10   ;;  %v1127_v10 = vld [vmem:[%s1837_s10 + $0x18] sm:$0xff] }
 0x399   : > { %1394 = vset.pattern.permute.xlu1 %v1428_v3 }
 0x3ef   : > { %v813_v19 = vpop.permute.xlu0 %812 }
 0x3f0   : > { %v808_v22 = vpop.permute.xlu1 %807  ;;  %v1636_v23 = vmul.f32 %v813_v19, %v1559_v31  ;;  %v1642_v25 = vmul.f32 %v813_v19, %v1561_v32 }
 0x3f1   : > { %v1639_v24 = vmul.f32 %v808_v22, %v1553_v20  ;;  %v1645_v26 = vmul.f32 %v808_v22, %v1555_v21 }
 0x3f3   : > { %v823_v27 = vpop.permute.xlu0 %822  ;;  %v833_v31 = vadd.f32 %v1636_v23, %v1639_v24 }
 0x3f4   : > { %v1648_v28 = vmul.f32 %v823_v27, %v1569_v46  ;;  %v1651_v29 = vmul.f32 %v823_v27, %v1571_v47  ;;  %v818_v30 = vpop.permute.xlu1 %817  ;;  %v842_v47 = vadd.f32 %v1642_v25, %v1645_v26 }
 0x3f5   : > { %v1656_v20 = vmul.f32 %v818_v30, %v1573_v48  ;;  %v1659_v32 = vmul.f32 %v818_v30, %v1575_v49 }
 0x3f6   : > { %v855_v21 = vmax.f32 %v1636_v23, %v1648_v28  ;;  %v864_v46 = vmax.f32 %v1642_v25, %v1651_v29 }
 0x3f7   : > { %v834_v33 = vadd.f32 %v833_v31, %v1656_v20  ;;  %v854_v34 = vmax.f32 %v1639_v24, %v1656_v20  ;;  %v863_v48 = vmax.f32 %v1645_v26, %v1659_v32  ;;  %v843_v35 = vadd.f32 %v842_v47, %v1659_v32  ;;  %v908_v13 = vpop.permute.xlu0 %907 }
 0x3f8   : > { %v876_v14 = vpop.permute.xlu1 %875 }
 0x3f9   : > { %v835_v49 = vadd.f32 %v834_v33, %v1648_v28  ;;  %v856_v36 = vmax.f32 %v854_v34, %v855_v21  ;;  %v865_v37 = vmax.f32 %v863_v48, %v864_v46  ;;  %v844_v42 = vadd.f32 %v843_v35, %v1651_v29 }
 0x3fa   : > { %v878_v35 = vlaneseq }
 0x3fb   : > { %v836_v38 = vrot.slane %v835_v49, 4  ;;  %v857_v39 = vrot.slane %v856_v36, 4  ;;  %v866_v40 = vrot.slane %v865_v37, 4  ;;  %v845_v52 = vrot.slane %v844_v42, 4 }
 0x3fc   : > { %v942_v15 = vpop.permute.xlu0 %941  ;;  %v918_v16 = vpop.permute.xlu1 %917 }
 0x3fd   : > { %v837_v41 = vadd.f32 %v836_v38, %v835_v49  ;;  %v858_v43 = vmax.f32 %v856_v36, %v857_v39  ;;  %v867_v44 = vmax.f32 %v865_v37, %v866_v40  ;;  %v846_v58 = vadd.f32 %v845_v52, %v844_v42 }
 0x3fe   : > { %v879_v38 = vshrl.u32 %v878_v35, 7 }
 0x3ff   : > { %v859_v45 = vrot.slane %v858_v43, 2  ;;  %v868_v50 = vrot.slane %v867_v44, 2  ;;  %v838_v51 = vrot.slane %v837_v41, 2  ;;  %v847_v62 = vrot.slane %v846_v58, 2 }
 0x400   : > { %v1754_v42 = vsub.s32 0, %v879_v38 }
 0x401   : > { %v860_v53 = vmax.f32 %v858_v43, %v859_v45  ;;  %v869_v54 = vmax.f32 %v867_v44, %v868_v50  ;;  %v839_v57 = vadd.f32 %v838_v51, %v837_v41  ;;  %v848_v0 = vadd.f32 %v847_v62, %v846_v58  ;;  %v1733_v17 = vpop.permute.xlu0 %982  ;;  %v950_v18 = vpop.permute.xlu1 %949 }
 0x402   : > { %v881_v45 = vrot.slane %v876_v14, %v1754_v42 }
 0x403   : > { %v861_v55 = vrot.slane %v860_v53, 1  ;;  %v870_v56 = vrot.slane %v869_v54, 1  ;;  %v840_v61 = vrot.slane %v839_v57, 1  ;;  %v849_v1 = vrot.slane %v848_v0, 1 }
 0x405   : > { %v1675_v59 = vmax.f32 %v860_v53, %v861_v55  ;;  %v1677_v60 = vmax.f32 %v869_v54, %v870_v56  ;;  %v841_v63 = vadd.f32 %v840_v61, %v839_v57  ;;  %v850_v4 = vadd.f32 %v849_v1, %v848_v0 }
 0x406   : > { %v1735_v19 = vpop.permute.xlu0 %990  ;;  %v1737_v22 = vpop.permute.xlu1 %974 }
 0x407   : > { %898 = vrot.lane.b32.xlu1 %v1677_v60, %s1439_s17  ;;  %896 = vrot.lane.b32.xlu0 %v1675_v59, %s1439_s17  ;;  %v1685_v2 = vmul.f32 0.03125, %v841_v63  ;;  %v1691_v5 = vmul.f32 0.03125, %v850_v4 }
 0x40a   : > { %v1739_v27 = vpop.permute.xlu0 %998 }
 0x40b   : > { %932 = vrot.lane.b32.xlu1 %v1675_v59, %s1440_s18  ;;  %967 = vrot.lane.b32.xlu0 %v1677_v60, %s1441_s19  ;;  %v1741_v30 = vpop.permute.xlu1 %1023 }
 0x40f   : > { %934 = vrot.lane.b32.xlu1 %v1677_v60, %s1440_s18  ;;  %1014 = vrot.lane.b32.xlu0 %v1675_v59, %s1442_s20  ;;  %v1743_v31 = vpop.permute.xlu0 %1031 }
 0x410   : > { %v1745_v21 = vpop.permute.xlu1 %1056 }
 0x413   : > { %965 = vrot.lane.b32.xlu1 %v1675_v59, %s1441_s19  ;;  %885 = vrot.lane.b32.xlu0 %v1685_v2, %s1439_s17 }
 0x414   : > { %v1747_v46 = vpop.permute.xlu0 %1089  ;;  %v1749_v47 = vpop.permute.xlu1 %1064 }
 0x417   : > { %1016 = vrot.lane.b32.xlu1 %v1677_v60, %s1442_s20  ;;  %924 = vrot.lane.b32.xlu0 %v1685_v2, %s1440_s18 }
 0x41b   : > { %887 = vrot.lane.b32.xlu1 %v1691_v5, %s1439_s17  ;;  %1097 = vperm.xlu0 %1393, %v1626_v12   ;;  %v1159_v12 = vld [vmem:[%s1838_s11 + $0x18] sm:$0xff] }
 0x41f   : > { %1047 = vrot.lane.b32.xlu1 %v1675_v59, %s1443_s21  ;;  %1007 = vrot.lane.b32.xlu0 %v1691_v5, %s1442_s20 }
 0x420   : > { %1395 = vset.pattern.permute.xlu0 %v1428_v3  ;;  %v1156_v3 = vld [vmem:[%s1838_s11] sm:$0xff] }
 0x423   : > { %926 = vrot.lane.b32.xlu1 %v1691_v5, %s1440_s18  ;;  %1049 = vrot.lane.b32.xlu0 %v1677_v60, %s1443_s21 }
 0x427   : > { %956 = vrot.lane.b32.xlu1 %v1685_v2, %s1441_s19  ;;  %1073 = vrot.lane.b32.xlu0 %v1691_v5, %s1444_s22 }
 0x42b   : > { %958 = vrot.lane.b32.xlu1 %v1691_v5, %s1441_s19  ;;  %1082 = vrot.lane.b32.xlu0 %v1677_v60, %s1444_s22 }
 0x42f   : > { %1005 = vrot.lane.b32.xlu1 %v1685_v2, %s1442_s20  ;;  %1135 = vperm.xlu0 %1395, %v1125_v6  }
 0x433   : > { %1038 = vrot.lane.b32.xlu1 %v1685_v2, %s1443_s21  ;;  %1162 = vperm.xlu0 %1395, %v1156_v3  }
 0x437   : > { %1040 = vrot.lane.b32.xlu1 %v1691_v5, %s1443_s21  ;;  %1172 = vperm.xlu0 %1395, %v1158_v7  }
 0x43b   : > { %1071 = vrot.lane.b32.xlu1 %v1685_v2, %s1444_s22 }
 0x43f   : > { %1080 = vrot.lane.b32.xlu1 %v1675_v59, %s1444_s22  ;;  %s1321_s22 = sshll.u32 %s1841_s24, 6 }
 0x440   : > { %s430_s8 = scalar_lea.vmem %s1836_s9, %s1321_s22  ;;  %s435_s29 = scalar_lea.vmem %s1839_s12, %s1321_s22 }
 0x443   : > { %1130 = vperm.xlu1 %1394, %v1124_v8  }
 0x447   : > { %1140 = vperm.xlu1 %1394, %v1126_v9  }
 0x44b   : > { %1145 = vperm.xlu1 %1394, %v1127_v10  }
 0x44f   : > { %1167 = vperm.xlu1 %1394, %v1157_v11  }
 0x453   : > { %1177 = vperm.xlu1 %1394, %v1159_v12  }
 0x479   : > { %v899_v33 = vpop.permute.xlu1 %898  ;;  %v897_v34 = vpop.permute.xlu0 %896 }
 0x47a   : > { %v903_v52 = vsel %vm889_vm5, 0.0, %v897_v34  ;;  %v900_v63 = vsel %vm889_vm5, %v897_v34, %v899_v33 }
 0x47b   : > { %v920_v56 = vmul.f32 %v918_v16, %v903_v52  ;;  %v921_v3 = vmul.f32 %v918_v16, %v900_v63 }
 0x47d   : > { %v933_v48 = vpop.permute.xlu1 %932  ;;  %v968_v49 = vpop.permute.xlu0 %967 }
 0x47e   : > { %v939_v4 = vsel %vm553_vm2, 0.0, %v933_v48 }
 0x47f   : > { %v952_v9 = vmul.f32 %v950_v18, %v939_v4 }
 0x481   : > { %v935_v36 = vpop.permute.xlu1 %934  ;;  %v1751_v37 = vpop.permute.xlu0 %1014 }
 0x482   : > { %v936_v12 = vsel %vm553_vm2, %v933_v48, %v935_v36  ;;  %v993_v36 = vmul.f32 %v1735_v19, %v1685_v2 }
 0x485   : > { %v966_v39 = vpop.permute.xlu1 %965  ;;  %v886_v40 = vpop.permute.xlu0 %885 }
 0x486   : > { %v893_v41 = vsel %vm889_vm5, 0.0, %v886_v40 }
 0x487   : > { %v910_v44 = vmul.f32 %v908_v13, %v893_v41 }
 0x489   : > { %v1017_v43 = vpop.permute.xlu1 %1016  ;;  %v925_v50 = vpop.permute.xlu0 %924  ;;  %v912_v54 = vadd.f32 %v910_v44, %v881_v45  ;;  %v969_v44 = vsel %vm960_vm6, %v966_v39, %v968_v49 }
 0x48a   : > { %v931_v55 = vsel %vm553_vm2, 0.0, %v925_v50 }
 0x48b   : > { %v922_v61 = vadd.f32 %v920_v56, %v912_v54  ;;  %v944_v62 = vmul.f32 %v942_v15, %v931_v55 }
 0x48d   : > { %v888_v51 = vpop.permute.xlu1 %887  ;;  %v946_v7 = vadd.f32 %v944_v62, %v922_v61 }
 0x48e   : > { %v890_v53 = vsel %vm889_vm5, %v886_v40, %v888_v51  ;;  %v953_v40 = vmul.f32 %v950_v18, %v936_v12  ;;  %v1001_v18 = vmul.f32 %v1739_v27, %v1675_v59  ;;  %v1002_v59 = vmul.f32 %v1739_v27, %v1677_v60 }
 0x48f   : > { %v911_v57 = vmul.f32 %v908_v13, %v890_v53  ;;  %v972_v13 = vsel %vm960_vm6, 0.0, %v966_v39  ;;  %v954_v35 = vadd.f32 %v952_v9, %v946_v7  ;;  %v986_v53 = vmul.f32 %v1733_v17, %v969_v44 }
 0x490   : > { %v985_v16 = vmul.f32 %v1733_v17, %v972_v13 }
 0x491   : > { %v1048_v58 = vpop.permute.xlu1 %1047  ;;  %v913_v0 = vadd.f32 %v911_v57, %v881_v45  ;;  %v994_v57 = vmul.f32 %v1735_v19, %v1691_v5 }
 0x493   : > { %v923_v10 = vadd.f32 %v921_v3, %v913_v0  ;;  %v1018_v0 = vsel %vm1009_vm7, %v1751_v37, %v1017_v43 }
 0x494   : > { %v1034_v3 = vmul.f32 %v1743_v31, %v1018_v0  ;;  %v1118_v0 = vld [vmem:[%s430_s8 + $0x10] sm:$0xff] }
 0x495   : > { %v927_v1 = vpop.permute.xlu1 %926 }
 0x496   : > { %v928_v6 = vsel %vm553_vm2, %v925_v50, %v927_v1  ;;  %v1021_v1 = vsel %vm1009_vm7, %v1017_v43, 0.0 }
 0x497   : > { %v945_v8 = vmul.f32 %v942_v15, %v928_v6  ;;  %v1035_v7 = vmul.f32 %v1743_v31, %v1021_v1  ;;  %v1119_v1 = vld [vmem:[%s430_s8 + $0x18] sm:$0xff] }
 0x499   : > { %v957_v11 = vpop.permute.xlu1 %956  ;;  %v947_v34 = vadd.f32 %v945_v8, %v923_v10 }
 0x49a   : > { %v964_v14 = vsel %vm960_vm6, 0.0, %v957_v11  ;;  %v1766_v33 = vpop.permute.xlu0 %1097 }
 0x49b   : > { %v977_v38 = vmul.f32 %v1737_v22, %v964_v14  ;;  %v955_v51 = vadd.f32 %v953_v40, %v947_v34 }
 0x49d   : > { %v979_v41 = vadd.f32 %v977_v38, %v954_v35  ;;  %v959_v15 = vpop.permute.xlu1 %958 }
 0x49e   : > { %v961_v45 = vsel %vm960_vm6, %v957_v11, %v959_v15  ;;  %v1008_v48 = vpop.permute.xlu0 %1007 }
 0x49f   : > { %v987_v50 = vadd.f32 %v985_v16, %v979_v41  ;;  %v978_v52 = vmul.f32 %v1737_v22, %v961_v45  ;;  %v1013_v22 = vsel %vm1009_vm7, %v1008_v48, 0.0 }
 0x4a0   : > { %v1027_v5 = vmul.f32 %v1741_v30, %v1013_v22  ;;  %v1120_v22 = vld [vmem:[%s430_s8 + $0x20] sm:$0xff] }
 0x4a1   : > { %v980_v54 = vadd.f32 %v978_v52, %v955_v51  ;;  %v1006_v55 = vpop.permute.xlu1 %1005  ;;  %v995_v56 = vadd.f32 %v993_v36, %v987_v50 }
 0x4a2   : > { %v1010_v49 = vsel %vm1009_vm7, %v1006_v55, %v1008_v48  ;;  %v1050_v39 = vpop.permute.xlu0 %1049 }
 0x4a3   : > { %v988_v2 = vadd.f32 %v986_v53, %v980_v54  ;;  %v1003_v61 = vadd.f32 %v1001_v18, %v995_v56  ;;  %v1026_v62 = vmul.f32 %v1741_v30, %v1010_v49  ;;  %v1051_v27 = vsel %vm1042_vm8, %v1048_v58, %v1050_v39 }
 0x4a4   : > { %v1054_v9 = vsel %vm1042_vm8, %v1050_v39, 0.0  ;;  %v1067_v34 = vmul.f32 %v1749_v47, %v1051_v27 }
 0x4a5   : > { %v996_v63 = vadd.f32 %v994_v57, %v988_v2  ;;  %v1039_v17 = vpop.permute.xlu1 %1038  ;;  %v1028_v19 = vadd.f32 %v1026_v62, %v1003_v61  ;;  %v1068_v31 = vmul.f32 %v1749_v47, %v1054_v9  ;;  %v1116_v61 = vld [vmem:[%s430_s8] sm:$0xff]  ;;  %v1117_v62 = vld [vmem:[%s430_s8 + $0x8] sm:$0xff] }
 0x4a6   : > { %v1074_v4 = vpop.permute.xlu0 %1073 }
 0x4a7   : > { %v1004_v6 = vadd.f32 %v1002_v59, %v996_v63  ;;  %v1036_v37 = vadd.f32 %v1034_v3, %v1028_v19  ;;  %v1079_v14 = vsel %vm1075_vm9, %v1074_v4, 0.0  ;;  %v1121_v59 = vld [vmem:[%s430_s8 + $0x28] sm:$0xff]  ;;  %v1122_v3 = vld [vmem:[%s430_s8 + $0x30] sm:$0xff] }
 0x4a8   : > { %v1093_v41 = vmul.f32 %v1747_v46, %v1079_v14 }
 0x4a9   : > { %v1029_v8 = vadd.f32 %v1027_v5, %v1004_v6  ;;  %v1041_v60 = vpop.permute.xlu1 %1040 }
 0x4aa   : > { %v1043_v10 = vsel %vm1042_vm8, %v1039_v17, %v1041_v60  ;;  %v1046_v11 = vsel %vm1042_vm8, %v1041_v60, 0.0  ;;  %v1083_v30 = vpop.permute.xlu0 %1082 }
 0x4ab   : > { %v1037_v12 = vadd.f32 %v1035_v7, %v1029_v8  ;;  %v1059_v43 = vmul.f32 %v1745_v21, %v1043_v10  ;;  %v1060_v13 = vmul.f32 %v1745_v21, %v1046_v11  ;;  %v1087_v58 = vsel %vm1075_vm9, %v1083_v30, 0.0  ;;  %v1123_v11 = vld [vmem:[%s430_s8 + $0x38] sm:$0xff] }
 0x4ac   : > { %v1101_v48 = vmul.f32 %v1766_v33, %v1087_v58 }
 0x4ad   : > { %v1061_v35 = vadd.f32 %v1059_v43, %v1036_v37  ;;  %v1062_v38 = vadd.f32 %v1060_v13, %v1037_v12  ;;  %v1072_v40 = vpop.permute.xlu1 %1071 }
 0x4ae   : > { %v1076_v16 = vsel %vm1075_vm9, %v1072_v40, %v1074_v4  ;;  %v1136_v56 = vpop.permute.xlu0 %1135 }
 0x4af   : > { %v1070_v15 = vadd.f32 %v1068_v31, %v1062_v38  ;;  %v1069_v44 = vadd.f32 %v1067_v34, %v1061_v35  ;;  %v1092_v21 = vmul.f32 %v1747_v46, %v1076_v16  ;;  %v1150_v60 = vsub.f32 %v1118_v0, %v1136_v56 }
 0x4b0   : > { %v1151_v27 = vsub.f32 %v1119_v1, %v1136_v56 }
 0x4b1   : > { %v1095_v45 = vadd.f32 %v1093_v41, %v1070_v15  ;;  %v1081_v36 = vpop.permute.xlu1 %1080  ;;  %v1094_v51 = vadd.f32 %v1092_v21, %v1069_v44 }
 0x4b2   : > { %v1084_v47 = vsel %vm1075_vm9, %v1081_v36, %v1083_v30  ;;  %v1163_v2 = vpop.permute.xlu0 %1162 }
 0x4b3   : > { %v1103_v50 = vadd.f32 %v1101_v48, %v1095_v45  ;;  %v1100_v52 = vmul.f32 %v1766_v33, %v1084_v47 }
 0x4b5   : > { %v1317_v18 = vmul.f32 -1.442695, %v1103_v50  ;;  %v1102_v53 = vadd.f32 %v1100_v52, %v1094_v51 }
 0x4b6   : > { %v1173_v19 = vpop.permute.xlu0 %1172 }
 0x4b7   : > { %1412 = vpow2.f32 %v1317_v18  ;;  %v1316_v54 = vmul.f32 -1.442695, %v1102_v53 }
 0x4b9   : > { %1414 = vpow2.f32 %v1316_v54 }
 0x4c1   : > { %v1413_v55 = vpop.eup %1412 }
 0x4c2   : > { %v1111_v46 = vadd.f32 1.0, %v1413_v55  ;;  %v1131_v49 = vpop.permute.xlu1 %1130 }
 0x4c3   : > { %v1415_v39 = vpop.eup %1414  ;;  %v1148_v17 = vsub.f32 %v1116_v61, %v1131_v49  ;;  %v1149_v4 = vsub.f32 %v1117_v62, %v1131_v49 }
 0x4c4   : > { %1416 = vrcp.f32 %v1111_v46  ;;  %v1110_v57 = vadd.f32 1.0, %v1415_v39 }
 0x4c5   : > { %v1180_v10 = vmul.f32 %v1163_v2, %v1148_v17  ;;  %v1181_v12 = vmul.f32 %v1163_v2, %v1149_v4 }
 0x4c6   : > { %1418 = vrcp.f32 %v1110_v57  ;;  %v1141_v33 = vpop.permute.xlu1 %1140 }
 0x4c7   : > { %v1152_v6 = vsub.f32 %v1120_v22, %v1141_v33  ;;  %v1153_v5 = vsub.f32 %v1121_v59, %v1141_v33 }
 0x4c9   : > { %v1184_v43 = vmul.f32 %v1173_v19, %v1152_v6  ;;  %v1185_v13 = vmul.f32 %v1173_v19, %v1153_v5 }
 0x4ca   : > { %v1146_v63 = vpop.permute.xlu1 %1145 }
 0x4cb   : > { %v1154_v30 = vsub.f32 %v1122_v3, %v1146_v63  ;;  %v1155_v38 = vsub.f32 %v1123_v11, %v1146_v63 }
 0x4ce   : > { %v1417_v7 = vpop.eup %1416  ;;  %v1168_v8 = vpop.permute.xlu1 %1167 }
 0x4cf   : > { %v1195_v9 = vrot.slane %v1417_v7, %v1754_v42  ;;  %v1182_v40 = vmul.f32 %v1168_v8, %v1150_v60  ;;  %v1183_v58 = vmul.f32 %v1168_v8, %v1151_v27 }
 0x4d0   : > { %v1419_v37 = vpop.eup %1418 }
 0x4d1   : > { %v1191_v14 = vrot.slane %v1419_v37, %v1754_v42  ;;  %v1197_v34 = vmul.f32 %v1195_v9, %v1645_v26  ;;  %v1201_v31 = vmul.f32 %v1195_v9, %v1659_v32  ;;  %v1199_v35 = vmul.f32 %v1195_v9, %v1642_v25 }
 0x4d2   : > { %v1178_v16 = vpop.permute.xlu1 %1177  ;;  %v1203_v41 = vmul.f32 %v1195_v9, %v1651_v29 }
 0x4d3   : > { %v1196_v15 = vmul.f32 %v1191_v14, %v1639_v24  ;;  %v1205_v44 = vadd.f32 %v1197_v34, %v1181_v12  ;;  %v1200_v21 = vmul.f32 %v1191_v14, %v1656_v20  ;;  %v1209_v45 = vadd.f32 %v1201_v31, %v1185_v13 }
 0x4d4   : > { %v1198_v26 = vmul.f32 %v1191_v14, %v1636_v23  ;;  %v1207_v25 = vadd.f32 %v1199_v35, %v1183_v58  ;;  %v1186_v32 = vmul.f32 %v1178_v16, %v1154_v30  ;;  %v1187_v42 = vmul.f32 %v1178_v16, %v1155_v38 }
 0x4d5   : > { %v1204_v48 = vadd.f32 %v1196_v15, %v1180_v10  ;;  %v1213_v36 = vmax.f32 %v1205_v44, 0.0  ;;  %v1208_v47 = vadd.f32 %v1200_v21, %v1184_v43  ;;  %v1217_v29 = vmax.f32 %v1209_v45, 0.0 }
 0x4d6   : > { %v1206_v50 = vadd.f32 %v1198_v26, %v1182_v40  ;;  %v1215_v24 = vmax.f32 %v1207_v25, 0.0  ;;  %v1202_v51 = vmul.f32 %v1191_v14, %v1648_v28  ;;  %v1211_v20 = vadd.f32 %v1203_v41, %v1187_v42 }
 0x4d7   : > { %v1212_v52 = vmax.f32 %v1204_v48, 0.0  ;;  %1221 = vst [vmem:[%s435_s29 + $0x8] sm:$0xff] %v1213_v36  ;;  %v1216_v18 = vmax.f32 %v1208_v47, 0.0  ;;  %1225 = vst [vmem:[%s435_s29 + $0x28] sm:$0xff] %v1217_v29 }
 0x4d8   : > { %v1214_v53 = vmax.f32 %v1206_v50, 0.0  ;;  %1223 = vst [vmem:[%s435_s29 + $0x18] sm:$0xff] %v1215_v24  ;;  %v1210_v54 = vadd.f32 %v1202_v51, %v1186_v32  ;;  %v1219_v23 = vmax.f32 %v1211_v20, 0.0 }
 0x4d9   : > { %1220 = vst [vmem:[%s435_s29] sm:$0xff] %v1212_v52  ;;  %1224 = vst [vmem:[%s435_s29 + $0x20] sm:$0xff] %v1216_v18 }
 0x4da   : > { %1222 = vst [vmem:[%s435_s29 + $0x10] sm:$0xff] %v1214_v53  ;;  %v1218_v55 = vmax.f32 %v1210_v54, 0.0  ;;  %1227 = vst [vmem:[%s435_s29 + $0x38] sm:$0xff] %v1219_v23 }
 0x4dc   : > { %1226 = vst [vmem:[%s435_s29 + $0x30] sm:$0xff] %v1218_v55 }
 0x4dd PF: > { %s24_s23 = sadd.s32 1, %s1426_s23  }
 0x4de   : > { %p21_p4 = scmp.ge.s32.totalorder %s24_s23, 4  }
 0x4e0   :  { %23 = sbr.rel (!%p21_p4) target bundleno = 3 (0x3), region = 101 }

</bundles_post_ra>
